<compile_context>
chip_gen: v6e
topology: v6e:2x2x1
jax: 0.10.0
libtpu: 0.0.40
codegen_flags: <defaults>
</compile_context>

<pallas_src>
import functools

import jax
import jax.numpy as jnp
from jax.experimental import pallas as pl
from jax.experimental.pallas import tpu as pltpu

_EPS = 1e-5                      # PyTorch InstanceNorm2d default eps
_MATMUL_DTYPE = jnp.bfloat16     # MXU operand dtype (accumulation is f32)
_COL0 = 16                       # aligned column where the padded interior starts


def _padded_scratch_width(W):
    """Scratch columns: [.. unused .. | left pad | interior (W) | right pad]."""
    need = _COL0 + W + 1
    return ((need + 7) // 8) * 8


def _reflect_pad_into(pad_ref, x):
    """Write ReflectionPad2d(1) of x (H, W, C) into pad_ref (H+2, WP, C).

    The interior is placed at rows 1..H, columns _COL0.._COL0+W-1 so the large
    interior store is sublane-aligned (unmasked).  pad_ref is in _MATMUL_DTYPE;
    x must already be cast to that dtype (done once by the caller).
    """
    H, W, _ = x.shape
    c0 = _COL0
    pad_ref[1:H + 1, c0:c0 + W, :] = x                           # interior (aligned)
    pad_ref[0:1, c0:c0 + W, :] = x[1:2]                          # top    = row 1
    pad_ref[H + 1:H + 2, c0:c0 + W, :] = x[H - 2:H - 1]          # bottom = row H-2
    # Columns last so the corners are reflected correctly for free.
    pad_ref[:, c0 - 1:c0, :] = pad_ref[:, c0 + 1:c0 + 2, :]      # left   = col 1
    pad_ref[:, c0 + W:c0 + W + 1, :] = pad_ref[:, c0 + W - 2:c0 + W - 1, :]  # right = col W-2


def _conv3x3_instnorm(pad_ref, w_ref, *, H, W, eps, relu):
    """3x3 conv (stride 1, no bias) + InstanceNorm2d(affine=False) [+ ReLU].

    pad_ref : (H+2, WP, Cin) _MATMUL_DTYPE scratch holding the reflect-padded
              input (interior at columns _COL0.._COL0+W-1).
    w_ref   : (9, Cin, Cout) weights in _MATMUL_DTYPE, tap index t = dy*3 + dx.
    returns : (H, W, Cout) float32
    """
    cout = w_ref.shape[2]
    acc = jnp.zeros((H, W, cout), dtype=jnp.float32)

    # dx (sublane axis) is the OUTER loop: one W-shifted copy of the padded
    # image per dx; the three dy taps are leading(row)-dim slices of that copy
    # (free offsets).  3 shifted copies per conv instead of 9.
    for dx in range(3):
        col = _COL0 - 1 + dx
        shifted = pad_ref[:, col:col + W, :]            # (H+2, W, Cin) bf16
        for dy in range(3):
            acc = acc + jnp.dot(shifted[dy:dy + H], w_ref[dy * 3 + dx],
                                preferred_element_type=jnp.float32)

    # InstanceNorm2d (biased variance), two-pass form: `centered` is reused by
    # the normalize, so this costs no more than E[x^2]-E[x]^2 and avoids its
    # cancellation problem.
    mean = jnp.mean(acc, axis=(0, 1), keepdims=True)
    centered = acc - mean
    var = jnp.mean(centered * centered, axis=(0, 1), keepdims=True)
    y = centered * jax.lax.rsqrt(var + eps)
    return jnp.maximum(y, 0.0) if relu else y


def _resnet_block_kernel(x_ref, w1_ref, w2_ref, out_ref, pad_ref, *, H, W, eps):
    """Fused ResnetBlock forward for one batch element (NHWC layout)."""
    # Block 1: reflect-pad -> conv3x3 -> InstanceNorm -> ReLU
    _reflect_pad_into(pad_ref, x_ref[0].astype(_MATMUL_DTYPE))
    h = _conv3x3_instnorm(pad_ref, w1_ref, H=H, W=W, eps=eps, relu=True)

    # Block 2: reflect-pad -> conv3x3 -> InstanceNorm  (scratch reused)
    _reflect_pad_into(pad_ref, h.astype(_MATMUL_DTYPE))
    y = _conv3x3_instnorm(pad_ref, w2_ref, H=H, W=W, eps=eps, relu=False)

    # Residual add.  Re-read the input block (still resident in VMEM via its
    # BlockSpec) instead of keeping an f32 copy live across both conv blocks.
    out_ref[0] = (y + x_ref[0].astype(jnp.float32)).astype(out_ref.dtype)


def _torch_w_to_taps(w_torch):
    """(Cout, Cin, 3, 3) -> (9, Cin, Cout), tap index t = dy*3 + dx."""
    cout, cin = w_torch.shape[0], w_torch.shape[1]
    return jnp.transpose(w_torch, (2, 3, 1, 0)).reshape(9, cin, cout)


def _vmem_capacity_bytes():
    """Physical VMEM per TensorCore; conservative fallback if query fails."""
    try:
        return int(pltpu.get_tpu_info().vmem_capacity_bytes)
    except Exception:
        return 64 * 1024 * 1024      # v7x per-core capacity (the smallest)


def _vmem_limit_bytes(H, W, C, act_itemsize):
    """Only raise the scoped-VMEM limit when whole-image blocks need it."""
    blk = H * W * C * act_itemsize                                   # activation block
    pad = (H + 2) * _padded_scratch_width(W) * C * jnp.dtype(_MATMUL_DTYPE).itemsize
    wts = 2 * 9 * C * C * jnp.dtype(_MATMUL_DTYPE).itemsize          # both weight sets
    acc = H * W * C * 4                                              # f32 temporaries
    est = 2 * 2 * blk + pad + 2 * wts + 4 * acc                      # dbl-buffered IO + temps
    if est <= 16 * 1024 * 1024:
        return None                                                  # default limit is fine
    # Never request more than ~85% of physical VMEM (v7x: 64 MiB per core).
    # TODO(synk): row-tile the grid when even the capped limit is insufficient.
    return min(int(est * 3 // 2), int(_vmem_capacity_bytes() * 0.85))


@jax.jit
def resnet_block_nhwc(x_nhwc, w1_torch, w2_torch):
    """ResnetBlock forward on NHWC activations (transpose-free hot path)."""
    B, H, W, C = x_nhwc.shape
    if H < 2 or W < 2:
        raise ValueError(f"ReflectionPad2d(1) needs H >= 2 and W >= 2; got H={H}, W={W}")
    w1 = _torch_w_to_taps(w1_torch).astype(_MATMUL_DTYPE)
    w2 = _torch_w_to_taps(w2_torch).astype(_MATMUL_DTYPE)

    kernel = functools.partial(_resnet_block_kernel, H=H, W=W, eps=_EPS)
    flops = 2 * 2 * 9 * C * C * H * W * B                   # two 3x3 convs
    bytes_accessed = (2 * x_nhwc.size * x_nhwc.dtype.itemsize
                      + (w1.size + w2.size) * jnp.dtype(_MATMUL_DTYPE).itemsize)

    return pl.pallas_call(
        kernel,
        out_shape=jax.ShapeDtypeStruct((B, H, W, C), x_nhwc.dtype),
        grid=(B,),
        in_specs=[
            pl.BlockSpec((1, H, W, C), lambda b: (b, 0, 0, 0)),
            # Weight blocks are grid-invariant, so they are only DMA'd once.
            pl.BlockSpec((9, C, C), lambda b: (0, 0, 0)),
            pl.BlockSpec((9, C, C), lambda b: (0, 0, 0)),
        ],
        out_specs=pl.BlockSpec((1, H, W, C), lambda b: (b, 0, 0, 0)),
        scratch_shapes=[
            pltpu.VMEM((H + 2, _padded_scratch_width(W), C), _MATMUL_DTYPE)],
        compiler_params=pltpu.CompilerParams(
            dimension_semantics=("parallel",),
            vmem_limit_bytes=_vmem_limit_bytes(H, W, C, x_nhwc.dtype.itemsize)),
        cost_estimate=pl.CostEstimate(
            flops=flops, transcendentals=2 * B * C,
            bytes_accessed=bytes_accessed),
    )(x_nhwc, w1, w2)


@jax.jit
def resnet_block(x_nchw, w1_torch, w2_torch):
    """PyTorch-layout (NCHW) entry point matching the nn.Module interface.

    The two transposes are a one-time layout adapter; in a real pipeline keep
    activations NHWC end-to-end and call resnet_block_nhwc directly.
    """
    x = jnp.transpose(x_nchw, (0, 2, 3, 1))                  # NCHW -> NHWC
    y = resnet_block_nhwc(x, w1_torch, w2_torch)
    return jnp.transpose(y, (0, 3, 1, 2))                    # NHWC -> NCHW


# ---------------------------- pure-JAX reference ----------------------------
def _ref_conv_block(x_nhwc, w9, relu):
    B, H, W, _ = x_nhwc.shape
    xp = jnp.pad(x_nhwc, ((0, 0), (1, 1), (1, 1), (0, 0)), mode="reflect")
    xp = xp.astype(_MATMUL_DTYPE)
    acc = jnp.zeros((B, H, W, w9.shape[2]), jnp.float32)
    for dy in range(3):
        for dx in range(3):
            acc = acc + jnp.einsum(
                "bhwc,co->bhwo",
                xp[:, dy:dy + H, dx:dx + W, :], w9[dy * 3 + dx],
                preferred_element_type=jnp.float32)
    mean = jnp.mean(acc, axis=(1, 2), keepdims=True)
    centered = acc - mean
    var = jnp.mean(centered * centered, axis=(1, 2), keepdims=True)
    y = centered * jax.lax.rsqrt(var + _EPS)
    return jnp.maximum(y, 0.0) if relu else y


def _ref_resnet_block(x_nchw, w1_torch, w2_torch):
    x = jnp.transpose(x_nchw, (0, 2, 3, 1)).astype(jnp.float32)
    w1 = _torch_w_to_taps(w1_torch).astype(_MATMUL_DTYPE)
    w2 = _torch_w_to_taps(w2_torch).astype(_MATMUL_DTYPE)
    h = _ref_conv_block(x, w1, True)
    y = _ref_conv_block(h, w2, False) + x
    return jnp.transpose(y, (0, 3, 1, 2))


if __name__ == "__main__":
    def _run_case(B, C, H, W, case_key):
        kx, k1, k2 = jax.random.split(case_key, 3)
        x = jax.random.normal(kx, (B, C, H, W), dtype=jnp.float32)
        # Deterministic synthetic conv weights, PyTorch layout (Cout, Cin, 3, 3).
        w1 = jax.random.normal(k1, (C, C, 3, 3), dtype=jnp.float32) * 0.2
        w2 = jax.random.normal(k2, (C, C, 3, 3), dtype=jnp.float32) * 0.2

        out = jax.block_until_ready(resnet_block(x, w1, w2))
        ref = _ref_resnet_block(x, w1, w2)
        assert out.shape == (B, C, H, W)
        max_err = jnp.max(jnp.abs(out - ref))
        assert jnp.allclose(out, ref, atol=1e-2, rtol=1e-2), (
            f"mismatch vs reference at shape {(B, C, H, W)}, max abs err = {max_err}")

    key = jax.random.PRNGKey(0)
    k_toy, k_dense = jax.random.split(key)
    _run_case(2, 4, 16, 16, k_toy)       # toy shape (masked-lane path, C=4)
    _run_case(1, 128, 20, 24, k_dense)   # lane-dense path (C=128), B=1

    print("KERNEL_OK")
</pallas_src>

<mosaic_0001>
module attributes {stable_mosaic.version = 11 : i64} {
  func.func @_resnet_block_kernel(%arg0: i32, %arg1: memref<1x16x16x4xf32, #tpu.memory_space<vmem>>, %arg2: memref<9x4x4xbf16, #tpu.memory_space<vmem>>, %arg3: memref<9x4x4xbf16, #tpu.memory_space<vmem>>, %arg4: memref<1x16x16x4xf32, #tpu.memory_space<vmem>>, %arg5: memref<18x40x4xbf16, #tpu.memory_space<vmem>>) attributes {dimension_semantics = [#tpu.dimension_semantics<parallel>], iteration_bounds = array<i64: 2>, scalar_prefetch = 0 : i64, scratch_operands = 1 : i64, tpu.core_type = #tpu.core_type<tc>, window_params = [{transform_indices = @transform_0, window_bounds = array<i64: 1, 16, 16, 4>}, {pipeline_mode = #tpu.pipeline_mode<synchronous>, transform_indices = @transform_1, window_bounds = array<i64: 9, 4, 4>}, {pipeline_mode = #tpu.pipeline_mode<synchronous>, transform_indices = @transform_2, window_bounds = array<i64: 9, 4, 4>}, {transform_indices = @transform_3, window_bounds = array<i64: 1, 16, 16, 4>}]} {
    %c0 = arith.constant 0 : index
    %c0_0 = arith.constant 0 : index
    %c0_1 = arith.constant 0 : index
    %c0_2 = arith.constant 0 : index
    %0 = vector.load %arg1[%c0, %c0_0, %c0_1, %c0_2] : memref<1x16x16x4xf32, #tpu.memory_space<vmem>>, vector<1x16x16x4xf32>
    %1 = vector.shape_cast %0 : vector<1x16x16x4xf32> to vector<16x16x4xf32>
    %2 = arith.truncf %1 : vector<16x16x4xf32> to vector<16x16x4xbf16>
    %c1 = arith.constant 1 : index
    %c16 = arith.constant 16 : index
    %c0_3 = arith.constant 0 : index
    %3 = vector.load %arg5[%c1, %c16, %c0_3] : memref<18x40x4xbf16, #tpu.memory_space<vmem>>, vector<16x16x4xbf16>
    tpu.vector_store %arg5[%c1, %c16, %c0_3], %2 {strides = array<i32>} : memref<18x40x4xbf16, #tpu.memory_space<vmem>>, vector<16x16x4xbf16>,
    %4 = vector.extract_strided_slice %2 {offsets = [1, 0, 0], sizes = [1, 16, 4], strides = [1, 1, 1]} : vector<16x16x4xbf16> to vector<1x16x4xbf16>
    %c0_4 = arith.constant 0 : index
    %c16_5 = arith.constant 16 : index
    %c0_6 = arith.constant 0 : index
    %5 = vector.load %arg5[%c0_4, %c16_5, %c0_6] : memref<18x40x4xbf16, #tpu.memory_space<vmem>>, vector<1x16x4xbf16>
    tpu.vector_store %arg5[%c0_4, %c16_5, %c0_6], %4 {strides = array<i32>} : memref<18x40x4xbf16, #tpu.memory_space<vmem>>, vector<1x16x4xbf16>,
    %6 = vector.extract_strided_slice %2 {offsets = [14, 0, 0], sizes = [1, 16, 4], strides = [1, 1, 1]} : vector<16x16x4xbf16> to vector<1x16x4xbf16>
    %c17 = arith.constant 17 : index
    %c16_7 = arith.constant 16 : index
    %c0_8 = arith.constant 0 : index
    %7 = vector.load %arg5[%c17, %c16_7, %c0_8] : memref<18x40x4xbf16, #tpu.memory_space<vmem>>, vector<1x16x4xbf16>
    tpu.vector_store %arg5[%c17, %c16_7, %c0_8], %6 {strides = array<i32>} : memref<18x40x4xbf16, #tpu.memory_space<vmem>>, vector<1x16x4xbf16>,
    %c0_9 = arith.constant 0 : index
    %c17_10 = arith.constant 17 : index
    %c0_11 = arith.constant 0 : index
    %8 = vector.load %arg5[%c0_9, %c17_10, %c0_11] : memref<18x40x4xbf16, #tpu.memory_space<vmem>>, vector<18x1x4xbf16>
    %c0_12 = arith.constant 0 : index
    %c15 = arith.constant 15 : index
    %c0_13 = arith.constant 0 : index
    %9 = vector.load %arg5[%c0_12, %c15, %c0_13] : memref<18x40x4xbf16, #tpu.memory_space<vmem>>, vector<18x1x4xbf16>
    tpu.vector_store %arg5[%c0_12, %c15, %c0_13], %8 {strides = array<i32>} : memref<18x40x4xbf16, #tpu.memory_space<vmem>>, vector<18x1x4xbf16>,
    %c0_14 = arith.constant 0 : index
    %c30 = arith.constant 30 : index
    %c0_15 = arith.constant 0 : index
    %10 = vector.load %arg5[%c0_14, %c30, %c0_15] : memref<18x40x4xbf16, #tpu.memory_space<vmem>>, vector<18x1x4xbf16>
    %c0_16 = arith.constant 0 : index
    %c32 = arith.constant 32 : index
    %c0_17 = arith.constant 0 : index
    %11 = vector.load %arg5[%c0_16, %c32, %c0_17] : memref<18x40x4xbf16, #tpu.memory_space<vmem>>, vector<18x1x4xbf16>
    tpu.vector_store %arg5[%c0_16, %c32, %c0_17], %10 {strides = array<i32>} : memref<18x40x4xbf16, #tpu.memory_space<vmem>>, vector<18x1x4xbf16>,
    %cst = arith.constant 0.000000e+00 : f32
    %12 = vector.broadcast %cst : f32 to vector<16x16x4xf32>
    %c0_18 = arith.constant 0 : index
    %c15_19 = arith.constant 15 : index
    %c0_20 = arith.constant 0 : index
    %13 = vector.load %arg5[%c0_18, %c15_19, %c0_20] : memref<18x40x4xbf16, #tpu.memory_space<vmem>>, vector<18x16x4xbf16>
    %14 = vector.extract_strided_slice %13 {offsets = [0, 0, 0], sizes = [16, 16, 4], strides = [1, 1, 1]} : vector<18x16x4xbf16> to vector<16x16x4xbf16>
    %c0_21 = arith.constant 0 : index
    %c0_22 = arith.constant 0 : index
    %c0_23 = arith.constant 0 : index
    %15 = vector.load %arg2[%c0_21, %c0_22, %c0_23] : memref<9x4x4xbf16, #tpu.memory_space<vmem>>, vector<1x4x4xbf16>
    %16 = vector.shape_cast %15 : vector<1x4x4xbf16> to vector<4x4xbf16>
    %cst_24 = arith.constant dense<0.000000e+00> : vector<16x16x4xf32>
    %17 = tpu.matmul %14, %16, %cst_24 {dimension_numbers = #tpu.dot_dimension_numbers<[2], [0], [0, 1], [1], [0, 0, 0, 1, 1, 1], [], []>} : vector<16x16x4xbf16>, vector<4x4xbf16>, vector<16x16x4xf32> -> vector<16x16x4xf32>
    %18 = arith.addf %12, %17 : vector<16x16x4xf32>
    %19 = vector.extract_strided_slice %13 {offsets = [1, 0, 0], sizes = [16, 16, 4], strides = [1, 1, 1]} : vector<18x16x4xbf16> to vector<16x16x4xbf16>
    %c3 = arith.constant 3 : index
    %c0_25 = arith.constant 0 : index
    %c0_26 = arith.constant 0 : index
    %20 = vector.load %arg2[%c3, %c0_25, %c0_26] : memref<9x4x4xbf16, #tpu.memory_space<vmem>>, vector<1x4x4xbf16>
    %21 = vector.shape_cast %20 : vector<1x4x4xbf16> to vector<4x4xbf16>
    %cst_27 = arith.constant dense<0.000000e+00> : vector<16x16x4xf32>
    %22 = tpu.matmul %19, %21, %cst_27 {dimension_numbers = #tpu.dot_dimension_numbers<[2], [0], [0, 1], [1], [0, 0, 0, 1, 1, 1], [], []>} : vector<16x16x4xbf16>, vector<4x4xbf16>, vector<16x16x4xf32> -> vector<16x16x4xf32>
    %23 = arith.addf %18, %22 : vector<16x16x4xf32>
    %24 = vector.extract_strided_slice %13 {offsets = [2, 0, 0], sizes = [16, 16, 4], strides = [1, 1, 1]} : vector<18x16x4xbf16> to vector<16x16x4xbf16>
    %c6 = arith.constant 6 : index
    %c0_28 = arith.constant 0 : index
    %c0_29 = arith.constant 0 : index
    %25 = vector.load %arg2[%c6, %c0_28, %c0_29] : memref<9x4x4xbf16, #tpu.memory_space<vmem>>, vector<1x4x4xbf16>
    %26 = vector.shape_cast %25 : vector<1x4x4xbf16> to vector<4x4xbf16>
    %cst_30 = arith.constant dense<0.000000e+00> : vector<16x16x4xf32>
    %27 = tpu.matmul %24, %26, %cst_30 {dimension_numbers = #tpu.dot_dimension_numbers<[2], [0], [0, 1], [1], [0, 0, 0, 1, 1, 1], [], []>} : vector<16x16x4xbf16>, vector<4x4xbf16>, vector<16x16x4xf32> -> vector<16x16x4xf32>
    %28 = arith.addf %23, %27 : vector<16x16x4xf32>
    %c0_31 = arith.constant 0 : index
    %c16_32 = arith.constant 16 : index
    %c0_33 = arith.constant 0 : index
    %29 = vector.load %arg5[%c0_31, %c16_32, %c0_33] : memref<18x40x4xbf16, #tpu.memory_space<vmem>>, vector<18x16x4xbf16>
    %30 = vector.extract_strided_slice %29 {offsets = [0, 0, 0], sizes = [16, 16, 4], strides = [1, 1, 1]} : vector<18x16x4xbf16> to vector<16x16x4xbf16>
    %c1_34 = arith.constant 1 : index
    %c0_35 = arith.constant 0 : index
    %c0_36 = arith.constant 0 : index
    %31 = vector.load %arg2[%c1_34, %c0_35, %c0_36] : memref<9x4x4xbf16, #tpu.memory_space<vmem>>, vector<1x4x4xbf16>
    %32 = vector.shape_cast %31 : vector<1x4x4xbf16> to vector<4x4xbf16>
    %cst_37 = arith.constant dense<0.000000e+00> : vector<16x16x4xf32>
    %33 = tpu.matmul %30, %32, %cst_37 {dimension_numbers = #tpu.dot_dimension_numbers<[2], [0], [0, 1], [1], [0, 0, 0, 1, 1, 1], [], []>} : vector<16x16x4xbf16>, vector<4x4xbf16>, vector<16x16x4xf32> -> vector<16x16x4xf32>
    %34 = arith.addf %28, %33 : vector<16x16x4xf32>
    %35 = vector.extract_strided_slice %29 {offsets = [1, 0, 0], sizes = [16, 16, 4], strides = [1, 1, 1]} : vector<18x16x4xbf16> to vector<16x16x4xbf16>
    %c4 = arith.constant 4 : index
    %c0_38 = arith.constant 0 : index
    %c0_39 = arith.constant 0 : index
    %36 = vector.load %arg2[%c4, %c0_38, %c0_39] : memref<9x4x4xbf16, #tpu.memory_space<vmem>>, vector<1x4x4xbf16>
    %37 = vector.shape_cast %36 : vector<1x4x4xbf16> to vector<4x4xbf16>
    %cst_40 = arith.constant dense<0.000000e+00> : vector<16x16x4xf32>
    %38 = tpu.matmul %35, %37, %cst_40 {dimension_numbers = #tpu.dot_dimension_numbers<[2], [0], [0, 1], [1], [0, 0, 0, 1, 1, 1], [], []>} : vector<16x16x4xbf16>, vector<4x4xbf16>, vector<16x16x4xf32> -> vector<16x16x4xf32>
    %39 = arith.addf %34, %38 : vector<16x16x4xf32>
    %40 = vector.extract_strided_slice %29 {offsets = [2, 0, 0], sizes = [16, 16, 4], strides = [1, 1, 1]} : vector<18x16x4xbf16> to vector<16x16x4xbf16>
    %c7 = arith.constant 7 : index
    %c0_41 = arith.constant 0 : index
    %c0_42 = arith.constant 0 : index
    %41 = vector.load %arg2[%c7, %c0_41, %c0_42] : memref<9x4x4xbf16, #tpu.memory_space<vmem>>, vector<1x4x4xbf16>
    %42 = vector.shape_cast %41 : vector<1x4x4xbf16> to vector<4x4xbf16>
    %cst_43 = arith.constant dense<0.000000e+00> : vector<16x16x4xf32>
    %43 = tpu.matmul %40, %42, %cst_43 {dimension_numbers = #tpu.dot_dimension_numbers<[2], [0], [0, 1], [1], [0, 0, 0, 1, 1, 1], [], []>} : vector<16x16x4xbf16>, vector<4x4xbf16>, vector<16x16x4xf32> -> vector<16x16x4xf32>
    %44 = arith.addf %39, %43 : vector<16x16x4xf32>
    %c0_44 = arith.constant 0 : index
    %c17_45 = arith.constant 17 : index
    %c0_46 = arith.constant 0 : index
    %45 = vector.load %arg5[%c0_44, %c17_45, %c0_46] : memref<18x40x4xbf16, #tpu.memory_space<vmem>>, vector<18x16x4xbf16>
    %46 = vector.extract_strided_slice %45 {offsets = [0, 0, 0], sizes = [16, 16, 4], strides = [1, 1, 1]} : vector<18x16x4xbf16> to vector<16x16x4xbf16>
    %c2 = arith.constant 2 : index
    %c0_47 = arith.constant 0 : index
    %c0_48 = arith.constant 0 : index
    %47 = vector.load %arg2[%c2, %c0_47, %c0_48] : memref<9x4x4xbf16, #tpu.memory_space<vmem>>, vector<1x4x4xbf16>
    %48 = vector.shape_cast %47 : vector<1x4x4xbf16> to vector<4x4xbf16>
    %cst_49 = arith.constant dense<0.000000e+00> : vector<16x16x4xf32>
    %49 = tpu.matmul %46, %48, %cst_49 {dimension_numbers = #tpu.dot_dimension_numbers<[2], [0], [0, 1], [1], [0, 0, 0, 1, 1, 1], [], []>} : vector<16x16x4xbf16>, vector<4x4xbf16>, vector<16x16x4xf32> -> vector<16x16x4xf32>
    %50 = arith.addf %44, %49 : vector<16x16x4xf32>
    %51 = vector.extract_strided_slice %45 {offsets = [1, 0, 0], sizes = [16, 16, 4], strides = [1, 1, 1]} : vector<18x16x4xbf16> to vector<16x16x4xbf16>
    %c5 = arith.constant 5 : index
    %c0_50 = arith.constant 0 : index
    %c0_51 = arith.constant 0 : index
    %52 = vector.load %arg2[%c5, %c0_50, %c0_51] : memref<9x4x4xbf16, #tpu.memory_space<vmem>>, vector<1x4x4xbf16>
    %53 = vector.shape_cast %52 : vector<1x4x4xbf16> to vector<4x4xbf16>
    %cst_52 = arith.constant dense<0.000000e+00> : vector<16x16x4xf32>
    %54 = tpu.matmul %51, %53, %cst_52 {dimension_numbers = #tpu.dot_dimension_numbers<[2], [0], [0, 1], [1], [0, 0, 0, 1, 1, 1], [], []>} : vector<16x16x4xbf16>, vector<4x4xbf16>, vector<16x16x4xf32> -> vector<16x16x4xf32>
    %55 = arith.addf %50, %54 : vector<16x16x4xf32>
    %56 = vector.extract_strided_slice %45 {offsets = [2, 0, 0], sizes = [16, 16, 4], strides = [1, 1, 1]} : vector<18x16x4xbf16> to vector<16x16x4xbf16>
    %c8 = arith.constant 8 : index
    %c0_53 = arith.constant 0 : index
    %c0_54 = arith.constant 0 : index
    %57 = vector.load %arg2[%c8, %c0_53, %c0_54] : memref<9x4x4xbf16, #tpu.memory_space<vmem>>, vector<1x4x4xbf16>
    %58 = vector.shape_cast %57 : vector<1x4x4xbf16> to vector<4x4xbf16>
    %cst_55 = arith.constant dense<0.000000e+00> : vector<16x16x4xf32>
    %59 = tpu.matmul %56, %58, %cst_55 {dimension_numbers = #tpu.dot_dimension_numbers<[2], [0], [0, 1], [1], [0, 0, 0, 1, 1, 1], [], []>} : vector<16x16x4xbf16>, vector<4x4xbf16>, vector<16x16x4xf32> -> vector<16x16x4xf32>
    %60 = arith.addf %55, %59 : vector<16x16x4xf32>
    %cst_56 = arith.constant dense<0.000000e+00> : vector<4xf32>
    %61 = vector.multi_reduction <add>, %60, %cst_56 [0, 1] : vector<16x16x4xf32> to vector<4xf32>
    %62 = vector.shape_cast %61 : vector<4xf32> to vector<1x1x4xf32>
    %cst_57 = arith.constant 2.560000e+02 : f32
    %63 = vector.broadcast %cst_57 : f32 to vector<1x1x4xf32>
    %64 = arith.divf %62, %63 : vector<1x1x4xf32>
    %65 = vector.broadcast %64 : vector<1x1x4xf32> to vector<16x16x4xf32>
    %66 = arith.subf %60, %65 : vector<16x16x4xf32>
    %67 = arith.mulf %66, %66 : vector<16x16x4xf32>
    %cst_58 = arith.constant dense<0.000000e+00> : vector<4xf32>
    %68 = vector.multi_reduction <add>, %67, %cst_58 [0, 1] : vector<16x16x4xf32> to vector<4xf32>
    %69 = vector.shape_cast %68 : vector<4xf32> to vector<1x1x4xf32>
    %cst_59 = arith.constant 2.560000e+02 : f32
    %70 = vector.broadcast %cst_59 : f32 to vector<1x1x4xf32>
    %71 = arith.divf %69, %70 : vector<1x1x4xf32>
    %cst_60 = arith.constant 9.99999974E-6 : f32
    %72 = vector.broadcast %cst_60 : f32 to vector<1x1x4xf32>
    %73 = arith.addf %71, %72 : vector<1x1x4xf32>
    %74 = math.rsqrt %73 : vector<1x1x4xf32>
    %75 = vector.broadcast %74 : vector<1x1x4xf32> to vector<16x16x4xf32>
    %76 = arith.mulf %66, %75 : vector<16x16x4xf32>
    %cst_61 = arith.constant 0.000000e+00 : f32
    %77 = vector.broadcast %cst_61 : f32 to vector<16x16x4xf32>
    %78 = arith.maximumf %76, %77 : vector<16x16x4xf32>
    %79 = arith.truncf %78 : vector<16x16x4xf32> to vector<16x16x4xbf16>
    %c1_62 = arith.constant 1 : index
    %c16_63 = arith.constant 16 : index
    %c0_64 = arith.constant 0 : index
    %80 = vector.load %arg5[%c1_62, %c16_63, %c0_64] : memref<18x40x4xbf16, #tpu.memory_space<vmem>>, vector<16x16x4xbf16>
    tpu.vector_store %arg5[%c1_62, %c16_63, %c0_64], %79 {strides = array<i32>} : memref<18x40x4xbf16, #tpu.memory_space<vmem>>, vector<16x16x4xbf16>,
    %81 = vector.extract_strided_slice %79 {offsets = [1, 0, 0], sizes = [1, 16, 4], strides = [1, 1, 1]} : vector<16x16x4xbf16> to vector<1x16x4xbf16>
    %c0_65 = arith.constant 0 : index
    %c16_66 = arith.constant 16 : index
    %c0_67 = arith.constant 0 : index
    %82 = vector.load %arg5[%c0_65, %c16_66, %c0_67] : memref<18x40x4xbf16, #tpu.memory_space<vmem>>, vector<1x16x4xbf16>
    tpu.vector_store %arg5[%c0_65, %c16_66, %c0_67], %81 {strides = array<i32>} : memref<18x40x4xbf16, #tpu.memory_space<vmem>>, vector<1x16x4xbf16>,
    %83 = vector.extract_strided_slice %79 {offsets = [14, 0, 0], sizes = [1, 16, 4], strides = [1, 1, 1]} : vector<16x16x4xbf16> to vector<1x16x4xbf16>
    %c17_68 = arith.constant 17 : index
    %c16_69 = arith.constant 16 : index
    %c0_70 = arith.constant 0 : index
    %84 = vector.load %arg5[%c17_68, %c16_69, %c0_70] : memref<18x40x4xbf16, #tpu.memory_space<vmem>>, vector<1x16x4xbf16>
    tpu.vector_store %arg5[%c17_68, %c16_69, %c0_70], %83 {strides = array<i32>} : memref<18x40x4xbf16, #tpu.memory_space<vmem>>, vector<1x16x4xbf16>,
    %c0_71 = arith.constant 0 : index
    %c17_72 = arith.constant 17 : index
    %c0_73 = arith.constant 0 : index
    %85 = vector.load %arg5[%c0_71, %c17_72, %c0_73] : memref<18x40x4xbf16, #tpu.memory_space<vmem>>, vector<18x1x4xbf16>
    %c0_74 = arith.constant 0 : index
    %c15_75 = arith.constant 15 : index
    %c0_76 = arith.constant 0 : index
    %86 = vector.load %arg5[%c0_74, %c15_75, %c0_76] : memref<18x40x4xbf16, #tpu.memory_space<vmem>>, vector<18x1x4xbf16>
    tpu.vector_store %arg5[%c0_74, %c15_75, %c0_76], %85 {strides = array<i32>} : memref<18x40x4xbf16, #tpu.memory_space<vmem>>, vector<18x1x4xbf16>,
    %c0_77 = arith.constant 0 : index
    %c30_78 = arith.constant 30 : index
    %c0_79 = arith.constant 0 : index
    %87 = vector.load %arg5[%c0_77, %c30_78, %c0_79] : memref<18x40x4xbf16, #tpu.memory_space<vmem>>, vector<18x1x4xbf16>
    %c0_80 = arith.constant 0 : index
    %c32_81 = arith.constant 32 : index
    %c0_82 = arith.constant 0 : index
    %88 = vector.load %arg5[%c0_80, %c32_81, %c0_82] : memref<18x40x4xbf16, #tpu.memory_space<vmem>>, vector<18x1x4xbf16>
    tpu.vector_store %arg5[%c0_80, %c32_81, %c0_82], %87 {strides = array<i32>} : memref<18x40x4xbf16, #tpu.memory_space<vmem>>, vector<18x1x4xbf16>,
    %cst_83 = arith.constant 0.000000e+00 : f32
    %89 = vector.broadcast %cst_83 : f32 to vector<16x16x4xf32>
    %c0_84 = arith.constant 0 : index
    %c15_85 = arith.constant 15 : index
    %c0_86 = arith.constant 0 : index
    %90 = vector.load %arg5[%c0_84, %c15_85, %c0_86] : memref<18x40x4xbf16, #tpu.memory_space<vmem>>, vector<18x16x4xbf16>
    %91 = vector.extract_strided_slice %90 {offsets = [0, 0, 0], sizes = [16, 16, 4], strides = [1, 1, 1]} : vector<18x16x4xbf16> to vector<16x16x4xbf16>
    %c0_87 = arith.constant 0 : index
    %c0_88 = arith.constant 0 : index
    %c0_89 = arith.constant 0 : index
    %92 = vector.load %arg3[%c0_87, %c0_88, %c0_89] : memref<9x4x4xbf16, #tpu.memory_space<vmem>>, vector<1x4x4xbf16>
    %93 = vector.shape_cast %92 : vector<1x4x4xbf16> to vector<4x4xbf16>
    %cst_90 = arith.constant dense<0.000000e+00> : vector<16x16x4xf32>
    %94 = tpu.matmul %91, %93, %cst_90 {dimension_numbers = #tpu.dot_dimension_numbers<[2], [0], [0, 1], [1], [0, 0, 0, 1, 1, 1], [], []>} : vector<16x16x4xbf16>, vector<4x4xbf16>, vector<16x16x4xf32> -> vector<16x16x4xf32>
    %95 = arith.addf %89, %94 : vector<16x16x4xf32>
    %96 = vector.extract_strided_slice %90 {offsets = [1, 0, 0], sizes = [16, 16, 4], strides = [1, 1, 1]} : vector<18x16x4xbf16> to vector<16x16x4xbf16>
    %c3_91 = arith.constant 3 : index
    %c0_92 = arith.constant 0 : index
    %c0_93 = arith.constant 0 : index
    %97 = vector.load %arg3[%c3_91, %c0_92, %c0_93] : memref<9x4x4xbf16, #tpu.memory_space<vmem>>, vector<1x4x4xbf16>
    %98 = vector.shape_cast %97 : vector<1x4x4xbf16> to vector<4x4xbf16>
    %cst_94 = arith.constant dense<0.000000e+00> : vector<16x16x4xf32>
    %99 = tpu.matmul %96, %98, %cst_94 {dimension_numbers = #tpu.dot_dimension_numbers<[2], [0], [0, 1], [1], [0, 0, 0, 1, 1, 1], [], []>} : vector<16x16x4xbf16>, vector<4x4xbf16>, vector<16x16x4xf32> -> vector<16x16x4xf32>
    %100 = arith.addf %95, %99 : vector<16x16x4xf32>
    %101 = vector.extract_strided_slice %90 {offsets = [2, 0, 0], sizes = [16, 16, 4], strides = [1, 1, 1]} : vector<18x16x4xbf16> to vector<16x16x4xbf16>
    %c6_95 = arith.constant 6 : index
    %c0_96 = arith.constant 0 : index
    %c0_97 = arith.constant 0 : index
    %102 = vector.load %arg3[%c6_95, %c0_96, %c0_97] : memref<9x4x4xbf16, #tpu.memory_space<vmem>>, vector<1x4x4xbf16>
    %103 = vector.shape_cast %102 : vector<1x4x4xbf16> to vector<4x4xbf16>
    %cst_98 = arith.constant dense<0.000000e+00> : vector<16x16x4xf32>
    %104 = tpu.matmul %101, %103, %cst_98 {dimension_numbers = #tpu.dot_dimension_numbers<[2], [0], [0, 1], [1], [0, 0, 0, 1, 1, 1], [], []>} : vector<16x16x4xbf16>, vector<4x4xbf16>, vector<16x16x4xf32> -> vector<16x16x4xf32>
    %105 = arith.addf %100, %104 : vector<16x16x4xf32>
    %c0_99 = arith.constant 0 : index
    %c16_100 = arith.constant 16 : index
    %c0_101 = arith.constant 0 : index
    %106 = vector.load %arg5[%c0_99, %c16_100, %c0_101] : memref<18x40x4xbf16, #tpu.memory_space<vmem>>, vector<18x16x4xbf16>
    %107 = vector.extract_strided_slice %106 {offsets = [0, 0, 0], sizes = [16, 16, 4], strides = [1, 1, 1]} : vector<18x16x4xbf16> to vector<16x16x4xbf16>
    %c1_102 = arith.constant 1 : index
    %c0_103 = arith.constant 0 : index
    %c0_104 = arith.constant 0 : index
    %108 = vector.load %arg3[%c1_102, %c0_103, %c0_104] : memref<9x4x4xbf16, #tpu.memory_space<vmem>>, vector<1x4x4xbf16>
    %109 = vector.shape_cast %108 : vector<1x4x4xbf16> to vector<4x4xbf16>
    %cst_105 = arith.constant dense<0.000000e+00> : vector<16x16x4xf32>
    %110 = tpu.matmul %107, %109, %cst_105 {dimension_numbers = #tpu.dot_dimension_numbers<[2], [0], [0, 1], [1], [0, 0, 0, 1, 1, 1], [], []>} : vector<16x16x4xbf16>, vector<4x4xbf16>, vector<16x16x4xf32> -> vector<16x16x4xf32>
    %111 = arith.addf %105, %110 : vector<16x16x4xf32>
    %112 = vector.extract_strided_slice %106 {offsets = [1, 0, 0], sizes = [16, 16, 4], strides = [1, 1, 1]} : vector<18x16x4xbf16> to vector<16x16x4xbf16>
    %c4_106 = arith.constant 4 : index
    %c0_107 = arith.constant 0 : index
    %c0_108 = arith.constant 0 : index
    %113 = vector.load %arg3[%c4_106, %c0_107, %c0_108] : memref<9x4x4xbf16, #tpu.memory_space<vmem>>, vector<1x4x4xbf16>
    %114 = vector.shape_cast %113 : vector<1x4x4xbf16> to vector<4x4xbf16>
    %cst_109 = arith.constant dense<0.000000e+00> : vector<16x16x4xf32>
    %115 = tpu.matmul %112, %114, %cst_109 {dimension_numbers = #tpu.dot_dimension_numbers<[2], [0], [0, 1], [1], [0, 0, 0, 1, 1, 1], [], []>} : vector<16x16x4xbf16>, vector<4x4xbf16>, vector<16x16x4xf32> -> vector<16x16x4xf32>
    %116 = arith.addf %111, %115 : vector<16x16x4xf32>
    %117 = vector.extract_strided_slice %106 {offsets = [2, 0, 0], sizes = [16, 16, 4], strides = [1, 1, 1]} : vector<18x16x4xbf16> to vector<16x16x4xbf16>
    %c7_110 = arith.constant 7 : index
    %c0_111 = arith.constant 0 : index
    %c0_112 = arith.constant 0 : index
    %118 = vector.load %arg3[%c7_110, %c0_111, %c0_112] : memref<9x4x4xbf16, #tpu.memory_space<vmem>>, vector<1x4x4xbf16>
    %119 = vector.shape_cast %118 : vector<1x4x4xbf16> to vector<4x4xbf16>
    %cst_113 = arith.constant dense<0.000000e+00> : vector<16x16x4xf32>
    %120 = tpu.matmul %117, %119, %cst_113 {dimension_numbers = #tpu.dot_dimension_numbers<[2], [0], [0, 1], [1], [0, 0, 0, 1, 1, 1], [], []>} : vector<16x16x4xbf16>, vector<4x4xbf16>, vector<16x16x4xf32> -> vector<16x16x4xf32>
    %121 = arith.addf %116, %120 : vector<16x16x4xf32>
    %c0_114 = arith.constant 0 : index
    %c17_115 = arith.constant 17 : index
    %c0_116 = arith.constant 0 : index
    %122 = vector.load %arg5[%c0_114, %c17_115, %c0_116] : memref<18x40x4xbf16, #tpu.memory_space<vmem>>, vector<18x16x4xbf16>
    %123 = vector.extract_strided_slice %122 {offsets = [0, 0, 0], sizes = [16, 16, 4], strides = [1, 1, 1]} : vector<18x16x4xbf16> to vector<16x16x4xbf16>
    %c2_117 = arith.constant 2 : index
    %c0_118 = arith.constant 0 : index
    %c0_119 = arith.constant 0 : index
    %124 = vector.load %arg3[%c2_117, %c0_118, %c0_119] : memref<9x4x4xbf16, #tpu.memory_space<vmem>>, vector<1x4x4xbf16>
    %125 = vector.shape_cast %124 : vector<1x4x4xbf16> to vector<4x4xbf16>
    %cst_120 = arith.constant dense<0.000000e+00> : vector<16x16x4xf32>
    %126 = tpu.matmul %123, %125, %cst_120 {dimension_numbers = #tpu.dot_dimension_numbers<[2], [0], [0, 1], [1], [0, 0, 0, 1, 1, 1], [], []>} : vector<16x16x4xbf16>, vector<4x4xbf16>, vector<16x16x4xf32> -> vector<16x16x4xf32>
    %127 = arith.addf %121, %126 : vector<16x16x4xf32>
    %128 = vector.extract_strided_slice %122 {offsets = [1, 0, 0], sizes = [16, 16, 4], strides = [1, 1, 1]} : vector<18x16x4xbf16> to vector<16x16x4xbf16>
    %c5_121 = arith.constant 5 : index
    %c0_122 = arith.constant 0 : index
    %c0_123 = arith.constant 0 : index
    %129 = vector.load %arg3[%c5_121, %c0_122, %c0_123] : memref<9x4x4xbf16, #tpu.memory_space<vmem>>, vector<1x4x4xbf16>
    %130 = vector.shape_cast %129 : vector<1x4x4xbf16> to vector<4x4xbf16>
    %cst_124 = arith.constant dense<0.000000e+00> : vector<16x16x4xf32>
    %131 = tpu.matmul %128, %130, %cst_124 {dimension_numbers = #tpu.dot_dimension_numbers<[2], [0], [0, 1], [1], [0, 0, 0, 1, 1, 1], [], []>} : vector<16x16x4xbf16>, vector<4x4xbf16>, vector<16x16x4xf32> -> vector<16x16x4xf32>
    %132 = arith.addf %127, %131 : vector<16x16x4xf32>
    %133 = vector.extract_strided_slice %122 {offsets = [2, 0, 0], sizes = [16, 16, 4], strides = [1, 1, 1]} : vector<18x16x4xbf16> to vector<16x16x4xbf16>
    %c8_125 = arith.constant 8 : index
    %c0_126 = arith.constant 0 : index
    %c0_127 = arith.constant 0 : index
    %134 = vector.load %arg3[%c8_125, %c0_126, %c0_127] : memref<9x4x4xbf16, #tpu.memory_space<vmem>>, vector<1x4x4xbf16>
    %135 = vector.shape_cast %134 : vector<1x4x4xbf16> to vector<4x4xbf16>
    %cst_128 = arith.constant dense<0.000000e+00> : vector<16x16x4xf32>
    %136 = tpu.matmul %133, %135, %cst_128 {dimension_numbers = #tpu.dot_dimension_numbers<[2], [0], [0, 1], [1], [0, 0, 0, 1, 1, 1], [], []>} : vector<16x16x4xbf16>, vector<4x4xbf16>, vector<16x16x4xf32> -> vector<16x16x4xf32>
    %137 = arith.addf %132, %136 : vector<16x16x4xf32>
    %cst_129 = arith.constant dense<0.000000e+00> : vector<4xf32>
    %138 = vector.multi_reduction <add>, %137, %cst_129 [0, 1] : vector<16x16x4xf32> to vector<4xf32>
    %139 = vector.shape_cast %138 : vector<4xf32> to vector<1x1x4xf32>
    %cst_130 = arith.constant 2.560000e+02 : f32
    %140 = vector.broadcast %cst_130 : f32 to vector<1x1x4xf32>
    %141 = arith.divf %139, %140 : vector<1x1x4xf32>
    %142 = vector.broadcast %141 : vector<1x1x4xf32> to vector<16x16x4xf32>
    %143 = arith.subf %137, %142 : vector<16x16x4xf32>
    %144 = arith.mulf %143, %143 : vector<16x16x4xf32>
    %cst_131 = arith.constant dense<0.000000e+00> : vector<4xf32>
    %145 = vector.multi_reduction <add>, %144, %cst_131 [0, 1] : vector<16x16x4xf32> to vector<4xf32>
    %146 = vector.shape_cast %145 : vector<4xf32> to vector<1x1x4xf32>
    %cst_132 = arith.constant 2.560000e+02 : f32
    %147 = vector.broadcast %cst_132 : f32 to vector<1x1x4xf32>
    %148 = arith.divf %146, %147 : vector<1x1x4xf32>
    %cst_133 = arith.constant 9.99999974E-6 : f32
    %149 = vector.broadcast %cst_133 : f32 to vector<1x1x4xf32>
    %150 = arith.addf %148, %149 : vector<1x1x4xf32>
    %151 = math.rsqrt %150 : vector<1x1x4xf32>
    %152 = vector.broadcast %151 : vector<1x1x4xf32> to vector<16x16x4xf32>
    %153 = arith.mulf %143, %152 : vector<16x16x4xf32>
    %c0_134 = arith.constant 0 : index
    %c0_135 = arith.constant 0 : index
    %c0_136 = arith.constant 0 : index
    %c0_137 = arith.constant 0 : index
    %154 = vector.load %arg1[%c0_134, %c0_135, %c0_136, %c0_137] : memref<1x16x16x4xf32, #tpu.memory_space<vmem>>, vector<1x16x16x4xf32>
    %155 = vector.shape_cast %154 : vector<1x16x16x4xf32> to vector<16x16x4xf32>
    %156 = arith.addf %153, %155 : vector<16x16x4xf32>
    %c0_138 = arith.constant 0 : index
    %c0_139 = arith.constant 0 : index
    %c0_140 = arith.constant 0 : index
    %c0_141 = arith.constant 0 : index
    %157 = vector.load %arg4[%c0_138, %c0_139, %c0_140, %c0_141] : memref<1x16x16x4xf32, #tpu.memory_space<vmem>>, vector<1x16x16x4xf32>
    %158 = vector.shape_cast %157 : vector<1x16x16x4xf32> to vector<16x16x4xf32>
    %159 = vector.shape_cast %156 : vector<16x16x4xf32> to vector<1x16x16x4xf32>
    tpu.vector_store %arg4[%c0_138, %c0_139, %c0_140, %c0_141], %159 {strides = array<i32>} : memref<1x16x16x4xf32, #tpu.memory_space<vmem>>, vector<1x16x16x4xf32>,
    return
  }
  func.func @transform_0(%arg0: i32) -> (i32, i32, i32, i32) {
    %c0_i32 = arith.constant 0 : i32
    %c0_i32_0 = arith.constant 0 : i32
    %c0_i32_1 = arith.constant 0 : i32
    %c0_i32_2 = arith.constant 0 : i32
    return %arg0, %c0_i32, %c0_i32_0, %c0_i32_1 : i32, i32, i32, i32
  }
  func.func @transform_1(%arg0: i32) -> (i32, i32, i32) {
    %c0_i32 = arith.constant 0 : i32
    %c0_i32_0 = arith.constant 0 : i32
    %c0_i32_1 = arith.constant 0 : i32
    %c0_i32_2 = arith.constant 0 : i32
    return %c0_i32, %c0_i32_0, %c0_i32_1 : i32, i32, i32
  }
  func.func @transform_2(%arg0: i32) -> (i32, i32, i32) {
    %c0_i32 = arith.constant 0 : i32
    %c0_i32_0 = arith.constant 0 : i32
    %c0_i32_1 = arith.constant 0 : i32
    %c0_i32_2 = arith.constant 0 : i32
    return %c0_i32, %c0_i32_0, %c0_i32_1 : i32, i32, i32
  }
  func.func @transform_3(%arg0: i32) -> (i32, i32, i32, i32) {
    %c0_i32 = arith.constant 0 : i32
    %c0_i32_0 = arith.constant 0 : i32
    %c0_i32_1 = arith.constant 0 : i32
    %c0_i32_2 = arith.constant 0 : i32
    return %arg0, %c0_i32, %c0_i32_0, %c0_i32_1 : i32, i32, i32, i32
  }
}

</mosaic_0001>

<bundles_post_ra>
// kernel: resnet_block_nhwc.1
= control target key start
LH: loop header
LB: loop body
LE: loop exit
PB: predicated region body
PF: predicated region fallthrough
CT: control target
= control target key end

     0   :  { %s9396_s12 = smov 0   ;;  %s13369_s0 = inlined_call_operand.vmem [shape: f32[2,16,16,4], index: 0, kind: input, shape index: {}]   ;;  %s13370_s1 = inlined_call_operand.vmem [shape: bf16[9,4,4], index: 1, kind: input, shape index: {}]   ;;  %s13371_s2 = inlined_call_operand.vmem [shape: bf16[9,4,4], index: 2, kind: input, shape index: {}]   ;;  %s13372_s3 = inlined_call_operand.vmem [shape: f32[2,16,16,4], index: 3, kind: output, shape index: {}]  }
   0x1 LB: > { %s7774_s13 = sadd.s32 4294967295, %s9374_s12   ;;  %p7778_p0 = scmp.ge.s32.totalorder %s9374_s12, 1  ;;  %s9374_s12 = sphi %s9396_s12, %s13_s12  }
   0x2   : > { %p137_p1 = scmp.lt.s32.totalorder %s9374_s12, 3 }
   0x4   : > { %p138_p2 = pnand %p7778_p0, %p137_p1 }
   0x6   : > { %141 = sbr.rel (%p138_p2) target bundleno = 1433 (0x599), region = 32 }
   0xb   : > { %v7833_v0 = vld [vmem:[%s13370_s1 + $0x6] sm:$0x3]  ;;  %vm1155_vm0 = vcmask 1041408   ;;  %v701_v1 = vld [vmem:[%s13370_s1] sm:$0x3]  ;;  %p161_p3 = scmp.lt.s32.totalorder %s7774_s13, 1 }
   0xc   : > { %9317 = vmatprep.subr.msk.bf16.mxu0 %vm1155_vm0, %v7833_v0  ;;  %v1157_v2 = vsel %vm1155_vm0, %v7833_v0, 0  ;;  %9318 = vmatprep.subr.msk.bf16.mxu1 %vm1155_vm0, %v701_v1  ;;  %v1349_v3 = vsel %vm1155_vm0, %v701_v1, 0  ;;  %v9419_v4 = vld [vmem:[%s13370_s1 + $0xc] sm:$0x3]  ;;  %vm333_vm1 = vcmask 27648   ;;  %vm443_vm2 = vcmask 27651  }
   0xd   : > { %8706 = vmatpush3.bf16.msra.mxu0 %v1157_v2  ;;  %8740 = vmatpush3.bf16.msra.mxu1 %v1349_v3  ;;  %s13617_s13 = smov (!%p161_p3, %s7774_s13), 1  ;;  %vm444_vm3 = vsmask.f32 7950  ;;  %v13404_v43 = vmov 0  ;;  %v449_v44 = vld [vmem:[#allocation2 + $0x18] sm:$0x8] }
   0xe   : > { %s8333_s20 = sshll.u32 %s13617_s13, 8  ;;  %9319 = vmatprep.subr.msk.bf16.mxu0 %vm1155_vm0, %v9419_v4  ;;  %vm9469_vm4 = vmand %vm443_vm2, %vm444_vm3  ;;  %vm591_vm5 = vsmask.f32 256  ;;  %vm704_vm6 = vsmask.f32 4368  ;;  %v9479_v50 = vsel %vm1155_vm0, %v9419_v4, 0 }
   0xf   : > { %s9429_s23 = scalar_lea.vmem %s13369_s0, %s8333_s20  ;;  %v13405_v43 = vsel %vm9469_vm4, 4294967295, %v13404_v43  ;;  %v446_v49 = vld [vmem:[#allocation2 + $0x4] sm:$0x8]  ;;  %vm9508_vm7 = vmor %vm591_vm5, %vm704_vm6  ;;  %vm1106_vm8 = vcmask 31744   ;;  %vm590_vm9 = vcmask 24576   ;;  %s13250_s6 = scalar_lea.vmem %s13372_s3, %s8333_s20 }
  0x10   : > { %v172_v5 = vld [vmem:[%s9429_s23] sm:$0xff]  ;;  %v173_v6 = vld [vmem:[%s9429_s23 + $0x8] sm:$0xff]  ;;  %v174_v7 = vld [vmem:[%s9429_s23 + $0x10] sm:$0xff]  ;;  %13406 = vst [vmem:[#allocation3_spill] sm:$0xff] %v13405_v43  ;;  %vm2532_vm11 = vsmask.f32 3328 }
  0x11   : > { %v8335_v8 = vpack.c.bf16 %v172_v5, %v172_v5  ;;  %v8336_v9 = vpack.c.bf16 %v173_v6, %v173_v6  ;;  %v175_v10 = vld [vmem:[%s9429_s23 + $0x18] sm:$0xff]  ;;  %v8337_v11 = vpack.c.bf16 %v174_v7, %v174_v7  ;;  %v176_v12 = vld [vmem:[%s9429_s23 + $0x20] sm:$0xff]  ;;  %v177_v13 = vld [vmem:[%s9429_s23 + $0x28] sm:$0xff]  ;;  %vm2533_vm12 = vsmask.f32 7440 }
  0x12   : > { %v8338_v14 = vpack.c.bf16 %v175_v10, %v175_v10  ;;  %v8339_v15 = vpack.c.bf16 %v176_v12, %v176_v12  ;;  %v8340_v16 = vpack.c.bf16 %v177_v13, %v177_v13  ;;  %v178_v17 = vld [vmem:[%s9429_s23 + $0x30] sm:$0xff]  ;;  %v179_v18 = vld [vmem:[%s9429_s23 + $0x38] sm:$0xff]  ;;  %v180_v19 = vld [vmem:[%s9429_s23 + $0x40] sm:$0xff] }
  0x13   : > { %334 = vst.msk [vmem:[#allocation2 + $0x1c] sm:$0xf] %vm333_vm1, %v8335_v8  ;;  %335 = vst.msk [vmem:[#allocation2 + $0x20] sm:$0xf] %vm333_vm1, %v8336_v9  ;;  %v8341_v20 = vpack.c.bf16 %v178_v17, %v178_v17  ;;  %v8342_v21 = vpack.c.bf16 %v179_v18, %v179_v18  ;;  %v181_v22 = vld [vmem:[%s9429_s23 + $0x48] sm:$0xff]  ;;  %v8343_v23 = vpack.c.bf16 %v180_v19, %v180_v19  ;;  %v182_v24 = vld [vmem:[%s9429_s23 + $0x50] sm:$0xff] }
  0x14   : > { %336 = vst.msk [vmem:[#allocation2 + $0x30] sm:$0xf] %vm333_vm1, %v8337_v11  ;;  %366 = vst.msk [vmem:[#allocation2 + $0x8] sm:$0xf] %vm333_vm1, %v8337_v11  ;;  %v183_v25 = vld [vmem:[%s9429_s23 + $0x58] sm:$0xff]  ;;  %v8344_v26 = vpack.c.bf16 %v181_v22, %v181_v22  ;;  %v8345_v27 = vpack.c.bf16 %v182_v24, %v182_v24  ;;  %v184_v29 = vld [vmem:[%s9429_s23 + $0x60] sm:$0xff] }
  0x15   : > { %337 = vst.msk [vmem:[#allocation2 + $0x34] sm:$0xf] %vm333_vm1, %v8338_v14  ;;  %367 = vst.msk [vmem:[#allocation2 + $0xc] sm:$0xf] %vm333_vm1, %v8338_v14  ;;  %v8346_v28 = vpack.c.bf16 %v183_v25, %v183_v25  ;;  %v185_v30 = vld [vmem:[%s9429_s23 + $0x68] sm:$0xff]  ;;  %v8347_v31 = vpack.c.bf16 %v184_v29, %v184_v29  ;;  %v186_v33 = vld [vmem:[%s9429_s23 + $0x70] sm:$0xff] }
  0x16   : > { %338 = vst.msk [vmem:[#allocation2 + $0x44] sm:$0xf] %vm333_vm1, %v8339_v15  ;;  %339 = vst.msk [vmem:[#allocation2 + $0x48] sm:$0xf] %vm333_vm1, %v8340_v16  ;;  %v8348_v32 = vpack.c.bf16 %v185_v30, %v185_v30  ;;  %v187_v34 = vld [vmem:[%s9429_s23 + $0x78] sm:$0xff]  ;;  %v8349_v35 = vpack.c.bf16 %v186_v33, %v186_v33  ;;  %v188_v37 = vld [vmem:[%s9429_s23 + $0x80] sm:$0xff] }
  0x17   : > { %340 = vst.msk [vmem:[#allocation2 + $0x58] sm:$0xf] %vm333_vm1, %v8341_v20  ;;  %341 = vst.msk [vmem:[#allocation2 + $0x5c] sm:$0xf] %vm333_vm1, %v8342_v21  ;;  %v8350_v36 = vpack.c.bf16 %v187_v34, %v187_v34  ;;  %v189_v38 = vld [vmem:[%s9429_s23 + $0x88] sm:$0xff]  ;;  %v8351_v39 = vpack.c.bf16 %v188_v37, %v188_v37  ;;  %v190_v41 = vld [vmem:[%s9429_s23 + $0x90] sm:$0xff] }
  0x18   : > { %342 = vst.msk [vmem:[#allocation2 + $0x6c] sm:$0xf] %vm333_vm1, %v8343_v23  ;;  %343 = vst.msk [vmem:[#allocation2 + $0x70] sm:$0xf] %vm333_vm1, %v8344_v26  ;;  %v8352_v40 = vpack.c.bf16 %v189_v38, %v189_v38  ;;  %v191_v42 = vld [vmem:[%s9429_s23 + $0x98] sm:$0xff]  ;;  %v8353_v45 = vpack.c.bf16 %v190_v41, %v190_v41  ;;  %v192_v47 = vld [vmem:[%s9429_s23 + $0xa0] sm:$0xff] }
  0x19   : > { %344 = vst.msk [vmem:[#allocation2 + $0x80] sm:$0xf] %vm333_vm1, %v8345_v27  ;;  %345 = vst.msk [vmem:[#allocation2 + $0x84] sm:$0xf] %vm333_vm1, %v8346_v28  ;;  %v8354_v46 = vpack.c.bf16 %v191_v42, %v191_v42  ;;  %v193_v48 = vld [vmem:[%s9429_s23 + $0xa8] sm:$0xff]  ;;  %v8355_v51 = vpack.c.bf16 %v192_v47, %v192_v47  ;;  %v194_v53 = vld [vmem:[%s9429_s23 + $0xb0] sm:$0xff] }
  0x1a   : > { %346 = vst.msk [vmem:[#allocation2 + $0x94] sm:$0xf] %vm333_vm1, %v8347_v31  ;;  %347 = vst.msk [vmem:[#allocation2 + $0x98] sm:$0xf] %vm333_vm1, %v8348_v32  ;;  %v8356_v52 = vpack.c.bf16 %v193_v48, %v193_v48  ;;  %v195_v54 = vld [vmem:[%s9429_s23 + $0xb8] sm:$0xff]  ;;  %v8357_v58 = vpack.c.bf16 %v194_v53, %v194_v53  ;;  %v13407_v11 = vmov 0 }
  0x1b   : > { %348 = vst.msk [vmem:[#allocation2 + $0xa8] sm:$0xf] %vm333_vm1, %v8349_v35  ;;  %349 = vst.msk [vmem:[#allocation2 + $0xac] sm:$0xf] %vm333_vm1, %v8350_v36  ;;  %v372_v55 = vld [vmem:[#allocation2 + $0x1c] sm:$0x1]  ;;  %v8358_v59 = vpack.c.bf16 %v195_v54, %v195_v54 }
  0x1c   : > { %350 = vst.msk [vmem:[#allocation2 + $0xbc] sm:$0xf] %vm333_vm1, %v8351_v39  ;;  %351 = vst.msk [vmem:[#allocation2 + $0xc0] sm:$0xf] %vm333_vm1, %v8352_v40  ;;  %v9485_v56 = vld [vmem:[#allocation2 + $0x1c] sm:$0xf] }
  0x1d   : > { %v9487_v57 = vld [vmem:[#allocation2 + $0x20] sm:$0xf]  ;;  %352 = vst.msk [vmem:[#allocation2 + $0xd0] sm:$0xf] %vm333_vm1, %v8353_v45  ;;  %353 = vst.msk [vmem:[#allocation2 + $0xd4] sm:$0xf] %vm333_vm1, %v8354_v46 }
  0x1e   : > { %v408_v60 = vrot.slane %v372_v55, 5  ;;  %v712_v61 = vshrl.u32 %v9485_v56, 16  ;;  %v715_v62 = vshll.u32 %v9485_v56, 16  ;;  %v721_v63 = vshrl.u32 %v9487_v57, 16  ;;  %v371_v0 = vld [vmem:[#allocation2 + $0x8] sm:$0x1]  ;;  %vm9862_vm10 = vmand %vm590_vm9, %vm591_vm5 }
  0x1f   : > { %354 = vst.msk [vmem:[#allocation2 + $0xe4] sm:$0xf] %vm333_vm1, %v8355_v51  ;;  %355 = vst.msk [vmem:[#allocation2 + $0xe8] sm:$0xf] %vm333_vm1, %v8356_v52  ;;  %v724_v1 = vshll.u32 %v9487_v57, 16  ;;  %v407_v2 = vrot.slane %v371_v0, 5 }
  0x20   : > { %v9497_v3 = vld [vmem:[#allocation2 + $0x8] sm:$0xf]  ;;  %v9499_v4 = vld [vmem:[#allocation2 + $0xc] sm:$0xf]  ;;  %356 = vst.msk [vmem:[#allocation2 + $0xf8] sm:$0xf] %vm333_vm1, %v8357_v58  ;;  %v450_v5 = vsel %vm9469_vm4, %v408_v60, %v449_v44  ;;  %vm10123_vm13 = vmor %vm2532_vm11, %vm2533_vm12 }
  0x21   : > { %357 = vst.msk [vmem:[#allocation2 + $0xfc] sm:$0xf] %vm333_vm1, %v8358_v59  ;;  %v714_v6 = vrot.slane %v712_v61, 7  ;;  %v723_v7 = vrot.slane %v721_v63, 7  ;;  %v1326_v8 = vshrl.u32 %v9497_v3, 16  ;;  %v13408_v11 = vsel %vm9508_vm7, 4294967295, %v13407_v11 }
  0x22   : > { %v373_v9 = vld [vmem:[#allocation2 + $0x30] sm:$0x1]  ;;  %v452_v10 = vld [vmem:[#allocation2 + $0x2c] sm:$0x8]  ;;  %451 = vst [vmem:[#allocation2 + $0x18] sm:$0x8] %v450_v5  ;;  %v447_v12 = vsel %vm9469_vm4, %v407_v2, %v446_v49 }
  0x23   : > { %13409 = vst [vmem:[#allocation4_spill] sm:$0xff] %v13408_v11  ;;  %v1329_v13 = vshll.u32 %v9497_v3, 16  ;;  %v1335_v14 = vshrl.u32 %v9499_v4, 16  ;;  %v1338_v15 = vshll.u32 %v9499_v4, 16  ;;  %v9517_v16 = vld [vmem:[#allocation2 + $0x30] sm:$0xf]  ;;  %v726_v18 = vor.u32 %v724_v1, %v723_v7 }
  0x24   : > { %v719_v17 = vrot.slane %v714_v6, 4  ;;  %448 = vst [vmem:[#allocation2 + $0x4] sm:$0x8] %v447_v12  ;;  %v1328_v19 = vrot.slane %v1326_v8, 7  ;;  %v9519_v20 = vld [vmem:[#allocation2 + $0x34] sm:$0xf]  ;;  %v9521_v22 = vor.u32 %v715_v62, %v714_v6 }
  0x25   : > { %v374_v21 = vld [vmem:[#allocation2 + $0x44] sm:$0x1]  ;;  %v1337_v23 = vrot.slane %v1335_v14, 7  ;;  %v409_v24 = vrot.slane %v373_v9, 5  ;;  %v734_v25 = vshrl.u32 %v9517_v16, 16  ;;  %v737_v29 = vshll.u32 %v9517_v16, 16 }
  0x26   : > { %v9524_v26 = vld [vmem:[#allocation2 + $0x44] sm:$0xf]  ;;  %v727_v27 = vsel %vm9508_vm7, %v719_v17, %v726_v18  ;;  %v1333_v28 = vrot.slane %v1328_v19, 4  ;;  %v743_v30 = vshrl.u32 %v9519_v20, 16  ;;  %v9530_v31 = vld [vmem:[#allocation2 + $0x48] sm:$0xf]  ;;  %v1331_v38 = vor.u32 %v1329_v13, %v1328_v19 }
  0x27   : > { %v1340_v32 = vor.u32 %v1338_v15, %v1337_v23  ;;  %v453_v33 = vsel %vm9469_vm4, %v409_v24, %v452_v10  ;;  %v736_v34 = vrot.slane %v734_v25, 7  ;;  %v746_v35 = vshll.u32 %v9519_v20, 16  ;;  %v455_v36 = vld [vmem:[#allocation2 + $0x40] sm:$0x8]  ;;  %v375_v37 = vld [vmem:[#allocation2 + $0x58] sm:$0x1] }
  0x28   : > { %454 = vst [vmem:[#allocation2 + $0x2c] sm:$0x8] %v453_v33  ;;  %v745_v39 = vrot.slane %v743_v30, 7  ;;  %v410_v40 = vrot.slane %v374_v21, 5  ;;  %v756_v41 = vshrl.u32 %v9524_v26, 16  ;;  %v759_v46 = vshll.u32 %v9524_v26, 16 }
  0x29   : > { %v9536_v42 = vld [vmem:[#allocation2 + $0x58] sm:$0xf]  ;;  %v1341_v44 = vsel %vm9508_vm7, %v1333_v28, %v1340_v32  ;;  %v741_v45 = vrot.slane %v736_v34, 4  ;;  %v765_v47 = vshrl.u32 %v9530_v31, 16  ;;  %v458_v48 = vld [vmem:[#allocation2 + $0x54] sm:$0x8]  ;;  %v739_v0 = vor.u32 %v737_v29, %v736_v34 }
  0x2a   : > { %v650_v49 = vld [vmem:[#allocation2 + $0x18] sm:$0x8]  ;;  %v748_v51 = vor.u32 %v746_v35, %v745_v39  ;;  %v456_v52 = vsel %vm9469_vm4, %v410_v40, %v455_v36  ;;  %v758_v53 = vrot.slane %v756_v41, 7  ;;  %v768_v54 = vshll.u32 %v9530_v31, 16  ;;  %v9545_v55 = vld [vmem:[#allocation2 + $0x5c] sm:$0xf] }
  0x2b   : > { %v707_v58 = vshrl.u32 %v650_v49, 16  ;;  %v647_v59 = vld [vmem:[#allocation2 + $0x4] sm:$0x8]  ;;  %457 = vst [vmem:[#allocation2 + $0x40] sm:$0x8] %v456_v52  ;;  %v767_v60 = vrot.slane %v765_v47, 7 }
  0x2c   : > { %v411_v61 = vrot.slane %v375_v37, 5  ;;  %v778_v62 = vshrl.u32 %v9536_v42, 16  ;;  %v1321_v63 = vshrl.u32 %v647_v59, 16  ;;  %v749_v1 = vsel %vm9508_vm7, %v741_v45, %v748_v51  ;;  %v376_v5 = vld [vmem:[#allocation2 + $0x6c] sm:$0x1] }
  0x2d   : > { %v763_v2 = vrot.slane %v758_v53, 4  ;;  %v7834_v6 = vrot.slane %v707_v58, 11  ;;  %v770_v7 = vor.u32 %v768_v54, %v767_v60  ;;  %v461_v10 = vld [vmem:[#allocation2 + $0x68] sm:$0x8]  ;;  %v761_v13 = vor.u32 %v759_v46, %v758_v53  ;;  %v9554_v17 = vld [vmem:[#allocation2 + $0x6c] sm:$0xf] }
  0x2e   : > { %v459_v8 = vsel %vm9469_vm4, %v411_v61, %v458_v48  ;;  %v780_v9 = vrot.slane %v778_v62, 7  ;;  %v7882_v12 = vrot.slane %v1321_v63, 11  ;;  %v781_v14 = vshll.u32 %v9536_v42, 16  ;;  %v9562_v25 = vld [vmem:[#allocation2 + $0x70] sm:$0xf] }
  0x2f   : > { %460 = vst [vmem:[#allocation2 + $0x54] sm:$0x8] %v459_v8  ;;  %v787_v15 = vshrl.u32 %v9545_v55, 16  ;;  %v718_v18 = vsel %vm9508_vm7, %v7834_v6, %v9521_v22  ;;  %v653_v19 = vld [vmem:[#allocation2 + $0x2c] sm:$0x8]  ;;  %v771_v21 = vsel %vm9508_vm7, %v763_v2, %v770_v7  ;;  %v790_v23 = vshll.u32 %v9545_v55, 16 }
  0x30   : > { %v412_v24 = vrot.slane %v376_v5, 5  ;;  %v7850_v28 = vcombine.low %v718_v18, %v727_v27  ;;  %v1332_v29 = vsel %vm9508_vm7, %v7882_v12, %v1331_v38  ;;  %v729_v30 = vshrl.u32 %v653_v19, 16  ;;  %v377_v33 = vld [vmem:[#allocation2 + $0x80] sm:$0x1]  ;;  %v464_v48 = vld [vmem:[#allocation2 + $0x7c] sm:$0x8] }
  0x31   : > { %v785_v32 = vrot.slane %v780_v9, 4  ;;  %v7883_v34 = vcombine.low %v1332_v29, %v1341_v44  ;;  %v789_v35 = vrot.slane %v787_v15, 7  ;;  %v800_v36 = vshrl.u32 %v9554_v17, 16  ;;  %v9569_v37 = vld [vmem:[#allocation2 + $0x80] sm:$0xf] }
  0x32   : > { %v462_v22 = vsel %vm9469_vm4, %v412_v24, %v461_v10  ;;  %8707 = vmatprep.mubr.msk.bf16.mxu0 %vm1106_vm8, %v7850_v28  ;;  %v7835_v39 = vrot.slane %v729_v30, 11  ;;  %v656_v40 = vld [vmem:[#allocation2 + $0x40] sm:$0x8]  ;;  %v783_v27 = vor.u32 %v781_v14, %v780_v9  ;;  %v809_v38 = vshrl.u32 %v9562_v25, 16  ;;  %v9579_v53 = vld [vmem:[#allocation2 + $0x84] sm:$0xf] }
  0x33   : > { %463 = vst [vmem:[#allocation2 + $0x68] sm:$0x8] %v462_v22  ;;  %v812_v41 = vshll.u32 %v9562_v25, 16  ;;  %8741 = vmatprep.mubr.msk.bf16.mxu1 %vm1106_vm8, %v7883_v34  ;;  %v751_v44 = vshrl.u32 %v656_v40, 16  ;;  %v792_v45 = vor.u32 %v790_v23, %v789_v35  ;;  %v802_v46 = vrot.slane %v800_v36, 7 }
  0x34   : > { %v413_v47 = vrot.slane %v377_v33, 5  ;;  %v740_v49 = vsel %vm9508_vm7, %v7835_v39, %v739_v0  ;;  %8742 = vmatmul.mubr.msk.bf16.vlgmr.msra.gmra.mxu1 %vm1106_vm8, %v7850_v28  ;;  %v803_v51 = vshll.u32 %v9554_v17, 16  ;;  %v811_v52 = vrot.slane %v809_v38, 7  ;;  %v378_v63 = vld [vmem:[#allocation2 + $0x94] sm:$0x1] }
  0x35   : > { %v822_v54 = vshrl.u32 %v9569_v37, 16  ;;  %v9582_v58 = vcombine.low %v740_v49, %v749_v1  ;;  %v7836_v59 = vrot.slane %v751_v44, 11  ;;  %v793_v61 = vsel %vm9508_vm7, %v785_v32, %v792_v45  ;;  %v467_v7 = vld [vmem:[#allocation2 + $0x90] sm:$0x8]  ;;  %v9589_v8 = vld [vmem:[#allocation2 + $0x94] sm:$0xf] }
  0x36   : > { %v659_v60 = vld [vmem:[#allocation2 + $0x54] sm:$0x8]  ;;  %v825_v62 = vshll.u32 %v9569_v37, 16  ;;  %v807_v2 = vrot.slane %v802_v46, 4  ;;  %v814_v5 = vor.u32 %v812_v41, %v811_v52  ;;  %v465_v6 = vsel %vm9469_vm4, %v413_v47, %v464_v48  ;;  %v9599_v14 = vld [vmem:[#allocation2 + $0x98] sm:$0xf] }
  0x37   : > { %v773_v0 = vshrl.u32 %v659_v60, 16  ;;  %8708 = vmatmul.mubr.msk.bf16.vlgmr.msra.gmra.mxu0 %vm1106_vm8, %v9582_v58  ;;  %v762_v1 = vsel %vm9508_vm7, %v7836_v59, %v761_v13  ;;  %8745 = vmatprep.mubr.msk.bf16.mxu1 %vm1106_vm8, %v9582_v58  ;;  %466 = vst [vmem:[#allocation2 + $0x7c] sm:$0x8] %v465_v6  ;;  %v824_v9 = vrot.slane %v822_v54, 7  ;;  %v831_v10 = vshrl.u32 %v9579_v53, 16 }
  0x38   : > { %v834_v12 = vshll.u32 %v9579_v53, 16  ;;  %8774 = vmatpush3.bf16.msra.mxu0 %v9479_v50  ;;  %v9602_v15 = vcombine.low %v762_v1, %v771_v21  ;;  %v805_v19 = vor.u32 %v803_v51, %v802_v46  ;;  %v414_v23 = vrot.slane %v378_v63, 5  ;;  %v379_v24 = vld [vmem:[#allocation2 + $0xa8] sm:$0x1]  ;;  %v470_v38 = vld [vmem:[#allocation2 + $0xa4] sm:$0x8] }
  0x39   : > { %v7837_v18 = vrot.slane %v773_v0, 11  ;;  %v9604_v13 = vld [vmem:[#allocation2 + $0xa8] sm:$0xf]  ;;  %v815_v29 = vsel %vm9508_vm7, %v807_v2, %v814_v5  ;;  %v829_v30 = vrot.slane %v824_v9, 4  ;;  %v833_v32 = vrot.slane %v831_v10, 7 }
  0x3a   : > { %v662_v28 = vld [vmem:[#allocation2 + $0x68] sm:$0x8]  ;;  %v844_v33 = vshrl.u32 %v9589_v8, 16  ;;  %8711 = vmatprep.mubr.msk.bf16.mxu0 %vm1106_vm8, %v9602_v15  ;;  %v468_v34 = vsel %vm9469_vm4, %v414_v23, %v467_v7  ;;  %v847_v35 = vshll.u32 %v9589_v8, 16  ;;  %v853_v40 = vshrl.u32 %v9599_v14, 16 }
  0x3b   : > { %v784_v50 = vsel %vm9508_vm7, %v7837_v18, %v783_v27  ;;  %v795_v21 = vshrl.u32 %v662_v28, 16  ;;  %v836_v36 = vor.u32 %v834_v12, %v833_v32  ;;  %469 = vst [vmem:[#allocation2 + $0x90] sm:$0x8] %v468_v34  ;;  %v9621_v41 = vld [vmem:[#allocation2 + $0xac] sm:$0xf]  ;;  %v856_v44 = vshll.u32 %v9599_v14, 16 }
  0x3c   : > { %v9616_v22 = vcombine.low %v784_v50, %v793_v61  ;;  %v9618_v39 = vrot.slane %v844_v33, 7  ;;  %8746 = vmatmul.mubr.msk.bf16.gmra.mxu1 %vm1106_vm8, %v9602_v15  ;;  %v415_v45 = vrot.slane %v379_v24, 5  ;;  %v866_v46 = vshrl.u32 %v9604_v13, 16  ;;  %v380_v47 = vld [vmem:[#allocation2 + $0xbc] sm:$0x1] }
  0x3d   : > { %v7838_v27 = vrot.slane %v795_v21, 11  ;;  %v827_v48 = vor.u32 %v825_v62, %v824_v9  ;;  %v837_v49 = vsel %vm9508_vm7, %v829_v30, %v836_v36  ;;  %v855_v51 = vrot.slane %v853_v40, 7  ;;  %v473_v52 = vld [vmem:[#allocation2 + $0xb8] sm:$0x8]  ;;  %v9631_v54 = vld [vmem:[#allocation2 + $0xbc] sm:$0xf] }
  0x3e   : > { %8749 = vmatprep.mubr.msk.bf16.mxu1 %vm1106_vm8, %v9616_v22  ;;  %13410 = vst [vmem:[#allocation5_spill] sm:$0xff] %v9631_v54  ;;  %v9636_v59 = vld [vmem:[%s13370_s1 + $0x2] sm:$0x3]  ;;  %v665_v61 = vld [vmem:[#allocation2 + $0x7c] sm:$0x8]  ;;  %v849_v63 = vor.u32 %v847_v35, %v9618_v39  ;;  %v471_v62 = vsel %vm9469_vm4, %v415_v45, %v470_v38  ;;  %v868_v0 = vrot.slane %v866_v46, 7 }
  0x3f   : > { %v806_v60 = vsel %vm9508_vm7, %v7838_v27, %v805_v19  ;;  %9320 = vmatprep.subr.msk.bf16.mxu1 %vm1155_vm0, %v9636_v59  ;;  %v9648_v2 = vld [vmem:[%s13370_s1 + $0x8] sm:$0x3]  ;;  %8712 = vmatmul.mubr.msk.bf16.gmra.mxu0 %vm1106_vm8, %v9616_v22  ;;  %v817_v6 = vshrl.u32 %v665_v61, 16  ;;  %v851_v7 = vrot.slane %v9618_v39, 4  ;;  %472 = vst [vmem:[#allocation2 + $0xa4] sm:$0x8] %v471_v62  ;;  %v858_v10 = vor.u32 %v856_v44, %v855_v51 }
  0x40   : > { %v9652_v5 = vcombine.low %v806_v60, %v815_v29  ;;  %v875_v1 = vshrl.u32 %v9621_v41, 16  ;;  %v9656_v9 = vld [vmem:[#allocation2 + $0xc0] sm:$0xf]  ;;  %9321 = vmatprep.subr.msk.bf16.mxu0 %vm1155_vm0, %v9648_v2  ;;  %v869_v12 = vshll.u32 %v9604_v13, 16  ;;  %v878_v18 = vshll.u32 %v9621_v41, 16 }
  0x41   : > { %13411 = vst [vmem:[#allocation6_spill] sm:$0xff] %v9656_v9  ;;  %v416_v19 = vrot.slane %v380_v47, 5  ;;  %v381_v23 = vld [vmem:[#allocation2 + $0xd0] sm:$0x1]  ;;  %v7839_v24 = vrot.slane %v817_v6, 11  ;;  %v873_v28 = vrot.slane %v868_v0, 4 }
  0x42   : > { %8715 = vmatprep.mubr.msk.bf16.mxu0 %vm1106_vm8, %v9652_v5  ;;  %v877_v29 = vrot.slane %v875_v1, 7  ;;  %v888_v30 = vshrl.u32 %v9631_v54, 16  ;;  %v9665_v32 = vld [vmem:[#allocation2 + $0xd0] sm:$0xf]  ;;  %v891_v21 = vshll.u32 %v9631_v54, 16  ;;  %v897_v34 = vshrl.u32 %v9656_v9, 16 }
  0x43   : > { %13412 = vst [vmem:[#allocation7_spill] sm:$0xff] %v9665_v32  ;;  %v668_v33 = vld [vmem:[#allocation2 + $0x90] sm:$0x8]  ;;  %v474_v50 = vsel %vm9469_vm4, %v416_v19, %v473_v52  ;;  %v900_v35 = vshll.u32 %v9656_v9, 16  ;;  %v828_v36 = vsel %vm9508_vm7, %v7839_v24, %v827_v48  ;;  %v476_v27 = vld [vmem:[#allocation2 + $0xcc] sm:$0x8]  ;;  %v859_v48 = vsel %vm9508_vm7, %v851_v7, %v858_v10 }
  0x44   : > { %v839_v39 = vshrl.u32 %v668_v33, 16  ;;  %v880_v40 = vor.u32 %v878_v18, %v877_v29  ;;  %475 = vst [vmem:[#allocation2 + $0xb8] sm:$0x8] %v474_v50  ;;  %v890_v38 = vrot.slane %v888_v30, 7  ;;  %v9674_v44 = vcombine.low %v828_v36, %v837_v49  ;;  %8750 = vmatmul.mubr.msk.bf16.gmra.mxu1 %vm1106_vm8, %v9652_v5  ;;  %v9678_v47 = vld [vmem:[#allocation2 + $0xd4] sm:$0xf] }
  0x45   : > { %v899_v45 = vrot.slane %v897_v34, 7  ;;  %v417_v46 = vrot.slane %v381_v23, 5  ;;  %13413 = vst [vmem:[#allocation8_spill] sm:$0xff] %v9678_v47  ;;  %v910_v51 = vshrl.u32 %v9665_v32, 16  ;;  %v871_v60 = vor.u32 %v869_v12, %v868_v0  ;;  %v382_v61 = vld [vmem:[#allocation2 + $0xe4] sm:$0x1] }
  0x46   : > { %v7840_v52 = vrot.slane %v839_v39, 11  ;;  %v9683_v62 = vld [vmem:[#allocation2 + $0xe4] sm:$0xf]  ;;  %8753 = vmatprep.mubr.msk.bf16.mxu1 %vm1106_vm8, %v9674_v44  ;;  %v881_v6 = vsel %vm9508_vm7, %v873_v28, %v880_v40  ;;  %v893_v1 = vor.u32 %v891_v21, %v890_v38  ;;  %v9691_v23 = vld [vmem:[#allocation2 + $0xe8] sm:$0xf]  ;;  %v919_v10 = vshrl.u32 %v9678_v47, 16 }
  0x47   : > { %13414 = vst [vmem:[#allocation9_spill] sm:$0xff] %v9683_v62  ;;  %v671_v49 = vld [vmem:[#allocation2 + $0xa4] sm:$0x8]  ;;  %v477_v18 = vsel %vm9469_vm4, %v417_v46, %v476_v27  ;;  %v912_v19 = vrot.slane %v910_v51, 7  ;;  %13415 = vst [vmem:[#allocation10_spill] sm:$0xff] %v9691_v23  ;;  %8716 = vmatmul.mubr.msk.bf16.gmra.mxu0 %vm1106_vm8, %v9674_v44  ;;  %v922_v12 = vshll.u32 %v9678_v47, 16  ;;  %v902_v30 = vor.u32 %v900_v35, %v899_v45 }
  0x48   : > { %v850_v0 = vsel %vm9508_vm7, %v7840_v52, %v849_v63  ;;  %v861_v7 = vshrl.u32 %v671_v49, 16  ;;  %478 = vst [vmem:[#allocation2 + $0xcc] sm:$0x8] %v477_v18  ;;  %v383_v24 = vld [vmem:[#allocation2 + $0xf8] sm:$0x1]  ;;  %v895_v29 = vrot.slane %v890_v38, 4 }
  0x49   : > { %v9699_v28 = vcombine.low %v850_v0, %v859_v48  ;;  %v913_v33 = vshll.u32 %v9665_v32, 16  ;;  %v479_v50 = vld [vmem:[#allocation2 + $0xe0] sm:$0x8]  ;;  %v482_v21 = vld [vmem:[#allocation2 + $0xf4] sm:$0x8]  ;;  %v921_v36 = vrot.slane %v919_v10, 7 }
  0x4a   : > { %v7841_v34 = vrot.slane %v861_v7, 11  ;;  %v418_v39 = vrot.slane %v382_v61, 5  ;;  %v932_v63 = vshrl.u32 %v9683_v62, 16  ;;  %v9703_v40 = vld [vmem:[#allocation2 + $0xf8] sm:$0xf]  ;;  %v917_v46 = vrot.slane %v912_v19, 4 }
  0x4b   : > { %13416 = vst [vmem:[#allocation11_spill] sm:$0xff] %v9703_v40  ;;  %8719 = vmatprep.mubr.msk.bf16.mxu0 %vm1106_vm8, %v9699_v28  ;;  %v674_v27 = vld [vmem:[#allocation2 + $0xb8] sm:$0x8]  ;;  %v935_v51 = vshll.u32 %v9683_v62, 16  ;;  %v941_v35 = vshrl.u32 %v9691_v23, 16  ;;  %v419_v38 = vrot.slane %v383_v24, 5  ;;  %v924_v48 = vor.u32 %v922_v12, %v921_v36 }
  0x4c   : > { %v872_v45 = vsel %vm9508_vm7, %v7841_v34, %v871_v60  ;;  %v883_v52 = vshrl.u32 %v674_v27, 16  ;;  %v480_v61 = vsel %vm9469_vm4, %v418_v39, %v479_v50  ;;  %v9713_v49 = vld [vmem:[#allocation2 + $0xfc] sm:$0xf]  ;;  %8754 = vmatmul.mubr.msk.bf16.gmra.mxu1 %vm1106_vm8, %v9699_v28  ;;  %v903_v0 = vsel %vm9508_vm7, %v895_v29, %v902_v30  ;;  %v196_v50 = vld [vmem:[%s9429_s23 + $0xc0] sm:$0xff]  ;;  %v197_v39 = vld [vmem:[%s9429_s23 + $0xc8] sm:$0xff] }
  0x4d   : > { %13417 = vst [vmem:[#allocation12_spill] sm:$0xff] %v9713_v49  ;;  %v9715_v18 = vcombine.low %v872_v45, %v881_v6  ;;  %481 = vst [vmem:[#allocation2 + $0xe0] sm:$0x8] %v480_v61  ;;  %v9721_v7 = vrot.slane %v932_v63, 7  ;;  %v483_v60 = vsel %vm9469_vm4, %v419_v38, %v482_v21  ;;  %v943_v12 = vrot.slane %v941_v35, 7  ;;  %v198_v35 = vld [vmem:[%s9429_s23 + $0xd0] sm:$0xff] }
  0x4e   : > { %v7842_v10 = vrot.slane %v883_v52, 11  ;;  %v944_v24 = vshll.u32 %v9691_v23, 16  ;;  %484 = vst [vmem:[#allocation2 + $0xf4] sm:$0x8] %v483_v60  ;;  %v954_v6 = vshrl.u32 %v9703_v40, 16  ;;  %v915_v30 = vor.u32 %v913_v33, %v912_v19  ;;  %v200_v38 = vld [vmem:[%s9429_s23 + $0xe0] sm:$0xff] }
  0x4f   : > { %8757 = vmatprep.mubr.msk.bf16.mxu1 %vm1106_vm8, %v9715_v18  ;;  %v677_v29 = vld [vmem:[#allocation2 + $0xcc] sm:$0x8]  ;;  %v925_v34 = vsel %vm9508_vm7, %v917_v46, %v924_v48  ;;  %v957_v21 = vshll.u32 %v9703_v40, 16  ;;  %v963_v36 = vshrl.u32 %v9713_v49, 16  ;;  %8720 = vmatmul.mubr.msk.bf16.gmra.mxu0 %vm1106_vm8, %v9715_v18  ;;  %v937_v19 = vor.u32 %v935_v51, %v9721_v7  ;;  %v199_v46 = vld [vmem:[%s9429_s23 + $0xd8] sm:$0xff]  ;;  %v202_v40 = vld [vmem:[%s9429_s23 + $0xf0] sm:$0xff] }
  0x50   : > { %v894_v63 = vsel %vm9508_vm7, %v7842_v10, %v893_v1  ;;  %v905_v27 = vshrl.u32 %v677_v29, 16  ;;  %v956_v33 = vrot.slane %v954_v6, 7  ;;  %v966_v48 = vshll.u32 %v9713_v49, 16  ;;  %v201_v60 = vld [vmem:[%s9429_s23 + $0xe8] sm:$0xff]  ;;  %v203_v62 = vld [vmem:[%s9429_s23 + $0xf8] sm:$0xff] }
  0x51   : > { %v9743_v45 = vcombine.low %v894_v63, %v903_v0  ;;  %v965_v52 = vrot.slane %v963_v36, 7  ;;  %v8359_v61 = vpack.c.bf16 %v196_v50, %v196_v50  ;;  %v939_v32 = vrot.slane %v9721_v7, 4  ;;  %v497_v47 = vld [vmem:[#allocation2 + $0x158] sm:$0x8] }
  0x52   : > { %v7843_v23 = vrot.slane %v905_v27, 11  ;;  %v946_v1 = vor.u32 %v944_v24, %v943_v12  ;;  %v8360_v10 = vpack.c.bf16 %v197_v39, %v197_v39  ;;  %v961_v51 = vrot.slane %v956_v33, 4  ;;  %v9759_v12 = vld [vmem:[%s13370_s1 + $0xe] sm:$0x3] }
  0x53   : > { %8723 = vmatprep.mubr.msk.bf16.mxu0 %vm1106_vm8, %v9743_v45  ;;  %358 = vst.msk [vmem:[#allocation2 + $0x10c] sm:$0xf] %vm333_vm1, %v8359_v61  ;;  %v8361_v0 = vpack.c.bf16 %v198_v35, %v198_v35  ;;  %v8362_v6 = vpack.c.bf16 %v199_v46, %v199_v46  ;;  %v8363_v29 = vpack.c.bf16 %v200_v38, %v200_v38 }
  0x54   : > { %v916_v50 = vsel %vm9508_vm7, %v7843_v23, %v915_v30  ;;  %v680_v36 = vld [vmem:[#allocation2 + $0xe0] sm:$0x8]  ;;  %359 = vst.msk [vmem:[#allocation2 + $0x110] sm:$0xf] %vm333_vm1, %v8360_v10  ;;  %v8364_v63 = vpack.c.bf16 %v201_v60, %v201_v60  ;;  %v8365_v27 = vpack.c.bf16 %v202_v40, %v202_v40  ;;  %v8366_v7 = vpack.c.bf16 %v203_v62, %v203_v62 }
  0x55   : > { %v9761_v24 = vcombine.low %v916_v50, %v925_v34  ;;  %8758 = vmatmul.mubr.msk.bf16.gmra.mxu1 %vm1106_vm8, %v9743_v45  ;;  %v927_v39 = vshrl.u32 %v680_v36, 16  ;;  %v683_v35 = vld [vmem:[#allocation2 + $0xf4] sm:$0x8]  ;;  %v968_v46 = vor.u32 %v966_v48, %v965_v52  ;;  %360 = vst.msk [vmem:[#allocation2 + $0x120] sm:$0xf] %vm333_vm1, %v8361_v0  ;;  %v1869_v62 = vsel %vm1155_vm0, %v9636_v59, 0 }
  0x56   : > { %361 = vst.msk [vmem:[#allocation2 + $0x124] sm:$0xf] %vm333_vm1, %v8362_v6  ;;  %362 = vst.msk [vmem:[#allocation2 + $0x134] sm:$0xf] %vm333_vm1, %v8363_v29  ;;  %v949_v23 = vshrl.u32 %v683_v35, 16  ;;  %v959_v40 = vor.u32 %v957_v21, %v956_v33  ;;  %8808 = vmatpush3.bf16.msra.mxu1 %v1869_v62  ;;  %v947_v34 = vsel %vm9508_vm7, %v939_v32, %v946_v1 }
  0x57   : > { %369 = vst.msk [vmem:[#allocation2 + $0x15c] sm:$0xf] %vm333_vm1, %v8363_v29  ;;  %363 = vst.msk [vmem:[#allocation2 + $0x138] sm:$0xf] %vm333_vm1, %v8364_v63  ;;  %v7844_v30 = vrot.slane %v927_v39, 11  ;;  %8761 = vmatprep.mubr.msk.bf16.mxu1 %vm1106_vm8, %v9761_v24  ;;  %9322 = vmatprep.subr.msk.bf16.mxu1 %vm1155_vm0, %v9759_v12  ;;  %v969_v33 = vsel %vm9508_vm7, %v961_v51, %v968_v46 }
  0x58   : > { %370 = vst.msk [vmem:[#allocation2 + $0x160] sm:$0xf] %vm333_vm1, %v8364_v63  ;;  %364 = vst.msk [vmem:[#allocation2 + $0x148] sm:$0xf] %vm333_vm1, %v8365_v27  ;;  %8724 = vmatmul.mubr.msk.bf16.gmra.mxu0 %vm1106_vm8, %v9761_v24  ;;  %v7845_v59 = vrot.slane %v949_v23, 11 }
  0x59   : > { %365 = vst.msk [vmem:[#allocation2 + $0x14c] sm:$0xf] %vm333_vm1, %v8366_v7  ;;  %v938_v21 = vsel %vm9508_vm7, %v7844_v30, %v937_v19  ;;  %v485_v48 = vld [vmem:[#allocation2 + $0x108] sm:$0x8]  ;;  %v488_v0 = vld [vmem:[#allocation2 + $0x11c] sm:$0x8] }
  0x5a   : > { %v9787_v38 = vcombine.low %v938_v21, %v947_v34  ;;  %v960_v32 = vsel %vm9508_vm7, %v7845_v59, %v959_v40  ;;  %v384_v52 = vld [vmem:[#allocation2 + $0x10c] sm:$0x1]  ;;  %v491_v39 = vld [vmem:[#allocation2 + $0x130] sm:$0x8] }
  0x5b   : > { %v9791_v61 = vld [vmem:[#allocation2 + $0x10c] sm:$0xf]  ;;  %v420_v60 = vrot.slane %v384_v52, 5  ;;  %v9793_v1 = vld [vmem:[#allocation2 + $0x110] sm:$0xf]  ;;  %v9798_v19 = vcombine.low %v960_v32, %v969_v33 }
  0x5c   : > { %13418 = vst [vmem:[#allocation13_spill] sm:$0xff] %v9787_v38  ;;  %13419 = vst [vmem:[#allocation14_spill] sm:$0xff] %v9791_v61  ;;  %v976_v10 = vshrl.u32 %v9791_v61, 16  ;;  %8727 = vmatprep.mubr.msk.bf16.mxu0 %vm1106_vm8, %v9787_v38  ;;  %v985_v51 = vshrl.u32 %v9793_v1, 16  ;;  %v385_v6 = vld [vmem:[#allocation2 + $0x120] sm:$0x1] }
  0x5d   : > { %13420 = vst [vmem:[#allocation15_spill] sm:$0xff] %v9793_v1  ;;  %13421 = vst [vmem:[#allocation16_spill] sm:$0xff] %v9798_v19  ;;  %v9801_v29 = vld [vmem:[#allocation2 + $0x120] sm:$0xf]  ;;  %8762 = vmatmul.mubr.msk.bf16.gmra.mxu1 %vm1106_vm8, %v9787_v38  ;;  %v486_v50 = vsel %vm9469_vm4, %v420_v60, %v485_v48  ;;  %v421_v63 = vrot.slane %v385_v6, 5  ;;  %v988_v46 = vshll.u32 %v9793_v1, 16 }
  0x5e   : > { %13422 = vst [vmem:[#allocation17_spill] sm:$0xff] %v9801_v29  ;;  %v978_v36 = vrot.slane %v976_v10, 7  ;;  %v9807_v27 = vld [vmem:[#allocation2 + $0x124] sm:$0xf]  ;;  %v998_v7 = vshrl.u32 %v9801_v29, 16  ;;  %v987_v35 = vrot.slane %v985_v51, 7  ;;  %8765 = vmatprep.mubr.msk.bf16.mxu1 %vm1106_vm8, %v9798_v19 }
  0x5f   : > { %13423 = vst [vmem:[#allocation18_spill] sm:$0xff] %v9807_v27  ;;  %487 = vst [vmem:[#allocation2 + $0x108] sm:$0x8] %v486_v50  ;;  %v1007_v62 = vshrl.u32 %v9807_v27, 16  ;;  %v386_v23 = vld [vmem:[#allocation2 + $0x134] sm:$0x1]  ;;  %v489_v30 = vsel %vm9469_vm4, %v421_v63, %v488_v0 }
  0x60   : > { %v979_v40 = vshll.u32 %v9791_v61, 16  ;;  %v9817_v34 = vld [vmem:[#allocation2 + $0x134] sm:$0xf]  ;;  %v9819_v59 = vld [vmem:[#allocation2 + $0x138] sm:$0xf]  ;;  %8728 = vmatmul.mubr.msk.bf16.gmra.mxu0 %vm1106_vm8, %v9798_v19  ;;  %v1000_v21 = vrot.slane %v998_v7, 7  ;;  %v990_v6 = vor.u32 %v988_v46, %v987_v35 }
  0x61   : > { %13424 = vst [vmem:[#allocation19_spill] sm:$0xff] %v9817_v34  ;;  %13425 = vst [vmem:[#allocation20_spill] sm:$0xff] %v9819_v59  ;;  %v1001_v33 = vshll.u32 %v9801_v29, 16  ;;  %v422_v32 = vrot.slane %v386_v23, 5  ;;  %v1020_v52 = vshrl.u32 %v9817_v34, 16  ;;  %v983_v60 = vrot.slane %v978_v36, 4 }
  0x62   : > { %490 = vst [vmem:[#allocation2 + $0x11c] sm:$0x8] %v489_v30  ;;  %v387_v48 = vld [vmem:[#allocation2 + $0x148] sm:$0x1]  ;;  %v1010_v10 = vshll.u32 %v9807_v27, 16  ;;  %v1029_v0 = vshrl.u32 %v9819_v59, 16  ;;  %v981_v19 = vor.u32 %v979_v40, %v978_v36 }
  0x63   : > { %v9827_v51 = vld [vmem:[#allocation2 + $0x148] sm:$0xf]  ;;  %v1009_v50 = vrot.slane %v1007_v62, 7  ;;  %v492_v63 = vsel %vm9469_vm4, %v422_v32, %v491_v39  ;;  %v1022_v30 = vrot.slane %v1020_v52, 7  ;;  %v494_v7 = vld [vmem:[#allocation2 + $0x144] sm:$0x8]  ;;  %v1003_v38 = vor.u32 %v1001_v33, %v1000_v21 }
  0x64   : > { %v9831_v61 = vld [vmem:[#allocation2 + $0x14c] sm:$0xf]  ;;  %493 = vst [vmem:[#allocation2 + $0x130] sm:$0x8] %v492_v63  ;;  %v1031_v23 = vrot.slane %v1029_v0, 7  ;;  %v1032_v29 = vshll.u32 %v9819_v59, 16  ;;  %v991_v0 = vsel %vm9508_vm7, %v983_v60, %v990_v6 }
  0x65   : > { %v423_v1 = vrot.slane %v387_v48, 5  ;;  %v1042_v27 = vshrl.u32 %v9827_v51, 16  ;;  %v388_v49 = vld [vmem:[#allocation2 + $0x15c] sm:$0x1]  ;;  %v1005_v46 = vrot.slane %v1000_v21, 4  ;;  %v1023_v62 = vshll.u32 %v9817_v34, 16 }
  0x66   : > { %v686_v35 = vld [vmem:[#allocation2 + $0x108] sm:$0x8]  ;;  %v1051_v32 = vshrl.u32 %v9831_v61, 16  ;;  %v1012_v48 = vor.u32 %v1010_v10, %v1009_v50  ;;  %v424_v63 = vrot.slane %v388_v49, 5  ;;  %v1027_v36 = vrot.slane %v1022_v30, 4 }
  0x67   : > { %v495_v39 = vsel %vm9469_vm4, %v423_v1, %v494_v7  ;;  %v971_v52 = vshrl.u32 %v686_v35, 16  ;;  %v1034_v40 = vor.u32 %v1032_v29, %v1031_v23  ;;  %v1044_v33 = vrot.slane %v1042_v27, 7 }
  0x68   : > { %496 = vst [vmem:[#allocation2 + $0x144] sm:$0x8] %v495_v39  ;;  %v1054_v21 = vshll.u32 %v9831_v61, 16  ;;  %v1053_v9 = vrot.slane %v1051_v32, 7  ;;  %v498_v1 = vsel %vm9469_vm4, %v424_v63, %v497_v47  ;;  %v1013_v49 = vsel %vm9508_vm7, %v1005_v46, %v1012_v48 }
  0x69   : > { %v689_v59 = vld [vmem:[#allocation2 + $0x11c] sm:$0x8]  ;;  %v7846_v54 = vrot.slane %v971_v52, 11  ;;  %499 = vst [vmem:[#allocation2 + $0x158] sm:$0x8] %v498_v1  ;;  %v1045_v29 = vshll.u32 %v9827_v51, 16  ;;  %v1025_v50 = vor.u32 %v1023_v62, %v1022_v30  ;;  %v1035_v47 = vsel %vm9508_vm7, %v1027_v36, %v1034_v40 }
  0x6a   : > { %v993_v34 = vshrl.u32 %v689_v59, 16  ;;  %v500_v59 = vld [vmem:[#allocation2 + $0xc] sm:$0x8]  ;;  %v1049_v35 = vrot.slane %v1044_v33, 4  ;;  %v13426_v32 = vmov 0 }
  0x6b   : > { %v982_v7 = vsel %vm9508_vm7, %v7846_v54, %v981_v19  ;;  %v692_v10 = vld [vmem:[#allocation2 + $0x130] sm:$0x8]  ;;  %v1056_v54 = vor.u32 %v1054_v21, %v1053_v9  ;;  %v501_v19 = vld [vmem:[#allocation2 + $0x20] sm:$0x8]  ;;  %v7815_v62 = vrot.slane %v500_v59, 11  ;;  %v13427_v32 = vsel %vm9862_vm10, 4294967295, %v13426_v32 }
  0x6c   : > { %v7847_v60 = vrot.slane %v993_v34, 11  ;;  %v9849_v27 = vcombine.low %v982_v7, %v991_v0  ;;  %v1015_v6 = vshrl.u32 %v692_v10, 16  ;;  %13428 = vst [vmem:[#allocation21_spill] sm:$0xff] %v13427_v32  ;;  %v593_v9 = vld [vmem:[#allocation2 + $0x10] sm:$0x1]  ;;  %v7816_v52 = vrot.slane %v501_v19, 11 }
  0x6d   : > { %v596_v0 = vld [vmem:[#allocation2 + $0x24] sm:$0x1]  ;;  %v594_v63 = vsel %vm9862_vm10, %v7815_v62, %v593_v9  ;;  %v502_v21 = vld [vmem:[#allocation2 + $0x34] sm:$0x8]  ;;  %v503_v59 = vld [vmem:[#allocation2 + $0x48] sm:$0x8]  ;;  %v9957_v19 = vcombine.low %v9569_v37, %v9579_v53  ;;  %v9973_v53 = vcombine.low %v9589_v8, %v9599_v14 }
  0x6e   : > { %v1004_v23 = vsel %vm9508_vm7, %v7847_v60, %v1003_v38  ;;  %8731 = vmatprep.mubr.msk.bf16.mxu0 %vm1106_vm8, %v9849_v27  ;;  %8766 = vmatmul.mubr.msk.bf16.gmra.mxu1 %vm1106_vm8, %v9849_v27  ;;  %v7848_v46 = vrot.slane %v1015_v6, 11  ;;  %v1047_v38 = vor.u32 %v1045_v29, %v1044_v33  ;;  %v1057_v33 = vsel %vm9508_vm7, %v1049_v35, %v1056_v54  ;;  %v599_v29 = vld [vmem:[#allocation2 + $0x38] sm:$0x1]  ;;  %v505_v54 = vld [vmem:[#allocation2 + $0x70] sm:$0x8] }
  0x6f   : > { %v9857_v34 = vcombine.low %v1004_v23, %v1013_v49  ;;  %v695_v30 = vld [vmem:[#allocation2 + $0x144] sm:$0x8]  ;;  %595 = vst [vmem:[#allocation2 + $0x10] sm:$0x1] %v594_v63  ;;  %v597_v1 = vsel %vm9862_vm10, %v7816_v52, %v596_v0  ;;  %v7920_v60 = vcombine.low %v9497_v3, %v9499_v4  ;;  %v7817_v10 = vrot.slane %v502_v21, 11  ;;  %v13432_v63 = vld [vmem:[#allocation7_spill] sm:$0xff] }
  0x70   : > { %v1037_v39 = vshrl.u32 %v695_v30, 16  ;;  %v1026_v48 = vsel %vm9508_vm7, %v7848_v46, %v1025_v50  ;;  %598 = vst [vmem:[#allocation2 + $0x24] sm:$0x1] %v597_v1  ;;  %v9899_v3 = vcombine.low %v9485_v56, %v9487_v57  ;;  %v9903_v4 = vcombine.low %v9517_v16, %v9519_v20  ;;  %v9910_v23 = vld [vmem:[%s13370_s1 + $0xa] sm:$0x3]  ;;  %v13433_v1 = vld [vmem:[#allocation13_spill] sm:$0xff] }
  0x71   : > { %8732 = vmatmul.mubr.msk.bf16.gmra.mxu0 %vm1106_vm8, %v9857_v34  ;;  %8769 = vmatprep.mubr.msk.bf16.mxu1 %vm1106_vm8, %v9857_v34  ;;  %v9874_v36 = vcombine.low %v1026_v48, %v1035_v47  ;;  %v600_v6 = vsel %vm9862_vm10, %v7817_v10, %v599_v29  ;;  %v2281_v50 = vsel %vm1155_vm0, %v9759_v12, 0  ;;  %v602_v56 = vld [vmem:[#allocation2 + $0x4c] sm:$0x1]  ;;  %v9921_v57 = vld [vmem:[%s13370_s1 + $0x4] sm:$0x3]  ;;  %v7818_v16 = vrot.slane %v503_v59, 11 }
  0x72   : > { %v7849_v40 = vrot.slane %v1037_v39, 11  ;;  %601 = vst [vmem:[#allocation2 + $0x38] sm:$0x1] %v600_v6  ;;  %v9933_v12 = vcombine.low %v9524_v26, %v9530_v31  ;;  %v605_v47 = vld [vmem:[#allocation2 + $0x60] sm:$0x1]  ;;  %v7820_v31 = vrot.slane %v505_v54, 11  ;;  %v9977_v39 = vcombine.low %v9604_v13, %v9621_v41 }
  0x73   : > { %8735 = vmatprep.mubr.msk.bf16.mxu0 %vm1106_vm8, %v9874_v36  ;;  %v603_v20 = vsel %vm9862_vm10, %v7818_v16, %v602_v56  ;;  %v608_v26 = vld [vmem:[#allocation2 + $0x74] sm:$0x1]  ;;  %v611_v30 = vld [vmem:[#allocation2 + $0x88] sm:$0x1]  ;;  %v508_v62 = vld [vmem:[#allocation2 + $0xac] sm:$0x8] }
  0x74   : > { %v1048_v7 = vsel %vm9508_vm7, %v7849_v40, %v1047_v38  ;;  %604 = vst [vmem:[#allocation2 + $0x4c] sm:$0x1] %v603_v20  ;;  %v609_v46 = vsel %vm9862_vm10, %v7820_v31, %v608_v26  ;;  %v7823_v9 = vrot.slane %v508_v62, 11  ;;  %v509_v14 = vld [vmem:[#allocation2 + $0xc0] sm:$0x8]  ;;  %v13430_v41 = vld [vmem:[#allocation5_spill] sm:$0xff] }
  0x75   : > { %v9886_v49 = vcombine.low %v1048_v7, %v1057_v33  ;;  %610 = vst [vmem:[#allocation2 + $0x74] sm:$0x1] %v609_v46  ;;  %v13429_v13 = vld [vmem:[#allocation6_spill] sm:$0xff]  ;;  %v7824_v52 = vrot.slane %v509_v14, 11  ;;  %v13431_v48 = vld [vmem:[#allocation8_spill] sm:$0xff]  ;;  %v13436_v6 = vld [vmem:[#allocation9_spill] sm:$0xff] }
  0x76   : > { %8770 = vmatmul.mubr.msk.bf16.gmra.mxu1 %vm1106_vm8, %v9874_v36  ;;  %v620_v0 = vld [vmem:[#allocation2 + $0xc4] sm:$0x1]  ;;  %v9997_v40 = vcombine.low %v13432_v63, %v13431_v48  ;;  %v510_v33 = vld [vmem:[#allocation2 + $0xd4] sm:$0x8]  ;;  %v511_v10 = vld [vmem:[#allocation2 + $0xe8] sm:$0x8] }
  0x77   : > { %8809 = vmatprep.mubr.msk.bf16.mxu1 %vm1106_vm8, %v7920_v60  ;;  %v621_v21 = vsel %vm9862_vm10, %v7824_v52, %v620_v0  ;;  %v13434_v7 = vld [vmem:[#allocation16_spill] sm:$0xff]  ;;  %v10009_v60 = vld [vmem:[#allocation2 + $0x15c] sm:$0xf]  ;;  %v13435_v29 = vld [vmem:[#allocation10_spill] sm:$0xff] }
  0x78   : > { %622 = vst [vmem:[#allocation2 + $0xc4] sm:$0x1] %v621_v21  ;;  %v10015_v59 = vld [vmem:[#allocation2 + $0x160] sm:$0xf]  ;;  %v13437_v56 = vld [vmem:[#allocation12_spill] sm:$0xff]  ;;  %v13438_v16 = vld [vmem:[#allocation11_spill] sm:$0xff] }
  0x79   : > { %8736 = vmatmul.mubr.msk.bf16.gmra.mxu0 %vm1106_vm8, %v9886_v49  ;;  %v10021_v20 = vcombine.low %v13438_v16, %v13437_v56  ;;  %v512_v54 = vld [vmem:[#allocation2 + $0xfc] sm:$0x8]  ;;  %v698_v26 = vld [vmem:[#allocation2 + $0x158] sm:$0x8]  ;;  %v13440_v62 = vld [vmem:[#allocation14_spill] sm:$0xff] }
  0x7a   : > { %8775 = vmatprep.mubr.msk.bf16.mxu0 %vm1106_vm8, %v9582_v58  ;;  %v2075_v58 = vsel %vm1155_vm0, %v9648_v2, 0  ;;  %v504_v2 = vld [vmem:[#allocation2 + $0x5c] sm:$0x8]  ;;  %v632_v48 = vld [vmem:[#allocation2 + $0x114] sm:$0x1] }
  0x7b   : > { %v7819_v35 = vrot.slane %v504_v2, 11  ;;  %v626_v2 = vld [vmem:[#allocation2 + $0xec] sm:$0x1]  ;;  %v514_v63 = vld [vmem:[#allocation2 + $0x124] sm:$0x8] }
  0x7c   : > { %v516_v16 = vld [vmem:[#allocation2 + $0x14c] sm:$0x8] }
  0x7e   : > { %8810 = vmatmul.mubr.msk.bf16.vlgmr.msra.gmra.mxu1 %vm1106_vm8, %v9899_v3 }
  0x7f   : > { %8813 = vmatprep.mubr.msk.bf16.mxu1 %vm1106_vm8, %v9903_v4  ;;  %8876 = vmatpush3.bf16.msra.mxu1 %v2281_v50  ;;  %v10013_v50 = vcombine.low %v13436_v6, %v13435_v29  ;;  %v635_v29 = vld [vmem:[#allocation2 + $0x128] sm:$0x1]  ;;  %v515_v6 = vld [vmem:[#allocation2 + $0x138] sm:$0x8] }
  0x80   : > { %9324 = vmatprep.subr.msk.bf16.mxu1 %vm1155_vm0, %v9910_v23  ;;  %v7830_v56 = vrot.slane %v515_v6, 11 }
  0x81   : > { %8776 = vmatmul.mubr.msk.bf16.vlgmr.msra.gmra.mxu0 %vm1106_vm8, %v9602_v15  ;;  %v9939_v15 = vcombine.low %v9536_v42, %v9545_v55  ;;  %v9953_v42 = vcombine.low %v9554_v17, %v9562_v25  ;;  %v506_v55 = vld [vmem:[#allocation2 + $0x84] sm:$0x8]  ;;  %v614_v25 = vld [vmem:[#allocation2 + $0x9c] sm:$0x1] }
  0x82   : > { %8842 = vmatpush3.bf16.msra.mxu0 %v2075_v58  ;;  %8779 = vmatprep.mubr.msk.bf16.mxu0 %vm1106_vm8, %v9616_v22  ;;  %v606_v22 = vsel %vm9862_vm10, %v7819_v35, %v605_v47  ;;  %v1520_v47 = vshrl.u32 %v10009_v60, 16  ;;  %v7826_v35 = vrot.slane %v511_v10, 11  ;;  %v7829_v10 = vrot.slane %v514_v63, 11 }
  0x83   : > { %9323 = vmatprep.subr.msk.bf16.mxu0 %vm1155_vm0, %v9921_v57  ;;  %607 = vst [vmem:[#allocation2 + $0x60] sm:$0x1] %v606_v22  ;;  %v1529_v22 = vshrl.u32 %v10015_v59, 16 }
  0x84   : > { %v627_v31 = vsel %vm9862_vm10, %v7826_v35, %v626_v2  ;;  %v1522_v46 = vrot.slane %v1520_v47, 7  ;;  %v641_v47 = vld [vmem:[#allocation2 + $0x150] sm:$0x1]  ;;  %v7831_v35 = vrot.slane %v516_v16, 11 }
  0x85   : > { %628 = vst [vmem:[#allocation2 + $0xec] sm:$0x1] %v627_v31 }
  0x86   : > { %8814 = vmatmul.mubr.msk.bf16.gmra.mxu1 %vm1106_vm8, %v9933_v12 }
  0x87   : > { %8817 = vmatprep.mubr.msk.bf16.mxu1 %vm1106_vm8, %v9939_v15 }
  0x89   : > { %8780 = vmatmul.mubr.msk.bf16.gmra.mxu0 %vm1106_vm8, %v9652_v5  ;;  %v7821_v5 = vrot.slane %v506_v55, 11  ;;  %v629_v55 = vld [vmem:[#allocation2 + $0x100] sm:$0x1] }
  0x8a   : > { %8783 = vmatprep.mubr.msk.bf16.mxu0 %vm1106_vm8, %v9674_v44  ;;  %v507_v44 = vld [vmem:[#allocation2 + $0x98] sm:$0x8] }
  0x8b   : > { %v612_v17 = vsel %vm9862_vm10, %v7821_v5, %v611_v30  ;;  %v7822_v37 = vrot.slane %v507_v44, 11  ;;  %v7827_v30 = vrot.slane %v512_v54, 11  ;;  %v1515_v5 = vshrl.u32 %v698_v26, 16 }
  0x8c   : > { %613 = vst [vmem:[#allocation2 + $0x88] sm:$0x1] %v612_v17  ;;  %v1523_v44 = vshll.u32 %v10009_v60, 16  ;;  %v1531_v17 = vrot.slane %v1529_v22, 7  ;;  %v3244_v22 = vsel %vm1155_vm0, %v9910_v23, 0  ;;  %v642_v54 = vsel %vm9862_vm10, %v7831_v35, %v641_v47 }
  0x8d   : > { %v615_v38 = vsel %vm9862_vm10, %v7822_v37, %v614_v25  ;;  %v1532_v25 = vshll.u32 %v10015_v59, 16  ;;  %v13439_v37 = vld [vmem:[#allocation15_spill] sm:$0xff]  ;;  %v3016_v26 = vsel %vm1155_vm0, %v9921_v57, 0  ;;  %643 = vst [vmem:[#allocation2 + $0x150] sm:$0x1] %v642_v54 }
  0x8e   : > { %8818 = vmatmul.mubr.msk.bf16.gmra.mxu1 %vm1106_vm8, %v9953_v42  ;;  %616 = vst [vmem:[#allocation2 + $0x9c] sm:$0x1] %v615_v38  ;;  %v10039_v38 = vcombine.low %v13440_v62, %v13439_v37  ;;  %v2477_v23 = vld [vmem:[#allocation2 + $0xc] sm:$0xf]  ;;  %v2478_v37 = vld [vmem:[#allocation2 + $0x10] sm:$0x1] }
  0x8f   : > { %8821 = vmatprep.mubr.msk.bf16.mxu1 %vm1106_vm8, %v9957_v19  ;;  %v1534_v52 = vor.u32 %v1532_v25, %v1531_v17  ;;  %v2545_v31 = vshll.u32 %v2477_v23, 16  ;;  %v2488_v47 = vld [vmem:[#allocation2 + $0x58] sm:$0xf] }
  0x91   : > { %8784 = vmatmul.mubr.msk.bf16.gmra.mxu0 %vm1106_vm8, %v9699_v28  ;;  %v617_v28 = vld [vmem:[#allocation2 + $0xb0] sm:$0x1]  ;;  %v2547_v17 = vrot.slane %v2545_v31, 5 }
  0x92   : > { %8787 = vmatprep.mubr.msk.bf16.mxu0 %vm1106_vm8, %v9715_v18  ;;  %v618_v8 = vsel %vm9862_vm10, %v7823_v9, %v617_v28  ;;  %v9993_v18 = vcombine.low %v13430_v41, %v13429_v13  ;;  %v630_v28 = vsel %vm9862_vm10, %v7827_v30, %v629_v55  ;;  %v513_v9 = vld [vmem:[#allocation2 + $0x110] sm:$0x8]  ;;  %v7901_v13 = vrot.slane %v1515_v5, 11 }
  0x93   : > { %619 = vst [vmem:[#allocation2 + $0xb0] sm:$0x1] %v618_v8  ;;  %v13442_v8 = vld [vmem:[#allocation17_spill] sm:$0xff]  ;;  %631 = vst [vmem:[#allocation2 + $0x100] sm:$0x1] %v630_v28  ;;  %v1525_v41 = vor.u32 %v1523_v44, %v1522_v46  ;;  %v7828_v0 = vrot.slane %v513_v9, 11 }
  0x94   : > { %v2549_v55 = vshrl.u32 %v2477_v23, 16  ;;  %v10142_v23 = vcombine.low %v9827_v51, %v9831_v61 }
  0x95   : > { %v1526_v21 = vsel %vm9508_vm7, %v7901_v13, %v1525_v41  ;;  %v2481_v13 = vld [vmem:[#allocation2 + $0x24] sm:$0x1] }
  0x96   : > { %8822 = vmatmul.mubr.msk.bf16.gmra.mxu1 %vm1106_vm8, %v9973_v53  ;;  %v2551_v25 = vrot.slane %v2549_v55, 4 }
  0x97   : > { %8825 = vmatprep.mubr.msk.bf16.mxu1 %vm1106_vm8, %v9977_v39 }
  0x99   : > { %8788 = vmatmul.mubr.msk.bf16.gmra.mxu0 %vm1106_vm8, %v9743_v45  ;;  %v7825_v45 = vrot.slane %v510_v33, 11  ;;  %v633_v33 = vsel %vm9862_vm10, %v7828_v0, %v632_v48 }
  0x9a   : > { %8791 = vmatprep.mubr.msk.bf16.mxu0 %vm1106_vm8, %v9761_v24  ;;  %v623_v24 = vld [vmem:[#allocation2 + $0xd8] sm:$0x1]  ;;  %634 = vst [vmem:[#allocation2 + $0x114] sm:$0x1] %v633_v33 }
  0x9b   : > { %v624_v58 = vsel %vm9862_vm10, %v7825_v45, %v623_v24  ;;  %v13443_v24 = vld [vmem:[#allocation20_spill] sm:$0xff] }
  0x9c   : > { %625 = vst [vmem:[#allocation2 + $0xd8] sm:$0x1] %v624_v58  ;;  %v636_v58 = vsel %vm9862_vm10, %v7829_v10, %v635_v29 }
  0x9d   : > { %637 = vst [vmem:[#allocation2 + $0x128] sm:$0x1] %v636_v58 }
  0x9e   : > { %8826 = vmatmul.mubr.msk.bf16.gmra.mxu1 %vm1106_vm8, %v9993_v18 }
  0x9f   : > { %8829 = vmatprep.mubr.msk.bf16.mxu1 %vm1106_vm8, %v9997_v40 }
  0xa1   : > { %8792 = vmatmul.mubr.msk.bf16.gmra.mxu0 %vm1106_vm8, %v13433_v1  ;;  %v13444_v1 = vld [vmem:[#allocation19_spill] sm:$0xff] }
  0xa2   : > { %8795 = vmatprep.mubr.msk.bf16.mxu0 %vm1106_vm8, %v13434_v7  ;;  %v10063_v7 = vcombine.low %v13444_v1, %v13443_v24 }
  0xa6   : > { %8830 = vmatmul.mubr.msk.bf16.gmra.mxu1 %vm1106_vm8, %v10013_v50 }
  0xa7   : > { %8833 = vmatprep.mubr.msk.bf16.mxu1 %vm1106_vm8, %v10021_v20 }
  0xa9   : > { %8796 = vmatmul.mubr.msk.bf16.gmra.mxu0 %vm1106_vm8, %v9849_v27  ;;  %v13441_v27 = vld [vmem:[#allocation18_spill] sm:$0xff] }
  0xaa   : > { %8799 = vmatprep.mubr.msk.bf16.mxu0 %vm1106_vm8, %v9857_v34  ;;  %v10045_v14 = vcombine.low %v13442_v8, %v13441_v27  ;;  %v1527_v34 = vrot.slane %v1522_v46, 4  ;;  %v2479_v46 = vld [vmem:[#allocation2 + $0x1c] sm:$0xf]  ;;  %v2552_v27 = vor.u32 %v2551_v25, %v2547_v17 }
  0xab   : > { %v2563_v30 = vshll.u32 %v2479_v46, 16 }
  0xac   : > { %v1535_v45 = vsel %vm9508_vm7, %v1527_v34, %v1534_v52  ;;  %v2482_v34 = vld [vmem:[#allocation2 + $0x30] sm:$0xf]  ;;  %v2553_v48 = vrot.slane %v2552_v27, 4  ;;  %v2494_v27 = vld [vmem:[#allocation2 + $0x80] sm:$0xf] }
  0xad   : > { %v2565_v8 = vrot.slane %v2563_v30, 5  ;;  %v2584_v24 = vshrl.u32 %v2482_v34, 16  ;;  %v2587_v10 = vshll.u32 %v2482_v34, 16  ;;  %v2635_v30 = vshll.u32 %v2488_v47, 16 }
  0xae   : > { %8834 = vmatmul.mubr.msk.bf16.gmra.mxu1 %vm1106_vm8, %v10039_v38 }
  0xaf   : > { %8837 = vmatprep.mubr.msk.bf16.mxu1 %vm1106_vm8, %v10045_v14  ;;  %v2586_v16 = vrot.slane %v2584_v24, 4  ;;  %v2589_v54 = vrot.slane %v2587_v10, 5  ;;  %v2683_v10 = vshll.u32 %v2494_v27, 16 }
  0xb1   : > { %8800 = vmatmul.mubr.msk.bf16.gmra.mxu0 %vm1106_vm8, %v9874_v36  ;;  %v7902_v36 = vcombine.low %v1526_v21, %v1535_v45  ;;  %v13445_v21 = vmov 0  ;;  %v2579_v45 = vshll.u32 %v2481_v13, 16 }
  0xb2   : > { %8803 = vmatprep.mubr.msk.bf16.mxu0 %vm1106_vm8, %v9886_v49  ;;  %v638_v49 = vld [vmem:[#allocation2 + $0x13c] sm:$0x1]  ;;  %v13446_v21 = vsel %vm10123_vm13, 4294967295, %v13445_v21 }
  0xb3   : > { %v639_v2 = vsel %vm9862_vm10, %v7830_v56, %v638_v49  ;;  %13447 = vst [vmem:[#allocation6_spill] sm:$0xff] %v13446_v21  ;;  %v2486_v49 = vld [vmem:[#allocation2 + $0x48] sm:$0xf]  ;;  %v2581_v56 = vrot.slane %v2579_v45, 5 }
  0xb4   : > { %640 = vst [vmem:[#allocation2 + $0x13c] sm:$0x1] %v639_v2  ;;  %v2621_v55 = vshrl.u32 %v2486_v49, 16 }
  0xb6   : > { %8838 = vmatmul.mubr.msk.bf16.gmra.mxu1 %vm1106_vm8, %v10063_v7 }
  0xb7   : > { %8877 = vmatprep.mubr.msk.bf16.mxu1 %vm1106_vm8, %v9903_v4 }
  0xb9   : > { %8804 = vmatmul.mubr.msk.bf16.gmra.mxu0 %vm1106_vm8, %v7902_v36 }
  0xba   : > { %8843 = vmatprep.mubr.msk.bf16.mxu0 %vm1106_vm8, %v9899_v3  ;;  %v10089_v3 = vld [vmem:[%s13370_s1 + $0x10] sm:$0x3] }
  0xbe   : > { %8878 = vmatmul.mubr.msk.bf16.vlgmr.msra.gmra.mxu1 %vm1106_vm8, %v9933_v12 }
  0xbf   : > { %8881 = vmatprep.mubr.msk.bf16.mxu1 %vm1106_vm8, %v9939_v15  ;;  %8944 = vmatpush3.bf16.msra.mxu1 %v3244_v22  ;;  %v2484_v22 = vld [vmem:[#allocation2 + $0x38] sm:$0x1] }
  0xc0   : > { %v2603_v51 = vshll.u32 %v2484_v22, 16 }
  0xc1   : > { %8844 = vmatmul.mubr.msk.bf16.vlgmr.msra.gmra.mxu0 %vm1106_vm8, %v9903_v4  ;;  %v2476_v4 = vld [vmem:[#allocation2 + $0x8] sm:$0xf] }
  0xc2   : > { %8910 = vmatpush3.bf16.msra.mxu0 %v3016_v26  ;;  %8847 = vmatprep.mubr.msk.bf16.mxu0 %vm1106_vm8, %v9933_v12  ;;  %v2536_v57 = vshrl.u32 %v2476_v4, 16  ;;  %v2539_v12 = vshll.u32 %v2476_v4, 16 }
  0xc3   : > { %9325 = vmatprep.subr.msk.bf16.mxu0 %vm1155_vm0, %v10089_v3 }
  0xc4   : > { %v2538_v5 = vrot.slane %v2536_v57, 4  ;;  %v2541_v44 = vrot.slane %v2539_v12, 5  ;;  %v7971_v57 = vcombine.low %v10009_v60, %v10015_v59  ;;  %v2617_v12 = vshll.u32 %v2486_v49, 16 }
  0xc6   : > { %8882 = vmatmul.mubr.msk.bf16.gmra.mxu1 %vm1106_vm8, %v9953_v42 }
  0xc7   : > { %8885 = vmatprep.mubr.msk.bf16.mxu1 %vm1106_vm8, %v9957_v19 }
  0xc9   : > { %8848 = vmatmul.mubr.msk.bf16.gmra.mxu0 %vm1106_vm8, %v9939_v15  ;;  %v2480_v15 = vld [vmem:[#allocation2 + $0x20] sm:$0xf] }
  0xca   : > { %8851 = vmatprep.mubr.msk.bf16.mxu0 %vm1106_vm8, %v9953_v42  ;;  %v2560_v42 = vshrl.u32 %v2479_v46, 16  ;;  %v2569_v62 = vshll.u32 %v2480_v15, 16  ;;  %v2573_v28 = vshrl.u32 %v2480_v15, 16  ;;  %v2489_v46 = vld [vmem:[#allocation2 + $0x5c] sm:$0xf]  ;;  %v2632_v15 = vshrl.u32 %v2488_v47, 16 }
  0xcc   : > { %v2562_v9 = vrot.slane %v2560_v42, 4  ;;  %v10121_v41 = vrot.slane %v2569_v62, 5  ;;  %v2575_v52 = vrot.slane %v2573_v28, 4  ;;  %v10155_v42 = vsel %vm1155_vm0, %v10089_v3, 0  ;;  %v2492_v62 = vld [vmem:[#allocation2 + $0x70] sm:$0xf] }
  0xcd   : > { %v517_v28 = vld [vmem:[#allocation2 + $0x160] sm:$0x8]  ;;  %v2645_v3 = vshrl.u32 %v2489_v46, 16  ;;  %v2634_v34 = vrot.slane %v2632_v15, 4 }
  0xce   : > { %8886 = vmatmul.mubr.msk.bf16.gmra.mxu1 %vm1106_vm8, %v9973_v53  ;;  %v2566_v33 = vor.u32 %v2565_v8, %v2562_v9  ;;  %v2576_v1 = vor.u32 %v2575_v52, %v10121_v41  ;;  %v10161_v9 = vrot.slane %v2617_v12, 5  ;;  %v2623_v8 = vrot.slane %v2621_v55, 4  ;;  %v644_v52 = vld [vmem:[#allocation2 + $0x164] sm:$0x1] }
  0xcf   : > { %8889 = vmatprep.mubr.msk.bf16.mxu1 %vm1106_vm8, %v9977_v39  ;;  %v2685_v12 = vrot.slane %v2683_v10, 5  ;;  %v2501_v10 = vld [vmem:[#allocation2 + $0xac] sm:$0xf] }
  0xd0   : > { %v2567_v6 = vrot.slane %v2566_v33, 4  ;;  %v2577_v35 = vrot.slane %v2576_v1, 4  ;;  %v2669_v33 = vshrl.u32 %v2492_v62, 16  ;;  %v2680_v1 = vshrl.u32 %v2494_v27, 16 }
  0xd1   : > { %8852 = vmatmul.mubr.msk.bf16.gmra.mxu0 %vm1106_vm8, %v9957_v19  ;;  %v2542_v19 = vor.u32 %v2541_v44, %v2538_v5  ;;  %v2491_v5 = vld [vmem:[#allocation2 + $0x6c] sm:$0xf] }
  0xd2   : > { %8855 = vmatprep.mubr.msk.bf16.mxu0 %vm1106_vm8, %v9973_v53  ;;  %v2555_v53 = vshll.u32 %v2478_v37, 16  ;;  %v2572_v31 = vsel %vm10123_vm13, %v2567_v6, %v10121_v41  ;;  %v2582_v44 = vsel %vm10123_vm13, %v2577_v35, %v2581_v56  ;;  %v2656_v13 = vshrl.u32 %v2491_v5, 16  ;;  %v2495_v6 = vld [vmem:[#allocation2 + $0x84] sm:$0xf]  ;;  %v2490_v56 = vld [vmem:[#allocation2 + $0x60] sm:$0x1] }
  0xd3   : > { %v2543_v0 = vrot.slane %v2542_v19, 4  ;;  %v2641_v19 = vshll.u32 %v2489_v46, 16  ;;  %v2659_v41 = vshll.u32 %v2491_v5, 16  ;;  %v2671_v22 = vrot.slane %v2669_v33, 4 }
  0xd4   : > { %v2557_v63 = vrot.slane %v2555_v53, 5  ;;  %v7832_v53 = vrot.slane %v517_v28, 11  ;;  %v2693_v55 = vshrl.u32 %v2495_v6, 16 }
  0xd5   : > { %v2548_v29 = vsel %vm10123_vm13, %v2543_v0, %v2547_v17  ;;  %v2590_v17 = vor.u32 %v2589_v54, %v2586_v16  ;;  %v2487_v0 = vld [vmem:[#allocation2 + $0x4c] sm:$0x1]  ;;  %v2658_v16 = vrot.slane %v2656_v13, 4  ;;  %v2497_v54 = vld [vmem:[#allocation2 + $0x94] sm:$0xf] }
  0xd6   : > { %8890 = vmatmul.mubr.msk.bf16.gmra.mxu1 %vm1106_vm8, %v9993_v18  ;;  %v2558_v36 = vsel %vm10123_vm13, %v2553_v48, %v2557_v63  ;;  %v2637_v48 = vrot.slane %v2635_v30, 5  ;;  %v2665_v63 = vshll.u32 %v2492_v62, 16  ;;  %v645_v45 = vsel %vm9862_vm10, %v7832_v53, %v644_v52  ;;  %v2493_v30 = vld [vmem:[#allocation2 + $0x74] sm:$0x1]  ;;  %v2500_v52 = vld [vmem:[#allocation2 + $0xa8] sm:$0xf] }
  0xd7   : > { %8893 = vmatprep.mubr.msk.bf16.mxu1 %vm1106_vm8, %v9997_v40  ;;  %v10173_v24 = vrot.slane %v2590_v17, 4  ;;  %646 = vst [vmem:[#allocation2 + $0x164] sm:$0x1] %v645_v45  ;;  %v2627_v49 = vshll.u32 %v2487_v0, 16  ;;  %v2704_v5 = vshrl.u32 %v2497_v54, 16 }
  0xd8   : > { %v2638_v47 = vor.u32 %v2637_v48, %v2634_v34  ;;  %v10181_v35 = vrot.slane %v2665_v63, 5  ;;  %v2496_v0 = vld [vmem:[#allocation2 + $0x88] sm:$0x1] }
  0xd9   : > { %8856 = vmatmul.mubr.msk.bf16.gmra.mxu0 %vm1106_vm8, %v9977_v39  ;;  %v2483_v39 = vld [vmem:[#allocation2 + $0x34] sm:$0xf]  ;;  %v2629_v62 = vrot.slane %v2627_v49, 5  ;;  %v2706_v48 = vrot.slane %v2704_v5, 4  ;;  %v2504_v5 = vld [vmem:[#allocation2 + $0xc0] sm:$0xf] }
  0xda   : > { %8859 = vmatprep.mubr.msk.bf16.mxu0 %vm1106_vm8, %v9993_v18  ;;  %v2485_v18 = vld [vmem:[#allocation2 + $0x44] sm:$0xf]  ;;  %v2593_v58 = vshll.u32 %v2483_v39, 16  ;;  %v2597_v2 = vshrl.u32 %v2483_v39, 16  ;;  %v10171_v39 = vcombine.low %v2572_v31, %v2582_v44  ;;  %v2689_v31 = vshll.u32 %v2495_v6, 16 }
  0xdb   : > { %v2608_v26 = vshrl.u32 %v2485_v18, 16  ;;  %v2611_v4 = vshll.u32 %v2485_v18, 16  ;;  %v2707_v44 = vshll.u32 %v2497_v54, 16  ;;  %v2639_v28 = vrot.slane %v2638_v47, 4 }
  0xdc   : > { %v2599_v61 = vrot.slane %v2597_v2, 4  ;;  %v2624_v2 = vor.u32 %v2623_v8, %v10161_v9  ;;  %v10193_v53 = vrot.slane %v2689_v31, 5  ;;  %v2695_v8 = vrot.slane %v2693_v55, 4 }
  0xdd   : > { %v2610_v25 = vrot.slane %v2608_v26, 4  ;;  %v2613_v37 = vrot.slane %v2611_v4, 5  ;;  %v2498_v26 = vld [vmem:[#allocation2 + $0x98] sm:$0xf]  ;;  %v2682_v4 = vrot.slane %v2680_v1, 4  ;;  %v2709_v63 = vrot.slane %v2707_v44, 5 }
  0xde   : > { %8894 = vmatmul.mubr.msk.bf16.gmra.mxu1 %vm1106_vm8, %v10013_v50  ;;  %v2713_v17 = vshll.u32 %v2498_v26, 16  ;;  %v2696_v6 = vor.u32 %v2695_v8, %v10193_v53  ;;  %v2737_v54 = vshll.u32 %v2501_v10, 16  ;;  %v2506_v44 = vld [vmem:[#allocation2 + $0xd0] sm:$0xf] }
  0xdf   : > { %8897 = vmatprep.mubr.msk.bf16.mxu1 %vm1106_vm8, %v10021_v20  ;;  %v2686_v27 = vor.u32 %v2685_v12, %v2682_v4  ;;  %v2503_v4 = vld [vmem:[#allocation2 + $0xbc] sm:$0xf] }
  0xe0   : > { %v10199_v33 = vrot.slane %v2713_v17, 5  ;;  %v10258_v8 = vrot.slane %v2737_v54, 5  ;;  %v2505_v54 = vld [vmem:[#allocation2 + $0xc4] sm:$0x1] }
  0xe1   : > { %8860 = vmatmul.mubr.msk.bf16.gmra.mxu0 %vm1106_vm8, %v9997_v40  ;;  %v10146_v40 = vcombine.low %v2548_v29, %v2558_v36  ;;  %v10176_v29 = vrot.slane %v2641_v19, 5  ;;  %v2647_v36 = vrot.slane %v2645_v3, 4  ;;  %v2672_v3 = vor.u32 %v2671_v22, %v10181_v35 }
  0xe2   : > { %8863 = vmatprep.mubr.msk.bf16.mxu0 %vm1106_vm8, %v10013_v50  ;;  %v10151_v50 = vrot.slane %v2593_v58, 5  ;;  %v10178_v58 = vrot.slane %v2603_v51, 5  ;;  %v2651_v51 = vshll.u32 %v2490_v56, 16  ;;  %v2699_v56 = vshll.u32 %v2496_v0, 16 }
  0xe3   : > { %v2731_v22 = vshll.u32 %v2500_v52, 16  ;;  %v2765_v0 = vshrl.u32 %v2504_v5, 16 }
  0xe4   : > { %v2600_v18 = vor.u32 %v2599_v61, %v10151_v50  ;;  %v2648_v61 = vor.u32 %v2647_v36, %v10176_v29  ;;  %v2596_v34 = vsel %vm10123_vm13, %v10173_v24, %v10151_v50  ;;  %v2644_v24 = vsel %vm10123_vm13, %v2639_v28, %v10176_v29  ;;  %v2507_v28 = vld [vmem:[#allocation2 + $0xd4] sm:$0xf] }
  0xe5   : > { %v10216_v36 = vrot.slane %v2686_v27, 4 }
  0xe6   : > { %8898 = vmatmul.mubr.msk.bf16.gmra.mxu1 %vm1106_vm8, %v10039_v38  ;;  %v2601_v46 = vrot.slane %v2600_v18, 4  ;;  %v2649_v13 = vrot.slane %v2648_v61, 4 }
  0xe7   : > { %8901 = vmatprep.mubr.msk.bf16.mxu1 %vm1106_vm8, %v10045_v14 }
  0xe8   : > { %v2606_v45 = vsel %vm10123_vm13, %v2601_v46, %v10178_v58  ;;  %v2499_v58 = vld [vmem:[#allocation2 + $0x9c] sm:$0x1]  ;;  %v10248_v46 = vrot.slane %v2696_v6, 4 }
  0xe9   : > { %8864 = vmatmul.mubr.msk.bf16.gmra.mxu0 %vm1106_vm8, %v10021_v20  ;;  %v2614_v20 = vor.u32 %v2613_v37, %v2610_v25  ;;  %v2717_v25 = vshrl.u32 %v2498_v26, 16  ;;  %v2625_v37 = vrot.slane %v2624_v2, 4  ;;  %v2710_v2 = vor.u32 %v2709_v63, %v2706_v48 }
  0xea   : > { %8867 = vmatprep.mubr.msk.bf16.mxu0 %vm1106_vm8, %v10039_v38  ;;  %v2661_v38 = vrot.slane %v2659_v41, 5  ;;  %v2675_v41 = vshll.u32 %v2493_v30, 16  ;;  %v2741_v26 = vshrl.u32 %v2501_v10, 16  ;;  %v2776_v48 = vshrl.u32 %v2506_v44, 16 }
  0xeb   : > { %v2615_v15 = vrot.slane %v2614_v20, 4  ;;  %v2630_v50 = vsel %vm10123_vm13, %v2625_v37, %v2629_v62  ;;  %v10214_v20 = vrot.slane %v2672_v3, 4  ;;  %v2711_v17 = vrot.slane %v2710_v2, 4 }
  0xec   : > { %v2662_v19 = vor.u32 %v2661_v38, %v2658_v16  ;;  %v10225_v29 = vrot.slane %v2675_v41, 5  ;;  %v2728_v16 = vshrl.u32 %v2500_v52, 16  ;;  %v10229_v38 = vcombine.low %v2596_v34, %v2606_v45 }
  0xed   : > { %v2620_v1 = vsel %vm10123_vm13, %v2615_v15, %v10161_v9  ;;  %v2733_v37 = vrot.slane %v2731_v22, 5  ;;  %v2752_v62 = vshrl.u32 %v2503_v4, 16  ;;  %v2743_v34 = vrot.slane %v2741_v26, 4 }
  0xee   : > { %8902 = vmatmul.mubr.msk.bf16.gmra.mxu1 %vm1106_vm8, %v10063_v7  ;;  %v10212_v18 = vrot.slane %v2662_v19, 4  ;;  %v10234_v59 = vcombine.low %v2620_v1, %v2630_v50  ;;  %v2730_v30 = vrot.slane %v2728_v16, 4  ;;  %v2755_v41 = vshll.u32 %v2503_v4, 16  ;;  %v2509_v16 = vld [vmem:[#allocation2 + $0xe4] sm:$0xf] }
  0xef   : > { %8905 = vmatprep.mubr.msk.bf16.mxu1 %vm1106_vm8, %v10142_v23  ;;  %v2761_v52 = vshll.u32 %v2504_v5, 16  ;;  %v2779_v45 = vshll.u32 %v2506_v44, 16  ;;  %v2785_v1 = vshll.u32 %v2507_v28, 16  ;;  %v2789_v50 = vshrl.u32 %v2507_v28, 16 }
  0xf0   : > { %v2668_v55 = vsel %vm10123_vm13, %v10212_v18, %v10181_v35  ;;  %v2716_v18 = vsel %vm10123_vm13, %v2711_v17, %v10199_v33  ;;  %v2754_v6 = vrot.slane %v2752_v62, 4  ;;  %v2757_v2 = vrot.slane %v2755_v41, 5 }
  0xf1   : > { %8868 = vmatmul.mubr.msk.bf16.gmra.mxu0 %vm1106_vm8, %v10045_v14  ;;  %v2653_v14 = vrot.slane %v2651_v51, 5  ;;  %v2701_v51 = vrot.slane %v2699_v56, 5  ;;  %v2778_v22 = vrot.slane %v2776_v48, 4  ;;  %v2781_v26 = vrot.slane %v2779_v45, 5 }
  0xf2   : > { %8871 = vmatprep.mubr.msk.bf16.mxu0 %vm1106_vm8, %v10063_v7  ;;  %v2719_v7 = vrot.slane %v2717_v25, 4  ;;  %v10286_v4 = vrot.slane %v2785_v1, 5  ;;  %v2803_v5 = vshll.u32 %v2509_v16, 16  ;;  %v2758_v62 = vor.u32 %v2757_v2, %v2754_v6 }
  0xf3   : > { %v2654_v49 = vsel %vm10123_vm13, %v2649_v13, %v2653_v14  ;;  %v2502_v14 = vld [vmem:[#allocation2 + $0xb0] sm:$0x1]  ;;  %v2702_v10 = vsel %vm10123_vm13, %v10248_v46, %v2701_v51  ;;  %v2510_v51 = vld [vmem:[#allocation2 + $0xe8] sm:$0xf] }
  0xf4   : > { %v8743_v9 = vpop.f32.mrf.mxu1  ;;  %v2720_v47 = vor.u32 %v2719_v7, %v10199_v33  ;;  %v10238_v31 = vcombine.low %v2644_v24, %v2654_v49  ;;  %v2747_v56 = vshll.u32 %v2502_v14, 16  ;;  %v2809_v14 = vshll.u32 %v2510_v51, 16 }
  0xf5   : > { %v2805_v48 = vrot.slane %v2803_v5, 5 }
  0xf6   : > { %8906 = vmatmul.mubr.msk.bf16.gmra.mxu1 %vm1106_vm8, %v7971_v57  ;;  %v1385_v60 = vpop.f32.mrf.mxu1  ;;  %v2723_v57 = vshll.u32 %v2499_v58, 16  ;;  %v2721_v25 = vrot.slane %v2720_v47, 4  ;;  %v10282_v47 = vrot.slane %v2761_v52, 5 }
  0xf7   : > { %8945 = vmatprep.mubr.msk.bf16.mxu1 %vm1106_vm8, %v10171_v39  ;;  %v8709_v12 = vpop.f32.mrf.mxu0 }
  0xf8   : > { %v10250_v15 = vadd.f32 %v8743_v9, %v8709_v12  ;;  %v8744_v61 = vpop.f32.mrf.mxu1  ;;  %v2725_v27 = vrot.slane %v2723_v57, 5  ;;  %v2791_v12 = vrot.slane %v2789_v50, 4 }
  0xf9   : > { %8872 = vmatmul.mubr.msk.bf16.gmra.mxu0 %vm1106_vm8, %v10142_v23  ;;  %v2692_v23 = vsel %vm10123_vm13, %v10216_v36, %v10193_v53  ;;  %v1193_v35 = vpop.f32.mrf.mxu0  ;;  %v2782_v36 = vor.u32 %v2781_v26, %v2778_v22  ;;  %v10331_v22 = vrot.slane %v2809_v14, 5 }
  0xfa   : > { %8911 = vmatprep.mubr.msk.bf16.mxu0 %vm1106_vm8, %v10146_v40  ;;  %v2678_v40 = vsel %vm10123_vm13, %v10214_v20, %v10225_v29  ;;  %v10256_v19 = vadd.f32 %v1385_v60, %v1193_v35  ;;  %v1388_v3 = vpop.f32.mrf.mxu1  ;;  %v2734_v20 = vor.u32 %v2733_v37, %v2730_v30  ;;  %v2726_v49 = vsel %vm10123_vm13, %v2721_v25, %v2725_v27  ;;  %v2508_v27 = vld [vmem:[#allocation2 + $0xd8] sm:$0x1] }
  0xfb   : > { %v8710_v13 = vpop.f32.mrf.mxu0  ;;  %v2744_v29 = vor.u32 %v2743_v34, %v10258_v8  ;;  %v2800_v30 = vshrl.u32 %v2509_v16, 16  ;;  %v10299_v17 = vcombine.low %v2692_v23, %v2702_v10  ;;  %v10301_v25 = vcombine.low %v2716_v18, %v2726_v49  ;;  %v2512_v34 = vld [vmem:[#allocation2 + $0xf8] sm:$0xf] }
  0xfc   : > { %v10262_v63 = vadd.f32 %v8744_v61, %v8710_v13  ;;  %v8747_v7 = vpop.f32.mrf.mxu1  ;;  %v10288_v61 = vcombine.low %v2668_v55, %v2678_v40  ;;  %v10305_v40 = vrot.slane %v2747_v56, 5  ;;  %v2792_v23 = vor.u32 %v2791_v12, %v10286_v4  ;;  %v2515_v56 = vld [vmem:[#allocation2 + $0x10c] sm:$0xf] }
  0xfd   : > { %v1196_v24 = vpop.f32.mrf.mxu0  ;;  %v10303_v37 = vrot.slane %v2744_v29, 4  ;;  %v2795_v50 = vshll.u32 %v2508_v27, 16  ;;  %v2824_v10 = vshrl.u32 %v2512_v34, 16  ;;  %v2827_v18 = vshll.u32 %v2512_v34, 16 }
  0xfe   : > { %8946 = vmatmul.mubr.msk.bf16.vlgmr.msra.gmra.mxu1 %vm1106_vm8, %v10229_v38  ;;  %v10274_v58 = vadd.f32 %v1388_v3, %v1196_v24  ;;  %v1401_v9 = vpop.f32.mrf.mxu1  ;;  %v2771_v3 = vshll.u32 %v2505_v54, 16  ;;  %v2513_v24 = vld [vmem:[#allocation2 + $0xfc] sm:$0xf]  ;;  %v2783_v2 = vrot.slane %v2782_v36, 4 }
  0xff   : > { %8949 = vmatprep.mubr.msk.bf16.mxu1 %vm1106_vm8, %v10234_v59  ;;  %v8713_v33 = vpop.f32.mrf.mxu0  ;;  %v2750_v6 = vsel %vm10123_vm13, %v10303_v37, %v10305_v40  ;;  %v2511_v37 = vld [vmem:[#allocation2 + $0xec] sm:$0x1]  ;;  %v2829_v40 = vrot.slane %v2827_v18, 5  ;;  %v2514_v18 = vld [vmem:[#allocation2 + $0x100] sm:$0x1] }
 0x100   : > { %v10284_v60 = vadd.f32 %v8747_v7, %v8713_v33  ;;  %v8748_v57 = vpop.f32.mrf.mxu1  ;;  %v2813_v7 = vshrl.u32 %v2510_v51, 16  ;;  %v2773_v29 = vrot.slane %v2771_v3, 5  ;;  %v2837_v51 = vshrl.u32 %v2513_v24, 16 }
 0x101   : > { %8912 = vmatmul.mubr.msk.bf16.vlgmr.msra.gmra.mxu0 %vm1106_vm8, %v10171_v39  ;;  %v2767_v39 = vrot.slane %v2765_v0, 4  ;;  %v1209_v46 = vpop.f32.mrf.mxu0  ;;  %v2802_v0 = vrot.slane %v2800_v30, 4  ;;  %v2851_v3 = vshll.u32 %v2515_v56, 16 }
 0x102   : > { %8978 = vmatpush3.bf16.msra.mxu0 %v10155_v42  ;;  %8915 = vmatprep.mubr.msk.bf16.mxu0 %vm1106_vm8, %v10229_v38  ;;  %v10290_v42 = vrot.slane %v2734_v20, 4  ;;  %v10292_v44 = vadd.f32 %v1401_v9, %v1209_v46  ;;  %v1404_v35 = vpop.f32.mrf.mxu1  ;;  %v2759_v9 = vrot.slane %v2758_v62, 4  ;;  %v2815_v12 = vrot.slane %v2813_v7, 4 }
 0x103   : > { %v8714_v55 = vpop.f32.mrf.mxu0  ;;  %v2768_v28 = vor.u32 %v2767_v39, %v10282_v47  ;;  %v2793_v39 = vrot.slane %v2792_v23, 4  ;;  %v2806_v26 = vor.u32 %v2805_v48, %v2802_v0  ;;  %v2833_v46 = vshll.u32 %v2513_v24, 16 }
 0x104   : > { %v10310_v13 = vadd.f32 %v8748_v57, %v8714_v55  ;;  %v8751_v53 = vpop.f32.mrf.mxu1  ;;  %v2740_v52 = vsel %vm10123_vm13, %v10290_v42, %v10258_v8  ;;  %v2516_v57 = vld [vmem:[#allocation2 + $0x110] sm:$0xf]  ;;  %v2826_v55 = vrot.slane %v2824_v10, 4  ;;  %v2764_v23 = vsel %vm10123_vm13, %v2759_v9, %v10282_v47 }
 0x105   : > { %v1212_v41 = vpop.f32.mrf.mxu0  ;;  %v2769_v49 = vrot.slane %v2768_v28, 4  ;;  %v2848_v28 = vshrl.u32 %v2515_v56, 16  ;;  %v2857_v27 = vshll.u32 %v2516_v57, 16  ;;  %v2861_v34 = vshrl.u32 %v2516_v57, 16 }
 0x106   : > { %8950 = vmatmul.mubr.msk.bf16.gmra.mxu1 %vm1106_vm8, %v10238_v31  ;;  %v10321_v45 = vadd.f32 %v1404_v35, %v1212_v41  ;;  %v1417_v1 = vpop.f32.mrf.mxu1  ;;  %v2797_v35 = vrot.slane %v2795_v50, 5  ;;  %v2788_v41 = vsel %vm10123_vm13, %v2783_v2, %v10286_v4  ;;  %v2816_v48 = vor.u32 %v2815_v12, %v10331_v22  ;;  %v2519_v12 = vld [vmem:[#allocation2 + $0x124] sm:$0xf] }
 0x107   : > { %8953 = vmatprep.mubr.msk.bf16.mxu1 %vm1106_vm8, %v10288_v61  ;;  %v8717_v20 = vpop.f32.mrf.mxu0  ;;  %v2774_v14 = vsel %vm10123_vm13, %v2769_v49, %v2773_v29  ;;  %v2819_v7 = vshll.u32 %v2511_v37, 16  ;;  %v2839_v50 = vrot.slane %v2837_v51, 4  ;;  %v10358_v4 = vrot.slane %v2806_v26, 4  ;;  %v2518_v26 = vld [vmem:[#allocation2 + $0x120] sm:$0xf] }
 0x108   : > { %v10329_v16 = vadd.f32 %v8751_v53, %v8717_v20  ;;  %v8752_v33 = vpop.f32.mrf.mxu1  ;;  %v2798_v10 = vsel %vm10123_vm13, %v2793_v39, %v2797_v35  ;;  %v2830_v20 = vor.u32 %v2829_v40, %v2826_v55  ;;  %v2850_v49 = vrot.slane %v2848_v28, 4  ;;  %v2517_v55 = vld [vmem:[#allocation2 + $0x114] sm:$0x1] }
 0x109   : > { %8916 = vmatmul.mubr.msk.bf16.gmra.mxu0 %vm1106_vm8, %v10234_v59  ;;  %v1225_v54 = vpop.f32.mrf.mxu0  ;;  %v2853_v29 = vrot.slane %v2851_v3, 5  ;;  %v10362_v56 = vrot.slane %v2857_v27, 5  ;;  %v10371_v39 = vcombine.low %v2740_v52, %v2750_v6  ;;  %v2817_v51 = vrot.slane %v2816_v48, 4  ;;  %v2521_v52 = vld [vmem:[#allocation2 + $0x134] sm:$0xf] }
 0x10a   : > { %8919 = vmatprep.mubr.msk.bf16.mxu0 %vm1106_vm8, %v10238_v31  ;;  %v10333_v30 = vadd.f32 %v1417_v1, %v1225_v54  ;;  %v1420_v5 = vpop.f32.mrf.mxu1  ;;  %v10350_v1 = vrot.slane %v2833_v46, 5  ;;  %v10373_v54 = vcombine.low %v2764_v23, %v2774_v14  ;;  %v2843_v37 = vshll.u32 %v2514_v18, 16  ;;  %v2522_v23 = vld [vmem:[#allocation2 + $0x138] sm:$0xf] }
 0x10b   : > { %v8718_v62 = vpop.f32.mrf.mxu0  ;;  %v10378_v28 = vcombine.low %v2788_v41, %v2798_v10  ;;  %v2812_v8 = vsel %vm10123_vm13, %v10358_v4, %v10331_v22  ;;  %v10384_v42 = vrot.slane %v2830_v20, 4  ;;  %v2854_v3 = vor.u32 %v2853_v29, %v2850_v49 }
 0x10c   : > { %v10337_v53 = vadd.f32 %v8752_v33, %v8718_v62  ;;  %v8755_v36 = vpop.f32.mrf.mxu1  ;;  %v2863_v33 = vrot.slane %v2861_v34, 4  ;;  %v2840_v35 = vor.u32 %v2839_v50, %v10350_v1  ;;  %v2872_v34 = vshrl.u32 %v2518_v26, 16 }
 0x10d   : > { %v1228_v0 = vpop.f32.mrf.mxu0  ;;  %v2881_v48 = vshll.u32 %v2519_v12, 16  ;;  %v2845_v10 = vrot.slane %v2843_v37, 5  ;;  %v2896_v4 = vshrl.u32 %v2521_v52, 16  ;;  %v2905_v49 = vshll.u32 %v2522_v23, 16 }
 0x10e   : > { %8954 = vmatmul.mubr.msk.bf16.gmra.mxu1 %vm1106_vm8, %v10299_v17  ;;  %v10354_v47 = vadd.f32 %v1420_v5, %v1228_v0  ;;  %v1433_v24 = vpop.f32.mrf.mxu1  ;;  %v2821_v5 = vrot.slane %v2819_v7, 5  ;;  %v2864_v27 = vor.u32 %v2863_v33, %v10362_v56  ;;  %v2867_v0 = vshll.u32 %v2517_v55, 16 }
 0x10f   : > { %8957 = vmatprep.mubr.msk.bf16.mxu1 %vm1106_vm8, %v10301_v25  ;;  %v8721_v9 = vpop.f32.mrf.mxu0  ;;  %v2885_v7 = vshrl.u32 %v2519_v12, 16  ;;  %v2909_v29 = vshrl.u32 %v2522_v23, 16  ;;  %v2874_v12 = vrot.slane %v2872_v34, 4  ;;  %v10403_v37 = vrot.slane %v2881_v48, 5  ;;  %v2524_v23 = vld [vmem:[#allocation2 + $0x148] sm:$0xf] }
 0x110   : > { %v10364_v2 = vadd.f32 %v8755_v36, %v8721_v9  ;;  %v8756_v57 = vpop.f32.mrf.mxu1  ;;  %v2875_v36 = vshll.u32 %v2518_v26, 16  ;;  %v2822_v50 = vsel %vm10123_vm13, %v2817_v51, %v2821_v5  ;;  %v2899_v9 = vshll.u32 %v2521_v52, 16 }
 0x111   : > { %8920 = vmatmul.mubr.msk.bf16.gmra.mxu0 %vm1106_vm8, %v10288_v61  ;;  %v1241_v46 = vpop.f32.mrf.mxu0  ;;  %v2865_v26 = vrot.slane %v2864_v27, 4  ;;  %v2887_v55 = vrot.slane %v2885_v7, 4  ;;  %v2898_v52 = vrot.slane %v2896_v4, 4  ;;  %v2907_v34 = vrot.slane %v2905_v49, 5 }
 0x112   : > { %8923 = vmatprep.mubr.msk.bf16.mxu0 %vm1106_vm8, %v10299_v17  ;;  %v10376_v40 = vadd.f32 %v1433_v24, %v1241_v46  ;;  %v1436_v62 = vpop.f32.mrf.mxu1  ;;  %v2841_v24 = vrot.slane %v2840_v35, 4  ;;  %v2877_v46 = vrot.slane %v2875_v36, 5  ;;  %v2869_v35 = vrot.slane %v2867_v0, 5 }
 0x113   : > { %v8722_v6 = vpop.f32.mrf.mxu0  ;;  %v2901_v27 = vrot.slane %v2899_v9, 5  ;;  %v2911_v36 = vrot.slane %v2909_v29, 4  ;;  %v2836_v0 = vsel %vm10123_vm13, %v10384_v42, %v10350_v1  ;;  %v2888_v1 = vor.u32 %v2887_v55, %v10403_v37 }
 0x114   : > { %v10389_v14 = vadd.f32 %v8756_v57, %v8722_v6  ;;  %v2855_v57 = vrot.slane %v2854_v3, 4  ;;  %v10405_v6 = vcombine.low %v2812_v8, %v2822_v50  ;;  %v2520_v3 = vld [vmem:[#allocation2 + $0x128] sm:$0x1]  ;;  %v2846_v8 = vsel %vm10123_vm13, %v2841_v24, %v2845_v10  ;;  %v2523_v50 = vld [vmem:[#allocation2 + $0x13c] sm:$0x1] }
 0x115   : > { %v8759_v41 = vpop.f32.mrf.mxu1  ;;  %v1244_v22 = vpop.f32.mrf.mxu0  ;;  %v2878_v7 = vor.u32 %v2877_v46, %v2874_v12  ;;  %v2870_v9 = vsel %vm10123_vm13, %v2865_v26, %v2869_v35  ;;  %v3214_v42 = vshrl.u32 %v2524_v23, 16  ;;  %v3217_v24 = vshll.u32 %v2524_v23, 16 }
 0x116   : > { %8958 = vmatmul.mubr.msk.bf16.gmra.mxu1 %vm1106_vm8, %v10371_v39  ;;  %v10397_v18 = vadd.f32 %v1436_v62, %v1244_v22  ;;  %v2525_v22 = vld [vmem:[#allocation2 + $0x14c] sm:$0xf]  ;;  %v2860_v48 = vsel %vm10123_vm13, %v2855_v57, %v10362_v56  ;;  %v2891_v56 = vshll.u32 %v2520_v3, 16  ;;  %v2902_v57 = vor.u32 %v2901_v27, %v2898_v52 }
 0x117   : > { %8961 = vmatprep.mubr.msk.bf16.mxu1 %vm1106_vm8, %v10373_v54  ;;  %v1449_v20 = vpop.f32.mrf.mxu1  ;;  %v3223_v10 = vshll.u32 %v2525_v22, 16  ;;  %v3227_v29 = vshrl.u32 %v2525_v22, 16  ;;  %v2912_v12 = vor.u32 %v2911_v36, %v2907_v34  ;;  %v2915_v46 = vshll.u32 %v2523_v50, 16 }
 0x118   : > { %v8725_v33 = vpop.f32.mrf.mxu0  ;;  %v2879_v35 = vrot.slane %v2878_v7, 4  ;;  %v2889_v23 = vrot.slane %v2888_v1, 4  ;;  %v3216_v22 = vrot.slane %v3214_v42, 4  ;;  %v2893_v43 = vrot.slane %v2891_v56, 5 }
 0x119   : > { %8924 = vmatmul.mubr.msk.bf16.gmra.mxu0 %vm1106_vm8, %v10301_v25  ;;  %v10401_v51 = vadd.f32 %v8759_v41, %v8725_v33  ;;  %v8760_v5 = vpop.f32.mrf.mxu1  ;;  %v3225_v52 = vrot.slane %v3223_v10, 5  ;;  %v3229_v27 = vrot.slane %v3227_v29, 4  ;;  %v2903_v50 = vrot.slane %v2902_v57, 4 }
 0x11a   : > { %8927 = vmatprep.mubr.msk.bf16.mxu0 %vm1106_vm8, %v10371_v39  ;;  %v1257_v62 = vpop.f32.mrf.mxu0  ;;  %v2884_v7 = vsel %vm10123_vm13, %v2879_v35, %v10403_v37 }
 0x11b   : > { %v10407_v11 = vadd.f32 %v1449_v20, %v1257_v62  ;;  %v10409_v32 = vpop.f32.mrf.mxu1  ;;  %v10439_v62 = vcombine.low %v2860_v48, %v2870_v9  ;;  %v3230_v1 = vor.u32 %v3229_v27, %v3225_v52  ;;  %v2908_v56 = vsel %vm10123_vm13, %v2903_v50, %v2907_v34 }
 0x11c   : > { %13448 = vst [vmem:[#allocation5_spill] sm:$0xff] %v10409_v32  ;;  %v8726_v41 = vpop.f32.mrf.mxu0  ;;  %v3219_v32 = vrot.slane %v3217_v24, 5 }
 0x11d   : > { %v10422_v4 = vadd.f32 %v8760_v5, %v8726_v41  ;;  %v8763_v20 = vpop.f32.mrf.mxu1  ;;  %v10435_v5 = vcombine.low %v2836_v0, %v2846_v8  ;;  %v2526_v0 = vld [vmem:[#allocation2 + $0x150] sm:$0x1]  ;;  %v3231_v29 = vrot.slane %v3230_v1, 4 }
 0x11e   : > { %8962 = vmatmul.mubr.msk.bf16.gmra.mxu1 %vm1106_vm8, %v10378_v28  ;;  %v10427_v49 = vpop.f32.mrf.mxu0  ;;  %v3220_v9 = vor.u32 %v3219_v32, %v3216_v22  ;;  %v3233_v42 = vshll.u32 %v2526_v0, 16 }
 0x11f   : > { %13449 = vst [vmem:[#allocation8_spill] sm:$0xff] %v10422_v4  ;;  %13450 = vst [vmem:[#allocation7_spill] sm:$0xff] %v10427_v49  ;;  %8965 = vmatprep.mubr.msk.bf16.mxu1 %vm1106_vm8, %v10405_v6  ;;  %v1465_v33 = vpop.f32.mrf.mxu1  ;;  %v2913_v49 = vrot.slane %v2912_v12, 4  ;;  %v2917_v4 = vrot.slane %v2915_v46, 5 }
 0x120   : > { %v8729_v26 = vpop.f32.mrf.mxu0  ;;  %v3221_v32 = vrot.slane %v3220_v9, 4 }
 0x121   : > { %8928 = vmatmul.mubr.msk.bf16.gmra.mxu0 %vm1106_vm8, %v10373_v54  ;;  %v10437_v55 = vadd.f32 %v8763_v20, %v8729_v26  ;;  %v8764_v41 = vpop.f32.mrf.mxu1  ;;  %v2894_v20 = vsel %vm10123_vm13, %v2889_v23, %v2893_v43  ;;  %v2918_v24 = vsel %vm10123_vm13, %v2913_v49, %v2917_v4 }
 0x122   : > { %8931 = vmatprep.mubr.msk.bf16.mxu0 %vm1106_vm8, %v10378_v28  ;;  %v1273_v3 = vpop.f32.mrf.mxu0  ;;  %v10464_v10 = vcombine.low %v2884_v7, %v2894_v20  ;;  %v10466_v43 = vcombine.low %v2908_v56, %v2918_v24  ;;  %v3226_v34 = vsel %vm10123_vm13, %v3221_v32, %v3225_v52 }
 0x123   : > { %v10441_v36 = vadd.f32 %v1465_v33, %v1273_v3  ;;  %v10462_v37 = vpop.f32.mrf.mxu1  ;;  %v3235_v33 = vrot.slane %v3233_v42, 5 }
 0x124   : > { %v8730_v8 = vpop.f32.mrf.mxu0  ;;  %13451 = vst [vmem:[#allocation13_spill] sm:$0xff] %v10462_v37 }
 0x125   : > { %v10445_v48 = vadd.f32 %v8764_v41, %v8730_v8  ;;  %v3236_v4 = vsel %vm10123_vm13, %v3231_v29, %v3235_v33 }
 0x126   : > { %8966 = vmatmul.mubr.msk.bf16.gmra.mxu1 %vm1106_vm8, %v10435_v5  ;;  %v10468_v57 = vpop.f32.mrf.mxu0  ;;  %v10484_v22 = vcombine.low %v3226_v34, %v3236_v4 }
 0x127   : > { %8969 = vmatprep.mubr.msk.bf16.mxu1 %vm1106_vm8, %v10439_v62  ;;  %13452 = vst [vmem:[#allocation16_spill] sm:$0xff] %v10468_v57 }
 0x129   : > { %8932 = vmatmul.mubr.msk.bf16.gmra.mxu0 %vm1106_vm8, %v10405_v6 }
 0x12a   : > { %8935 = vmatprep.mubr.msk.bf16.mxu0 %vm1106_vm8, %v10435_v5 }
 0x12e   : > { %v8767_v12 = vpop.f32.mrf.mxu1  ;;  %8970 = vmatmul.mubr.msk.bf16.gmra.mxu1 %vm1106_vm8, %v10464_v10 }
 0x12f   : > { %8973 = vmatprep.mubr.msk.bf16.mxu1 %vm1106_vm8, %v10466_v43 }
 0x130   : > { %v1481_v46 = vpop.f32.mrf.mxu1 }
 0x131   : > { %v8733_v49 = vpop.f32.mrf.mxu0  ;;  %8936 = vmatmul.mubr.msk.bf16.gmra.mxu0 %vm1106_vm8, %v10439_v62 }
 0x132   : > { %v10480_v26 = vadd.f32 %v8767_v12, %v8733_v49  ;;  %8939 = vmatprep.mubr.msk.bf16.mxu0 %vm1106_vm8, %v10464_v10  ;;  %v8768_v23 = vpop.f32.mrf.mxu1 }
 0x133   : > { %v1289_v35 = vpop.f32.mrf.mxu0 }
 0x134   : > { %v10486_v3 = vadd.f32 %v1481_v46, %v1289_v35  ;;  %v10488_v52 = vpop.f32.mrf.mxu1 }
 0x135   : > { %v8734_v41 = vpop.f32.mrf.mxu0  ;;  %13453 = vst [vmem:[#allocation10_spill] sm:$0xff] %v10488_v52 }
 0x136   : > { %v10490_v27 = vadd.f32 %v8768_v23, %v8734_v41  ;;  %v8771_v0 = vpop.f32.mrf.mxu1  ;;  %8974 = vmatmul.mubr.msk.bf16.gmra.mxu1 %vm1106_vm8, %v10484_v22 }
 0x137   : > { %v10492_v50 = vpop.f32.mrf.mxu0 }
 0x138   : > { %13454 = vst [vmem:[#allocation9_spill] sm:$0xff] %v10492_v50  ;;  %v1497_v7 = vpop.f32.mrf.mxu1 }
 0x139   : > { %v8737_v8 = vpop.f32.mrf.mxu0  ;;  %8940 = vmatmul.mubr.msk.bf16.gmra.mxu0 %vm1106_vm8, %v10466_v43 }
 0x13a   : > { %v10498_v20 = vadd.f32 %v8771_v0, %v8737_v8  ;;  %8979 = vmatprep.mubr.msk.bf16.mxu0 %vm1106_vm8, %v10229_v38  ;;  %v8772_v1 = vpop.f32.mrf.mxu1 }
 0x13b   : > { %v1305_v9 = vpop.f32.mrf.mxu0 }
 0x13c   : > { %v10502_v42 = vadd.f32 %v1497_v7, %v1305_v9  ;;  %v10504_v24 = vpop.f32.mrf.mxu1 }
 0x13d   : > { %v8738_v56 = vpop.f32.mrf.mxu0  ;;  %13455 = vst [vmem:[#allocation12_spill] sm:$0xff] %v10504_v24 }
 0x13e   : > { %v10506_v32 = vadd.f32 %v8772_v1, %v8738_v56  ;;  %v8811_v33 = vpop.f32.mrf.mxu1 }
 0x13f   : > { %v10508_v29 = vpop.f32.mrf.mxu0 }
 0x140   : > { %13456 = vst [vmem:[#allocation11_spill] sm:$0xff] %v10508_v29  ;;  %v1905_v34 = vpop.f32.mrf.mxu1 }
 0x141   : > { %v8777_v12 = vpop.f32.mrf.mxu0  ;;  %8980 = vmatmul.mubr.msk.bf16.vlgmr.msra.gmra.mxu0 %vm1106_vm8, %v10234_v59 }
 0x142   : > { %v1708_v4 = vadd.f32 %v8777_v12, %v10250_v15  ;;  %8983 = vmatprep.mubr.msk.bf16.mxu0 %vm1106_vm8, %v10238_v31  ;;  %v8812_v49 = vpop.f32.mrf.mxu1 }
 0x143   : > { %v1579_v38 = vpop.f32.mrf.mxu0 }
 0x144   : > { %v1706_v46 = vadd.f32 %v1579_v38, %v10256_v19  ;;  %v10516_v35 = vadd.f32 %v8811_v33, %v1708_v4  ;;  %v10518_v41 = vpop.f32.mrf.mxu1 }
 0x145   : > { %v8778_v23 = vpop.f32.mrf.mxu0 }
 0x146   : > { %v1709_v0 = vadd.f32 %v8778_v23, %v10262_v63  ;;  %v10521_v8 = vadd.f32 %v1905_v34, %v1706_v46  ;;  %v8815_v7 = vpop.f32.mrf.mxu1 }
 0x147   : > { %v1582_v59 = vpop.f32.mrf.mxu0 }
 0x148   : > { %v10524_v15 = vadd.f32 %v1582_v59, %v10274_v58  ;;  %v10526_v9 = vadd.f32 %v8812_v49, %v1709_v0  ;;  %v1921_v19 = vpop.f32.mrf.mxu1 }
 0x149   : > { %v8781_v31 = vpop.f32.mrf.mxu0  ;;  %8984 = vmatmul.mubr.msk.bf16.gmra.mxu0 %vm1106_vm8, %v10288_v61 }
 0x14a   : > { %v1712_v1 = vadd.f32 %v8781_v31, %v10284_v60  ;;  %8987 = vmatprep.mubr.msk.bf16.mxu0 %vm1106_vm8, %v10299_v17  ;;  %v8816_v56 = vpop.f32.mrf.mxu1 }
 0x14b   : > { %v1595_v63 = vpop.f32.mrf.mxu0 }
 0x14c   : > { %v1710_v33 = vadd.f32 %v1595_v63, %v10292_v44  ;;  %v10534_v12 = vadd.f32 %v8815_v7, %v1712_v1  ;;  %v10536_v34 = vpop.f32.mrf.mxu1 }
 0x14d   : > { %v8782_v58 = vpop.f32.mrf.mxu0 }
 0x14e   : > { %v1713_v4 = vadd.f32 %v8782_v58, %v10310_v13  ;;  %v10539_v38 = vadd.f32 %v1921_v19, %v1710_v33  ;;  %v8819_v49 = vpop.f32.mrf.mxu1 }
 0x14f   : > { %v1598_v61 = vpop.f32.mrf.mxu0 }
 0x150   : > { %v10542_v60 = vadd.f32 %v1598_v61, %v10321_v45  ;;  %v10544_v46 = vadd.f32 %v8816_v56, %v1713_v4  ;;  %v1937_v44 = vpop.f32.mrf.mxu1 }
 0x151   : > { %v8785_v17 = vpop.f32.mrf.mxu0  ;;  %8988 = vmatmul.mubr.msk.bf16.gmra.mxu0 %vm1106_vm8, %v10301_v25 }
 0x152   : > { %v1716_v23 = vadd.f32 %v8785_v17, %v10329_v16  ;;  %8991 = vmatprep.mubr.msk.bf16.mxu0 %vm1106_vm8, %v10371_v39  ;;  %v8820_v0 = vpop.f32.mrf.mxu1 }
 0x153   : > { %v1611_v13 = vpop.f32.mrf.mxu0 }
 0x154   : > { %v1714_v59 = vadd.f32 %v1611_v13, %v10333_v30  ;;  %v10552_v7 = vadd.f32 %v8819_v49, %v1716_v23  ;;  %v10554_v31 = vpop.f32.mrf.mxu1 }
 0x155   : > { %v8786_v45 = vpop.f32.mrf.mxu0 }
 0x156   : > { %v1717_v19 = vadd.f32 %v8786_v45, %v10337_v53  ;;  %v10557_v1 = vadd.f32 %v1937_v44, %v1714_v59  ;;  %v8823_v63 = vpop.f32.mrf.mxu1 }
 0x157   : > { %v1614_v25 = vpop.f32.mrf.mxu0 }
 0x158   : > { %v10560_v16 = vadd.f32 %v1614_v25, %v10354_v47  ;;  %v10562_v56 = vadd.f32 %v8820_v0, %v1717_v19  ;;  %v1953_v30 = vpop.f32.mrf.mxu1 }
 0x159   : > { %v8789_v39 = vpop.f32.mrf.mxu0  ;;  %8992 = vmatmul.mubr.msk.bf16.gmra.mxu0 %vm1106_vm8, %v10373_v54  ;;  %v2527_v54 = vld [vmem:[#allocation2 + $0x15c] sm:$0xf] }
 0x15a   : > { %v1720_v33 = vadd.f32 %v8789_v39, %v10364_v2  ;;  %8995 = vmatprep.mubr.msk.bf16.mxu0 %vm1106_vm8, %v10378_v28  ;;  %v8824_v58 = vpop.f32.mrf.mxu1  ;;  %v2528_v2 = vld [vmem:[#allocation2 + $0x160] sm:$0xf]  ;;  %v3442_v45 = vshrl.u32 %v2527_v54, 16  ;;  %v3445_v19 = vshll.u32 %v2527_v54, 16 }
 0x15b   : > { %v1627_v53 = vpop.f32.mrf.mxu0  ;;  %v3451_v25 = vshll.u32 %v2528_v2, 16 }
 0x15c   : > { %v1718_v4 = vadd.f32 %v1627_v53, %v10376_v40  ;;  %v10570_v61 = vadd.f32 %v8823_v63, %v1720_v33  ;;  %v10572_v49 = vpop.f32.mrf.mxu1  ;;  %v3455_v63 = vshrl.u32 %v2528_v2, 16 }
 0x15d   : > { %v8790_v47 = vpop.f32.mrf.mxu0 }
 0x15e   : > { %v1721_v17 = vadd.f32 %v8790_v47, %v10389_v14  ;;  %v10575_v44 = vadd.f32 %v1953_v30, %v1718_v4  ;;  %v8827_v13 = vpop.f32.mrf.mxu1  ;;  %v3447_v4 = vrot.slane %v3445_v19, 5  ;;  %v13458_v47 = vld [vmem:[#allocation8_spill] sm:$0xff] }
 0x15f   : > { %v1630_v23 = vpop.f32.mrf.mxu0 }
 0x160   : > { %v10578_v0 = vadd.f32 %v1630_v23, %v10397_v18  ;;  %v10580_v28 = vadd.f32 %v8824_v58, %v1721_v17  ;;  %v1969_v40 = vpop.f32.mrf.mxu1  ;;  %v3457_v23 = vrot.slane %v3455_v63, 4 }
 0x161   : > { %v8793_v59 = vpop.f32.mrf.mxu0  ;;  %8996 = vmatmul.mubr.msk.bf16.gmra.mxu0 %vm1106_vm8, %v10405_v6  ;;  %v3444_v6 = vrot.slane %v3442_v45, 4 }
 0x162   : > { %v1724_v14 = vadd.f32 %v8793_v59, %v10401_v51  ;;  %8999 = vmatprep.mubr.msk.bf16.mxu0 %vm1106_vm8, %v10435_v5  ;;  %v8828_v30 = vpop.f32.mrf.mxu1  ;;  %v3453_v51 = vrot.slane %v3451_v25, 5  ;;  %v2529_v59 = vld [vmem:[#allocation2 + $0x164] sm:$0x1] }
 0x163   : > { %v1643_v39 = vpop.f32.mrf.mxu0  ;;  %v3461_v19 = vshll.u32 %v2529_v59, 16 }
 0x164   : > { %v1722_v18 = vadd.f32 %v1643_v39, %v10407_v11  ;;  %v10588_v33 = vadd.f32 %v8827_v13, %v1724_v14  ;;  %v10590_v58 = vpop.f32.mrf.mxu1  ;;  %v3448_v14 = vor.u32 %v3447_v4, %v3444_v6 }
 0x165   : > { %v8794_v53 = vpop.f32.mrf.mxu0  ;;  %13457 = vst [vmem:[#allocation15_spill] sm:$0xff] %v10590_v58  ;;  %v3463_v4 = vrot.slane %v3461_v19, 5 }
 0x166   : > { %v1725_v17 = vadd.f32 %v8794_v53, %v13458_v47  ;;  %v10593_v54 = vadd.f32 %v1969_v40, %v1722_v18  ;;  %v8831_v2 = vpop.f32.mrf.mxu1  ;;  %v3458_v40 = vor.u32 %v3457_v23, %v3453_v51  ;;  %v3449_v47 = vrot.slane %v3448_v14, 4 }
 0x167   : > { %v10595_v5 = vpop.f32.mrf.mxu0 }
 0x168   : > { %v10597_v24 = vadd.f32 %v8828_v30, %v1725_v17  ;;  %v1985_v13 = vpop.f32.mrf.mxu1 }
 0x169   : > { %v8797_v11 = vpop.f32.mrf.mxu0  ;;  %9000 = vmatmul.mubr.msk.bf16.gmra.mxu0 %vm1106_vm8, %v10439_v62 }
 0x16a   : > { %v1728_v45 = vadd.f32 %v8797_v11, %v10437_v55  ;;  %9003 = vmatprep.mubr.msk.bf16.mxu0 %vm1106_vm8, %v10464_v10  ;;  %v8832_v63 = vpop.f32.mrf.mxu1  ;;  %v3459_v55 = vrot.slane %v3458_v40, 4 }
 0x16b   : > { %v1659_v25 = vpop.f32.mrf.mxu0 }
 0x16c   : > { %v1726_v39 = vadd.f32 %v1659_v25, %v10441_v36  ;;  %v10605_v18 = vadd.f32 %v8831_v2, %v1728_v45  ;;  %v10607_v53 = vpop.f32.mrf.mxu1  ;;  %v3464_v11 = vsel %vm10123_vm13, %v3459_v55, %v3463_v4 }
 0x16d   : > { %v8798_v30 = vpop.f32.mrf.mxu0  ;;  %13459 = vst [vmem:[#allocation14_spill] sm:$0xff] %v10607_v53 }
 0x16e   : > { %v1729_v62 = vadd.f32 %v8798_v30, %v10445_v48  ;;  %v10610_v6 = vadd.f32 %v1985_v13, %v1726_v39  ;;  %v8835_v10 = vpop.f32.mrf.mxu1  ;;  %v3454_v48 = vsel %vm10123_vm13, %v3449_v47, %v3453_v51 }
 0x16f   : > { %v10612_v17 = vpop.f32.mrf.mxu0  ;;  %v8040_v25 = vcombine.low %v3454_v48, %v3464_v11 }
 0x170   : > { %13460 = vst [vmem:[#allocation18_spill] sm:$0xff] %v10612_v17  ;;  %v10614_v23 = vadd.f32 %v8832_v63, %v1729_v62  ;;  %v2001_v36 = vpop.f32.mrf.mxu1 }
 0x171   : > { %v8801_v59 = vpop.f32.mrf.mxu0  ;;  %9004 = vmatmul.mubr.msk.bf16.gmra.mxu0 %vm1106_vm8, %v10466_v43 }
 0x172   : > { %v1732_v2 = vadd.f32 %v8801_v59, %v10480_v26  ;;  %9007 = vmatprep.mubr.msk.bf16.mxu0 %vm1106_vm8, %v10484_v22  ;;  %v8836_v14 = vpop.f32.mrf.mxu1 }
 0x173   : > { %v1675_v13 = vpop.f32.mrf.mxu0 }
 0x174   : > { %v1730_v45 = vadd.f32 %v1675_v13, %v10486_v3  ;;  %v10626_v40 = vadd.f32 %v8835_v10, %v1732_v2  ;;  %v10628_v43 = vpop.f32.mrf.mxu1 }
 0x175   : > { %v8802_v19 = vpop.f32.mrf.mxu0  ;;  %13461 = vst [vmem:[#allocation17_spill] sm:$0xff] %v10628_v43 }
 0x176   : > { %v1733_v26 = vadd.f32 %v8802_v19, %v10490_v27  ;;  %v10631_v63 = vadd.f32 %v2001_v36, %v1730_v45  ;;  %v8839_v51 = vpop.f32.mrf.mxu1 }
 0x177   : > { %v10633_v22 = vpop.f32.mrf.mxu0 }
 0x178   : > { %13462 = vst [vmem:[#allocation20_spill] sm:$0xff] %v10633_v22  ;;  %v10635_v39 = vadd.f32 %v8836_v14, %v1733_v26  ;;  %v2017_v47 = vpop.f32.mrf.mxu1 }
 0x179   : > { %v8805_v30 = vpop.f32.mrf.mxu0  ;;  %9008 = vmatmul.mubr.msk.bf16.gmra.mxu0 %vm1106_vm8, %v8040_v25 }
 0x17a   : > { %v1736_v3 = vadd.f32 %v8805_v30, %v10498_v20  ;;  %v8840_v55 = vpop.f32.mrf.mxu1 }
 0x17b   : > { %v1691_v62 = vpop.f32.mrf.mxu0 }
 0x17c   : > { %v1734_v4 = vadd.f32 %v1691_v62, %v10502_v42  ;;  %v10640_v10 = vadd.f32 %v8839_v51, %v1736_v3  ;;  %v10642_v59 = vpop.f32.mrf.mxu1 }
 0x17d   : > { %v8806_v27 = vpop.f32.mrf.mxu0  ;;  %13463 = vst [vmem:[#allocation19_spill] sm:$0xff] %v10642_v59 }
 0x17e   : > { %v1737_v36 = vadd.f32 %v8806_v27, %v10506_v32  ;;  %v10645_v2 = vadd.f32 %v2017_v47, %v1734_v4  ;;  %v8879_v11 = vpop.f32.mrf.mxu1 }
 0x17f   : > { %v10647_v48 = vpop.f32.mrf.mxu0 }
 0x180   : > { %13464 = vst [vmem:[#allocation8_spill] sm:$0xff] %v10647_v48  ;;  %v10649_v13 = vadd.f32 %v8840_v55, %v1737_v36  ;;  %v2317_v20 = vpop.f32.mrf.mxu1 }
 0x181   : > { %v8845_v14 = vpop.f32.mrf.mxu0 }
 0x182   : > { %v2240_v45 = vadd.f32 %v8845_v14, %v10516_v35  ;;  %v8880_v42 = vpop.f32.mrf.mxu1 }
 0x183   : > { %v2111_v19 = vpop.f32.mrf.mxu0 }
 0x184   : > { %v2238_v25 = vadd.f32 %v2111_v19, %v10521_v8  ;;  %v10653_v26 = vadd.f32 %v8879_v11, %v2240_v45  ;;  %v10655_v30 = vpop.f32.mrf.mxu1 }
 0x185   : > { %v8846_v51 = vpop.f32.mrf.mxu0 }
 0x186   : > { %v2241_v32 = vadd.f32 %v8846_v51, %v10526_v9  ;;  %v10658_v47 = vadd.f32 %v2317_v20, %v2238_v25  ;;  %v8883_v62 = vpop.f32.mrf.mxu1 }
 0x187   : > { %v10660_v3 = vpop.f32.mrf.mxu0 }
 0x188   : > { %v10662_v55 = vadd.f32 %v8880_v42, %v2241_v32  ;;  %v10664_v35 = vpop.f32.mrf.mxu1 }
 0x189   : > { %v8849_v4 = vpop.f32.mrf.mxu0 }
 0x18a   : > { %v2244_v27 = vadd.f32 %v8849_v4, %v10534_v12  ;;  %v8884_v36 = vpop.f32.mrf.mxu1 }
 0x18b   : > { %v2127_v8 = vpop.f32.mrf.mxu0 }
 0x18c   : > { %v10668_v11 = vadd.f32 %v2127_v8, %v10539_v38  ;;  %v10670_v14 = vadd.f32 %v8883_v62, %v2244_v27  ;;  %v10672_v20 = vpop.f32.mrf.mxu1 }
 0x18d   : > { %v8850_v9 = vpop.f32.mrf.mxu0 }
 0x18e   : > { %v2245_v45 = vadd.f32 %v8850_v9, %v10544_v46  ;;  %v8887_v42 = vpop.f32.mrf.mxu1 }
 0x18f   : > { %v10675_v19 = vpop.f32.mrf.mxu0 }
 0x190   : > { %v10677_v25 = vadd.f32 %v8884_v36, %v2245_v45  ;;  %v10679_v32 = vpop.f32.mrf.mxu1 }
 0x191   : > { %v8853_v51 = vpop.f32.mrf.mxu0 }
 0x192   : > { %v2248_v12 = vadd.f32 %v8853_v51, %v10552_v7  ;;  %v8888_v38 = vpop.f32.mrf.mxu1 }
 0x193   : > { %v2143_v4 = vpop.f32.mrf.mxu0 }
 0x194   : > { %v10683_v62 = vadd.f32 %v2143_v4, %v10557_v1  ;;  %v10685_v27 = vadd.f32 %v8887_v42, %v2248_v12  ;;  %v10687_v21 = vpop.f32.mrf.mxu1 }
 0x195   : > { %v8854_v8 = vpop.f32.mrf.mxu0 }
 0x196   : > { %v2249_v46 = vadd.f32 %v8854_v8, %v10562_v56  ;;  %v8891_v36 = vpop.f32.mrf.mxu1 }
 0x197   : > { %v10690_v9 = vpop.f32.mrf.mxu0 }
 0x198   : > { %v10692_v45 = vadd.f32 %v8888_v38, %v2249_v46  ;;  %v10694_v48 = vpop.f32.mrf.mxu1 }
 0x199   : > { %v8857_v59 = vpop.f32.mrf.mxu0 }
 0x19a   : > { %v2252_v7 = vadd.f32 %v8857_v59, %v10570_v61  ;;  %v8892_v1 = vpop.f32.mrf.mxu1 }
 0x19b   : > { %v2159_v51 = vpop.f32.mrf.mxu0 }
 0x19c   : > { %v10698_v42 = vadd.f32 %v2159_v51, %v10575_v44  ;;  %v10700_v12 = vadd.f32 %v8891_v36, %v2252_v7  ;;  %v10702_v29 = vpop.f32.mrf.mxu1 }
 0x19d   : > { %v8858_v4 = vpop.f32.mrf.mxu0 }
 0x19e   : > { %v2253_v56 = vadd.f32 %v8858_v4, %v10580_v28  ;;  %v8895_v38 = vpop.f32.mrf.mxu1 }
 0x19f   : > { %v10705_v8 = vpop.f32.mrf.mxu0 }
 0x1a0   : > { %v10707_v46 = vadd.f32 %v8892_v1, %v2253_v56  ;;  %v10709_v22 = vpop.f32.mrf.mxu1 }
 0x1a1   : > { %v8861_v43 = vpop.f32.mrf.mxu0  ;;  %13465 = vst [vmem:[#allocation22_spill] sm:$0xff] %v10709_v22 }
 0x1a2   : > { %v2256_v61 = vadd.f32 %v8861_v43, %v10588_v33  ;;  %v8896_v44 = vpop.f32.mrf.mxu1 }
 0x1a3   : > { %v2175_v59 = vpop.f32.mrf.mxu0 }
 0x1a4   : > { %v10713_v36 = vadd.f32 %v2175_v59, %v10593_v54  ;;  %v10715_v7 = vadd.f32 %v8895_v38, %v2256_v61  ;;  %v10717_v52 = vpop.f32.mrf.mxu1 }
 0x1a5   : > { %v8862_v51 = vpop.f32.mrf.mxu0  ;;  %13467 = vst [vmem:[#allocation24_spill] sm:$0xff] %v10717_v52 }
 0x1a6   : > { %13466 = vst [vmem:[#allocation23_spill] sm:$0xff] %v10713_v36  ;;  %v2257_v28 = vadd.f32 %v8862_v51, %v10597_v24  ;;  %v8899_v1 = vpop.f32.mrf.mxu1 }
 0x1a7   : > { %v10720_v4 = vpop.f32.mrf.mxu0 }
 0x1a8   : > { %13468 = vst [vmem:[#allocation25_spill] sm:$0xff] %v10720_v4  ;;  %v10722_v56 = vadd.f32 %v8896_v44, %v2257_v28  ;;  %v10724_v53 = vpop.f32.mrf.mxu1 }
 0x1a9   : > { %v8865_v50 = vpop.f32.mrf.mxu0  ;;  %13469 = vst [vmem:[#allocation26_spill] sm:$0xff] %v10724_v53 }
 0x1aa   : > { %v2260_v33 = vadd.f32 %v8865_v50, %v10605_v18  ;;  %v8900_v54 = vpop.f32.mrf.mxu1 }
 0x1ab   : > { %v2191_v43 = vpop.f32.mrf.mxu0 }
 0x1ac   : > { %v10728_v38 = vadd.f32 %v2191_v43, %v10610_v6  ;;  %v10730_v61 = vadd.f32 %v8899_v1, %v2260_v33  ;;  %v10732_v52 = vpop.f32.mrf.mxu1 }
 0x1ad   : > { %v8866_v59 = vpop.f32.mrf.mxu0  ;;  %13471 = vst [vmem:[#allocation28_spill] sm:$0xff] %v10732_v52 }
 0x1ae   : > { %13470 = vst [vmem:[#allocation27_spill] sm:$0xff] %v10728_v38  ;;  %v2261_v24 = vadd.f32 %v8866_v59, %v10614_v23  ;;  %v8903_v44 = vpop.f32.mrf.mxu1 }
 0x1af   : > { %v10735_v51 = vpop.f32.mrf.mxu0 }
 0x1b0   : > { %13472 = vst [vmem:[#allocation29_spill] sm:$0xff] %v10735_v51  ;;  %v10737_v28 = vadd.f32 %v8900_v54, %v2261_v24  ;;  %v10739_v17 = vpop.f32.mrf.mxu1 }
 0x1b1   : > { %v8869_v53 = vpop.f32.mrf.mxu0  ;;  %13473 = vst [vmem:[#allocation30_spill] sm:$0xff] %v10739_v17 }
 0x1b2   : > { %v2264_v50 = vadd.f32 %v8869_v53, %v10626_v40  ;;  %v8904_v6 = vpop.f32.mrf.mxu1 }
 0x1b3   : > { %v2207_v18 = vpop.f32.mrf.mxu0 }
 0x1b4   : > { %v10743_v1 = vadd.f32 %v2207_v18, %v10631_v63  ;;  %v10745_v33 = vadd.f32 %v8903_v44, %v2264_v50  ;;  %v10747_v52 = vpop.f32.mrf.mxu1 }
 0x1b5   : > { %v8870_v43 = vpop.f32.mrf.mxu0  ;;  %13475 = vst [vmem:[#allocation32_spill] sm:$0xff] %v10747_v52 }
 0x1b6   : > { %13474 = vst [vmem:[#allocation31_spill] sm:$0xff] %v10743_v1  ;;  %v2265_v23 = vadd.f32 %v8870_v43, %v10635_v39  ;;  %v8907_v54 = vpop.f32.mrf.mxu1 }
 0x1b7   : > { %v10750_v59 = vpop.f32.mrf.mxu0 }
 0x1b8   : > { %13476 = vst [vmem:[#allocation33_spill] sm:$0xff] %v10750_v59  ;;  %v10752_v24 = vadd.f32 %v8904_v6, %v2265_v23  ;;  %v10754_v38 = vpop.f32.mrf.mxu1 }
 0x1b9   : > { %v8873_v17 = vpop.f32.mrf.mxu0  ;;  %13477 = vst [vmem:[#allocation34_spill] sm:$0xff] %v10754_v38 }
 0x1ba   : > { %v2268_v53 = vadd.f32 %v8873_v17, %v10640_v10  ;;  %v8908_v63 = vpop.f32.mrf.mxu1 }
 0x1bb   : > { %v2223_v40 = vpop.f32.mrf.mxu0 }
 0x1bc   : > { %v10758_v44 = vadd.f32 %v2223_v40, %v10645_v2  ;;  %v10760_v50 = vadd.f32 %v8907_v54, %v2268_v53  ;;  %v10762_v52 = vpop.f32.mrf.mxu1 }
 0x1bd   : > { %v8874_v18 = vpop.f32.mrf.mxu0  ;;  %13479 = vst [vmem:[#allocation36_spill] sm:$0xff] %v10762_v52 }
 0x1be   : > { %13478 = vst [vmem:[#allocation35_spill] sm:$0xff] %v10758_v44  ;;  %v2269_v39 = vadd.f32 %v8874_v18, %v10649_v13  ;;  %v10767_v6 = vpop.f32.mrf.mxu1 }
 0x1bf   : > { %v10765_v43 = vpop.f32.mrf.mxu0 }
 0x1c0   : > { %13480 = vst [vmem:[#allocation37_spill] sm:$0xff] %v10765_v43  ;;  %v10769_v23 = vadd.f32 %v8908_v63, %v2269_v39  ;;  %v10774_v2 = vpop.f32.mrf.mxu1 }
 0x1c1   : > { %v8913_v38 = vpop.f32.mrf.mxu0 }
 0x1c2   : > { %v10772_v17 = vadd.f32 %v8913_v38, %v10653_v26  ;;  %v10784_v18 = vpop.f32.mrf.mxu1 }
 0x1c3   : > { %v3052_v10 = vpop.f32.mrf.mxu0 }
 0x1c4   : > { %v10777_v54 = vadd.f32 %v3052_v10, %v10658_v47  ;;  %v10789_v26 = vpop.f32.mrf.mxu1 }
 0x1c5   : > { %v8914_v53 = vpop.f32.mrf.mxu0 }
 0x1c6   : > { %v10780_v40 = vadd.f32 %v8914_v53, %v10662_v55  ;;  %v10796_v10 = vpop.f32.mrf.mxu1 }
 0x1c7   : > { %v10782_v13 = vpop.f32.mrf.mxu0 }
 0x1c8   : > { %v10803_v43 = vpop.f32.mrf.mxu1 }
 0x1c9   : > { %v8917_v63 = vpop.f32.mrf.mxu0 }
 0x1ca   : > { %v10787_v39 = vadd.f32 %v8917_v63, %v10670_v14  ;;  %v10810_v59 = vpop.f32.mrf.mxu1 }
 0x1cb   : > { %v10791_v38 = vpop.f32.mrf.mxu0 }
 0x1cc   : > { %v10817_v22 = vpop.f32.mrf.mxu1 }
 0x1cd   : > { %v8918_v52 = vpop.f32.mrf.mxu0 }
 0x1ce   : > { %v10794_v47 = vadd.f32 %v8918_v52, %v10677_v25  ;;  %v10824_v4 = vpop.f32.mrf.mxu1 }
 0x1cf   : > { %v10798_v55 = vpop.f32.mrf.mxu0 }
 0x1d0   : > { %v10831_v57 = vpop.f32.mrf.mxu1 }
 0x1d1   : > { %v8921_v53 = vpop.f32.mrf.mxu0 }
 0x1d2   : > { %v10801_v44 = vadd.f32 %v8921_v53, %v10685_v27  ;;  %v10838_v58 = vpop.f32.mrf.mxu1 }
 0x1d3   : > { %v10805_v14 = vpop.f32.mrf.mxu0 }
 0x1d5   : > { %v8922_v63 = vpop.f32.mrf.mxu0 }
 0x1d6   : > { %v10808_v1 = vadd.f32 %v8922_v63, %v10692_v45 }
 0x1d7   : > { %v10812_v52 = vpop.f32.mrf.mxu0 }
 0x1d9   : > { %v8925_v25 = vpop.f32.mrf.mxu0 }
 0x1da   : > { %v10815_v51 = vadd.f32 %v8925_v25, %v10700_v12 }
 0x1db   : > { %v10819_v27 = vpop.f32.mrf.mxu0 }
 0x1dc   : > { %13481 = vst [vmem:[#allocation38_spill] sm:$0xff] %v10815_v51 }
 0x1dd   : > { %v8926_v53 = vpop.f32.mrf.mxu0 }
 0x1de   : > { %v10822_v36 = vadd.f32 %v8926_v53, %v10707_v46 }
 0x1df   : > { %v10826_v45 = vpop.f32.mrf.mxu0 }
 0x1e0   : > { %13482 = vst [vmem:[#allocation39_spill] sm:$0xff] %v10822_v36  ;;  %13483 = vst [vmem:[#allocation40_spill] sm:$0xff] %v10826_v45  ;;  %v10845_v45 = vpop.f32.mrf.mxu1 }
 0x1e1   : > { %v8929_v63 = vpop.f32.mrf.mxu0 }
 0x1e2   : > { %v10829_v37 = vadd.f32 %v8929_v63, %v10715_v7 }
 0x1e3   : > { %v10833_v12 = vpop.f32.mrf.mxu0 }
 0x1e4   : > { %13484 = vst [vmem:[#allocation41_spill] sm:$0xff] %v10829_v37  ;;  %13485 = vst [vmem:[#allocation42_spill] sm:$0xff] %v10833_v12  ;;  %v10852_v12 = vpop.f32.mrf.mxu1 }
 0x1e5   : > { %v8930_v25 = vpop.f32.mrf.mxu0 }
 0x1e6   : > { %v10836_v51 = vadd.f32 %v8930_v25, %v10722_v56 }
 0x1e7   : > { %v10840_v46 = vpop.f32.mrf.mxu0 }
 0x1e8   : > { %13486 = vst [vmem:[#allocation43_spill] sm:$0xff] %v10836_v51  ;;  %13487 = vst [vmem:[#allocation44_spill] sm:$0xff] %v10840_v46  ;;  %v10859_v46 = vpop.f32.mrf.mxu1 }
 0x1e9   : > { %v8933_v53 = vpop.f32.mrf.mxu0 }
 0x1ea   : > { %v10843_v36 = vadd.f32 %v8933_v53, %v10730_v61 }
 0x1eb   : > { %v10847_v7 = vpop.f32.mrf.mxu0 }
 0x1ec   : > { %13488 = vst [vmem:[#allocation45_spill] sm:$0xff] %v10843_v36  ;;  %13489 = vst [vmem:[#allocation46_spill] sm:$0xff] %v10847_v7  ;;  %v10866_v7 = vpop.f32.mrf.mxu1 }
 0x1ed   : > { %v8934_v63 = vpop.f32.mrf.mxu0 }
 0x1ee   : > { %v10850_v37 = vadd.f32 %v8934_v63, %v10737_v28 }
 0x1ef   : > { %v10854_v56 = vpop.f32.mrf.mxu0 }
 0x1f0   : > { %13490 = vst [vmem:[#allocation47_spill] sm:$0xff] %v10850_v37  ;;  %13491 = vst [vmem:[#allocation48_spill] sm:$0xff] %v10854_v56  ;;  %v2033_v37 = vadd.f32 %v10518_v41, %v10524_v15  ;;  %v2037_v15 = vadd.f32 %v10536_v34, %v10542_v60 }
 0x1f1   : > { %v8937_v25 = vpop.f32.mrf.mxu0 }
 0x1f2   : > { %v10857_v51 = vadd.f32 %v8937_v25, %v10745_v33  ;;  %v10875_v33 = vpop.f32.mrf.mxu1 }
 0x1f3   : > { %v10861_v61 = vpop.f32.mrf.mxu0 }
 0x1f4   : > { %13492 = vst [vmem:[#allocation49_spill] sm:$0xff] %v10857_v51  ;;  %13493 = vst [vmem:[#allocation50_spill] sm:$0xff] %v10861_v61  ;;  %v2239_v51 = vadd.f32 %v10660_v3, %v2033_v37 }
 0x1f5   : > { %v8938_v53 = vpop.f32.mrf.mxu0 }
 0x1f6   : > { %v10864_v36 = vadd.f32 %v8938_v53, %v10752_v24  ;;  %v10883_v53 = vpop.f32.mrf.mxu1 }
 0x1f7   : > { %v10868_v28 = vpop.f32.mrf.mxu0 }
 0x1f8   : > { %13494 = vst [vmem:[#allocation51_spill] sm:$0xff] %v10864_v36  ;;  %13495 = vst [vmem:[#allocation52_spill] sm:$0xff] %v10868_v28  ;;  %v2445_v28 = vadd.f32 %v10655_v30, %v2239_v51  ;;  %v10893_v37 = vpop.f32.mrf.mxu1  ;;  %v3409_v51 = vadd.f32 %v10767_v6, %v10772_v17 }
 0x1f9   : > { %v8941_v63 = vpop.f32.mrf.mxu0 }
 0x1fa   : > { %v10873_v56 = vadd.f32 %v8941_v63, %v10760_v50  ;;  %v3180_v50 = vadd.f32 %v10782_v13, %v2445_v28  ;;  %v2448_v63 = vadd.f32 %v10664_v35, %v10668_v11  ;;  %v10904_v13 = vpop.f32.mrf.mxu1 }
 0x1fb   : > { %v10877_v25 = vpop.f32.mrf.mxu0 }
 0x1fc   : > { %v3408_v34 = vadd.f32 %v10789_v26, %v3180_v50 }
 0x1fd   : > { %v8942_v61 = vpop.f32.mrf.mxu0 }
 0x1fe   : > { %v10881_v24 = vadd.f32 %v8942_v61, %v10769_v23  ;;  %v2243_v23 = vadd.f32 %v10675_v19, %v2037_v15  ;;  %v3407_v61 = vadd.f32 %v10774_v2, %v10777_v54  ;;  %v3410_v19 = vadd.f32 %v10784_v18, %v10780_v40  ;;  %v10924_v18 = vpop.f32.mrf.mxu1 }
 0x1ff   : > { %v10885_v36 = vpop.f32.mrf.mxu0  ;;  %v2041_v54 = vadd.f32 %v10554_v31, %v10560_v16  ;;  %v2452_v31 = vadd.f32 %v10679_v32, %v10683_v62 }
 0x200   : > { %13496 = vst [vmem:[#allocation53_spill] sm:$0xff] %v10881_v24  ;;  %v3183_v24 = vadd.f32 %v10791_v38, %v2448_v63  ;;  %v2449_v11 = vadd.f32 %v10672_v20, %v2243_v23  ;;  %v3413_v63 = vadd.f32 %v10796_v10, %v10787_v39  ;;  %v10939_v32 = vpop.f32.mrf.mxu1  ;;  %v2045_v10 = vadd.f32 %v10572_v49, %v10578_v0 }
 0x201   : > { %v8981_v41 = vpop.f32.mrf.mxu0  ;;  %v2247_v40 = vadd.f32 %v10690_v9, %v2041_v54  ;;  %v3187_v9 = vadd.f32 %v10805_v14, %v2452_v31  ;;  %v13498_v54 = vld [vmem:[#allocation5_spill] sm:$0xff]  ;;  %v2456_v0 = vadd.f32 %v10694_v48, %v10698_v42 }
 0x202   : > { %v10909_v28 = vadd.f32 %v8981_v41, %v3409_v51  ;;  %v3411_v6 = vadd.f32 %v10803_v43, %v3183_v24  ;;  %v3184_v26 = vadd.f32 %v10798_v55, %v2449_v11  ;;  %v3414_v51 = vadd.f32 %v10810_v59, %v10794_v47  ;;  %v13497_v47 = vld [vmem:[#allocation7_spill] sm:$0xff] }
 0x203   : > { %v3508_v3 = vpop.f32.mrf.mxu0  ;;  %v3191_v31 = vadd.f32 %v10819_v27, %v2456_v0  ;;  %v13499_v27 = vld [vmem:[#allocation15_spill] sm:$0xff]  ;;  %v13507_v0 = vld [vmem:[#allocation38_spill] sm:$0xff] }
 0x204   : > { %v10902_v60 = vadd.f32 %v3508_v3, %v3407_v61  ;;  %v3670_v16 = vsel %vm1106_vm8, %v10909_v28, 0.0  ;;  %v3412_v3 = vadd.f32 %v10817_v22, %v3184_v26  ;;  %v2453_v61 = vadd.f32 %v10687_v21, %v2247_v40  ;;  %v10960_v26 = vpop.f32.mrf.mxu1 }
 0x205   : > { %v8982_v30 = vpop.f32.mrf.mxu0  ;;  %v3415_v21 = vadd.f32 %v10831_v57, %v3187_v9 }
 0x206   : > { %v3667_v38 = vsel %vm1106_vm8, %v10902_v60, 0.0  ;;  %v10919_v15 = vadd.f32 %v8982_v30, %v3410_v19  ;;  %v3188_v11 = vadd.f32 %v10812_v52, %v2453_v61  ;;  %v10976_v42 = vpop.f32.mrf.mxu1 }
 0x207   : > { %v3511_v35 = vpop.f32.mrf.mxu0 }
 0x208   : > { %v10911_v2 = vadd.f32 %v3511_v35, %v3408_v34  ;;  %v3672_v23 = vsel %vm1106_vm8, %v10919_v15, 0.0 }
 0x209   : > { %v8985_v17 = vpop.f32.mrf.mxu0 }
 0x20a   : > { %v3668_v20 = vsel %vm1106_vm8, %v10911_v2, 0.0  ;;  %v10943_v34 = vadd.f32 %v8985_v17, %v3413_v63  ;;  %v2251_v17 = vadd.f32 %v10705_v8, %v2045_v10  ;;  %v3416_v8 = vadd.f32 %v10845_v45, %v3188_v11  ;;  %v13504_v11 = vld [vmem:[#allocation23_spill] sm:$0xff] }
 0x20b   : > { %v3669_v41 = vadd.f32 %v3668_v20, %v3667_v38  ;;  %v3524_v50 = vpop.f32.mrf.mxu0 }
 0x20c   : > { %v10930_v43 = vadd.f32 %v3524_v50, %v3411_v6  ;;  %v1453_v6 = vadd.f32 %v13498_v54, %v13497_v47  ;;  %v3678_v57 = vsel %vm1106_vm8, %v10943_v34, 0.0  ;;  %v3417_v50 = vadd.f32 %v10824_v4, %v10801_v44 }
 0x20d   : > { %v3671_v55 = vadd.f32 %v3670_v16, %v3669_v41  ;;  %v8986_v24 = vpop.f32.mrf.mxu0  ;;  %v2457_v48 = vadd.f32 %v10702_v29, %v2251_v17  ;;  %v3419_v29 = vadd.f32 %v10859_v46, %v3191_v31 }
 0x20e   : > { %v3674_v39 = vsel %vm1106_vm8, %v10930_v43, 0.0  ;;  %v10953_v19 = vadd.f32 %v8986_v24, %v3414_v51  ;;  %v1723_v20 = vadd.f32 %v10595_v5, %v1453_v6  ;;  %v3418_v5 = vadd.f32 %v10838_v58, %v10808_v1  ;;  %v13501_v1 = vld [vmem:[#allocation16_spill] sm:$0xff]  ;;  %v13506_v6 = vld [vmem:[#allocation18_spill] sm:$0xff] }
 0x20f   : > { %v3673_v62 = vadd.f32 %v3672_v23, %v3671_v55  ;;  %v3527_v30 = vpop.f32.mrf.mxu0  ;;  %v13500_v23 = vld [vmem:[#allocation40_spill] sm:$0xff] }
 0x210   : > { %v10947_v22 = vadd.f32 %v3527_v30, %v3412_v3  ;;  %v3680_v16 = vsel %vm1106_vm8, %v10953_v19, 0.0  ;;  %v2049_v45 = vadd.f32 %v13499_v27, %v1723_v20  ;;  %v3192_v61 = vadd.f32 %v13500_v23, %v2457_v48  ;;  %v13502_v30 = vld [vmem:[#allocation13_spill] sm:$0xff]  ;;  %v13511_v27 = vld [vmem:[#allocation14_spill] sm:$0xff] }
 0x211   : > { %v3675_v14 = vadd.f32 %v3674_v39, %v3673_v62  ;;  %v8989_v35 = vpop.f32.mrf.mxu0  ;;  %v1469_v51 = vadd.f32 %v13502_v30, %v13501_v1  ;;  %v13503_v39 = vld [vmem:[#allocation25_spill] sm:$0xff]  ;;  %v13514_v30 = vld [vmem:[#allocation10_spill] sm:$0xff] }
 0x212   : > { %v3676_v59 = vsel %vm1106_vm8, %v10947_v22, 0.0  ;;  %v10980_v63 = vadd.f32 %v8989_v35, %v3417_v50  ;;  %v2255_v10 = vadd.f32 %v13503_v39, %v2049_v45  ;;  %v3420_v20 = vadd.f32 %v10875_v33, %v3192_v61  ;;  %v13512_v61 = vld [vmem:[#allocation44_spill] sm:$0xff]  ;;  %v13515_v39 = vld [vmem:[#allocation29_spill] sm:$0xff] }
 0x213   : > { %v3677_v38 = vadd.f32 %v3676_v59, %v3675_v14  ;;  %v3540_v49 = vpop.f32.mrf.mxu0  ;;  %v10996_v14 = vpop.f32.mrf.mxu1  ;;  %v13505_v59 = vld [vmem:[#allocation22_spill] sm:$0xff]  ;;  %v1727_v17 = vadd.f32 %v13506_v6, %v1469_v51 }
 0x214   : > { %v10966_v52 = vadd.f32 %v3540_v49, %v3415_v21  ;;  %v2460_v47 = vadd.f32 %v13505_v59, %v13504_v11  ;;  %v3686_v46 = vsel %vm1106_vm8, %v10980_v63, 0.0  ;;  %v13516_v59 = vld [vmem:[#allocation27_spill] sm:$0xff] }
 0x215   : > { %v3679_v40 = vadd.f32 %v3678_v57, %v3677_v38  ;;  %v8990_v41 = vpop.f32.mrf.mxu0  ;;  %v3421_v57 = vadd.f32 %v10852_v12, %v13507_v0  ;;  %v2053_v45 = vadd.f32 %v13511_v27, %v1727_v17  ;;  %v13518_v17 = vld [vmem:[#allocation20_spill] sm:$0xff] }
 0x216   : > { %v3682_v4 = vsel %vm1106_vm8, %v10966_v52, 0.0  ;;  %v10989_v62 = vadd.f32 %v8990_v41, %v3418_v5 }
 0x217   : > { %v3681_v55 = vadd.f32 %v3680_v16, %v3679_v40  ;;  %v3543_v24 = vpop.f32.mrf.mxu0  ;;  %v13508_v40 = vld [vmem:[#allocation42_spill] sm:$0xff]  ;;  %v11012_v16 = vpop.f32.mrf.mxu1 }
 0x218   : > { %v10984_v44 = vadd.f32 %v3543_v24, %v3416_v8  ;;  %v3195_v41 = vadd.f32 %v13508_v40, %v2460_v47  ;;  %v3688_v50 = vsel %vm1106_vm8, %v10989_v62, 0.0  ;;  %v13509_v8 = vld [vmem:[#allocation24_spill] sm:$0xff]  ;;  %v13510_v24 = vld [vmem:[#allocation39_spill] sm:$0xff]  ;;  %v13517_v47 = vld [vmem:[#allocation26_spill] sm:$0xff] }
 0x219   : > { %v3683_v3 = vadd.f32 %v3682_v4, %v3681_v55  ;;  %v8993_v9 = vpop.f32.mrf.mxu0  ;;  %v2461_v31 = vadd.f32 %v13509_v8, %v2255_v10  ;;  %v3422_v5 = vadd.f32 %v10866_v7, %v13510_v24  ;;  %v2259_v10 = vadd.f32 %v13515_v39, %v2053_v45  ;;  %v13526_v39 = vld [vmem:[#allocation12_spill] sm:$0xff] }
 0x21a   : > { %v3684_v58 = vsel %vm1106_vm8, %v10984_v44, 0.0  ;;  %v11016_v4 = vadd.f32 %v8993_v9, %v3421_v57  ;;  %v3423_v23 = vadd.f32 %v10893_v37, %v3195_v41  ;;  %v13513_v9 = vld [vmem:[#allocation9_spill] sm:$0xff]  ;;  %v13520_v41 = vld [vmem:[#allocation46_spill] sm:$0xff] }
 0x21b   : > { %v3685_v35 = vadd.f32 %v3684_v58, %v3683_v3  ;;  %v3556_v21 = vpop.f32.mrf.mxu0  ;;  %v3196_v58 = vadd.f32 %v13512_v61, %v2461_v31  ;;  %v1485_v51 = vadd.f32 %v13514_v30, %v13513_v9  ;;  %v13519_v57 = vld [vmem:[#allocation41_spill] sm:$0xff]  ;;  %v13521_v31 = vld [vmem:[#allocation28_spill] sm:$0xff] }
 0x21c   : > { %v11002_v54 = vadd.f32 %v3556_v21, %v3419_v29  ;;  %v3694_v37 = vsel %vm1106_vm8, %v11016_v4, 0.0  ;;  %v13524_v9 = vld [vmem:[#allocation48_spill] sm:$0xff] }
 0x21d   : > { %v3687_v38 = vadd.f32 %v3686_v46, %v3685_v35  ;;  %v8994_v49 = vpop.f32.mrf.mxu0  ;;  %v3376_v35 = vpop.f32.mrf.mxu1  ;;  %v2464_v46 = vadd.f32 %v13517_v47, %v13516_v59  ;;  %v3424_v40 = vadd.f32 %v10924_v18, %v3196_v58  ;;  %v13523_v18 = vld [vmem:[#allocation17_spill] sm:$0xff] }
 0x21e   : > { %v3690_v12 = vsel %vm1106_vm8, %v11002_v54, 0.0  ;;  %v11025_v1 = vadd.f32 %v8994_v49, %v3422_v5 }
 0x21f   : > { %v3689_v48 = vadd.f32 %v3688_v50, %v3687_v38  ;;  %v3559_v55 = vpop.f32.mrf.mxu0  ;;  %v1731_v38 = vadd.f32 %v13518_v17, %v1485_v51  ;;  %v3199_v50 = vadd.f32 %v13520_v41, %v2464_v46  ;;  %v13529_v17 = vld [vmem:[#allocation30_spill] sm:$0xff]  ;;  %v13531_v41 = vld [vmem:[#allocation45_spill] sm:$0xff] }
 0x220   : > { %v11020_v33 = vadd.f32 %v3559_v55, %v3420_v20  ;;  %v3425_v20 = vadd.f32 %v10883_v53, %v13519_v57  ;;  %v3696_v8 = vsel %vm1106_vm8, %v11025_v1, 0.0  ;;  %v8972_v55 = vpop.f32.mrf.mxu1 }
 0x221   : > { %v3691_v3 = vadd.f32 %v3690_v12, %v3689_v48  ;;  %v8997_v29 = vpop.f32.mrf.mxu0  ;;  %v2465_v48 = vadd.f32 %v13521_v31, %v2259_v10  ;;  %v13522_v12 = vld [vmem:[#allocation43_spill] sm:$0xff]  ;;  %v13532_v31 = vld [vmem:[#allocation50_spill] sm:$0xff] }
 0x222   : > { %v3692_v7 = vsel %vm1106_vm8, %v11020_v33, 0.0  ;;  %v3426_v27 = vadd.f32 %v10904_v13, %v13522_v12  ;;  %v11048_v45 = vadd.f32 %v8997_v29, %v3425_v20  ;;  %v13525_v29 = vld [vmem:[#allocation11_spill] sm:$0xff]  ;;  %v3379_v59 = vpop.f32.mrf.mxu1 }
 0x223   : > { %v3693_v21 = vadd.f32 %v3692_v7, %v3691_v3  ;;  %v3572_v11 = vpop.f32.mrf.mxu0  ;;  %v3427_v7 = vadd.f32 %v10960_v26, %v3199_v50  ;;  %v3200_v30 = vadd.f32 %v13524_v9, %v2465_v48  ;;  %v1501_v10 = vadd.f32 %v13526_v39, %v13525_v29 }
 0x224   : > { %v11036_v6 = vadd.f32 %v3572_v11, %v3423_v23  ;;  %v2057_v23 = vadd.f32 %v13523_v18, %v1731_v38  ;;  %v3702_v26 = vsel %vm1106_vm8, %v11048_v45, 0.0  ;;  %v3429_v50 = vadd.f32 %v10939_v32, %v13531_v41 }
 0x225   : > { %v3695_v49 = vadd.f32 %v3694_v37, %v3693_v21  ;;  %v8998_v0 = vpop.f32.mrf.mxu0  ;;  %v13527_v21 = vld [vmem:[#allocation33_spill] sm:$0xff]  ;;  %v13528_v37 = vld [vmem:[#allocation31_spill] sm:$0xff] }
 0x226   : > { %v3698_v53 = vsel %vm1106_vm8, %v11036_v6, 0.0  ;;  %v11057_v51 = vadd.f32 %v8998_v0, %v3426_v27  ;;  %v2263_v11 = vadd.f32 %v13527_v21, %v2057_v23  ;;  %v2468_v38 = vadd.f32 %v13529_v17, %v13528_v37  ;;  %v13530_v0 = vld [vmem:[#allocation8_spill] sm:$0xff]  ;;  %v8975_v27 = vpop.f32.mrf.mxu1  ;;  %v13534_v23 = vld [vmem:[#allocation47_spill] sm:$0xff] }
 0x227   : > { %v3697_v24 = vadd.f32 %v3696_v8, %v3695_v49  ;;  %v3575_v5 = vpop.f32.mrf.mxu0  ;;  %v1735_v57 = vadd.f32 %v13530_v0, %v1501_v10  ;;  %v3428_v8 = vadd.f32 %v10996_v14, %v3200_v30  ;;  %v13535_v14 = vld [vmem:[#allocation19_spill] sm:$0xff]  ;;  %v13536_v10 = vld [vmem:[#allocation52_spill] sm:$0xff] }
 0x228   : > { %v11052_v3 = vadd.f32 %v3575_v5, %v3424_v40  ;;  %v3203_v48 = vadd.f32 %v13532_v31, %v2468_v38  ;;  %v13533_v5 = vld [vmem:[#allocation32_spill] sm:$0xff]  ;;  %v13538_v38 = vld [vmem:[#allocation35_spill] sm:$0xff] }
 0x229   : > { %v3699_v61 = vadd.f32 %v3698_v53, %v3697_v24  ;;  %v9001_v58 = vpop.f32.mrf.mxu0  ;;  %v3704_v24 = vsel %vm1106_vm8, %v11057_v51, 0.0  ;;  %v2469_v12 = vadd.f32 %v13533_v5, %v2263_v11  ;;  %v2061_v30 = vadd.f32 %v13535_v14, %v1735_v57 }
 0x22a   : > { %v3700_v13 = vsel %vm1106_vm8, %v11052_v3, 0.0  ;;  %v3431_v39 = vadd.f32 %v3376_v35, %v3203_v48 }
 0x22b   : > { %v3701_v47 = vadd.f32 %v3700_v13, %v3699_v61  ;;  %v3588_v46 = vpop.f32.mrf.mxu0  ;;  %v3430_v61 = vadd.f32 %v10976_v42, %v13534_v23  ;;  %v3204_v21 = vadd.f32 %v13536_v10, %v2469_v12  ;;  %v13537_v42 = vld [vmem:[#allocation37_spill] sm:$0xff]  ;;  %v13542_v23 = vld [vmem:[#allocation51_spill] sm:$0xff] }
 0x22c   : > { %v11068_v49 = vadd.f32 %v3588_v46, %v3427_v7  ;;  %v11080_v7 = vadd.f32 %v9001_v58, %v3429_v50  ;;  %v2267_v58 = vadd.f32 %v13537_v42, %v2061_v30  ;;  %v3392_v46 = vpop.f32.mrf.mxu1 }
 0x22d   : > { %v3703_v20 = vadd.f32 %v3702_v26, %v3701_v47  ;;  %v9002_v40 = vpop.f32.mrf.mxu0  ;;  %v13539_v26 = vld [vmem:[#allocation34_spill] sm:$0xff] }
 0x22e   : > { %v3706_v32 = vsel %vm1106_vm8, %v11068_v49, 0.0  ;;  %v11088_v11 = vadd.f32 %v9002_v40, %v3430_v61  ;;  %v2472_v0 = vadd.f32 %v13539_v26, %v13538_v38  ;;  %v3710_v57 = vsel %vm1106_vm8, %v11080_v7, 0.0  ;;  %v13540_v40 = vld [vmem:[#allocation49_spill] sm:$0xff]  ;;  %v8976_v12 = vpop.f32.mrf.mxu1 }
 0x22f   : > { %v3705_v53 = vadd.f32 %v3704_v24, %v3703_v20  ;;  %v3591_v18 = vpop.f32.mrf.mxu0  ;;  %v3433_v50 = vadd.f32 %v11012_v16, %v13540_v40  ;;  %v13541_v24 = vld [vmem:[#allocation36_spill] sm:$0xff]  ;;  %v3434_v61 = vadd.f32 %v8972_v55, %v13542_v23 }
 0x230   : > { %v11084_v9 = vadd.f32 %v3591_v18, %v3428_v8  ;;  %v3432_v8 = vadd.f32 %v3379_v59, %v3204_v21  ;;  %v3207_v31 = vadd.f32 %v10877_v25, %v2472_v0  ;;  %v3712_v48 = vsel %vm1106_vm8, %v11088_v11, 0.0  ;;  %v3395_v21 = vpop.f32.mrf.mxu1 }
 0x231   : > { %v3707_v13 = vadd.f32 %v3706_v32, %v3705_v53  ;;  %v9005_v29 = vpop.f32.mrf.mxu0  ;;  %v2473_v5 = vadd.f32 %v13541_v24, %v2267_v58 }
 0x232   : > { %v3708_v47 = vsel %vm1106_vm8, %v11084_v9, 0.0  ;;  %v3661_v32 = vadd.f32 %v9005_v29, %v3433_v50  ;;  %v3435_v59 = vadd.f32 %v3392_v46, %v3207_v31 }
 0x233   : > { %v3709_v37 = vadd.f32 %v3708_v47, %v3707_v13  ;;  %v3604_v17 = vpop.f32.mrf.mxu0  ;;  %v3208_v25 = vadd.f32 %v10885_v36, %v2473_v5 }
 0x234   : > { %v11097_v20 = vadd.f32 %v3604_v17, %v3431_v39  ;;  %v3718_v58 = vsel %vm1106_vm8, %v3661_v32, 0.0  ;;  %v3437_v17 = vadd.f32 %v8975_v27, %v10873_v56 }
 0x235   : > { %v3711_v35 = vadd.f32 %v3710_v57, %v3709_v37  ;;  %v9006_v41 = vpop.f32.mrf.mxu0  ;;  %v3436_v38 = vadd.f32 %v3395_v21, %v3208_v25  ;;  %v13543_v57 = vld [vmem:[#allocation53_spill] sm:$0xff] }
 0x236   : > { %v3714_v14 = vsel %vm1106_vm8, %v11097_v20, 0.0  ;;  %v3662_v39 = vadd.f32 %v9006_v41, %v3434_v61  ;;  %v3438_v36 = vadd.f32 %v8976_v12, %v13543_v57 }
 0x237   : > { %v3713_v53 = vadd.f32 %v3712_v48, %v3711_v35  ;;  %v3607_v18 = vpop.f32.mrf.mxu0 }
 0x238   : > { %v3660_v30 = vadd.f32 %v3607_v18, %v3432_v8  ;;  %v3720_v26 = vsel %vm1106_vm8, %v3662_v39, 0.0 }
 0x239   : > { %v3715_v13 = vadd.f32 %v3714_v14, %v3713_v53  ;;  %v9009_v16 = vpop.f32.mrf.mxu0 }
 0x23a   : > { %v3716_v10 = vsel %vm1106_vm8, %v3660_v30, 0.0  ;;  %v3665_v35 = vadd.f32 %v9009_v16, %v3437_v17 }
 0x23b   : > { %v3717_v47 = vadd.f32 %v3716_v10, %v3715_v13  ;;  %v3620_v42 = vpop.f32.mrf.mxu0 }
 0x23c   : > { %v3663_v37 = vadd.f32 %v3620_v42, %v3435_v59  ;;  %v3726_v24 = vsel %vm1106_vm8, %v3665_v35, 0.0 }
 0x23d   : > { %v3719_v55 = vadd.f32 %v3718_v58, %v3717_v47  ;;  %v9010_v29 = vpop.f32.mrf.mxu0 }
 0x23e   : > { %v3722_v41 = vsel %vm1106_vm8, %v3663_v37, 0.0  ;;  %v3666_v8 = vadd.f32 %v9010_v29, %v3438_v36 }
 0x23f   : > { %v3721_v0 = vadd.f32 %v3720_v26, %v3719_v55  ;;  %v3623_v46 = vpop.f32.mrf.mxu0 }
 0x240   : > { %v3664_v40 = vadd.f32 %v3623_v46, %v3436_v38  ;;  %v3728_v56 = vsel %vm1106_vm8, %v3666_v8, 0.0 }
 0x241   : > { %v3723_v50 = vadd.f32 %v3722_v41, %v3721_v0  ;;  %v4426_v41 = vld [vmem:[%s13371_s2] sm:$0x3] }
 0x242   : > { %v3724_v31 = vsel %vm1106_vm8, %v3664_v40, 0.0  ;;  %9327 = vmatprep.subr.msk.bf16.mxu0 %vm1155_vm0, %v4426_v41 }
 0x243   : > { %v3725_v48 = vadd.f32 %v3724_v31, %v3723_v50 }
 0x245   : > { %v3727_v5 = vadd.f32 %v3726_v24, %v3725_v48 }
 0x247   : > { %v3729_v27 = vadd.f32 %v3728_v56, %v3727_v5  ;;  %v5070_v56 = vsel %vm1155_vm0, %v4426_v41, 0 }
 0x248   : > { %9046 = vmatpush3.bf16.msra.mxu0 %v5070_v56 }
 0x249   : > { %v3730_v53 = vrot.slane %v3729_v27, 4 }
 0x24b   : > { %v3731_v18 = vadd.f32 %v3730_v53, %v3729_v27 }
 0x24d   : > { %v3732_v23 = vrot.slane %v3731_v18, 2 }
 0x24f   : > { %v3733_v61 = vadd.f32 %v3732_v23, %v3731_v18 }
 0x251   : > { %v3734_v12 = vrot.slane %v3733_v61, 1 }
 0x253   : > { %v3735_v14 = vadd.f32 %v3734_v12, %v3733_v61 }
 0x255   : > { %v3737_v13 = vmul.f32 0.00390625, %v3735_v14 }
 0x257   : > { %v11119_v16 = vsub.f32 %v10984_v44, %v3737_v13  ;;  %v11122_v59 = vsub.f32 %v11002_v54, %v3737_v13  ;;  %v11125_v25 = vsub.f32 %v11020_v33, %v3737_v13  ;;  %v11128_v10 = vsub.f32 %v11016_v4, %v3737_v13 }
 0x258   : > { %v11131_v21 = vsub.f32 %v11025_v1, %v3737_v13  ;;  %v11134_v47 = vsub.f32 %v11036_v6, %v3737_v13  ;;  %v11137_v42 = vsub.f32 %v11052_v3, %v3737_v13  ;;  %v11140_v44 = vsub.f32 %v11048_v45, %v3737_v13 }
 0x259   : > { %v11143_v54 = vsub.f32 %v11057_v51, %v3737_v13  ;;  %v11146_v33 = vsub.f32 %v11068_v49, %v3737_v13  ;;  %v11149_v4 = vsub.f32 %v11084_v9, %v3737_v13  ;;  %v11152_v1 = vsub.f32 %v11080_v7, %v3737_v13 }
 0x25a   : > { %v11155_v6 = vsub.f32 %v11088_v11, %v3737_v13  ;;  %v11158_v3 = vsub.f32 %v11097_v20, %v3737_v13  ;;  %v11160_v45 = vsub.f32 %v3660_v30, %v3737_v13  ;;  %v11162_v58 = vsub.f32 %v3661_v32, %v3737_v13 }
 0x25b   : > { %v11164_v51 = vsub.f32 %v3662_v39, %v3737_v13  ;;  %v11166_v49 = vsub.f32 %v3663_v37, %v3737_v13  ;;  %v11168_v55 = vsub.f32 %v3664_v40, %v3737_v13  ;;  %v11170_v9 = vsub.f32 %v3665_v35, %v3737_v13  ;;  %v8107_v35 = vld [vmem:[%s13371_s2 + $0x6] sm:$0x3] }
 0x25c   : > { %v11172_v7 = vsub.f32 %v3666_v8, %v3737_v13  ;;  %v11175_v11 = vsub.f32 %v10902_v60, %v3737_v13  ;;  %v11178_v20 = vsub.f32 %v10911_v2, %v3737_v13  ;;  %v11181_v30 = vsub.f32 %v10909_v28, %v3737_v13  ;;  %9326 = vmatprep.subr.msk.bf16.mxu1 %vm1155_vm0, %v8107_v35 }
 0x25d   : > { %v11184_v32 = vsub.f32 %v10919_v15, %v3737_v13  ;;  %v11191_v29 = vsub.f32 %v10930_v43, %v3737_v13  ;;  %v11196_v2 = vsub.f32 %v10947_v22, %v3737_v13  ;;  %v11203_v26 = vsub.f32 %v10943_v34, %v3737_v13 }
 0x25e   : > { %v3770_v39 = vmul.f32 %v11175_v11, %v11175_v11  ;;  %v3771_v37 = vmul.f32 %v11178_v20, %v11178_v20  ;;  %v3772_v60 = vmul.f32 %v11181_v30, %v11181_v30  ;;  %v11209_v22 = vsub.f32 %v10953_v19, %v3737_v13 }
 0x25f   : > { %v3773_v28 = vmul.f32 %v11184_v32, %v11184_v32  ;;  %v3774_v43 = vmul.f32 %v11191_v29, %v11191_v29  ;;  %v3775_v57 = vmul.f32 %v11196_v2, %v11196_v2  ;;  %v11222_v40 = vsub.f32 %v10966_v52, %v3737_v13 }
 0x260   : > { %v3802_v15 = vsel %vm1106_vm8, %v3770_v39, 0.0  ;;  %v3803_v17 = vsel %vm1106_vm8, %v3771_v37, 0.0  ;;  %v3805_v0 = vsel %vm1106_vm8, %v3772_v60, 0.0  ;;  %v3776_v19 = vmul.f32 %v11203_v26, %v11203_v26 }
 0x261   : > { %v3804_v38 = vadd.f32 %v3803_v17, %v3802_v15  ;;  %v3807_v36 = vsel %vm1106_vm8, %v3773_v28, 0.0  ;;  %v3809_v50 = vsel %vm1106_vm8, %v3774_v43, 0.0  ;;  %v3777_v31 = vmul.f32 %v11209_v22, %v11209_v22 }
 0x262   : > { %v3811_v48 = vsel %vm1106_vm8, %v3775_v57, 0.0  ;;  %v4878_v5 = vsel %vm1155_vm0, %v8107_v35, 0  ;;  %v11234_v52 = vsub.f32 %v10980_v63, %v3737_v13  ;;  %v3778_v27 = vmul.f32 %v11222_v40, %v11222_v40 }
 0x263   : > { %v3806_v46 = vadd.f32 %v3805_v0, %v3804_v38  ;;  %v3813_v53 = vsel %vm1106_vm8, %v3776_v19, 0.0  ;;  %9012 = vmatpush3.bf16.msra.mxu1 %v4878_v5  ;;  %v11240_v23 = vsub.f32 %v10989_v62, %v3737_v13  ;;  %v3779_v61 = vmul.f32 %v11119_v16, %v11119_v16  ;;  %v11254_v62 = vld [vmem:[%s13371_s2 + $0xc] sm:$0x3] }
 0x264   : > { %v3815_v12 = vsel %vm1106_vm8, %v3777_v31, 0.0  ;;  %v3780_v63 = vmul.f32 %v11234_v52, %v11234_v52  ;;  %v3817_v39 = vsel %vm1106_vm8, %v3778_v27, 0.0  ;;  %9328 = vmatprep.subr.msk.bf16.mxu1 %vm1155_vm0, %v11254_v62  ;;  %v3782_v15 = vmul.f32 %v11122_v59, %v11122_v59 }
 0x265   : > { %v3808_v34 = vadd.f32 %v3807_v36, %v3806_v46  ;;  %v3781_v60 = vmul.f32 %v11240_v23, %v11240_v23  ;;  %v3819_v28 = vsel %vm1106_vm8, %v3779_v61, 0.0  ;;  %v3783_v43 = vmul.f32 %v11125_v25, %v11125_v25 }
 0x266   : > { %v3821_v17 = vsel %vm1106_vm8, %v3780_v63, 0.0  ;;  %v3784_v57 = vmul.f32 %v11128_v10, %v11128_v10  ;;  %v3825_v36 = vsel %vm1106_vm8, %v3782_v15, 0.0  ;;  %v3788_v56 = vmul.f32 %v11140_v44, %v11140_v44 }
 0x267   : > { %v3810_v8 = vadd.f32 %v3809_v50, %v3808_v34  ;;  %v3823_v0 = vsel %vm1106_vm8, %v3781_v60, 0.0  ;;  %v3785_v34 = vmul.f32 %v11131_v21, %v11131_v21  ;;  %v3827_v41 = vsel %vm1106_vm8, %v3783_v43, 0.0 }
 0x268   : > { %v3786_v50 = vmul.f32 %v11134_v47, %v11134_v47  ;;  %v3837_v63 = vsel %vm1106_vm8, %v3788_v56, 0.0 }
 0x269   : > { %v3812_v24 = vadd.f32 %v3811_v48, %v3810_v8  ;;  %v3829_v8 = vsel %vm1106_vm8, %v3784_v57, 0.0  ;;  %v3787_v48 = vmul.f32 %v11137_v42, %v11137_v42 }
 0x26a   : > { %v3833_v27 = vsel %vm1106_vm8, %v3786_v50, 0.0 }
 0x26b   : > { %v3814_v18 = vadd.f32 %v3813_v53, %v3812_v24  ;;  %v3831_v24 = vsel %vm1106_vm8, %v3785_v34, 0.0  ;;  %v3835_v61 = vsel %vm1106_vm8, %v3787_v48, 0.0 }
 0x26d   : > { %v3816_v14 = vadd.f32 %v3815_v12, %v3814_v18  ;;  %v3789_v18 = vmul.f32 %v11143_v54, %v11143_v54 }
 0x26f   : > { %v3818_v37 = vadd.f32 %v3817_v39, %v3816_v14  ;;  %v3790_v14 = vmul.f32 %v11146_v33, %v11146_v33  ;;  %v3839_v60 = vsel %vm1106_vm8, %v3789_v18, 0.0 }
 0x271   : > { %v3820_v13 = vadd.f32 %v3819_v28, %v3818_v37  ;;  %v3791_v37 = vmul.f32 %v11149_v4, %v11149_v4  ;;  %v3841_v15 = vsel %vm1106_vm8, %v3790_v14, 0.0 }
 0x273   : > { %v3822_v38 = vadd.f32 %v3821_v17, %v3820_v13  ;;  %v3792_v13 = vmul.f32 %v11152_v1, %v11152_v1  ;;  %v3843_v43 = vsel %vm1106_vm8, %v3791_v37, 0.0 }
 0x275   : > { %v3824_v46 = vadd.f32 %v3823_v0, %v3822_v38  ;;  %v3793_v38 = vmul.f32 %v11155_v6, %v11155_v6  ;;  %v3845_v57 = vsel %vm1106_vm8, %v3792_v13, 0.0 }
 0x277   : > { %v3826_v35 = vadd.f32 %v3825_v36, %v3824_v46  ;;  %v3794_v46 = vmul.f32 %v11158_v3, %v11158_v3  ;;  %v3847_v34 = vsel %vm1106_vm8, %v3793_v38, 0.0 }
 0x279   : > { %v3828_v19 = vadd.f32 %v3827_v41, %v3826_v35  ;;  %v3795_v35 = vmul.f32 %v11160_v45, %v11160_v45  ;;  %v3849_v50 = vsel %vm1106_vm8, %v3794_v46, 0.0 }
 0x27b   : > { %v3830_v31 = vadd.f32 %v3829_v8, %v3828_v19  ;;  %v3796_v19 = vmul.f32 %v11162_v58, %v11162_v58  ;;  %v3851_v48 = vsel %vm1106_vm8, %v3795_v35, 0.0 }
 0x27d   : > { %v3832_v5 = vadd.f32 %v3831_v24, %v3830_v31  ;;  %v3797_v31 = vmul.f32 %v11164_v51, %v11164_v51  ;;  %v3853_v56 = vsel %vm1106_vm8, %v3796_v19, 0.0 }
 0x27f   : > { %v3834_v53 = vadd.f32 %v3833_v27, %v3832_v5  ;;  %v3798_v5 = vmul.f32 %v11166_v49, %v11166_v49  ;;  %v3855_v18 = vsel %vm1106_vm8, %v3797_v31, 0.0 }
 0x281   : > { %v3836_v12 = vadd.f32 %v3835_v61, %v3834_v53  ;;  %v3799_v53 = vmul.f32 %v11168_v55, %v11168_v55  ;;  %v3857_v14 = vsel %vm1106_vm8, %v3798_v5, 0.0 }
 0x283   : > { %v3838_v39 = vadd.f32 %v3837_v63, %v3836_v12  ;;  %v3800_v12 = vmul.f32 %v11170_v9, %v11170_v9  ;;  %v3859_v37 = vsel %vm1106_vm8, %v3799_v53, 0.0 }
 0x285   : > { %v3840_v28 = vadd.f32 %v3839_v60, %v3838_v39  ;;  %v3801_v39 = vmul.f32 %v11172_v7, %v11172_v7 }
 0x287   : > { %v3842_v17 = vadd.f32 %v3841_v15, %v3840_v28  ;;  %v3861_v28 = vsel %vm1106_vm8, %v3800_v12, 0.0  ;;  %v3863_v15 = vsel %vm1106_vm8, %v3801_v39, 0.0 }
 0x289   : > { %v3844_v0 = vadd.f32 %v3843_v43, %v3842_v17 }
 0x28b   : > { %v3846_v36 = vadd.f32 %v3845_v57, %v3844_v0 }
 0x28d   : > { %v3848_v41 = vadd.f32 %v3847_v34, %v3846_v36 }
 0x28f   : > { %v3850_v8 = vadd.f32 %v3849_v50, %v3848_v41  ;;  %v11323_v41 = vld [vmem:[%s13371_s2 + $0x2] sm:$0x3] }
 0x290   : > { %9329 = vmatprep.subr.msk.bf16.mxu0 %vm1155_vm0, %v11323_v41 }
 0x291   : > { %v3852_v24 = vadd.f32 %v3851_v48, %v3850_v8 }
 0x293   : > { %v3854_v27 = vadd.f32 %v3853_v56, %v3852_v24 }
 0x295   : > { %v3856_v61 = vadd.f32 %v3855_v18, %v3854_v27 }
 0x297   : > { %v3858_v63 = vadd.f32 %v3857_v14, %v3856_v61 }
 0x299   : > { %v3860_v60 = vadd.f32 %v3859_v37, %v3858_v63 }
 0x29b   : > { %v3862_v13 = vadd.f32 %v3861_v28, %v3860_v60 }
 0x29d   : > { %v3864_v17 = vadd.f32 %v3863_v15, %v3862_v13 }
 0x29f   : > { %v3865_v38 = vrot.slane %v3864_v17, 4 }
 0x2a1   : > { %v3866_v43 = vadd.f32 %v3865_v38, %v3864_v17 }
 0x2a3   : > { %v3867_v0 = vrot.slane %v3866_v43, 2 }
 0x2a5   : > { %v3868_v46 = vadd.f32 %v3867_v0, %v3866_v43 }
 0x2a7   : > { %v3869_v57 = vrot.slane %v3868_v46, 1 }
 0x2a9   : > { %v3870_v36 = vadd.f32 %v3869_v57, %v3868_v46 }
 0x2ab   : > { %v3871_v35 = vmul.f32 0.00390625, %v3870_v36 }
 0x2ad   : > { %v3872_v34 = vadd.f32 1e-05, %v3871_v35 }
 0x2af   : > { %9364 = vrsqrt.f32 %v3872_v34 }
 0x2bc   : > { %v9365_v19 = vpop.eup %9364 }
 0x2bd   : > { %v3903_v50 = vmul.f32 %v9365_v19, %v11168_v55  ;;  %v11329_v8 = vmul.f32 %v9365_v19, %v11175_v11  ;;  %v11332_v31 = vmul.f32 %v9365_v19, %v11178_v20  ;;  %v11335_v48 = vmul.f32 %v9365_v19, %v11181_v30 }
 0x2be   : > { %v11338_v24 = vmul.f32 %v9365_v19, %v11184_v32  ;;  %v11341_v5 = vmul.f32 %v9365_v19, %v11191_v29  ;;  %v11344_v56 = vmul.f32 %v9365_v19, %v11196_v2  ;;  %v11347_v55 = vmul.f32 %v9365_v19, %v11203_v26 }
 0x2bf   : > { %v3935_v27 = vmax.f32 %v3903_v50, 0.0  ;;  %v11350_v11 = vmul.f32 %v9365_v19, %v11209_v22  ;;  %v11353_v20 = vmul.f32 %v9365_v19, %v11222_v40  ;;  %v11356_v30 = vmul.f32 %v9365_v19, %v11119_v16 }
 0x2c0   : > { %v11359_v32 = vmul.f32 %v9365_v19, %v11234_v52  ;;  %v11362_v29 = vmul.f32 %v9365_v19, %v11240_v23  ;;  %v11365_v2 = vmul.f32 %v9365_v19, %v11122_v59  ;;  %v11368_v53 = vmul.f32 %v9365_v19, %v11125_v25 }
 0x2c1   : > { %v8396_v26 = vpack.c.bf16 %v3935_v27, %v3935_v27  ;;  %v11371_v22 = vmul.f32 %v9365_v19, %v11128_v10  ;;  %v11374_v40 = vmul.f32 %v9365_v19, %v11131_v21  ;;  %v11377_v16 = vmul.f32 %v9365_v19, %v11134_v47 }
 0x2c2   : > { %v11380_v52 = vmul.f32 %v9365_v19, %v11137_v42  ;;  %v11383_v23 = vmul.f32 %v9365_v19, %v11140_v44  ;;  %v11386_v59 = vmul.f32 %v9365_v19, %v11143_v54  ;;  %v11391_v25 = vmul.f32 %v9365_v19, %v11146_v33 }
 0x2c3   : > { %4095 = vst.msk [vmem:[#allocation2 + $0x138] sm:$0xf] %vm333_vm1, %v8396_v26  ;;  %4101 = vst.msk [vmem:[#allocation2 + $0x160] sm:$0xf] %vm333_vm1, %v8396_v26  ;;  %v11394_v10 = vmul.f32 %v9365_v19, %v11149_v4  ;;  %v11397_v21 = vmul.f32 %v9365_v19, %v11152_v1  ;;  %v11400_v47 = vmul.f32 %v9365_v19, %v11155_v6  ;;  %v3908_v18 = vmax.f32 %v11335_v48, 0.0 }
 0x2c4   : > { %v11403_v42 = vmul.f32 %v9365_v19, %v11158_v3  ;;  %v11406_v44 = vmul.f32 %v9365_v19, %v11162_v58  ;;  %v11409_v54 = vmul.f32 %v9365_v19, %v11164_v51  ;;  %v11412_v33 = vmul.f32 %v9365_v19, %v11166_v49 }
 0x2c5   : > { %v11415_v4 = vmul.f32 %v9365_v19, %v11160_v45  ;;  %v11418_v1 = vmul.f32 %v9365_v19, %v11170_v9  ;;  %v11421_v6 = vmul.f32 %v9365_v19, %v11172_v7  ;;  %v3906_v3 = vmax.f32 %v11329_v8, 0.0 }
 0x2c6   : > { %v3907_v58 = vmax.f32 %v11332_v31, 0.0  ;;  %v3909_v51 = vmax.f32 %v11338_v24, 0.0  ;;  %v3910_v49 = vmax.f32 %v11341_v5, 0.0  ;;  %v3911_v61 = vmax.f32 %v11344_v56, 0.0 }
 0x2c7   : > { %v3912_v45 = vmax.f32 %v11347_v55, 0.0  ;;  %v3913_v9 = vmax.f32 %v11350_v11, 0.0  ;;  %v3914_v12 = vmax.f32 %v11353_v20, 0.0  ;;  %v3915_v7 = vmax.f32 %v11356_v30, 0.0 }
 0x2c8   : > { %v3916_v14 = vmax.f32 %v11359_v32, 0.0  ;;  %v3917_v63 = vmax.f32 %v11362_v29, 0.0  ;;  %v3918_v39 = vmax.f32 %v11365_v2, 0.0  ;;  %v3919_v37 = vmax.f32 %v11368_v53, 0.0 }
 0x2c9   : > { %v3920_v60 = vmax.f32 %v11371_v22, 0.0  ;;  %v3921_v28 = vmax.f32 %v11374_v40, 0.0  ;;  %v3922_v13 = vmax.f32 %v11377_v16, 0.0  ;;  %v3923_v15 = vmax.f32 %v11380_v52, 0.0 }
 0x2ca   : > { %v3924_v17 = vmax.f32 %v11383_v23, 0.0  ;;  %v3925_v38 = vmax.f32 %v11386_v59, 0.0  ;;  %v3926_v43 = vmax.f32 %v11391_v25, 0.0  ;;  %v3927_v0 = vmax.f32 %v11394_v10, 0.0 }
 0x2cb   : > { %v3928_v46 = vmax.f32 %v11397_v21, 0.0  ;;  %v3929_v57 = vmax.f32 %v11400_v47, 0.0  ;;  %v3930_v36 = vmax.f32 %v11403_v42, 0.0  ;;  %v3931_v35 = vmax.f32 %v11415_v4, 0.0 }
 0x2cc   : > { %v3932_v34 = vmax.f32 %v11406_v44, 0.0  ;;  %v3933_v19 = vmax.f32 %v11409_v54, 0.0  ;;  %v3934_v50 = vmax.f32 %v11412_v33, 0.0  ;;  %v3936_v8 = vmax.f32 %v11418_v1, 0.0 }
 0x2cd   : > { %v3937_v31 = vmax.f32 %v11421_v6, 0.0  ;;  %v8367_v48 = vpack.c.bf16 %v3906_v3, %v3906_v3  ;;  %v8368_v24 = vpack.c.bf16 %v3907_v58, %v3907_v58  ;;  %v8369_v5 = vpack.c.bf16 %v3908_v18, %v3908_v18  ;;  %v4177_v3 = vld [vmem:[#allocation2 + $0x18] sm:$0x8]  ;;  %v4174_v58 = vld [vmem:[#allocation2 + $0x4] sm:$0x8] }
 0x2ce   : > { %v8370_v56 = vpack.c.bf16 %v3909_v51, %v3909_v51  ;;  %v8371_v27 = vpack.c.bf16 %v3910_v49, %v3910_v49  ;;  %v8372_v55 = vpack.c.bf16 %v3911_v61, %v3911_v61  ;;  %v8373_v11 = vpack.c.bf16 %v3912_v45, %v3912_v45  ;;  %v4180_v18 = vld [vmem:[#allocation2 + $0x2c] sm:$0x8]  ;;  %v4183_v45 = vld [vmem:[#allocation2 + $0x40] sm:$0x8] }
 0x2cf   : > { %v8374_v20 = vpack.c.bf16 %v3913_v9, %v3913_v9  ;;  %v8375_v30 = vpack.c.bf16 %v3914_v12, %v3914_v12  ;;  %v8376_v32 = vpack.c.bf16 %v3915_v7, %v3915_v7  ;;  %4066 = vst.msk [vmem:[#allocation2 + $0x1c] sm:$0xf] %vm333_vm1, %v8367_v48  ;;  %4067 = vst.msk [vmem:[#allocation2 + $0x20] sm:$0xf] %vm333_vm1, %v8368_v24 }
 0x2d0   : > { %v8377_v29 = vpack.c.bf16 %v3916_v14, %v3916_v14  ;;  %v8378_v2 = vpack.c.bf16 %v3917_v63, %v3917_v63  ;;  %v8379_v26 = vpack.c.bf16 %v3918_v39, %v3918_v39  ;;  %v8380_v53 = vpack.c.bf16 %v3919_v37, %v3919_v37  ;;  %4068 = vst.msk [vmem:[#allocation2 + $0x30] sm:$0xf] %vm333_vm1, %v8369_v5  ;;  %v4186_v63 = vld [vmem:[#allocation2 + $0x54] sm:$0x8]  ;;  %v4189_v39 = vld [vmem:[#allocation2 + $0x68] sm:$0x8] }
 0x2d1   : > { %4069 = vst.msk [vmem:[#allocation2 + $0x34] sm:$0xf] %vm333_vm1, %v8370_v56  ;;  %4070 = vst.msk [vmem:[#allocation2 + $0x44] sm:$0xf] %vm333_vm1, %v8371_v27  ;;  %v8381_v22 = vpack.c.bf16 %v3920_v60, %v3920_v60  ;;  %v8382_v40 = vpack.c.bf16 %v3921_v28, %v3921_v28  ;;  %v8383_v16 = vpack.c.bf16 %v3922_v13, %v3922_v13 }
 0x2d2   : > { %4071 = vst.msk [vmem:[#allocation2 + $0x48] sm:$0xf] %vm333_vm1, %v8372_v55  ;;  %4098 = vst.msk [vmem:[#allocation2 + $0x8] sm:$0xf] %vm333_vm1, %v8369_v5  ;;  %v8384_v52 = vpack.c.bf16 %v3923_v15, %v3923_v15  ;;  %v8385_v23 = vpack.c.bf16 %v3924_v17, %v3924_v17  ;;  %v8386_v59 = vpack.c.bf16 %v3925_v38, %v3925_v38  ;;  %v4192_v15 = vld [vmem:[#allocation2 + $0x7c] sm:$0x8] }
 0x2d3   : > { %4099 = vst.msk [vmem:[#allocation2 + $0xc] sm:$0xf] %vm333_vm1, %v8370_v56  ;;  %4072 = vst.msk [vmem:[#allocation2 + $0x58] sm:$0xf] %vm333_vm1, %v8373_v11  ;;  %v8387_v25 = vpack.c.bf16 %v3926_v43, %v3926_v43  ;;  %v8388_v10 = vpack.c.bf16 %v3927_v0, %v3927_v0  ;;  %v8389_v21 = vpack.c.bf16 %v3928_v46, %v3928_v46  ;;  %v4195_v17 = vld [vmem:[#allocation2 + $0x90] sm:$0x8] }
 0x2d4   : > { %4073 = vst.msk [vmem:[#allocation2 + $0x5c] sm:$0xf] %vm333_vm1, %v8374_v20  ;;  %4074 = vst.msk [vmem:[#allocation2 + $0x6c] sm:$0xf] %vm333_vm1, %v8375_v30  ;;  %v8390_v47 = vpack.c.bf16 %v3929_v57, %v3929_v57  ;;  %v8391_v42 = vpack.c.bf16 %v3930_v36, %v3930_v36  ;;  %v8392_v44 = vpack.c.bf16 %v3931_v35, %v3931_v35  ;;  %v4198_v55 = vld [vmem:[#allocation2 + $0xa4] sm:$0x8] }
 0x2d5   : > { %4075 = vst.msk [vmem:[#allocation2 + $0x70] sm:$0xf] %vm333_vm1, %v8376_v32  ;;  %4076 = vst.msk [vmem:[#allocation2 + $0x80] sm:$0xf] %vm333_vm1, %v8377_v29  ;;  %v8393_v54 = vpack.c.bf16 %v3932_v34, %v3932_v34  ;;  %v8394_v33 = vpack.c.bf16 %v3933_v19, %v3933_v19  ;;  %v8395_v4 = vpack.c.bf16 %v3934_v50, %v3934_v50  ;;  %v4201_v11 = vld [vmem:[#allocation2 + $0xb8] sm:$0x8] }
 0x2d6   : > { %4077 = vst.msk [vmem:[#allocation2 + $0x84] sm:$0xf] %vm333_vm1, %v8378_v2  ;;  %4078 = vst.msk [vmem:[#allocation2 + $0x94] sm:$0xf] %vm333_vm1, %v8379_v26  ;;  %v8397_v1 = vpack.c.bf16 %v3936_v8, %v3936_v8  ;;  %v8398_v6 = vpack.c.bf16 %v3937_v31, %v3937_v31  ;;  %v4103_v51 = vld [vmem:[#allocation2 + $0x1c] sm:$0x1] }
 0x2d7   : > { %4079 = vst.msk [vmem:[#allocation2 + $0x98] sm:$0xf] %vm333_vm1, %v8380_v53  ;;  %4080 = vst.msk [vmem:[#allocation2 + $0xa8] sm:$0xf] %vm333_vm1, %v8381_v22  ;;  %v11487_v49 = vld [vmem:[#allocation2 + $0x1c] sm:$0xf] }
 0x2d8   : > { %4081 = vst.msk [vmem:[#allocation2 + $0xac] sm:$0xf] %vm333_vm1, %v8382_v40  ;;  %4082 = vst.msk [vmem:[#allocation2 + $0xbc] sm:$0xf] %vm333_vm1, %v8383_v16  ;;  %v11489_v61 = vld [vmem:[#allocation2 + $0x20] sm:$0xf] }
 0x2d9   : > { %4083 = vst.msk [vmem:[#allocation2 + $0xc0] sm:$0xf] %vm333_vm1, %v8384_v52  ;;  %4084 = vst.msk [vmem:[#allocation2 + $0xd0] sm:$0xf] %vm333_vm1, %v8385_v23  ;;  %v4102_v9 = vld [vmem:[#allocation2 + $0x8] sm:$0x1]  ;;  %v11494_v14 = vcombine.low %v11487_v49, %v11489_v61 }
 0x2da   : > { %4085 = vst.msk [vmem:[#allocation2 + $0xd4] sm:$0xf] %vm333_vm1, %v8386_v59  ;;  %4086 = vst.msk [vmem:[#allocation2 + $0xe4] sm:$0xf] %vm333_vm1, %v8387_v25  ;;  %v4104_v12 = vld [vmem:[#allocation2 + $0x30] sm:$0x1] }
 0x2db   : > { %4087 = vst.msk [vmem:[#allocation2 + $0xe8] sm:$0xf] %vm333_vm1, %v8388_v10  ;;  %4088 = vst.msk [vmem:[#allocation2 + $0xf8] sm:$0xf] %vm333_vm1, %v8389_v21  ;;  %v4105_v7 = vld [vmem:[#allocation2 + $0x44] sm:$0x1] }
 0x2dc   : > { %4089 = vst.msk [vmem:[#allocation2 + $0xfc] sm:$0xf] %vm333_vm1, %v8390_v47  ;;  %4090 = vst.msk [vmem:[#allocation2 + $0x10c] sm:$0xf] %vm333_vm1, %v8391_v42  ;;  %v4106_v37 = vld [vmem:[#allocation2 + $0x58] sm:$0x1] }
 0x2dd   : > { %4091 = vst.msk [vmem:[#allocation2 + $0x110] sm:$0xf] %vm333_vm1, %v8392_v44  ;;  %4092 = vst.msk [vmem:[#allocation2 + $0x120] sm:$0xf] %vm333_vm1, %v8393_v54  ;;  %v4107_v60 = vld [vmem:[#allocation2 + $0x6c] sm:$0x1] }
 0x2de   : > { %4093 = vst.msk [vmem:[#allocation2 + $0x124] sm:$0xf] %vm333_vm1, %v8394_v33  ;;  %4094 = vst.msk [vmem:[#allocation2 + $0x134] sm:$0xf] %vm333_vm1, %v8395_v4  ;;  %v4138_v28 = vrot.slane %v4102_v9, 5  ;;  %v4139_v13 = vrot.slane %v4103_v51, 5 }
 0x2df   : > { %4096 = vst.msk [vmem:[#allocation2 + $0x148] sm:$0xf] %vm333_vm1, %v8397_v1  ;;  %4100 = vst.msk [vmem:[#allocation2 + $0x15c] sm:$0xf] %vm333_vm1, %v8395_v4  ;;  %v4108_v38 = vld [vmem:[#allocation2 + $0x80] sm:$0x1] }
 0x2e0   : > { %4097 = vst.msk [vmem:[#allocation2 + $0x14c] sm:$0xf] %vm333_vm1, %v8398_v6  ;;  %v4109_v43 = vld [vmem:[#allocation2 + $0x94] sm:$0x1]  ;;  %v4140_v0 = vrot.slane %v4104_v12, 5  ;;  %v4141_v46 = vrot.slane %v4105_v7, 5  ;;  %v4178_v50 = vsel %vm9469_vm4, %v4139_v13, %v4177_v3  ;;  %v4175_v8 = vsel %vm9469_vm4, %v4138_v28, %v4174_v58 }
 0x2e1   : > { %v4110_v57 = vld [vmem:[#allocation2 + $0xa8] sm:$0x1]  ;;  %v4111_v36 = vld [vmem:[#allocation2 + $0xbc] sm:$0x1]  ;;  %v4142_v35 = vrot.slane %v4106_v37, 5  ;;  %v4143_v34 = vrot.slane %v4107_v60, 5 }
 0x2e2   : > { %v4112_v31 = vld [vmem:[#allocation2 + $0xd0] sm:$0x1]  ;;  %v4113_v48 = vld [vmem:[#allocation2 + $0xe4] sm:$0x1]  ;;  %v4144_v24 = vrot.slane %v4108_v38, 5  ;;  %v4145_v5 = vrot.slane %v4109_v43, 5  ;;  %v4181_v56 = vsel %vm9469_vm4, %v4140_v0, %v4180_v18  ;;  %v4184_v27 = vsel %vm9469_vm4, %v4141_v46, %v4183_v45 }
 0x2e3   : > { %4179 = vst [vmem:[#allocation2 + $0x18] sm:$0x8] %v4178_v50  ;;  %4176 = vst [vmem:[#allocation2 + $0x4] sm:$0x8] %v4175_v8  ;;  %v4204_v20 = vld [vmem:[#allocation2 + $0xcc] sm:$0x8]  ;;  %v4187_v53 = vsel %vm9469_vm4, %v4142_v35, %v4186_v63  ;;  %v4190_v22 = vsel %vm9469_vm4, %v4143_v34, %v4189_v39 }
 0x2e4   : > { %v4207_v30 = vld [vmem:[#allocation2 + $0xe0] sm:$0x8]  ;;  %v4114_v32 = vld [vmem:[#allocation2 + $0xf8] sm:$0x1]  ;;  %v4115_v29 = vld [vmem:[#allocation2 + $0x10c] sm:$0x1]  ;;  %v4193_v21 = vsel %vm9469_vm4, %v4144_v24, %v4192_v15  ;;  %v4196_v47 = vsel %vm9469_vm4, %v4145_v5, %v4195_v17 }
 0x2e5   : > { %v4146_v2 = vrot.slane %v4110_v57, 5  ;;  %v4147_v26 = vrot.slane %v4111_v36, 5  ;;  %4182 = vst [vmem:[#allocation2 + $0x2c] sm:$0x8] %v4181_v56  ;;  %4185 = vst [vmem:[#allocation2 + $0x40] sm:$0x8] %v4184_v27 }
 0x2e6   : > { %v4210_v40 = vld [vmem:[#allocation2 + $0xf4] sm:$0x8]  ;;  %v4213_v16 = vld [vmem:[#allocation2 + $0x108] sm:$0x8]  ;;  %v4216_v52 = vld [vmem:[#allocation2 + $0x11c] sm:$0x8] }
 0x2e7   : > { %v4219_v23 = vld [vmem:[#allocation2 + $0x130] sm:$0x8]  ;;  %v4116_v59 = vld [vmem:[#allocation2 + $0x120] sm:$0x1]  ;;  %v4117_v25 = vld [vmem:[#allocation2 + $0x134] sm:$0x1]  ;;  %v4199_v9 = vsel %vm9469_vm4, %v4146_v2, %v4198_v55  ;;  %v4202_v12 = vsel %vm9469_vm4, %v4147_v26, %v4201_v11 }
 0x2e8   : > { %v4118_v10 = vld [vmem:[#allocation2 + $0x148] sm:$0x1]  ;;  %4188 = vst [vmem:[#allocation2 + $0x54] sm:$0x8] %v4187_v53  ;;  %4191 = vst [vmem:[#allocation2 + $0x68] sm:$0x8] %v4190_v22 }
 0x2e9   : > { %v4222_v42 = vld [vmem:[#allocation2 + $0x144] sm:$0x8]  ;;  %v4119_v44 = vld [vmem:[#allocation2 + $0x15c] sm:$0x1]  ;;  %v4148_v54 = vrot.slane %v4112_v31, 5  ;;  %v4149_v33 = vrot.slane %v4113_v48, 5 }
 0x2ea   : > { %v4150_v4 = vrot.slane %v4114_v32, 5  ;;  %v4151_v1 = vrot.slane %v4115_v29, 5  ;;  %4194 = vst [vmem:[#allocation2 + $0x7c] sm:$0x8] %v4193_v21  ;;  %4197 = vst [vmem:[#allocation2 + $0x90] sm:$0x8] %v4196_v47 }
 0x2eb   : > { %v4152_v6 = vrot.slane %v4116_v59, 5  ;;  %v4153_v3 = vrot.slane %v4117_v25, 5  ;;  %v4154_v58 = vrot.slane %v4118_v10, 5  ;;  %v4155_v18 = vrot.slane %v4119_v44, 5  ;;  %v4225_v51 = vld [vmem:[#allocation2 + $0x158] sm:$0x8] }
 0x2ec   : > { %v4230_v45 = vld [vmem:[#allocation2 + $0x34] sm:$0x8]  ;;  %v4205_v7 = vsel %vm9469_vm4, %v4148_v54, %v4204_v20  ;;  %v4208_v63 = vsel %vm9469_vm4, %v4149_v33, %v4207_v30  ;;  %v4324_v39 = vld [vmem:[#allocation2 + $0x38] sm:$0x1]  ;;  %4200 = vst [vmem:[#allocation2 + $0xa4] sm:$0x8] %v4199_v9  ;;  %v4211_v37 = vsel %vm9469_vm4, %v4150_v4, %v4210_v40  ;;  %v4214_v60 = vsel %vm9469_vm4, %v4151_v1, %v4213_v16 }
 0x2ed   : > { %4203 = vst [vmem:[#allocation2 + $0xb8] sm:$0x8] %v4202_v12  ;;  %4206 = vst [vmem:[#allocation2 + $0xcc] sm:$0x8] %v4205_v7  ;;  %v4217_v28 = vsel %vm9469_vm4, %v4152_v6, %v4216_v52  ;;  %v4220_v13 = vsel %vm9469_vm4, %v4153_v3, %v4219_v23  ;;  %v8091_v15 = vrot.slane %v4230_v45, 11  ;;  %v4223_v17 = vsel %vm9469_vm4, %v4154_v58, %v4222_v42 }
 0x2ee   : > { %4209 = vst [vmem:[#allocation2 + $0xe0] sm:$0x8] %v4208_v63  ;;  %4212 = vst [vmem:[#allocation2 + $0xf4] sm:$0x8] %v4211_v37  ;;  %v4226_v38 = vsel %vm9469_vm4, %v4155_v18, %v4225_v51  ;;  %v4375_v43 = vld [vmem:[#allocation2 + $0x18] sm:$0x8] }
 0x2ef   : > { %4215 = vst [vmem:[#allocation2 + $0x108] sm:$0x8] %v4214_v60  ;;  %4218 = vst [vmem:[#allocation2 + $0x11c] sm:$0x8] %v4217_v28  ;;  %v4325_v46 = vsel %vm9862_vm10, %v8091_v15, %v4324_v39  ;;  %v4372_v57 = vld [vmem:[#allocation2 + $0x4] sm:$0x8] }
 0x2f0   : > { %4221 = vst [vmem:[#allocation2 + $0x130] sm:$0x8] %v4220_v13  ;;  %4224 = vst [vmem:[#allocation2 + $0x144] sm:$0x8] %v4223_v17  ;;  %v11536_v36 = vsel %vm1155_vm0, %v11254_v62, 0  ;;  %v11540_v35 = vsel %vm1155_vm0, %v11323_v41, 0 }
 0x2f1   : > { %4227 = vst [vmem:[#allocation2 + $0x158] sm:$0x8] %v4226_v38  ;;  %4326 = vst [vmem:[#allocation2 + $0x38] sm:$0x1] %v4325_v46  ;;  %v4430_v34 = vshrl.u32 %v4375_v43, 16  ;;  %v4435_v19 = vshrl.u32 %v11487_v49, 16 }
 0x2f2   : > { %v4438_v50 = vshll.u32 %v11487_v49, 16  ;;  %v4444_v8 = vshrl.u32 %v11489_v61, 16  ;;  %v11545_v31 = vld [vmem:[#allocation2 + $0x8] sm:$0xf]  ;;  %v4447_v48 = vshll.u32 %v11489_v61, 16  ;;  %v5042_v62 = vshrl.u32 %v4372_v57, 16 }
 0x2f3   : > { %v11548_v24 = vld [vmem:[#allocation2 + $0xc] sm:$0xf]  ;;  %v5047_v5 = vshrl.u32 %v11545_v31, 16  ;;  %v5050_v41 = vshll.u32 %v11545_v31, 16  ;;  %v8108_v56 = vrot.slane %v4430_v34, 11  ;;  %v4437_v27 = vrot.slane %v4435_v19, 7 }
 0x2f4   : > { %v4446_v55 = vrot.slane %v4444_v8, 7  ;;  %v5056_v11 = vshrl.u32 %v11548_v24, 16  ;;  %v4378_v20 = vld [vmem:[#allocation2 + $0x2c] sm:$0x8]  ;;  %v8156_v49 = vrot.slane %v5042_v62, 11  ;;  %v5059_v32 = vshll.u32 %v11548_v24, 16 }
 0x2f5   : > { %v5049_v30 = vrot.slane %v5047_v5, 7  ;;  %v11554_v29 = vld [vmem:[#allocation2 + $0x30] sm:$0xf]  ;;  %v4452_v61 = vshrl.u32 %v4378_v20, 16  ;;  %v4440_v2 = vor.u32 %v4438_v50, %v4437_v27  ;;  %v4442_v26 = vrot.slane %v4437_v27, 4 }
 0x2f6   : > { %v4449_v53 = vor.u32 %v4447_v48, %v4446_v55  ;;  %v5058_v22 = vrot.slane %v5056_v11, 7  ;;  %v11556_v40 = vld [vmem:[#allocation2 + $0x34] sm:$0xf]  ;;  %v4381_v16 = vld [vmem:[#allocation2 + $0x40] sm:$0x8]  ;;  %v4457_v25 = vshrl.u32 %v11554_v29, 16 }
 0x2f7   : > { %v5052_v52 = vor.u32 %v5050_v41, %v5049_v30  ;;  %v5054_v23 = vrot.slane %v5049_v30, 4  ;;  %v8109_v59 = vrot.slane %v4452_v61, 11  ;;  %v11559_v10 = vld [vmem:[#allocation2 + $0x44] sm:$0xf]  ;;  %v4441_v47 = vsel %vm9508_vm7, %v8108_v56, %v4440_v2  ;;  %v11569_v3 = vld [vmem:[#allocation2 + $0x48] sm:$0xf] }
 0x2f8   : > { %v4450_v42 = vsel %vm9508_vm7, %v4442_v26, %v4449_v53  ;;  %v5061_v44 = vor.u32 %v5059_v32, %v5058_v22  ;;  %v4460_v54 = vshll.u32 %v11554_v29, 16  ;;  %v4459_v1 = vrot.slane %v4457_v25, 7  ;;  %v4384_v9 = vld [vmem:[#allocation2 + $0x54] sm:$0x8]  ;;  %v11576_v37 = vld [vmem:[#allocation2 + $0x58] sm:$0xf] }
 0x2f9   : > { %v8124_v33 = vcombine.low %v4441_v47, %v4450_v42  ;;  %v5053_v4 = vsel %vm9508_vm7, %v8156_v49, %v5052_v52  ;;  %v4466_v6 = vshrl.u32 %v11556_v40, 16  ;;  %v4469_v18 = vshll.u32 %v11556_v40, 16  ;;  %v11580_v17 = vld [vmem:[#allocation2 + $0x5c] sm:$0xf]  ;;  %v4387_v34 = vld [vmem:[#allocation2 + $0x68] sm:$0x8] }
 0x2fa   : > { %v5062_v58 = vsel %vm9508_vm7, %v5054_v23, %v5061_v44  ;;  %v4474_v51 = vshrl.u32 %v4381_v16, 16  ;;  %v4479_v45 = vshrl.u32 %v11559_v10, 16  ;;  %v4462_v7 = vor.u32 %v4460_v54, %v4459_v1  ;;  %v11588_v62 = vld [vmem:[#allocation2 + $0x6c] sm:$0xf]  ;;  %v11599_v30 = vld [vmem:[#allocation2 + $0x70] sm:$0xf] }
 0x2fb   : > { %9013 = vmatprep.mubr.msk.bf16.mxu1 %vm1106_vm8, %v8124_v33  ;;  %v8157_v12 = vcombine.low %v5053_v4, %v5062_v58  ;;  %v4464_v63 = vrot.slane %v4459_v1, 4  ;;  %v4468_v39 = vrot.slane %v4466_v6, 7  ;;  %v4482_v13 = vshll.u32 %v11559_v10, 16  ;;  %v11604_v32 = vld [vmem:[%s13371_s2 + $0x8] sm:$0x3] }
 0x2fc   : > { %v8110_v60 = vrot.slane %v4474_v51, 11  ;;  %v4481_v28 = vrot.slane %v4479_v45, 7  ;;  %v4488_v15 = vshrl.u32 %v11569_v3, 16  ;;  %v4463_v38 = vsel %vm9508_vm7, %v8109_v59, %v4462_v7  ;;  %v4390_v53 = vld [vmem:[#allocation2 + $0x7c] sm:$0x8] }
 0x2fd   : > { %9047 = vmatprep.mubr.msk.bf16.mxu0 %vm1106_vm8, %v8157_v12  ;;  %v4471_v43 = vor.u32 %v4469_v18, %v4468_v39  ;;  %v4491_v46 = vshll.u32 %v11569_v3, 16  ;;  %v4496_v57 = vshrl.u32 %v4384_v9, 16  ;;  %v4501_v48 = vshrl.u32 %v11576_v37, 16  ;;  %v11615_v59 = vld [vmem:[#allocation2 + $0x80] sm:$0xf] }
 0x2fe   : > { %9048 = vmatmul.mubr.msk.bf16.vlgmr.msra.gmra.mxu0 %vm1106_vm8, %v8124_v33  ;;  %v4484_v19 = vor.u32 %v4482_v13, %v4481_v28  ;;  %v4486_v50 = vrot.slane %v4481_v28, 4  ;;  %v4490_v8 = vrot.slane %v4488_v15, 7  ;;  %v4504_v56 = vshll.u32 %v11576_v37, 16  ;;  %v11624_v1 = vld [vmem:[#allocation2 + $0x84] sm:$0xf] }
 0x2ff   : > { %v4472_v5 = vsel %vm9508_vm7, %v4464_v63, %v4471_v43  ;;  %v8111_v41 = vrot.slane %v4496_v57, 11  ;;  %v4510_v27 = vshrl.u32 %v11580_v17, 16  ;;  %9114 = vmatpush3.bf16.msra.mxu0 %v11540_v35  ;;  %v4503_v49 = vrot.slane %v4501_v48, 7  ;;  %v4393_v45 = vld [vmem:[#allocation2 + $0x90] sm:$0x8] }
 0x300   : > { %v11595_v55 = vcombine.low %v4463_v38, %v4472_v5  ;;  %v4485_v11 = vsel %vm9508_vm7, %v8110_v60, %v4484_v19  ;;  %v4493_v20 = vor.u32 %v4491_v46, %v4490_v8  ;;  %v4513_v2 = vshll.u32 %v11580_v17, 16  ;;  %v11633_v9 = vld [vmem:[#allocation2 + $0x94] sm:$0xf]  ;;  %v11640_v60 = vld [vmem:[#allocation2 + $0x98] sm:$0xf] }
 0x301   : > { %v4512_v61 = vrot.slane %v4510_v27, 7  ;;  %v4518_v26 = vshrl.u32 %v4387_v34, 16  ;;  %v4523_v35 = vshrl.u32 %v11588_v62, 16  ;;  %v4506_v16 = vor.u32 %v4504_v56, %v4503_v49  ;;  %v4396_v19 = vld [vmem:[#allocation2 + $0xa4] sm:$0x8] }
 0x302   : > { %9014 = vmatmul.mubr.msk.bf16.vlgmr.msra.gmra.mxu1 %vm1106_vm8, %v11595_v55  ;;  %v4494_v22 = vsel %vm9508_vm7, %v4486_v50, %v4493_v20  ;;  %9051 = vmatprep.mubr.msk.bf16.mxu0 %vm1106_vm8, %v11595_v55  ;;  %v4508_v52 = vrot.slane %v4503_v49, 4  ;;  %v4526_v23 = vshll.u32 %v11588_v62, 16  ;;  %v4532_v33 = vshrl.u32 %v11599_v30, 16  ;;  %v11658_v49 = vld [vmem:[#allocation2 + $0xac] sm:$0xf] }
 0x303   : > { %9080 = vmatpush3.bf16.msra.mxu1 %v11536_v36  ;;  %v11618_v25 = vcombine.low %v4485_v11, %v4494_v22  ;;  %v4515_v47 = vor.u32 %v4513_v2, %v4512_v61  ;;  %v8112_v42 = vrot.slane %v4518_v26, 11  ;;  %v4525_v44 = vrot.slane %v4523_v35, 7  ;;  %v6197_v0 = vld [vmem:[#allocation2 + $0x8] sm:$0xf] }
 0x304   : > { %v4507_v54 = vsel %vm9508_vm7, %v8111_v41, %v4506_v16  ;;  %v4535_v4 = vshll.u32 %v11599_v30, 16  ;;  %v4540_v6 = vshrl.u32 %v4390_v53, 16  ;;  %9330 = vmatprep.subr.msk.bf16.mxu1 %vm1155_vm0, %v11604_v32  ;;  %v4545_v51 = vshrl.u32 %v11615_v59, 16  ;;  %v11651_v41 = vld [vmem:[#allocation2 + $0xa8] sm:$0xf] }
 0x305   : > { %9017 = vmatprep.mubr.msk.bf16.mxu1 %vm1106_vm8, %v11618_v25  ;;  %v4516_v36 = vsel %vm9508_vm7, %v4508_v52, %v4515_v47  ;;  %v4528_v58 = vor.u32 %v4526_v23, %v4525_v44  ;;  %v4530_v18 = vrot.slane %v4525_v44, 4  ;;  %v4534_v7 = vrot.slane %v4532_v33, 7  ;;  %v4399_v23 = vld [vmem:[#allocation2 + $0xb8] sm:$0x8]  ;;  %v11671_v33 = vld [vmem:[#allocation2 + $0xbc] sm:$0xf] }
 0x306   : > { %v11635_v12 = vcombine.low %v4507_v54, %v4516_v36  ;;  %9052 = vmatmul.mubr.msk.bf16.gmra.mxu0 %vm1106_vm8, %v11618_v25  ;;  %v8113_v63 = vrot.slane %v4540_v6, 11  ;;  %v4548_v39 = vshll.u32 %v11615_v59, 16  ;;  %v4547_v13 = vrot.slane %v4545_v51, 7 }
 0x307   : > { %v4529_v28 = vsel %vm9508_vm7, %v8112_v42, %v4528_v58  ;;  %v4554_v15 = vshrl.u32 %v11624_v1, 16  ;;  %v4557_v38 = vshll.u32 %v11624_v1, 16  ;;  %v4537_v43 = vor.u32 %v4535_v4, %v4534_v7 }
 0x308   : > { %9055 = vmatprep.mubr.msk.bf16.mxu0 %vm1106_vm8, %v11635_v12  ;;  %v4562_v46 = vshrl.u32 %v4393_v45, 16  ;;  %v4567_v57 = vshrl.u32 %v11633_v9, 16  ;;  %v4570_v34 = vshll.u32 %v11633_v9, 16  ;;  %v4550_v50 = vor.u32 %v4548_v39, %v4547_v13 }
 0x309   : > { %v4552_v8 = vrot.slane %v4547_v13, 4  ;;  %v4556_v48 = vrot.slane %v4554_v15, 7  ;;  %v4576_v5 = vshrl.u32 %v11640_v60, 16  ;;  %v4538_v56 = vsel %vm9508_vm7, %v4530_v18, %v4537_v43  ;;  %v11679_v18 = vld [vmem:[#allocation2 + $0xc0] sm:$0xf] }
 0x30a   : > { %9018 = vmatmul.mubr.msk.bf16.gmra.mxu1 %vm1106_vm8, %v11635_v12  ;;  %v8114_v27 = vrot.slane %v4562_v46, 11  ;;  %v4569_v11 = vrot.slane %v4567_v57, 7  ;;  %v4579_v20 = vshll.u32 %v11640_v60, 16  ;;  %v11660_v61 = vcombine.low %v4529_v28, %v4538_v56  ;;  %v4405_v56 = vld [vmem:[#allocation2 + $0xe0] sm:$0x8] }
 0x30b   : > { %v4551_v2 = vsel %vm9508_vm7, %v8113_v63, %v4550_v50  ;;  %v4559_v26 = vor.u32 %v4557_v38, %v4556_v48  ;;  %v4578_v35 = vrot.slane %v4576_v5, 7  ;;  %v4584_v16 = vshrl.u32 %v4396_v19, 16  ;;  %v4402_v63 = vld [vmem:[#allocation2 + $0xcc] sm:$0x8]  ;;  %v11687_v38 = vld [vmem:[#allocation2 + $0xd0] sm:$0xf] }
 0x30c   : > { %13547 = vst [vmem:[#allocation7_spill] sm:$0xff] %v11660_v61  ;;  %v4572_v53 = vor.u32 %v4570_v34, %v4569_v11  ;;  %v4574_v22 = vrot.slane %v4569_v11, 4  ;;  %v4589_v52 = vshrl.u32 %v11651_v41, 16  ;;  %9021 = vmatprep.mubr.msk.bf16.mxu1 %vm1106_vm8, %v11660_v61  ;;  %v4592_v44 = vshll.u32 %v11651_v41, 16  ;;  %v11692_v19 = vld [vmem:[#allocation2 + $0xd4] sm:$0xf] }
 0x30d   : > { %v4560_v47 = vsel %vm9508_vm7, %v4552_v8, %v4559_v26  ;;  %v4581_v42 = vor.u32 %v4579_v20, %v4578_v35  ;;  %v4598_v54 = vshrl.u32 %v11658_v49, 16  ;;  %v8115_v36 = vrot.slane %v4584_v16, 11  ;;  %v11711_v16 = vld [vmem:[%s13371_s2 + $0xe] sm:$0x3] }
 0x30e   : > { %v11673_v4 = vcombine.low %v4551_v2, %v4560_v47  ;;  %9056 = vmatmul.mubr.msk.bf16.gmra.mxu0 %vm1106_vm8, %v11660_v61  ;;  %v4573_v6 = vsel %vm9508_vm7, %v8114_v27, %v4572_v53  ;;  %v4591_v58 = vrot.slane %v4589_v52, 7  ;;  %v4601_v45 = vshll.u32 %v11658_v49, 16  ;;  %v11703_v2 = vld [vmem:[#allocation2 + $0xe4] sm:$0xf]  ;;  %9331 = vmatprep.subr.msk.bf16.mxu0 %vm1155_vm0, %v11711_v16  ;;  %v4422_v61 = vld [vmem:[#allocation2 + $0x14c] sm:$0xf] }
 0x30f   : > { %v4600_v51 = vrot.slane %v4598_v54, 7  ;;  %v4606_v7 = vshrl.u32 %v4399_v23, 16  ;;  %v4582_v39 = vsel %vm9508_vm7, %v4574_v22, %v4581_v42  ;;  %v4611_v15 = vshrl.u32 %v11671_v33, 16 }
 0x310   : > { %13548 = vst [vmem:[#allocation5_spill] sm:$0xff] %v11673_v4  ;;  %9059 = vmatprep.mubr.msk.bf16.mxu0 %vm1106_vm8, %v11673_v4  ;;  %v4594_v28 = vor.u32 %v4592_v44, %v4591_v58  ;;  %v4596_v13 = vrot.slane %v4591_v58, 4  ;;  %v11689_v43 = vcombine.low %v4573_v6, %v4582_v39  ;;  %v4620_v34 = vshrl.u32 %v11679_v18, 16  ;;  %v11716_v44 = vld [vmem:[#allocation2 + $0xe8] sm:$0xf] }
 0x311   : > { %v4603_v46 = vor.u32 %v4601_v45, %v4600_v51  ;;  %v8116_v57 = vrot.slane %v4606_v7, 11  ;;  %v4613_v8 = vrot.slane %v4611_v15, 7  ;;  %v4614_v48 = vshll.u32 %v11671_v33, 16  ;;  %v4408_v51 = vld [vmem:[#allocation2 + $0xf4] sm:$0x8] }
 0x312   : > { %13549 = vst [vmem:[#allocation15_spill] sm:$0xff] %v11689_v43  ;;  %9022 = vmatmul.mubr.msk.bf16.gmra.mxu1 %vm1106_vm8, %v11673_v4  ;;  %v4595_v50 = vsel %vm9508_vm7, %v8115_v36, %v4594_v28  ;;  %v4628_v5 = vshrl.u32 %v4402_v63, 16  ;;  %v4622_v27 = vrot.slane %v4620_v34, 7  ;;  %v4623_v11 = vshll.u32 %v11679_v18, 16  ;;  %v11729_v28 = vld [vmem:[#allocation2 + $0xf8] sm:$0xf] }
 0x313   : > { %9025 = vmatprep.mubr.msk.bf16.mxu1 %vm1106_vm8, %v11689_v43  ;;  %v4633_v20 = vshrl.u32 %v11687_v38, 16  ;;  %v4604_v26 = vsel %vm9508_vm7, %v4596_v13, %v4603_v46  ;;  %v4616_v35 = vor.u32 %v4614_v48, %v4613_v8  ;;  %v4618_v53 = vrot.slane %v4613_v8, 4  ;;  %v11734_v34 = vld [vmem:[#allocation2 + $0xfc] sm:$0xf]  ;;  %v11795_v4 = vld [vmem:[#allocation2 + $0xc] sm:$0x8] }
 0x314   : > { %v4636_v22 = vshll.u32 %v11687_v38, 16  ;;  %v11713_v52 = vcombine.low %v4595_v50, %v4604_v26  ;;  %v4625_v23 = vor.u32 %v4623_v11, %v4622_v27  ;;  %v4642_v42 = vshrl.u32 %v11692_v19, 16  ;;  %v11744_v26 = vld [vmem:[#allocation2 + $0x10c] sm:$0xf] }
 0x315   : > { %v4635_v47 = vrot.slane %v4633_v20, 7  ;;  %v4617_v54 = vsel %vm9508_vm7, %v8116_v57, %v4616_v35  ;;  %v8117_v6 = vrot.slane %v4628_v5, 11  ;;  %v4650_v36 = vshrl.u32 %v4405_v56, 16 }
 0x316   : > { %13550 = vst [vmem:[#allocation40_spill] sm:$0xff] %v11713_v52  ;;  %9060 = vmatmul.mubr.msk.bf16.gmra.mxu0 %vm1106_vm8, %v11689_v43  ;;  %v4655_v58 = vshrl.u32 %v11703_v2, 16  ;;  %v4644_v7 = vrot.slane %v4642_v42, 7  ;;  %v4645_v63 = vshll.u32 %v11692_v19, 16  ;;  %v4658_v39 = vshll.u32 %v11703_v2, 16 }
 0x317   : > { %9063 = vmatprep.mubr.msk.bf16.mxu0 %vm1106_vm8, %v11713_v52  ;;  %v4640_v45 = vrot.slane %v4635_v47, 4  ;;  %v4626_v13 = vsel %vm9508_vm7, %v4618_v53, %v4625_v23  ;;  %v4638_v15 = vor.u32 %v4636_v22, %v4635_v47  ;;  %v4664_v57 = vshrl.u32 %v11716_v44, 16  ;;  %v4411_v47 = vld [vmem:[#allocation2 + $0x108] sm:$0x8]  ;;  %v11751_v42 = vld [vmem:[#allocation2 + $0x138] sm:$0xf] }
 0x318   : > { %v4657_v46 = vrot.slane %v4655_v58, 7  ;;  %v11736_v50 = vcombine.low %v4617_v54, %v4626_v13  ;;  %v4647_v8 = vor.u32 %v4645_v63, %v4644_v7  ;;  %v8118_v48 = vrot.slane %v4650_v36, 11 }
 0x319   : > { %v4672_v5 = vshrl.u32 %v4408_v51, 16  ;;  %v4639_v56 = vsel %vm9508_vm7, %v8117_v6, %v4638_v15  ;;  %v4666_v27 = vrot.slane %v4664_v57, 7  ;;  %v4667_v11 = vshll.u32 %v11716_v44, 16  ;;  %v11754_v51 = vld [vmem:[#allocation2 + $0x110] sm:$0xf] }
 0x31a   : > { %13551 = vst [vmem:[#allocation16_spill] sm:$0xff] %v11736_v50  ;;  %9026 = vmatmul.mubr.msk.bf16.gmra.mxu1 %vm1106_vm8, %v11713_v52  ;;  %v4677_v20 = vshrl.u32 %v11729_v28, 16  ;;  %v4648_v35 = vsel %vm9508_vm7, %v4640_v45, %v4647_v8  ;;  %v4660_v53 = vor.u32 %v4658_v39, %v4657_v46  ;;  %v4662_v22 = vrot.slane %v4657_v46, 4  ;;  %v4414_v39 = vld [vmem:[#allocation2 + $0x11c] sm:$0x8] }
 0x31b   : > { %9029 = vmatprep.mubr.msk.bf16.mxu1 %vm1106_vm8, %v11736_v50  ;;  %v4686_v23 = vshrl.u32 %v11734_v34, 16  ;;  %v4669_v54 = vor.u32 %v4667_v11, %v4666_v27  ;;  %v8119_v6 = vrot.slane %v4672_v5, 11  ;;  %v4680_v58 = vshll.u32 %v11729_v28, 16  ;;  %v11764_v8 = vld [vmem:[#allocation2 + $0x120] sm:$0xf] }
 0x31c   : > { %v4679_v36 = vrot.slane %v4677_v20, 7  ;;  %v11756_v7 = vcombine.low %v4639_v56, %v4648_v35  ;;  %v4689_v13 = vshll.u32 %v11734_v34, 16  ;;  %v4699_v45 = vshrl.u32 %v11744_v26, 16  ;;  %v11771_v35 = vld [vmem:[#allocation2 + $0x124] sm:$0xf] }
 0x31d   : > { %v4688_v63 = vrot.slane %v4686_v23, 7  ;;  %v4661_v15 = vsel %vm9508_vm7, %v8118_v48, %v4660_v53  ;;  %v4694_v57 = vshrl.u32 %v4411_v47, 16  ;;  %v4670_v11 = vsel %vm9508_vm7, %v4662_v22, %v4669_v54 }
 0x31e   : > { %13552 = vst [vmem:[#allocation13_spill] sm:$0xff] %v11756_v7  ;;  %9064 = vmatmul.mubr.msk.bf16.gmra.mxu0 %vm1106_vm8, %v11736_v50  ;;  %v4684_v46 = vrot.slane %v4679_v36, 4  ;;  %v4682_v5 = vor.u32 %v4680_v58, %v4679_v36  ;;  %v4701_v27 = vrot.slane %v4699_v45, 7  ;;  %v4708_v20 = vshrl.u32 %v11754_v51, 16  ;;  %v11780_v58 = vld [vmem:[#allocation2 + $0x134] sm:$0xf] }
 0x31f   : > { %9067 = vmatprep.mubr.msk.bf16.mxu0 %vm1106_vm8, %v11756_v7  ;;  %v4691_v56 = vor.u32 %v4689_v13, %v4688_v63  ;;  %v4716_v23 = vshrl.u32 %v4414_v39, 16  ;;  %v4752_v48 = vshrl.u32 %v11751_v42, 16  ;;  %v11774_v53 = vcombine.low %v4661_v15, %v4670_v11  ;;  %v4417_v45 = vld [vmem:[#allocation2 + $0x130] sm:$0x8] }
 0x320   : > { %v4683_v47 = vsel %vm9508_vm7, %v8119_v6, %v4682_v5  ;;  %v4702_v50 = vshll.u32 %v11744_v26, 16  ;;  %v4721_v36 = vshrl.u32 %v11764_v8, 16  ;;  %v8120_v54 = vrot.slane %v4694_v57, 11 }
 0x321   : > { %13553 = vst [vmem:[#allocation25_spill] sm:$0xff] %v11774_v53  ;;  %v4692_v22 = vsel %vm9508_vm7, %v4684_v46, %v4691_v56  ;;  %v4710_v63 = vrot.slane %v4708_v20, 7  ;;  %v4711_v13 = vshll.u32 %v11754_v51, 16  ;;  %v4706_v39 = vrot.slane %v4701_v27, 4 }
 0x322   : > { %9030 = vmatmul.mubr.msk.bf16.gmra.mxu1 %vm1106_vm8, %v11756_v7  ;;  %v4704_v6 = vor.u32 %v4702_v50, %v4701_v27  ;;  %v4723_v15 = vrot.slane %v4721_v36, 7  ;;  %v4730_v5 = vshrl.u32 %v11771_v35, 16  ;;  %v11790_v11 = vcombine.low %v4683_v47, %v4692_v22 }
 0x323   : > { %9033 = vmatprep.mubr.msk.bf16.mxu1 %vm1106_vm8, %v11774_v53  ;;  %v4713_v52 = vor.u32 %v4711_v13, %v4710_v63  ;;  %v8121_v7 = vrot.slane %v4716_v23, 11  ;;  %v4743_v43 = vshrl.u32 %v11780_v58, 16  ;;  %v4724_v46 = vshll.u32 %v11764_v8, 16  ;;  %v4420_v63 = vld [vmem:[#allocation2 + $0x144] sm:$0x8] }
 0x324   : > { %v4732_v57 = vrot.slane %v4730_v5, 7  ;;  %v4733_v56 = vshll.u32 %v11771_v35, 16  ;;  %v4738_v20 = vshrl.u32 %v4417_v45, 16  ;;  %v4705_v50 = vsel %vm9508_vm7, %v8120_v54, %v4704_v6  ;;  %v4421_v13 = vld [vmem:[#allocation2 + $0x148] sm:$0xf] }
 0x325   : > { %v4745_v27 = vrot.slane %v4743_v43, 7  ;;  %v4754_v47 = vrot.slane %v4752_v48, 7  ;;  %v4726_v23 = vor.u32 %v4724_v46, %v4723_v15  ;;  %v4728_v36 = vrot.slane %v4723_v15, 4 }
 0x326   : > { %9068 = vmatmul.mubr.msk.bf16.gmra.mxu0 %vm1106_vm8, %v11774_v53  ;;  %v4735_v22 = vor.u32 %v4733_v56, %v4732_v57  ;;  %v4714_v45 = vsel %vm9508_vm7, %v4706_v39, %v4713_v52  ;;  %v4746_v5 = vshll.u32 %v11780_v58, 16  ;;  %v4755_v53 = vshll.u32 %v11751_v42, 16 }
 0x327   : > { %9071 = vmatprep.mubr.msk.bf16.mxu0 %vm1106_vm8, %v11790_v11  ;;  %v8089_v54 = vrot.slane %v11795_v4, 11  ;;  %v11808_v43 = vcombine.low %v4705_v50, %v4714_v45  ;;  %v4727_v48 = vsel %vm9508_vm7, %v8121_v7, %v4726_v23  ;;  %v8122_v6 = vrot.slane %v4738_v20, 11  ;;  %v4330_v45 = vld [vmem:[#allocation2 + $0x60] sm:$0x1] }
 0x328   : > { %v4748_v15 = vor.u32 %v4746_v5, %v4745_v27  ;;  %v4757_v46 = vor.u32 %v4755_v53, %v4754_v47  ;;  %v4760_v57 = vshrl.u32 %v4420_v63, 16  ;;  %v4765_v52 = vshrl.u32 %v4421_v13, 16  ;;  %v4336_v5 = vld [vmem:[#allocation2 + $0x88] sm:$0x1] }
 0x329   : > { %v4736_v39 = vsel %vm9508_vm7, %v4728_v36, %v4735_v22  ;;  %v4774_v4 = vshrl.u32 %v4422_v61, 16  ;;  %v8194_v56 = vcombine.low %v11545_v31, %v11548_v24  ;;  %v11822_v7 = vcombine.low %v11554_v29, %v11556_v40 }
 0x32a   : > { %9034 = vmatmul.mubr.msk.bf16.gmra.mxu1 %vm1106_vm8, %v11790_v11  ;;  %v11824_v20 = vcombine.low %v4727_v48, %v4736_v39  ;;  %v4750_v50 = vrot.slane %v4745_v27, 4  ;;  %v11828_v53 = vcombine.low %v11559_v10, %v11569_v3  ;;  %v11832_v47 = vcombine.low %v11576_v37, %v11580_v17 }
 0x32b   : > { %9037 = vmatprep.mubr.msk.bf16.mxu1 %vm1106_vm8, %v11808_v43  ;;  %v4749_v23 = vsel %vm9508_vm7, %v8122_v6, %v4748_v15  ;;  %v11838_v31 = vcombine.low %v11588_v62, %v11599_v30  ;;  %v11842_v24 = vcombine.low %v11615_v59, %v11624_v1  ;;  %v11846_v29 = vcombine.low %v11633_v9, %v11640_v60  ;;  %v4231_v15 = vld [vmem:[#allocation2 + $0x48] sm:$0x8] }
 0x32c   : > { %v4767_v40 = vrot.slane %v4765_v52, 7  ;;  %v11852_v10 = vcombine.low %v11651_v41, %v11658_v49  ;;  %v11856_v3 = vcombine.low %v11671_v33, %v11679_v18  ;;  %v11860_v37 = vcombine.low %v11687_v38, %v11692_v19  ;;  %v4318_v41 = vld [vmem:[#allocation2 + $0x10] sm:$0x1]  ;;  %v4229_v19 = vld [vmem:[#allocation2 + $0x20] sm:$0x8] }
 0x32d   : > { %v4776_v17 = vrot.slane %v4774_v4, 7  ;;  %v11866_v62 = vcombine.low %v11703_v2, %v11716_v44  ;;  %v11870_v30 = vcombine.low %v11729_v28, %v11734_v34  ;;  %v11874_v59 = vcombine.low %v11744_v26, %v11754_v51  ;;  %v4232_v26 = vld [vmem:[#allocation2 + $0x5c] sm:$0x8]  ;;  %v4234_v51 = vld [vmem:[#allocation2 + $0x84] sm:$0x8] }
 0x32e   : > { %9072 = vmatmul.mubr.msk.bf16.gmra.mxu0 %vm1106_vm8, %v11808_v43  ;;  %v4758_v1 = vsel %vm9508_vm7, %v4750_v50, %v4757_v46  ;;  %v4768_v9 = vshll.u32 %v4421_v13, 16  ;;  %v11880_v60 = vcombine.low %v11764_v8, %v11771_v35  ;;  %v8123_v33 = vrot.slane %v4760_v57, 11  ;;  %v4321_v8 = vld [vmem:[#allocation2 + $0x24] sm:$0x1]  ;;  %v11916_v46 = vld [vmem:[%s13371_s2 + $0xa] sm:$0x3] }
 0x32f   : > { %9075 = vmatprep.mubr.msk.bf16.mxu0 %vm1106_vm8, %v11824_v20  ;;  %v11882_v49 = vcombine.low %v4749_v23, %v4758_v1  ;;  %v4777_v18 = vshll.u32 %v4422_v61, 16  ;;  %v4772_v2 = vrot.slane %v4767_v40, 4  ;;  %v11888_v28 = vcombine.low %v4421_v13, %v4422_v61  ;;  %v11929_v52 = vld [vmem:[%s13371_s2 + $0x4] sm:$0x3]  ;;  %v4333_v4 = vld [vmem:[#allocation2 + $0x74] sm:$0x1] }
 0x330   : > { %v4770_v38 = vor.u32 %v4768_v9, %v4767_v40  ;;  %v4319_v34 = vsel %vm9862_vm10, %v8089_v54, %v4318_v41  ;;  %v8090_v27 = vrot.slane %v4229_v19, 11  ;;  %v8093_v36 = vrot.slane %v4232_v26, 11  ;;  %v13554_v50 = vld [vmem:[#allocation7_spill] sm:$0xff]  ;;  %v13555_v23 = vld [vmem:[#allocation5_spill] sm:$0xff] }
 0x331   : > { %v4779_v44 = vor.u32 %v4777_v18, %v4776_v17  ;;  %4320 = vst [vmem:[#allocation2 + $0x10] sm:$0x1] %v4319_v34  ;;  %v8095_v22 = vrot.slane %v4234_v51, 11  ;;  %v6002_v6 = vsel %vm1155_vm0, %v11711_v16, 0  ;;  %v8092_v57 = vrot.slane %v4231_v15, 11  ;;  %v13556_v41 = vld [vmem:[#allocation15_spill] sm:$0xff] }
 0x332   : > { %9038 = vmatmul.mubr.msk.bf16.gmra.mxu1 %vm1106_vm8, %v11824_v20  ;;  %v4771_v35 = vsel %vm9508_vm7, %v8123_v33, %v4770_v38  ;;  %v4322_v63 = vsel %vm9862_vm10, %v8090_v27, %v4321_v8  ;;  %v4331_v54 = vsel %vm9862_vm10, %v8093_v36, %v4330_v45  ;;  %v5796_v16 = vsel %vm1155_vm0, %v11604_v32, 0  ;;  %v4233_v32 = vld [vmem:[#allocation2 + $0x70] sm:$0x8]  ;;  %v4236_v40 = vld [vmem:[#allocation2 + $0xac] sm:$0x8]  ;;  %v13560_v45 = vld [vmem:[#allocation25_spill] sm:$0xff] }
 0x333   : > { %9041 = vmatprep.mubr.msk.bf16.mxu1 %vm1106_vm8, %v11882_v49  ;;  %v4780_v61 = vsel %vm9508_vm7, %v4772_v2, %v4779_v44  ;;  %4323 = vst [vmem:[#allocation2 + $0x24] sm:$0x1] %v4322_v63  ;;  %v4337_v48 = vsel %vm9862_vm10, %v8095_v22, %v4336_v5  ;;  %4332 = vst [vmem:[#allocation2 + $0x60] sm:$0x1] %v4331_v54  ;;  %v4339_v1 = vld [vmem:[#allocation2 + $0x9c] sm:$0x1] }
 0x334   : > { %v11901_v13 = vcombine.low %v4771_v35, %v4780_v61  ;;  %4338 = vst [vmem:[#allocation2 + $0x88] sm:$0x1] %v4337_v48  ;;  %v8097_v9 = vrot.slane %v4236_v40, 11  ;;  %v13557_v33 = vld [vmem:[#allocation40_spill] sm:$0xff]  ;;  %v4237_v44 = vld [vmem:[#allocation2 + $0xc0] sm:$0x8] }
 0x335   : > { %v4342_v18 = vld [vmem:[#allocation2 + $0xb0] sm:$0x1]  ;;  %v4238_v2 = vld [vmem:[#allocation2 + $0xd4] sm:$0x8]  ;;  %v4345_v34 = vld [vmem:[#allocation2 + $0xc4] sm:$0x1] }
 0x336   : > { %9076 = vmatmul.mubr.msk.bf16.gmra.mxu0 %vm1106_vm8, %v11882_v49  ;;  %v4343_v19 = vsel %vm9862_vm10, %v8097_v9, %v4342_v18  ;;  %v8099_v26 = vrot.slane %v4238_v2, 11  ;;  %v13558_v51 = vld [vmem:[#allocation16_spill] sm:$0xff]  ;;  %v8098_v8 = vrot.slane %v4237_v44, 11  ;;  %v13559_v35 = vld [vmem:[#allocation13_spill] sm:$0xff]  ;;  %v4239_v61 = vld [vmem:[#allocation2 + $0xe8] sm:$0x8] }
 0x337   : > { %9115 = vmatprep.mubr.msk.bf16.mxu0 %vm1106_vm8, %v8194_v56  ;;  %v8094_v56 = vrot.slane %v4233_v32, 11  ;;  %4344 = vst [vmem:[#allocation2 + $0xb0] sm:$0x1] %v4343_v19  ;;  %v4348_v27 = vld [vmem:[#allocation2 + $0xd8] sm:$0x1]  ;;  %v8100_v54 = vrot.slane %v4239_v61, 11 }
 0x338   : > { %v4346_v36 = vsel %vm9862_vm10, %v8098_v8, %v4345_v34  ;;  %v4349_v22 = vsel %vm9862_vm10, %v8099_v26, %v4348_v27  ;;  %v4240_v63 = vld [vmem:[#allocation2 + $0xfc] sm:$0x8]  ;;  %v4351_v5 = vld [vmem:[#allocation2 + $0xec] sm:$0x1]  ;;  %v4354_v15 = vld [vmem:[#allocation2 + $0x100] sm:$0x1]  ;;  %v12015_v34 = vcombine.low %v11780_v58, %v11751_v42 }
 0x339   : > { %4347 = vst [vmem:[#allocation2 + $0xc4] sm:$0x1] %v4346_v36  ;;  %4350 = vst [vmem:[#allocation2 + $0xd8] sm:$0x1] %v4349_v22  ;;  %v8101_v48 = vrot.slane %v4240_v63, 11  ;;  %v6962_v22 = vsel %vm1155_vm0, %v11916_v46, 0 }
 0x33a   : > { %9042 = vmatmul.mubr.msk.bf16.gmra.mxu1 %vm1106_vm8, %v11901_v13  ;;  %v4241_v32 = vld [vmem:[#allocation2 + $0x110] sm:$0x8]  ;;  %v4360_v40 = vld [vmem:[#allocation2 + $0x128] sm:$0x1]  ;;  %v4244_v18 = vld [vmem:[#allocation2 + $0x14c] sm:$0x8] }
 0x33b   : > { %9081 = vmatprep.mubr.msk.bf16.mxu1 %vm1106_vm8, %v11595_v55  ;;  %v4327_v55 = vld [vmem:[#allocation2 + $0x4c] sm:$0x1]  ;;  %v4363_v26 = vld [vmem:[#allocation2 + $0x13c] sm:$0x1]  ;;  %v4245_v27 = vld [vmem:[#allocation2 + $0x160] sm:$0x8] }
 0x33c   : > { %v4328_v39 = vsel %vm9862_vm10, %v8092_v57, %v4327_v55  ;;  %v11987_v55 = vld [vmem:[#allocation2 + $0x15c] sm:$0xf]  ;;  %v11989_v57 = vld [vmem:[#allocation2 + $0x160] sm:$0xf]  ;;  %v8106_v21 = vrot.slane %v4245_v27, 11  ;;  %v6734_v63 = vsel %vm1155_vm0, %v11929_v52, 0 }
 0x33d   : > { %4329 = vst [vmem:[#allocation2 + $0x4c] sm:$0x1] %v4328_v39  ;;  %v4423_v39 = vld [vmem:[#allocation2 + $0x158] sm:$0x8]  ;;  %v5244_v9 = vshll.u32 %v11987_v55, 16 }
 0x33e   : > { %9116 = vmatmul.mubr.msk.bf16.vlgmr.msra.gmra.mxu0 %vm1106_vm8, %v11494_v14  ;;  %v4369_v61 = vld [vmem:[#allocation2 + $0x164] sm:$0x1] }
 0x33f   : > { %9119 = vmatprep.mubr.msk.bf16.mxu0 %vm1106_vm8, %v11822_v7  ;;  %9182 = vmatpush3.bf16.msra.mxu0 %v6002_v6  ;;  %v4352_v6 = vsel %vm9862_vm10, %v8100_v54, %v4351_v5  ;;  %v6203_v5 = vld [vmem:[#allocation2 + $0x30] sm:$0xf] }
 0x340   : > { %9333 = vmatprep.subr.msk.bf16.mxu0 %vm1155_vm0, %v11916_v46  ;;  %4353 = vst [vmem:[#allocation2 + $0xec] sm:$0x1] %v4352_v6  ;;  %v6305_v6 = vshll.u32 %v6203_v5, 16 }
 0x342   : > { %9082 = vmatmul.mubr.msk.bf16.vlgmr.msra.gmra.mxu1 %vm1106_vm8, %v11618_v25  ;;  %v4334_v25 = vsel %vm9862_vm10, %v8094_v56, %v4333_v4  ;;  %v5241_v4 = vshrl.u32 %v11987_v55, 16  ;;  %v5250_v56 = vshrl.u32 %v11989_v57, 16 }
 0x343   : > { %9148 = vmatpush3.bf16.msra.mxu1 %v5796_v16  ;;  %9085 = vmatprep.mubr.msk.bf16.mxu1 %vm1106_vm8, %v11635_v12  ;;  %4335 = vst [vmem:[#allocation2 + $0x74] sm:$0x1] %v4334_v25  ;;  %v4235_v12 = vld [vmem:[#allocation2 + $0x98] sm:$0x8]  ;;  %v4242_v16 = vld [vmem:[#allocation2 + $0x124] sm:$0x8] }
 0x344   : > { %9332 = vmatprep.subr.msk.bf16.mxu1 %vm1155_vm0, %v11929_v52  ;;  %v8096_v17 = vrot.slane %v4235_v12, 11  ;;  %v8103_v25 = vrot.slane %v4242_v16, 11  ;;  %v8102_v12 = vrot.slane %v4241_v32, 11 }
 0x346   : > { %9120 = vmatmul.mubr.msk.bf16.gmra.mxu0 %vm1106_vm8, %v11828_v53  ;;  %v4340_v38 = vsel %vm9862_vm10, %v8096_v17, %v4339_v1  ;;  %v5252_v17 = vrot.slane %v5250_v56, 7 }
 0x347   : > { %9123 = vmatprep.mubr.msk.bf16.mxu0 %vm1106_vm8, %v11832_v47  ;;  %4341 = vst [vmem:[#allocation2 + $0x9c] sm:$0x1] %v4340_v38  ;;  %v4243_v38 = vld [vmem:[#allocation2 + $0x138] sm:$0x8] }
 0x34a   : > { %9086 = vmatmul.mubr.msk.bf16.gmra.mxu1 %vm1106_vm8, %v13554_v50  ;;  %v4357_v50 = vld [vmem:[#allocation2 + $0x114] sm:$0x1] }
 0x34b   : > { %9089 = vmatprep.mubr.msk.bf16.mxu1 %vm1106_vm8, %v13555_v23  ;;  %v5236_v23 = vshrl.u32 %v4423_v39, 16 }
 0x34d   : > { %v8175_v1 = vrot.slane %v5236_v23, 11 }
 0x34e   : > { %9124 = vmatmul.mubr.msk.bf16.gmra.mxu0 %vm1106_vm8, %v11838_v31 }
 0x34f   : > { %9127 = vmatprep.mubr.msk.bf16.mxu0 %vm1106_vm8, %v11842_v24 }
 0x352   : > { %9090 = vmatmul.mubr.msk.bf16.gmra.mxu1 %vm1106_vm8, %v13556_v41  ;;  %v5253_v41 = vshll.u32 %v11989_v57, 16 }
 0x353   : > { %9093 = vmatprep.mubr.msk.bf16.mxu1 %vm1106_vm8, %v13557_v33  ;;  %v4361_v33 = vsel %vm9862_vm10, %v8103_v25, %v4360_v40  ;;  %v6204_v25 = vld [vmem:[#allocation2 + $0x34] sm:$0xf] }
 0x354   : > { %4362 = vst [vmem:[#allocation2 + $0x128] sm:$0x1] %v4361_v33  ;;  %v5255_v44 = vor.u32 %v5253_v41, %v5252_v17  ;;  %v6311_v17 = vshll.u32 %v6204_v25, 16  ;;  %v6206_v33 = vld [vmem:[#allocation2 + $0x44] sm:$0xf] }
 0x356   : > { %9128 = vmatmul.mubr.msk.bf16.gmra.mxu0 %vm1106_vm8, %v11846_v29 }
 0x357   : > { %9131 = vmatprep.mubr.msk.bf16.mxu0 %vm1106_vm8, %v11852_v10 }
 0x35a   : > { %9094 = vmatmul.mubr.msk.bf16.gmra.mxu1 %vm1106_vm8, %v13558_v51  ;;  %v8105_v51 = vrot.slane %v4244_v18, 11 }
 0x35b   : > { %9097 = vmatprep.mubr.msk.bf16.mxu1 %vm1106_vm8, %v13559_v35  ;;  %v8104_v35 = vrot.slane %v4243_v38, 11  ;;  %v6205_v38 = vld [vmem:[#allocation2 + $0x38] sm:$0x1] }
 0x35d   : > { %v4364_v42 = vsel %vm9862_vm10, %v8104_v35, %v4363_v26  ;;  %v6202_v26 = vld [vmem:[#allocation2 + $0x24] sm:$0x1]  ;;  %v6207_v35 = vld [vmem:[#allocation2 + $0x48] sm:$0xf] }
 0x35e   : > { %9132 = vmatmul.mubr.msk.bf16.gmra.mxu0 %vm1106_vm8, %v11856_v3  ;;  %4365 = vst [vmem:[#allocation2 + $0x13c] sm:$0x1] %v4364_v42 }
 0x35f   : > { %9135 = vmatprep.mubr.msk.bf16.mxu0 %vm1106_vm8, %v11860_v37 }
 0x362   : > { %9098 = vmatmul.mubr.msk.bf16.gmra.mxu1 %vm1106_vm8, %v13560_v45  ;;  %v4370_v45 = vsel %vm9862_vm10, %v8106_v21, %v4369_v61  ;;  %v6335_v61 = vshll.u32 %v6207_v35, 16 }
 0x363   : > { %9101 = vmatprep.mubr.msk.bf16.mxu1 %vm1106_vm8, %v11790_v11  ;;  %v4355_v11 = vsel %vm9862_vm10, %v8101_v48, %v4354_v15  ;;  %4371 = vst [vmem:[#allocation2 + $0x164] sm:$0x1] %v4370_v45  ;;  %v6302_v48 = vshrl.u32 %v6203_v5, 16  ;;  %v6199_v15 = vld [vmem:[#allocation2 + $0x10] sm:$0x1] }
 0x364   : > { %4356 = vst [vmem:[#allocation2 + $0x100] sm:$0x1] %v4355_v11  ;;  %v6209_v45 = vld [vmem:[#allocation2 + $0x58] sm:$0xf] }
 0x365   : > { %v6304_v23 = vrot.slane %v6302_v48, 4 }
 0x366   : > { %9136 = vmatmul.mubr.msk.bf16.gmra.mxu0 %vm1106_vm8, %v11866_v62 }
 0x367   : > { %9139 = vmatprep.mubr.msk.bf16.mxu0 %vm1106_vm8, %v11870_v30 }
 0x36a   : > { %9102 = vmatmul.mubr.msk.bf16.gmra.mxu1 %vm1106_vm8, %v11808_v43  ;;  %v5243_v43 = vrot.slane %v5241_v4, 7 }
 0x36b   : > { %9105 = vmatprep.mubr.msk.bf16.mxu1 %vm1106_vm8, %v11824_v20  ;;  %v4358_v20 = vsel %vm9862_vm10, %v8102_v12, %v4357_v50  ;;  %v6307_v12 = vrot.slane %v6305_v6, 5 }
 0x36c   : > { %4359 = vst [vmem:[#allocation2 + $0x114] sm:$0x1] %v4358_v20  ;;  %v5246_v19 = vor.u32 %v5244_v9, %v5243_v43  ;;  %v5248_v2 = vrot.slane %v5243_v43, 4  ;;  %v6315_v20 = vshrl.u32 %v6204_v25, 16 }
 0x36e   : > { %9140 = vmatmul.mubr.msk.bf16.gmra.mxu0 %vm1106_vm8, %v11874_v59  ;;  %v5247_v8 = vsel %vm9508_vm7, %v8175_v1, %v5246_v19  ;;  %v6308_v19 = vor.u32 %v6307_v12, %v6304_v23  ;;  %v6211_v23 = vld [vmem:[#allocation2 + $0x60] sm:$0x1] }
 0x36f   : > { %9143 = vmatprep.mubr.msk.bf16.mxu0 %vm1106_vm8, %v11880_v60 }
 0x370   : > { %v12098_v21 = vrot.slane %v6308_v19, 4 }
 0x372   : > { %9106 = vmatmul.mubr.msk.bf16.gmra.mxu1 %vm1106_vm8, %v11882_v49  ;;  %v4366_v49 = vld [vmem:[#allocation2 + $0x150] sm:$0x1] }
 0x373   : > { %9109 = vmatprep.mubr.msk.bf16.mxu1 %vm1106_vm8, %v11901_v13  ;;  %v5256_v13 = vsel %vm9508_vm7, %v5248_v2, %v5255_v44  ;;  %v4367_v36 = vsel %vm9862_vm10, %v8105_v51, %v4366_v49  ;;  %v12087_v51 = vrot.slane %v6311_v17, 5  ;;  %v6326_v49 = vshrl.u32 %v6206_v33, 16 }
 0x374   : > { %v8176_v58 = vcombine.low %v5247_v8, %v5256_v13  ;;  %4368 = vst [vmem:[#allocation2 + $0x150] sm:$0x1] %v4367_v36  ;;  %v6317_v8 = vrot.slane %v6315_v20, 4  ;;  %v6297_v36 = vshll.u32 %v6202_v26, 16 }
 0x376   : > { %9144 = vmatmul.mubr.msk.bf16.gmra.mxu0 %vm1106_vm8, %v12015_v34  ;;  %v6299_v48 = vrot.slane %v6297_v36, 5 }
 0x377   : > { %9183 = vmatprep.mubr.msk.bf16.mxu0 %vm1106_vm8, %v11822_v7 }
 0x37a   : > { %9110 = vmatmul.mubr.msk.bf16.gmra.mxu1 %vm1106_vm8, %v8176_v58 }
 0x37b   : > { %9149 = vmatprep.mubr.msk.bf16.mxu1 %vm1106_vm8, %v11494_v14  ;;  %v12045_v14 = vld [vmem:[%s13371_s2 + $0x10] sm:$0x3] }
 0x37c   : > { %v12121_v6 = vsel %vm1155_vm0, %v12045_v14, 0 }
 0x37e   : > { %9184 = vmatmul.mubr.msk.bf16.vlgmr.msra.gmra.mxu0 %vm1106_vm8, %v11828_v53 }
 0x37f   : > { %9187 = vmatprep.mubr.msk.bf16.mxu0 %vm1106_vm8, %v11832_v47  ;;  %9250 = vmatpush3.bf16.msra.mxu0 %v6962_v22  ;;  %v8245_v22 = vcombine.low %v11987_v55, %v11989_v57 }
 0x382   : > { %9150 = vmatmul.mubr.msk.bf16.vlgmr.msra.gmra.mxu1 %vm1106_vm8, %v11822_v7  ;;  %v6198_v7 = vld [vmem:[#allocation2 + $0xc] sm:$0xf] }
 0x383   : > { %9216 = vmatpush3.bf16.msra.mxu1 %v6734_v63  ;;  %9153 = vmatprep.mubr.msk.bf16.mxu1 %vm1106_vm8, %v11828_v53  ;;  %v6200_v53 = vld [vmem:[#allocation2 + $0x1c] sm:$0xf]  ;;  %v6263_v46 = vshll.u32 %v6198_v7, 16  ;;  %v6267_v52 = vshrl.u32 %v6198_v7, 16  ;;  %v6339_v63 = vshrl.u32 %v6207_v35, 16  ;;  %v6318_v7 = vor.u32 %v6317_v8, %v12087_v51 }
 0x384   : > { %9334 = vmatprep.subr.msk.bf16.mxu1 %vm1155_vm0, %v12045_v14  ;;  %v6281_v54 = vshll.u32 %v6200_v53, 16 }
 0x385   : > { %v6265_v39 = vrot.slane %v6263_v46, 5  ;;  %v6269_v32 = vrot.slane %v6267_v52, 4 }
 0x386   : > { %9188 = vmatmul.mubr.msk.bf16.gmra.mxu0 %vm1106_vm8, %v11838_v31  ;;  %v6283_v56 = vrot.slane %v6281_v54, 5  ;;  %v6212_v54 = vld [vmem:[#allocation2 + $0x6c] sm:$0xf] }
 0x387   : > { %9191 = vmatprep.mubr.msk.bf16.mxu0 %vm1106_vm8, %v11842_v24  ;;  %v6270_v43 = vor.u32 %v6269_v32, %v6265_v39  ;;  %v6374_v25 = vshrl.u32 %v6212_v54, 16  ;;  %v6377_v12 = vshll.u32 %v6212_v54, 16  ;;  %v6221_v54 = vld [vmem:[#allocation2 + $0xa8] sm:$0xf] }
 0x389   : > { %v6271_v44 = vrot.slane %v6270_v43, 4  ;;  %v6376_v26 = vrot.slane %v6374_v25, 4  ;;  %v6379_v8 = vrot.slane %v6377_v12, 5 }
 0x38a   : > { %9154 = vmatmul.mubr.msk.bf16.gmra.mxu1 %vm1106_vm8, %v11832_v47  ;;  %v6254_v47 = vshrl.u32 %v6197_v0, 16 }
 0x38b   : > { %9157 = vmatprep.mubr.msk.bf16.mxu1 %vm1106_vm8, %v11838_v31  ;;  %v6257_v31 = vshll.u32 %v6197_v0, 16 }
 0x38c   : > { %v6256_v11 = vrot.slane %v6254_v47, 4 }
 0x38d   : > { %v6259_v16 = vrot.slane %v6257_v31, 5  ;;  %v6210_v31 = vld [vmem:[#allocation2 + $0x5c] sm:$0xf] }
 0x38e   : > { %9192 = vmatmul.mubr.msk.bf16.gmra.mxu0 %vm1106_vm8, %v11846_v29  ;;  %v6359_v32 = vshll.u32 %v6210_v31, 16 }
 0x38f   : > { %9195 = vmatprep.mubr.msk.bf16.mxu0 %vm1106_vm8, %v11852_v10  ;;  %v6260_v40 = vor.u32 %v6259_v16, %v6256_v11  ;;  %v6350_v11 = vshrl.u32 %v6209_v45, 16  ;;  %v12123_v16 = vrot.slane %v6335_v61, 5 }
 0x391   : > { %v6261_v2 = vrot.slane %v6260_v40, 4 }
 0x392   : > { %9158 = vmatmul.mubr.msk.bf16.gmra.mxu1 %vm1106_vm8, %v11842_v24  ;;  %v6278_v24 = vshrl.u32 %v6200_v53, 16  ;;  %v6328_v53 = vrot.slane %v6326_v49, 4 }
 0x393   : > { %9161 = vmatprep.mubr.msk.bf16.mxu1 %vm1106_vm8, %v11846_v29  ;;  %v6201_v29 = vld [vmem:[#allocation2 + $0x20] sm:$0xf]  ;;  %v6266_v0 = vsel %vm10123_vm13, %v6261_v2, %v6265_v39  ;;  %v6341_v39 = vrot.slane %v6339_v63, 4 }
 0x394   : > { %v6280_v4 = vrot.slane %v6278_v24, 4  ;;  %v6287_v50 = vshll.u32 %v6201_v29, 16 }
 0x396   : > { %9196 = vmatmul.mubr.msk.bf16.gmra.mxu0 %vm1106_vm8, %v11856_v3  ;;  %v6284_v1 = vor.u32 %v6283_v56, %v6280_v4  ;;  %v12083_v9 = vrot.slane %v6287_v50, 5  ;;  %v6363_v4 = vshrl.u32 %v6210_v31, 16  ;;  %v6215_v56 = vld [vmem:[#allocation2 + $0x80] sm:$0xf]  ;;  %v6319_v50 = vrot.slane %v6318_v7, 4 }
 0x397   : > { %9199 = vmatprep.mubr.msk.bf16.mxu0 %vm1106_vm8, %v11860_v37  ;;  %v6398_v20 = vshrl.u32 %v6215_v56, 16  ;;  %v6217_v7 = vld [vmem:[#allocation2 + $0x88] sm:$0x1] }
 0x398   : > { %v12091_v13 = vrot.slane %v6284_v1, 4  ;;  %v6401_v1 = vshll.u32 %v6215_v56, 16  ;;  %v6417_v55 = vshll.u32 %v6217_v7, 16  ;;  %v6224_v56 = vld [vmem:[#allocation2 + $0xbc] sm:$0xf] }
 0x39a   : > { %9162 = vmatmul.mubr.msk.bf16.gmra.mxu1 %vm1106_vm8, %v11852_v10  ;;  %v6291_v10 = vshrl.u32 %v6201_v29, 16  ;;  %v6290_v52 = vsel %vm10123_vm13, %v12091_v13, %v12083_v9  ;;  %v6213_v29 = vld [vmem:[#allocation2 + $0x70] sm:$0xf]  ;;  %v6214_v13 = vld [vmem:[#allocation2 + $0x74] sm:$0x1] }
 0x39b   : > { %9165 = vmatprep.mubr.msk.bf16.mxu1 %vm1106_vm8, %v11856_v3  ;;  %v6273_v3 = vshll.u32 %v6199_v15, 16  ;;  %v6208_v15 = vld [vmem:[#allocation2 + $0x4c] sm:$0x1]  ;;  %v6383_v14 = vshll.u32 %v6213_v29, 16  ;;  %v6387_v40 = vshrl.u32 %v6213_v29, 16 }
 0x39c   : > { %v6293_v41 = vrot.slane %v6291_v10, 4  ;;  %v6353_v10 = vshll.u32 %v6209_v45, 16 }
 0x39d   : > { %v6275_v18 = vrot.slane %v6273_v3, 5  ;;  %v6345_v3 = vshll.u32 %v6208_v15, 16  ;;  %v12138_v35 = vrot.slane %v6383_v14, 5  ;;  %v6389_v49 = vrot.slane %v6387_v40, 4  ;;  %v6222_v40 = vld [vmem:[#allocation2 + $0xac] sm:$0xf] }
 0x39e   : > { %9200 = vmatmul.mubr.msk.bf16.gmra.mxu0 %vm1106_vm8, %v11866_v62  ;;  %v6294_v42 = vor.u32 %v6293_v41, %v12083_v9  ;;  %v6342_v9 = vor.u32 %v6341_v39, %v12123_v16  ;;  %v6352_v41 = vrot.slane %v6350_v11, 4  ;;  %v6355_v2 = vrot.slane %v6353_v10, 5 }
 0x39f   : > { %9203 = vmatprep.mubr.msk.bf16.mxu0 %vm1106_vm8, %v11870_v30  ;;  %v6276_v27 = vsel %vm10123_vm13, %v6271_v44, %v6275_v18  ;;  %v6365_v18 = vrot.slane %v6363_v4, 4  ;;  %v6369_v44 = vshll.u32 %v6211_v23, 16  ;;  %v6390_v29 = vor.u32 %v6389_v49, %v12138_v35 }
 0x3a0   : > { %v12107_v46 = vcombine.low %v6266_v0, %v6276_v27  ;;  %v6295_v5 = vrot.slane %v6294_v42, 4  ;;  %v6400_v42 = vrot.slane %v6398_v20, 4  ;;  %v6343_v63 = vrot.slane %v6342_v9, 4 }
 0x3a1   : > { %v6356_v0 = vor.u32 %v6355_v2, %v6352_v41  ;;  %v6449_v4 = vshll.u32 %v6221_v54, 16  ;;  %v6391_v23 = vrot.slane %v6390_v29, 4  ;;  %v6470_v20 = vshrl.u32 %v6224_v56, 16 }
 0x3a2   : > { %9166 = vmatmul.mubr.msk.bf16.gmra.mxu1 %vm1106_vm8, %v11860_v37  ;;  %v6329_v37 = vshll.u32 %v6206_v33, 16  ;;  %v6300_v43 = vsel %vm10123_vm13, %v6295_v5, %v6299_v48  ;;  %v12134_v33 = vrot.slane %v6359_v32, 5  ;;  %v6380_v5 = vor.u32 %v6379_v8, %v6376_v26 }
 0x3a3   : > { %9169 = vmatprep.mubr.msk.bf16.mxu1 %vm1106_vm8, %v11866_v62  ;;  %v6321_v62 = vshll.u32 %v6205_v38, 16  ;;  %v6216_v38 = vld [vmem:[#allocation2 + $0x84] sm:$0xf]  ;;  %v6446_v32 = vshrl.u32 %v6221_v54, 16  ;;  %v6419_v9 = vrot.slane %v6417_v55, 5  ;;  %v6459_v26 = vshrl.u32 %v6222_v40, 16 }
 0x3a4   : > { %v6331_v47 = vrot.slane %v6329_v37, 5  ;;  %v6218_v37 = vld [vmem:[#allocation2 + $0x94] sm:$0xf]  ;;  %v6407_v27 = vshll.u32 %v6216_v38, 16  ;;  %v6411_v36 = vshrl.u32 %v6216_v38, 16  ;;  %v6451_v38 = vrot.slane %v6449_v4, 5 }
 0x3a5   : > { %v6323_v24 = vrot.slane %v6321_v62, 5  ;;  %v6403_v62 = vrot.slane %v6401_v1, 5  ;;  %v6473_v1 = vshll.u32 %v6224_v56, 16  ;;  %v6230_v4 = vld [vmem:[#allocation2 + $0xe4] sm:$0xf] }
 0x3a6   : > { %9204 = vmatmul.mubr.msk.bf16.gmra.mxu0 %vm1106_vm8, %v11874_v59  ;;  %v6413_v15 = vrot.slane %v6411_v36, 4 }
 0x3a7   : > { %9207 = vmatprep.mubr.msk.bf16.mxu0 %vm1106_vm8, %v11880_v60  ;;  %v6324_v17 = vsel %vm10123_vm13, %v6319_v50, %v6323_v24  ;;  %v6393_v24 = vshll.u32 %v6214_v13, 16  ;;  %v6404_v48 = vor.u32 %v6403_v62, %v6400_v42  ;;  %v6225_v13 = vld [vmem:[#allocation2 + $0xc0] sm:$0xf]  ;;  %v6475_v36 = vrot.slane %v6473_v1, 5 }
 0x3a9   : > { %v6395_v25 = vrot.slane %v6393_v24, 5  ;;  %v6405_v12 = vrot.slane %v6404_v48, 4  ;;  %v6228_v24 = vld [vmem:[#allocation2 + $0xd4] sm:$0xf] }
 0x3aa   : > { %9170 = vmatmul.mubr.msk.bf16.gmra.mxu1 %vm1106_vm8, %v11870_v30  ;;  %v6314_v30 = vsel %vm10123_vm13, %v12098_v21, %v12087_v51  ;;  %v6347_v51 = vrot.slane %v6345_v3, 5  ;;  %v12142_v21 = vcombine.low %v6290_v52, %v6300_v43  ;;  %v6371_v52 = vrot.slane %v6369_v44, 5  ;;  %v6220_v43 = vld [vmem:[#allocation2 + $0x9c] sm:$0x1] }
 0x3ab   : > { %9173 = vmatprep.mubr.msk.bf16.mxu1 %vm1106_vm8, %v11874_v59  ;;  %v6332_v59 = vor.u32 %v6331_v47, %v6328_v53  ;;  %v12144_v61 = vcombine.low %v6314_v30, %v6324_v17  ;;  %v6219_v53 = vld [vmem:[#allocation2 + $0x98] sm:$0xf]  ;;  %v6425_v47 = vshll.u32 %v6218_v37, 16  ;;  %v12159_v30 = vrot.slane %v6407_v27, 5 }
 0x3ac   : > { %v6348_v31 = vsel %vm10123_vm13, %v6343_v63, %v6347_v51  ;;  %v6431_v57 = vshll.u32 %v6219_v53, 16  ;;  %v6381_v3 = vrot.slane %v6380_v5, 4  ;;  %v6396_v2 = vsel %vm10123_vm13, %v6391_v23, %v6395_v25  ;;  %v6227_v63 = vld [vmem:[#allocation2 + $0xd0] sm:$0xf] }
 0x3ad   : > { %v6333_v19 = vrot.slane %v6332_v59, 4  ;;  %v6427_v39 = vrot.slane %v6425_v47, 5  ;;  %v6357_v59 = vrot.slane %v6356_v0, 4  ;;  %v6414_v14 = vor.u32 %v6413_v15, %v12159_v30 }
 0x3ae   : > { %9208 = vmatmul.mubr.msk.bf16.gmra.mxu0 %vm1106_vm8, %v12015_v34  ;;  %v12170_v17 = vrot.slane %v6431_v57, 5  ;;  %v6455_v44 = vshll.u32 %v6222_v40, 16  ;;  %v6386_v8 = vsel %vm10123_vm13, %v6381_v3, %v12138_v35  ;;  %v6472_v27 = vrot.slane %v6470_v20, 4  ;;  %v6223_v35 = vld [vmem:[#allocation2 + $0xb0] sm:$0x1] }
 0x3af   : > { %9211 = vmatprep.mubr.msk.bf16.mxu0 %vm1106_vm8, %v11888_v28  ;;  %v6338_v45 = vsel %vm10123_vm13, %v6333_v19, %v12123_v16  ;;  %v6415_v49 = vrot.slane %v6414_v14, 4  ;;  %v6483_v5 = vshrl.u32 %v6225_v13, 16  ;;  %v6494_v48 = vshrl.u32 %v6227_v63, 16  ;;  %v6226_v3 = vld [vmem:[#allocation2 + $0xc4] sm:$0x1] }
 0x3b0   : > { %v12163_v50 = vcombine.low %v6338_v45, %v6348_v31  ;;  %v12198_v47 = vrot.slane %v6455_v44, 5  ;;  %v6461_v31 = vrot.slane %v6459_v26, 4  ;;  %v6465_v57 = vshll.u32 %v6223_v35, 16 }
 0x3b1   : > { %v6420_v45 = vsel %vm10123_vm13, %v6415_v49, %v6419_v9 }
 0x3b2   : > { %9174 = vmatmul.mubr.msk.bf16.gmra.mxu1 %vm1106_vm8, %v11880_v60  ;;  %v6366_v60 = vor.u32 %v6365_v18, %v12134_v33  ;;  %v6448_v18 = vrot.slane %v6446_v32, 4  ;;  %v6507_v32 = vshrl.u32 %v6228_v24, 16  ;;  %v6462_v25 = vor.u32 %v6461_v31, %v12198_v47 }
 0x3b3   : > { %9177 = vmatprep.mubr.msk.bf16.mxu1 %vm1106_vm8, %v12015_v34  ;;  %v6422_v34 = vshrl.u32 %v6218_v37, 16  ;;  %v6441_v37 = vshll.u32 %v6220_v43, 16  ;;  %v6496_v43 = vrot.slane %v6494_v48, 4  ;;  %v6467_v9 = vrot.slane %v6465_v57, 5  ;;  %v6234_v48 = vld [vmem:[#allocation2 + $0xfc] sm:$0xf] }
 0x3b4   : > { %v6367_v11 = vrot.slane %v6366_v60, 4  ;;  %v12190_v60 = vcombine.low %v6386_v8, %v6396_v2  ;;  %v6452_v7 = vor.u32 %v6451_v38, %v6448_v18  ;;  %v6518_v18 = vshrl.u32 %v6230_v4, 16 }
 0x3b5   : > { %v6424_v16 = vrot.slane %v6422_v34, 4  ;;  %v6443_v29 = vrot.slane %v6441_v37, 5  ;;  %v6521_v38 = vshll.u32 %v6230_v4, 16  ;;  %v6509_v44 = vrot.slane %v6507_v32, 4 }
 0x3b6   : > { %9212 = vmatmul.mubr.msk.bf16.gmra.mxu0 %vm1106_vm8, %v8245_v22  ;;  %v6435_v22 = vshrl.u32 %v6219_v53, 16  ;;  %v6372_v10 = vsel %vm10123_vm13, %v6367_v11, %v6371_v52  ;;  %v6479_v52 = vshll.u32 %v6225_v13, 16  ;;  %v6463_v37 = vrot.slane %v6462_v25, 4  ;;  %v6229_v13 = vld [vmem:[#allocation2 + $0xd8] sm:$0x1] }
 0x3b7   : > { %9251 = vmatprep.mubr.msk.bf16.mxu0 %vm1106_vm8, %v12142_v21  ;;  %v6428_v41 = vor.u32 %v6427_v39, %v6424_v16  ;;  %v6503_v39 = vshll.u32 %v6228_v24, 16  ;;  %v6513_v24 = vshll.u32 %v6229_v13, 16 }
 0x3b8   : > { %v12216_v23 = vrot.slane %v6479_v52, 5 }
 0x3b9   : > { %v12194_v0 = vrot.slane %v6428_v41, 4  ;;  %v12228_v2 = vrot.slane %v6503_v39, 5 }
 0x3ba   : > { %9178 = vmatmul.mubr.msk.bf16.gmra.mxu1 %vm1106_vm8, %v11888_v28  ;;  %v6437_v28 = vrot.slane %v6435_v22, 4  ;;  %v6476_v22 = vor.u32 %v6475_v36, %v6472_v27 }
 0x3bb   : > { %9217 = vmatprep.mubr.msk.bf16.mxu1 %vm1106_vm8, %v12107_v46  ;;  %v6362_v46 = vsel %vm10123_vm13, %v6357_v59, %v12134_v33  ;;  %v6410_v33 = vsel %vm10123_vm13, %v6405_v12, %v12159_v30  ;;  %v6497_v30 = vshll.u32 %v6227_v63, 16  ;;  %v6485_v12 = vrot.slane %v6483_v5, 4 }
 0x3bc   : > { %v12181_v51 = vcombine.low %v6362_v46, %v6372_v10  ;;  %v6438_v62 = vor.u32 %v6437_v28, %v12170_v17  ;;  %v6453_v10 = vrot.slane %v6452_v7, 4  ;;  %v6231_v28 = vld [vmem:[#allocation2 + $0xe8] sm:$0xf]  ;;  %v12224_v41 = vrot.slane %v6476_v22, 4 }
 0x3bd   : > { %v6489_v46 = vshll.u32 %v6226_v3, 16  ;;  %v6486_v36 = vor.u32 %v6485_v12, %v12216_v23  ;;  %v6468_v7 = vsel %vm10123_vm13, %v6463_v37, %v6467_v9  ;;  %v6510_v5 = vor.u32 %v6509_v44, %v12228_v2 }
 0x3be   : > { %v9049_v19 = vpop.f32.mrf.mxu0  ;;  %9252 = vmatmul.mubr.msk.bf16.vlgmr.msra.gmra.mxu0 %vm1106_vm8, %v12144_v61  ;;  %v6439_v55 = vrot.slane %v6438_v62, 4  ;;  %v6458_v49 = vsel %vm10123_vm13, %v6453_v10, %v12198_v47  ;;  %v6523_v47 = vrot.slane %v6521_v38, 5  ;;  %v6555_v12 = vshrl.u32 %v6234_v48, 16 }
 0x3bf   : > { %9255 = vmatprep.mubr.msk.bf16.mxu0 %vm1106_vm8, %v12163_v50  ;;  %v6491_v52 = vrot.slane %v6489_v46, 5  ;;  %v12259_v39 = vcombine.low %v6458_v49, %v6468_v7  ;;  %v6487_v32 = vrot.slane %v6486_v36, 4  ;;  %v6239_v7 = vld [vmem:[#allocation2 + $0x120] sm:$0xf] }
 0x3c0   : > { %v5106_v42 = vpop.f32.mrf.mxu0  ;;  %v6444_v40 = vsel %vm10123_vm13, %v6439_v55, %v6443_v29  ;;  %v6232_v29 = vld [vmem:[#allocation2 + $0xec] sm:$0x1] }
 0x3c1   : > { %v6537_v3 = vshll.u32 %v6232_v29, 16 }
 0x3c2   : > { %v9015_v53 = vpop.f32.mrf.mxu1  ;;  %9218 = vmatmul.mubr.msk.bf16.vlgmr.msra.gmra.mxu1 %vm1106_vm8, %v12142_v21  ;;  %v9050_v34 = vpop.f32.mrf.mxu0  ;;  %v12205_v21 = vcombine.low %v6410_v33, %v6420_v45  ;;  %v6531_v33 = vshrl.u32 %v6231_v28, 16  ;;  %v6233_v45 = vld [vmem:[#allocation2 + $0xf8] sm:$0xf] }
 0x3c3   : > { %v12200_v54 = vadd.f32 %v9049_v19, %v9015_v53  ;;  %9284 = vmatpush3.bf16.msra.mxu1 %v12121_v6  ;;  %9221 = vmatprep.mubr.msk.bf16.mxu1 %vm1106_vm8, %v12144_v61  ;;  %v6434_v6 = vsel %vm10123_vm13, %v12194_v0, %v12170_v17  ;;  %v6499_v17 = vrot.slane %v6497_v30, 5  ;;  %v6482_v53 = vsel %vm10123_vm13, %v12224_v41, %v12216_v23 }
 0x3c4   : > { %v4914_v15 = vpop.f32.mrf.mxu1  ;;  %v5109_v11 = vpop.f32.mrf.mxu0  ;;  %v12239_v27 = vcombine.low %v6434_v6, %v6444_v40  ;;  %v6533_v55 = vrot.slane %v6531_v33, 4  ;;  %v6542_v57 = vshrl.u32 %v6233_v45, 16  ;;  %v6545_v22 = vshll.u32 %v6233_v45, 16  ;;  %v6237_v40 = vld [vmem:[#allocation2 + $0x110] sm:$0xf] }
 0x3c5   : > { %v12207_v16 = vadd.f32 %v5106_v42, %v4914_v15  ;;  %v6527_v42 = vshll.u32 %v6231_v28, 16  ;;  %v6500_v63 = vor.u32 %v6499_v17, %v6496_v43  ;;  %v6551_v23 = vshll.u32 %v6234_v48, 16 }
 0x3c6   : > { %v9016_v56 = vpop.f32.mrf.mxu1  ;;  %v9053_v59 = vpop.f32.mrf.mxu0  ;;  %9256 = vmatmul.mubr.msk.bf16.gmra.mxu0 %vm1106_vm8, %v12181_v51  ;;  %v6492_v17 = vsel %vm10123_vm13, %v6487_v32, %v6491_v52  ;;  %v6511_v28 = vrot.slane %v6510_v5, 4  ;;  %v6547_v38 = vrot.slane %v6545_v22, 5  ;;  %v6579_v49 = vshrl.u32 %v6237_v40, 16 }
 0x3c7   : > { %v12218_v14 = vadd.f32 %v9050_v34, %v9016_v56  ;;  %9259 = vmatprep.mubr.msk.bf16.mxu0 %vm1106_vm8, %v12190_v60  ;;  %v6520_v34 = vrot.slane %v6518_v18, 4  ;;  %v6501_v4 = vrot.slane %v6500_v63, 4  ;;  %v6236_v56 = vld [vmem:[#allocation2 + $0x10c] sm:$0xf]  ;;  %v6544_v18 = vrot.slane %v6542_v57, 4 }
 0x3c8   : > { %v4917_v20 = vpop.f32.mrf.mxu1  ;;  %v5122_v1 = vpop.f32.mrf.mxu0  ;;  %v6566_v46 = vshrl.u32 %v6236_v56, 16  ;;  %v6539_v33 = vrot.slane %v6537_v3, 5  ;;  %v12272_v36 = vrot.slane %v6551_v23, 5  ;;  %v6557_v63 = vrot.slane %v6555_v12, 4 }
 0x3c9   : > { %v12226_v19 = vadd.f32 %v5109_v11, %v4917_v20  ;;  %v12253_v11 = vrot.slane %v6527_v42, 5  ;;  %v6524_v25 = vor.u32 %v6523_v47, %v6520_v34  ;;  %v6515_v20 = vrot.slane %v6513_v24, 5  ;;  %v6235_v24 = vld [vmem:[#allocation2 + $0x100] sm:$0x1] }
 0x3ca   : > { %v9019_v26 = vpop.f32.mrf.mxu1  ;;  %9222 = vmatmul.mubr.msk.bf16.gmra.mxu1 %vm1106_vm8, %v12163_v50  ;;  %v9054_v8 = vpop.f32.mrf.mxu0  ;;  %v6506_v52 = vsel %vm10123_vm13, %v6501_v4, %v12228_v2  ;;  %v6548_v29 = vor.u32 %v6547_v38, %v6544_v18  ;;  %v6568_v48 = vrot.slane %v6566_v46, 4  ;;  %v6581_v22 = vrot.slane %v6579_v49, 4 }
 0x3cb   : > { %v12235_v62 = vadd.f32 %v9053_v59, %v9019_v26  ;;  %9225 = vmatprep.mubr.msk.bf16.mxu1 %vm1106_vm8, %v12181_v51  ;;  %v6534_v41 = vor.u32 %v6533_v55, %v12253_v11  ;;  %v6569_v26 = vshll.u32 %v6236_v56, 16  ;;  %v6525_v42 = vrot.slane %v6524_v25, 4  ;;  %v6242_v25 = vld [vmem:[#allocation2 + $0x134] sm:$0xf] }
 0x3cc   : > { %v4930_v0 = vpop.f32.mrf.mxu1  ;;  %v5125_v35 = vpop.f32.mrf.mxu0  ;;  %v6561_v23 = vshll.u32 %v6235_v24, 16  ;;  %v6590_v12 = vshrl.u32 %v6239_v7, 16 }
 0x3cd   : > { %v12248_v31 = vadd.f32 %v5122_v1, %v4930_v0  ;;  %v12276_v0 = vcombine.low %v6482_v53, %v6492_v17  ;;  %v6535_v5 = vrot.slane %v6534_v41, 4  ;;  %v6571_v55 = vrot.slane %v6569_v26, 5  ;;  %v6243_v17 = vld [vmem:[#allocation2 + $0x138] sm:$0xf] }
 0x3ce   : > { %v9020_v30 = vpop.f32.mrf.mxu1  ;;  %v9057_v15 = vpop.f32.mrf.mxu0  ;;  %9260 = vmatmul.mubr.msk.bf16.gmra.mxu0 %vm1106_vm8, %v12205_v21  ;;  %v6530_v2 = vsel %vm10123_vm13, %v6525_v42, %v12253_v11  ;;  %v6623_v42 = vshll.u32 %v6243_v17, 16 }
 0x3cf   : > { %v12255_v6 = vadd.f32 %v9054_v8, %v9020_v30  ;;  %9263 = vmatprep.mubr.msk.bf16.mxu0 %vm1106_vm8, %v12239_v27  ;;  %v6575_v8 = vshll.u32 %v6237_v40, 16  ;;  %v6240_v30 = vld [vmem:[#allocation2 + $0x124] sm:$0xf]  ;;  %v6540_v4 = vsel %vm10123_vm13, %v6535_v5, %v6539_v33  ;;  %v6593_v40 = vshll.u32 %v6239_v7, 16 }
 0x3d0   : > { %v4933_v59 = vpop.f32.mrf.mxu1  ;;  %v5138_v10 = vpop.f32.mrf.mxu0  ;;  %v6599_v11 = vshll.u32 %v6240_v30, 16  ;;  %v6603_v41 = vshrl.u32 %v6240_v30, 16  ;;  %v12307_v38 = vcombine.low %v6530_v2, %v6540_v4  ;;  %v6572_v46 = vor.u32 %v6571_v55, %v6568_v48  ;;  %v6245_v2 = vld [vmem:[#allocation2 + $0x148] sm:$0xf] }
 0x3d1   : > { %v12261_v43 = vadd.f32 %v5125_v35, %v4933_v59  ;;  %v6516_v35 = vsel %vm10123_vm13, %v6511_v28, %v6515_v20  ;;  %v12289_v57 = vrot.slane %v6575_v8, 5  ;;  %v6627_v33 = vshrl.u32 %v6243_v17, 16  ;;  %v6246_v17 = vld [vmem:[#allocation2 + $0x14c] sm:$0xf] }
 0x3d2   : > { %v9023_v1 = vpop.f32.mrf.mxu1  ;;  %9226 = vmatmul.mubr.msk.bf16.gmra.mxu1 %vm1106_vm8, %v12190_v60  ;;  %v9058_v9 = vpop.f32.mrf.mxu0  ;;  %v12291_v59 = vcombine.low %v6506_v52, %v6516_v35  ;;  %v6563_v35 = vrot.slane %v6561_v23, 5  ;;  %v6592_v7 = vrot.slane %v6590_v12, 4  ;;  %v12314_v48 = vrot.slane %v6599_v11, 5 }
 0x3d3   : > { %v12268_v44 = vadd.f32 %v9057_v15, %v9023_v1  ;;  %9229 = vmatprep.mubr.msk.bf16.mxu1 %vm1106_vm8, %v12205_v21  ;;  %v6238_v15 = vld [vmem:[#allocation2 + $0x114] sm:$0x1]  ;;  %v6549_v1 = vrot.slane %v6548_v29, 4  ;;  %v6582_v26 = vor.u32 %v6581_v22, %v12289_v57  ;;  %v6241_v29 = vld [vmem:[#allocation2 + $0x128] sm:$0x1]  ;;  %v6605_v30 = vrot.slane %v6603_v41, 4 }
 0x3d4   : > { %v4946_v37 = vpop.f32.mrf.mxu1  ;;  %v5141_v13 = vpop.f32.mrf.mxu0  ;;  %v6573_v22 = vrot.slane %v6572_v46, 4  ;;  %v12323_v12 = vrot.slane %v6623_v42, 5  ;;  %v6609_v11 = vshll.u32 %v6241_v29, 16  ;;  %v6945_v42 = vshrl.u32 %v6246_v17, 16 }
 0x3d5   : > { %v12274_v45 = vadd.f32 %v5138_v10, %v4946_v37  ;;  %v6558_v10 = vor.u32 %v6557_v63, %v12272_v36  ;;  %v6614_v37 = vshrl.u32 %v6242_v25, 16  ;;  %v6554_v55 = vsel %vm10123_vm13, %v6549_v1, %v12272_v36 }
 0x3d6   : > { %v9024_v34 = vpop.f32.mrf.mxu1  ;;  %v9061_v47 = vpop.f32.mrf.mxu0  ;;  %9264 = vmatmul.mubr.msk.bf16.gmra.mxu0 %vm1106_vm8, %v12259_v39  ;;  %v6606_v46 = vor.u32 %v6605_v30, %v12314_v48  ;;  %v6611_v29 = vrot.slane %v6609_v11, 5 }
 0x3d7   : > { %v12285_v53 = vadd.f32 %v9058_v9, %v9024_v34  ;;  %9267 = vmatprep.mubr.msk.bf16.mxu0 %vm1106_vm8, %v12276_v0  ;;  %v6585_v9 = vshll.u32 %v6238_v15, 16  ;;  %v6595_v34 = vrot.slane %v6593_v40, 5  ;;  %v6559_v5 = vrot.slane %v6558_v10, 4 }
 0x3d8   : > { %v4949_v32 = vpop.f32.mrf.mxu1  ;;  %v5154_v56 = vpop.f32.mrf.mxu0  ;;  %v6629_v40 = vrot.slane %v6627_v33, 4 }
 0x3d9   : > { %v12299_v3 = vadd.f32 %v5141_v13, %v4949_v32  ;;  %v6617_v13 = vshll.u32 %v6242_v25, 16  ;;  %v6587_v24 = vrot.slane %v6585_v9, 5  ;;  %v6583_v32 = vrot.slane %v6582_v26, 4 }
 0x3da   : > { %v9027_v28 = vpop.f32.mrf.mxu1  ;;  %9230 = vmatmul.mubr.msk.bf16.gmra.mxu1 %vm1106_vm8, %v12239_v27  ;;  %v9062_v20 = vpop.f32.mrf.mxu0  ;;  %v6616_v25 = vrot.slane %v6614_v37, 4  ;;  %v6596_v9 = vor.u32 %v6595_v34, %v6592_v7  ;;  %v6578_v34 = vsel %vm10123_vm13, %v6573_v22, %v12289_v57 }
 0x3db   : > { %v12303_v18 = vadd.f32 %v9061_v47, %v9027_v28  ;;  %9233 = vmatprep.mubr.msk.bf16.mxu1 %vm1106_vm8, %v12259_v39  ;;  %v6619_v23 = vrot.slane %v6617_v13, 5  ;;  %v6588_v41 = vsel %vm10123_vm13, %v6583_v32, %v6587_v24  ;;  %v6941_v13 = vshll.u32 %v6246_v17, 16 }
 0x3dc   : > { %v4962_v8 = vpop.f32.mrf.mxu1  ;;  %v5157_v49 = vpop.f32.mrf.mxu0 }
 0x3dd   : > { %v12310_v63 = vadd.f32 %v5154_v56, %v4962_v8  ;;  %v6244_v56 = vld [vmem:[#allocation2 + $0x13c] sm:$0x1]  ;;  %v6932_v8 = vshrl.u32 %v6245_v2, 16  ;;  %v6943_v22 = vrot.slane %v6941_v13, 5 }
 0x3de   : > { %v9028_v47 = vpop.f32.mrf.mxu1  ;;  %v9065_v52 = vpop.f32.mrf.mxu0  ;;  %9268 = vmatmul.mubr.msk.bf16.gmra.mxu0 %vm1106_vm8, %v12291_v59  ;;  %v6633_v26 = vshll.u32 %v6244_v56, 16  ;;  %v6597_v56 = vrot.slane %v6596_v9, 4 }
 0x3df   : > { %v12316_v15 = vadd.f32 %v9062_v20, %v9028_v47  ;;  %9271 = vmatprep.mubr.msk.bf16.mxu0 %vm1106_vm8, %v12307_v38  ;;  %v6564_v20 = vsel %vm10123_vm13, %v6559_v5, %v6563_v35  ;;  %v6620_v47 = vor.u32 %v6619_v23, %v6616_v25  ;;  %v6630_v5 = vor.u32 %v6629_v40, %v12323_v12 }
 0x3e0   : > { %v4965_v4 = vpop.f32.mrf.mxu1  ;;  %v5170_v10 = vpop.f32.mrf.mxu0  ;;  %v12338_v7 = vcombine.low %v6554_v55, %v6564_v20  ;;  %v6607_v55 = vrot.slane %v6606_v46, 4  ;;  %v6934_v17 = vrot.slane %v6932_v8, 4 }
 0x3e1   : > { %v12325_v28 = vadd.f32 %v5157_v49, %v4965_v4  ;;  %v6935_v49 = vshll.u32 %v6245_v2, 16  ;;  %v6635_v2 = vrot.slane %v6633_v26, 5  ;;  %v6247_v4 = vld [vmem:[#allocation2 + $0x150] sm:$0x1]  ;;  %v6621_v40 = vrot.slane %v6620_v47, 4 }
 0x3e2   : > { %v9031_v36 = vpop.f32.mrf.mxu1  ;;  %9234 = vmatmul.mubr.msk.bf16.gmra.mxu1 %vm1106_vm8, %v12276_v0  ;;  %v9066_v1 = vpop.f32.mrf.mxu0  ;;  %v6631_v11 = vrot.slane %v6630_v5, 4  ;;  %v6612_v9 = vsel %vm10123_vm13, %v6607_v55, %v6611_v29 }
 0x3e3   : > { %v12334_v37 = vadd.f32 %v9065_v52, %v9031_v36  ;;  %9237 = vmatprep.mubr.msk.bf16.mxu1 %vm1106_vm8, %v12291_v59  ;;  %v12346_v52 = vcombine.low %v6578_v34, %v6588_v41  ;;  %v6937_v57 = vrot.slane %v6935_v49, 5  ;;  %v6951_v41 = vshll.u32 %v6247_v4, 16 }
 0x3e4   : > { %v4978_v33 = vpop.f32.mrf.mxu1  ;;  %v5173_v35 = vpop.f32.mrf.mxu0  ;;  %v6636_v26 = vsel %vm10123_vm13, %v6631_v11, %v6635_v2  ;;  %v6602_v49 = vsel %vm10123_vm13, %v6597_v56, %v12314_v48  ;;  %v6626_v47 = vsel %vm10123_vm13, %v6621_v40, %v12323_v12 }
 0x3e5   : > { %v12344_v24 = vadd.f32 %v5170_v10, %v4978_v33  ;;  %v6947_v10 = vrot.slane %v6945_v42, 4  ;;  %v6938_v13 = vor.u32 %v6937_v57, %v6934_v17  ;;  %v12369_v34 = vcombine.low %v6602_v49, %v6612_v9 }
 0x3e6   : > { %v9032_v30 = vpop.f32.mrf.mxu1  ;;  %v9069_v32 = vpop.f32.mrf.mxu0  ;;  %9272 = vmatmul.mubr.msk.bf16.gmra.mxu0 %vm1106_vm8, %v12338_v7  ;;  %v12376_v29 = vcombine.low %v6626_v47, %v6636_v26 }
 0x3e7   : > { %v12350_v20 = vadd.f32 %v9066_v1, %v9032_v30  ;;  %9275 = vmatprep.mubr.msk.bf16.mxu0 %vm1106_vm8, %v12346_v52  ;;  %v6948_v42 = vor.u32 %v6947_v10, %v6943_v22  ;;  %v6953_v30 = vrot.slane %v6951_v41, 5  ;;  %v6939_v56 = vrot.slane %v6938_v13, 4 }
 0x3e8   : > { %v4981_v25 = vpop.f32.mrf.mxu1  ;;  %v5186_v23 = vpop.f32.mrf.mxu0 }
 0x3e9   : > { %v12354_v36 = vadd.f32 %v5173_v35, %v4981_v25  ;;  %v6949_v2 = vrot.slane %v6948_v42, 4  ;;  %v6944_v40 = vsel %vm10123_vm13, %v6939_v56, %v6943_v22 }
 0x3ea   : > { %v9035_v46 = vpop.f32.mrf.mxu1  ;;  %9238 = vmatmul.mubr.msk.bf16.gmra.mxu1 %vm1106_vm8, %v12307_v38  ;;  %v9070_v1 = vpop.f32.mrf.mxu0 }
 0x3eb   : > { %v12362_v8 = vadd.f32 %v9069_v32, %v9035_v46  ;;  %9241 = vmatprep.mubr.msk.bf16.mxu1 %vm1106_vm8, %v12338_v7  ;;  %v6954_v57 = vsel %vm10123_vm13, %v6949_v2, %v6953_v30 }
 0x3ec   : > { %v4994_v33 = vpop.f32.mrf.mxu1  ;;  %v5189_v35 = vpop.f32.mrf.mxu0  ;;  %v12396_v41 = vcombine.low %v6944_v40, %v6954_v57 }
 0x3ed   : > { %v12374_v5 = vadd.f32 %v5186_v23, %v4994_v33 }
 0x3ee   : > { %v9036_v32 = vpop.f32.mrf.mxu1  ;;  %v9073_v55 = vpop.f32.mrf.mxu0  ;;  %9276 = vmatmul.mubr.msk.bf16.gmra.mxu0 %vm1106_vm8, %v12369_v34 }
 0x3ef   : > { %v12380_v48 = vadd.f32 %v9070_v1, %v9036_v32  ;;  %9279 = vmatprep.mubr.msk.bf16.mxu0 %vm1106_vm8, %v12376_v29 }
 0x3f0   : > { %v4997_v4 = vpop.f32.mrf.mxu1  ;;  %v5202_v17 = vpop.f32.mrf.mxu0 }
 0x3f1   : > { %v12384_v12 = vadd.f32 %v5189_v35, %v4997_v4 }
 0x3f2   : > { %v9039_v10 = vpop.f32.mrf.mxu1  ;;  %9242 = vmatmul.mubr.msk.bf16.gmra.mxu1 %vm1106_vm8, %v12346_v52  ;;  %v9074_v25 = vpop.f32.mrf.mxu0 }
 0x3f3   : > { %v12390_v23 = vadd.f32 %v9073_v55, %v9039_v10  ;;  %9245 = vmatprep.mubr.msk.bf16.mxu1 %vm1106_vm8, %v12369_v34 }
 0x3f4   : > { %v5010_v11 = vpop.f32.mrf.mxu1  ;;  %v5205_v9 = vpop.f32.mrf.mxu0 }
 0x3f5   : > { %v12398_v46 = vadd.f32 %v5202_v17, %v5010_v11 }
 0x3f6   : > { %v9040_v1 = vpop.f32.mrf.mxu1  ;;  %v9077_v26 = vpop.f32.mrf.mxu0  ;;  %9280 = vmatmul.mubr.msk.bf16.gmra.mxu0 %vm1106_vm8, %v12396_v41 }
 0x3f7   : > { %v12402_v49 = vadd.f32 %v9074_v25, %v9040_v1 }
 0x3f8   : > { %v5013_v13 = vpop.f32.mrf.mxu1  ;;  %v5218_v42 = vpop.f32.mrf.mxu0 }
 0x3f9   : > { %v12404_v33 = vadd.f32 %v5205_v9, %v5013_v13 }
 0x3fa   : > { %v9043_v35 = vpop.f32.mrf.mxu1  ;;  %9246 = vmatmul.mubr.msk.bf16.gmra.mxu1 %vm1106_vm8, %v12376_v29  ;;  %v9078_v22 = vpop.f32.mrf.mxu0 }
 0x3fb   : > { %v12408_v47 = vadd.f32 %v9077_v26, %v9043_v35  ;;  %9285 = vmatprep.mubr.msk.bf16.mxu1 %vm1106_vm8, %v12144_v61 }
 0x3fc   : > { %v5026_v30 = vpop.f32.mrf.mxu1  ;;  %v5221_v32 = vpop.f32.mrf.mxu0 }
 0x3fd   : > { %v12412_v55 = vadd.f32 %v5218_v42, %v5026_v30 }
 0x3fe   : > { %v9044_v56 = vpop.f32.mrf.mxu1  ;;  %v9117_v2 = vpop.f32.mrf.mxu0 }
 0x3ff   : > { %v12414_v4 = vadd.f32 %v9078_v22, %v9044_v56 }
 0x400   : > { %v5029_v17 = vpop.f32.mrf.mxu1  ;;  %v5626_v57 = vpop.f32.mrf.mxu0 }
 0x401   : > { %v12416_v10 = vadd.f32 %v5221_v32, %v5029_v17 }
 0x402   : > { %v9083_v25 = vpop.f32.mrf.mxu1  ;;  %9286 = vmatmul.mubr.msk.bf16.vlgmr.msra.gmra.mxu1 %vm1106_vm8, %v12163_v50  ;;  %v9118_v40 = vpop.f32.mrf.mxu0 }
 0x403   : > { %v5429_v11 = vadd.f32 %v9083_v25, %v12200_v54  ;;  %9289 = vmatprep.mubr.msk.bf16.mxu1 %vm1106_vm8, %v12181_v51 }
 0x404   : > { %v5300_v61 = vpop.f32.mrf.mxu1  ;;  %v5629_v9 = vpop.f32.mrf.mxu0 }
 0x405   : > { %v12423_v1 = vadd.f32 %v9117_v2, %v5429_v11  ;;  %v5427_v26 = vadd.f32 %v5300_v61, %v12207_v16 }
 0x406   : > { %v9084_v13 = vpop.f32.mrf.mxu1  ;;  %v9121_v42 = vpop.f32.mrf.mxu0 }
 0x407   : > { %v12426_v35 = vadd.f32 %v5626_v57, %v5427_v26  ;;  %v5430_v22 = vadd.f32 %v9084_v13, %v12218_v14 }
 0x408   : > { %v5303_v30 = vpop.f32.mrf.mxu1  ;;  %v5642_v50 = vpop.f32.mrf.mxu0 }
 0x409   : > { %v12429_v32 = vadd.f32 %v9118_v40, %v5430_v22  ;;  %v5428_v54 = vadd.f32 %v5303_v30, %v12226_v19 }
 0x40a   : > { %v9087_v56 = vpop.f32.mrf.mxu1  ;;  %9290 = vmatmul.mubr.msk.bf16.gmra.mxu1 %vm1106_vm8, %v12190_v60  ;;  %v9122_v51 = vpop.f32.mrf.mxu0 }
 0x40b   : > { %v12434_v2 = vadd.f32 %v5629_v9, %v5428_v54  ;;  %v5433_v16 = vadd.f32 %v9087_v56, %v12235_v62  ;;  %9293 = vmatprep.mubr.msk.bf16.mxu1 %vm1106_vm8, %v12205_v21 }
 0x40c   : > { %v5316_v17 = vpop.f32.mrf.mxu1  ;;  %v5645_v14 = vpop.f32.mrf.mxu0 }
 0x40d   : > { %v12439_v57 = vadd.f32 %v9121_v42, %v5433_v16  ;;  %v5431_v25 = vadd.f32 %v5316_v17, %v12248_v31 }
 0x40e   : > { %v9088_v40 = vpop.f32.mrf.mxu1  ;;  %v9125_v19 = vpop.f32.mrf.mxu0 }
 0x40f   : > { %v12442_v11 = vadd.f32 %v5642_v50, %v5431_v25  ;;  %v5434_v60 = vadd.f32 %v9088_v40, %v12255_v6 }
 0x410   : > { %v5319_v61 = vpop.f32.mrf.mxu1  ;;  %v5658_v9 = vpop.f32.mrf.mxu0 }
 0x411   : > { %v12445_v26 = vadd.f32 %v9122_v51, %v5434_v60  ;;  %v5432_v62 = vadd.f32 %v5319_v61, %v12261_v43 }
 0x412   : > { %v9091_v13 = vpop.f32.mrf.mxu1  ;;  %9294 = vmatmul.mubr.msk.bf16.gmra.mxu1 %vm1106_vm8, %v12239_v27  ;;  %v9126_v21 = vpop.f32.mrf.mxu0 }
 0x413   : > { %v12450_v42 = vadd.f32 %v5645_v14, %v5432_v62  ;;  %v5437_v31 = vadd.f32 %v9091_v13, %v12268_v44  ;;  %9297 = vmatprep.mubr.msk.bf16.mxu1 %vm1106_vm8, %v12259_v39 }
 0x414   : > { %v5332_v22 = vpop.f32.mrf.mxu1  ;;  %v5661_v6 = vpop.f32.mrf.mxu0 }
 0x415   : > { %v12455_v30 = vadd.f32 %v9125_v19, %v5437_v31  ;;  %v5435_v50 = vadd.f32 %v5332_v22, %v12274_v45 }
 0x416   : > { %v9092_v54 = vpop.f32.mrf.mxu1  ;;  %v9129_v43 = vpop.f32.mrf.mxu0 }
 0x417   : > { %v12458_v56 = vadd.f32 %v5658_v9, %v5435_v50  ;;  %v5438_v27 = vadd.f32 %v9092_v54, %v12285_v53  ;;  %v6249_v54 = vld [vmem:[#allocation2 + $0x160] sm:$0xf] }
 0x418   : > { %v5335_v51 = vpop.f32.mrf.mxu1  ;;  %v5674_v16 = vpop.f32.mrf.mxu0 }
 0x419   : > { %v12461_v17 = vadd.f32 %v9126_v21, %v5438_v27  ;;  %v5436_v44 = vadd.f32 %v5335_v51, %v12299_v3 }
 0x41a   : > { %v9095_v14 = vpop.f32.mrf.mxu1  ;;  %9298 = vmatmul.mubr.msk.bf16.gmra.mxu1 %vm1106_vm8, %v12276_v0  ;;  %v9130_v39 = vpop.f32.mrf.mxu0 }
 0x41b   : > { %v12466_v25 = vadd.f32 %v5661_v6, %v5436_v44  ;;  %v5441_v45 = vadd.f32 %v9095_v14, %v12303_v18  ;;  %9301 = vmatprep.mubr.msk.bf16.mxu1 %vm1106_vm8, %v12291_v59  ;;  %v6248_v6 = vld [vmem:[#allocation2 + $0x15c] sm:$0xf] }
 0x41c   : > { %v5348_v40 = vpop.f32.mrf.mxu1  ;;  %v5677_v53 = vpop.f32.mrf.mxu0 }
 0x41d   : > { %v12471_v19 = vadd.f32 %v9129_v43, %v5441_v45  ;;  %v5439_v60 = vadd.f32 %v5348_v40, %v12310_v63 }
 0x41e   : > { %v9096_v61 = vpop.f32.mrf.mxu1  ;;  %v9133_v3 = vpop.f32.mrf.mxu0 }
 0x41f   : > { %v12474_v9 = vadd.f32 %v5674_v16, %v5439_v60  ;;  %v5442_v0 = vadd.f32 %v9096_v61, %v12316_v15  ;;  %v7160_v16 = vshrl.u32 %v6248_v6, 16  ;;  %v6250_v61 = vld [vmem:[#allocation2 + $0x164] sm:$0x1] }
 0x420   : > { %v5351_v62 = vpop.f32.mrf.mxu1  ;;  %v5690_v13 = vpop.f32.mrf.mxu0 }
 0x421   : > { %v12477_v21 = vadd.f32 %v9130_v39, %v5442_v0  ;;  %v5440_v18 = vadd.f32 %v5351_v62, %v12325_v28  ;;  %v7173_v39 = vshrl.u32 %v6249_v54, 16 }
 0x422   : > { %v9099_v31 = vpop.f32.mrf.mxu1  ;;  %9302 = vmatmul.mubr.msk.bf16.gmra.mxu1 %vm1106_vm8, %v12307_v38  ;;  %v9134_v59 = vpop.f32.mrf.mxu0  ;;  %v7163_v38 = vshll.u32 %v6248_v6, 16 }
 0x423   : > { %v12482_v22 = vadd.f32 %v5677_v53, %v5440_v18  ;;  %v5445_v63 = vadd.f32 %v9099_v31, %v12334_v37  ;;  %9305 = vmatprep.mubr.msk.bf16.mxu1 %vm1106_vm8, %v12338_v7  ;;  %v7169_v37 = vshll.u32 %v6249_v54, 16  ;;  %v7175_v18 = vrot.slane %v7173_v39, 4 }
 0x424   : > { %v5364_v15 = vpop.f32.mrf.mxu1  ;;  %v5693_v50 = vpop.f32.mrf.mxu0  ;;  %v7165_v0 = vrot.slane %v7163_v38, 5 }
 0x425   : > { %v12487_v43 = vadd.f32 %v9133_v3, %v5445_v63  ;;  %v5443_v28 = vadd.f32 %v5364_v15, %v12344_v24  ;;  %v7162_v3 = vrot.slane %v7160_v16, 4 }
 0x426   : > { %v9100_v27 = vpop.f32.mrf.mxu1  ;;  %v9137_v51 = vpop.f32.mrf.mxu0 }
 0x427   : > { %v12490_v44 = vadd.f32 %v5690_v13, %v5443_v28  ;;  %v5446_v14 = vadd.f32 %v9100_v27, %v12350_v20  ;;  %v7171_v13 = vrot.slane %v7169_v37, 5  ;;  %v7166_v28 = vor.u32 %v7165_v0, %v7162_v3 }
 0x428   : > { %v5367_v45 = vpop.f32.mrf.mxu1  ;;  %v5706_v7 = vpop.f32.mrf.mxu0 }
 0x429   : > { %v12493_v40 = vadd.f32 %v9134_v59, %v5446_v14  ;;  %v5444_v53 = vadd.f32 %v5367_v45, %v12354_v36 }
 0x42a   : > { %v9103_v60 = vpop.f32.mrf.mxu1  ;;  %9306 = vmatmul.mubr.msk.bf16.gmra.mxu1 %vm1106_vm8, %v12346_v52  ;;  %v9138_v24 = vpop.f32.mrf.mxu0  ;;  %v7179_v52 = vshll.u32 %v6250_v61, 16 }
 0x42b   : > { %v12498_v62 = vadd.f32 %v5693_v50, %v5444_v53  ;;  %v5449_v20 = vadd.f32 %v9103_v60, %v12362_v8  ;;  %9309 = vmatprep.mubr.msk.bf16.mxu1 %vm1106_vm8, %v12369_v34  ;;  %v7176_v8 = vor.u32 %v7175_v18, %v7171_v13 }
 0x42c   : > { %v5380_v31 = vpop.f32.mrf.mxu1  ;;  %v5709_v59 = vpop.f32.mrf.mxu0  ;;  %v7181_v14 = vrot.slane %v7179_v52, 5 }
 0x42d   : > { %v12503_v36 = vadd.f32 %v9137_v51, %v5449_v20  ;;  %v5447_v63 = vadd.f32 %v5380_v31, %v12374_v5  ;;  %v7177_v45 = vrot.slane %v7176_v8, 4 }
 0x42e   : > { %v9104_v6 = vpop.f32.mrf.mxu1  ;;  %v9141_v15 = vpop.f32.mrf.mxu0 }
 0x42f   : > { %v12506_v54 = vadd.f32 %v5706_v7, %v5447_v63  ;;  %v5450_v50 = vadd.f32 %v9104_v6, %v12380_v48  ;;  %v7167_v48 = vrot.slane %v7166_v28, 4 }
 0x430   : > { %v5383_v27 = vpop.f32.mrf.mxu1  ;;  %v5722_v16 = vpop.f32.mrf.mxu0 }
 0x431   : > { %v12509_v34 = vadd.f32 %v9138_v24, %v5450_v50  ;;  %v5448_v38 = vadd.f32 %v5383_v27, %v12384_v12  ;;  %v7182_v24 = vsel %vm10123_vm13, %v7177_v45, %v7181_v14 }
 0x432   : > { %v9107_v51 = vpop.f32.mrf.mxu1  ;;  %9310 = vmatmul.mubr.msk.bf16.gmra.mxu1 %vm1106_vm8, %v12376_v29  ;;  %v9142_v5 = vpop.f32.mrf.mxu0 }
 0x433   : > { %v12514_v37 = vadd.f32 %v5709_v59, %v5448_v38  ;;  %v5453_v39 = vadd.f32 %v9107_v51, %v12390_v23  ;;  %9313 = vmatprep.mubr.msk.bf16.mxu1 %vm1106_vm8, %v12396_v41  ;;  %v7172_v41 = vsel %vm10123_vm13, %v7167_v48, %v7171_v13 }
 0x434   : > { %v5396_v7 = vpop.f32.mrf.mxu1  ;;  %v5725_v53 = vpop.f32.mrf.mxu0  ;;  %v8314_v20 = vcombine.low %v7172_v41, %v7182_v24 }
 0x435   : > { %v12519_v60 = vadd.f32 %v9141_v15, %v5453_v39  ;;  %v5451_v12 = vadd.f32 %v5396_v7, %v12398_v46 }
 0x436   : > { %v9108_v29 = vpop.f32.mrf.mxu1  ;;  %v9145_v61 = vpop.f32.mrf.mxu0 }
 0x437   : > { %v12524_v3 = vadd.f32 %v5722_v16, %v5451_v12  ;;  %v5454_v23 = vadd.f32 %v9108_v29, %v12402_v49 }
 0x438   : > { %v5399_v0 = vpop.f32.mrf.mxu1  ;;  %v5738_v18 = vpop.f32.mrf.mxu0 }
 0x439   : > { %v12529_v31 = vadd.f32 %v9142_v5, %v5454_v23  ;;  %v5452_v59 = vadd.f32 %v5399_v0, %v12404_v33 }
 0x43a   : > { %v9111_v46 = vpop.f32.mrf.mxu1  ;;  %9314 = vmatmul.mubr.msk.bf16.gmra.mxu1 %vm1106_vm8, %v8314_v20  ;;  %v9146_v63 = vpop.f32.mrf.mxu0 }
 0x43b   : > { %v12533_v52 = vadd.f32 %v5725_v53, %v5452_v59  ;;  %v5457_v6 = vadd.f32 %v9111_v46, %v12408_v47 }
 0x43c   : > { %v5412_v15 = vpop.f32.mrf.mxu1  ;;  %v5741_v49 = vpop.f32.mrf.mxu0 }
 0x43d   : > { %v12536_v50 = vadd.f32 %v9145_v61, %v5457_v6  ;;  %v5455_v58 = vadd.f32 %v5412_v15, %v12412_v55 }
 0x43e   : > { %v9112_v13 = vpop.f32.mrf.mxu1  ;;  %v9185_v28 = vpop.f32.mrf.mxu0 }
 0x43f   : > { %v12539_v8 = vadd.f32 %v5738_v18, %v5455_v58  ;;  %v5458_v33 = vadd.f32 %v9112_v13, %v12414_v4 }
 0x440   : > { %v5415_v27 = vpop.f32.mrf.mxu1  ;;  %v6038_v16 = vpop.f32.mrf.mxu0 }
 0x441   : > { %v12542_v38 = vadd.f32 %v9146_v63, %v5458_v33  ;;  %v5456_v14 = vadd.f32 %v5415_v27, %v12416_v10 }
 0x442   : > { %v9151_v51 = vpop.f32.mrf.mxu1  ;;  %v9186_v47 = vpop.f32.mrf.mxu0 }
 0x443   : > { %v12545_v5 = vadd.f32 %v5741_v49, %v5456_v14  ;;  %v5961_v39 = vadd.f32 %v9151_v51, %v12423_v1 }
 0x444   : > { %v5832_v48 = vpop.f32.mrf.mxu1  ;;  %v12548_v55 = vpop.f32.mrf.mxu0 }
 0x445   : > { %v12550_v45 = vadd.f32 %v9185_v28, %v5961_v39  ;;  %v5959_v7 = vadd.f32 %v5832_v48, %v12426_v35 }
 0x446   : > { %v9152_v4 = vpop.f32.mrf.mxu1  ;;  %v9189_v53 = vpop.f32.mrf.mxu0 }
 0x447   : > { %v12553_v12 = vadd.f32 %v6038_v16, %v5959_v7  ;;  %v5962_v24 = vadd.f32 %v9152_v4, %v12429_v32 }
 0x448   : > { %v5835_v10 = vpop.f32.mrf.mxu1  ;;  %v12556_v29 = vpop.f32.mrf.mxu0 }
 0x449   : > { %v12558_v61 = vadd.f32 %v9186_v47, %v5962_v24  ;;  %v12561_v1 = vadd.f32 %v5835_v10, %v12434_v2 }
 0x44a   : > { %v9155_v23 = vpop.f32.mrf.mxu1  ;;  %v9190_v41 = vpop.f32.mrf.mxu0 }
 0x44b   : > { %v5965_v0 = vadd.f32 %v9155_v23, %v12439_v57 }
 0x44c   : > { %v5848_v20 = vpop.f32.mrf.mxu1  ;;  %v12564_v35 = vpop.f32.mrf.mxu0 }
 0x44d   : > { %v12566_v18 = vadd.f32 %v9189_v53, %v5965_v0  ;;  %v12569_v59 = vadd.f32 %v5848_v20, %v12442_v11 }
 0x44e   : > { %v9156_v32 = vpop.f32.mrf.mxu1  ;;  %v9193_v46 = vpop.f32.mrf.mxu0 }
 0x44f   : > { %v5966_v63 = vadd.f32 %v9156_v32, %v12445_v26 }
 0x450   : > { %v5851_v6 = vpop.f32.mrf.mxu1  ;;  %v12572_v15 = vpop.f32.mrf.mxu0 }
 0x451   : > { %v12574_v2 = vadd.f32 %v9190_v41, %v5966_v63  ;;  %v12577_v49 = vadd.f32 %v5851_v6, %v12450_v42 }
 0x452   : > { %v9159_v57 = vpop.f32.mrf.mxu1  ;;  %v9194_v58 = vpop.f32.mrf.mxu0 }
 0x453   : > { %v5969_v13 = vadd.f32 %v9159_v57, %v12455_v30 }
 0x454   : > { %v5864_v28 = vpop.f32.mrf.mxu1  ;;  %v12580_v33 = vpop.f32.mrf.mxu0 }
 0x455   : > { %v12582_v11 = vadd.f32 %v9193_v46, %v5969_v13  ;;  %v12585_v27 = vadd.f32 %v5864_v28, %v12458_v56 }
 0x456   : > { %v9160_v26 = vpop.f32.mrf.mxu1  ;;  %v9197_v16 = vpop.f32.mrf.mxu0 }
 0x457   : > { %v5970_v14 = vadd.f32 %v9160_v26, %v12461_v17 }
 0x458   : > { %v5867_v51 = vpop.f32.mrf.mxu1  ;;  %v12588_v47 = vpop.f32.mrf.mxu0 }
 0x459   : > { %v12590_v42 = vadd.f32 %v9194_v58, %v5970_v14  ;;  %v12593_v39 = vadd.f32 %v5867_v51, %v12466_v25 }
 0x45a   : > { %v9163_v30 = vpop.f32.mrf.mxu1  ;;  %v9198_v48 = vpop.f32.mrf.mxu0 }
 0x45b   : > { %v5973_v7 = vadd.f32 %v9163_v30, %v12471_v19 }
 0x45c   : > { %v5880_v4 = vpop.f32.mrf.mxu1  ;;  %v12596_v53 = vpop.f32.mrf.mxu0 }
 0x45d   : > { %v12598_v56 = vadd.f32 %v9197_v16, %v5973_v7  ;;  %v12601_v24 = vadd.f32 %v5880_v4, %v12474_v9 }
 0x45e   : > { %v9164_v17 = vpop.f32.mrf.mxu1  ;;  %v9201_v10 = vpop.f32.mrf.mxu0 }
 0x45f   : > { %v5974_v23 = vadd.f32 %v9164_v17, %v12477_v21 }
 0x460   : > { %v5883_v41 = vpop.f32.mrf.mxu1  ;;  %v12604_v0 = vpop.f32.mrf.mxu0 }
 0x461   : > { %v12606_v25 = vadd.f32 %v9198_v48, %v5974_v23  ;;  %v12609_v20 = vadd.f32 %v5883_v41, %v12482_v22 }
 0x462   : > { %v9167_v19 = vpop.f32.mrf.mxu1  ;;  %v9202_v32 = vpop.f32.mrf.mxu0 }
 0x463   : > { %v5977_v46 = vadd.f32 %v9167_v19, %v12487_v43 }
 0x464   : > { %v5896_v63 = vpop.f32.mrf.mxu1  ;;  %v12612_v6 = vpop.f32.mrf.mxu0 }
 0x465   : > { %v12614_v9 = vadd.f32 %v9201_v10, %v5977_v46  ;;  %v12617_v57 = vadd.f32 %v5896_v63, %v12490_v44 }
 0x466   : > { %v9168_v21 = vpop.f32.mrf.mxu1  ;;  %v9205_v58 = vpop.f32.mrf.mxu0 }
 0x467   : > { %v5978_v13 = vadd.f32 %v9168_v21, %v12493_v40 }
 0x468   : > { %v5899_v28 = vpop.f32.mrf.mxu1  ;;  %v12620_v26 = vpop.f32.mrf.mxu0 }
 0x469   : > { %13562 = vst [vmem:[#allocation23_spill] sm:$0xff] %v12620_v26  ;;  %v12622_v22 = vadd.f32 %v9202_v32, %v5978_v13  ;;  %v12625_v16 = vadd.f32 %v5899_v28, %v12498_v62 }
 0x46a   : > { %v9171_v43 = vpop.f32.mrf.mxu1  ;;  %v9206_v14 = vpop.f32.mrf.mxu0 }
 0x46b   : > { %v5981_v51 = vadd.f32 %v9171_v43, %v12503_v36 }
 0x46c   : > { %v5912_v30 = vpop.f32.mrf.mxu1  ;;  %v12628_v48 = vpop.f32.mrf.mxu0 }
 0x46d   : > { %13563 = vst [vmem:[#allocation22_spill] sm:$0xff] %v12628_v48  ;;  %v12630_v44 = vadd.f32 %v9205_v58, %v5981_v51  ;;  %v12633_v7 = vadd.f32 %v5912_v30, %v12506_v54 }
 0x46e   : > { %v9172_v40 = vpop.f32.mrf.mxu1  ;;  %v9209_v4 = vpop.f32.mrf.mxu0 }
 0x46f   : > { %13564 = vst [vmem:[#allocation18_spill] sm:$0xff] %v12633_v7  ;;  %v5982_v17 = vadd.f32 %v9172_v40, %v12509_v34 }
 0x470   : > { %v5915_v10 = vpop.f32.mrf.mxu1  ;;  %v12636_v23 = vpop.f32.mrf.mxu0 }
 0x471   : > { %13565 = vst [vmem:[#allocation38_spill] sm:$0xff] %v12636_v23  ;;  %v12638_v62 = vadd.f32 %v9206_v14, %v5982_v17  ;;  %v12641_v41 = vadd.f32 %v5915_v10, %v12514_v37 }
 0x472   : > { %v9175_v36 = vpop.f32.mrf.mxu1  ;;  %v9210_v19 = vpop.f32.mrf.mxu0 }
 0x473   : > { %13566 = vst [vmem:[#allocation42_spill] sm:$0xff] %v12641_v41  ;;  %v5985_v32 = vadd.f32 %v9175_v36, %v12519_v60 }
 0x474   : > { %v5928_v46 = vpop.f32.mrf.mxu1  ;;  %v12644_v63 = vpop.f32.mrf.mxu0 }
 0x475   : > { %13567 = vst [vmem:[#allocation24_spill] sm:$0xff] %v12644_v63  ;;  %v12646_v54 = vadd.f32 %v9209_v4, %v5985_v32  ;;  %v12649_v21 = vadd.f32 %v5928_v46, %v12524_v3 }
 0x476   : > { %v9176_v34 = vpop.f32.mrf.mxu1  ;;  %v9213_v58 = vpop.f32.mrf.mxu0 }
 0x477   : > { %13568 = vst [vmem:[#allocation39_spill] sm:$0xff] %v12649_v21  ;;  %v5986_v13 = vadd.f32 %v9176_v34, %v12529_v31 }
 0x478   : > { %v5931_v28 = vpop.f32.mrf.mxu1  ;;  %v12652_v43 = vpop.f32.mrf.mxu0 }
 0x479   : > { %13569 = vst [vmem:[#allocation14_spill] sm:$0xff] %v12652_v43  ;;  %v12654_v37 = vadd.f32 %v9210_v19, %v5986_v13  ;;  %v12657_v14 = vadd.f32 %v5931_v28, %v12533_v52 }
 0x47a   : > { %v9179_v60 = vpop.f32.mrf.mxu1  ;;  %v9214_v51 = vpop.f32.mrf.mxu0 }
 0x47b   : > { %13570 = vst [vmem:[#allocation44_spill] sm:$0xff] %v12657_v14  ;;  %v5989_v30 = vadd.f32 %v9179_v60, %v12536_v50 }
 0x47c   : > { %v5944_v40 = vpop.f32.mrf.mxu1  ;;  %v12665_v31 = vpop.f32.mrf.mxu0 }
 0x47d   : > { %v12660_v4 = vadd.f32 %v9213_v58, %v5989_v30  ;;  %v12663_v3 = vadd.f32 %v5944_v40, %v12539_v8  ;;  %13572 = vst [vmem:[#allocation10_spill] sm:$0xff] %v12665_v31 }
 0x47e   : > { %v9180_v17 = vpop.f32.mrf.mxu1  ;;  %v12673_v46 = vpop.f32.mrf.mxu0 }
 0x47f   : > { %13571 = vst [vmem:[#allocation9_spill] sm:$0xff] %v12663_v3  ;;  %v5990_v10 = vadd.f32 %v9180_v17, %v12542_v38 }
 0x480   : > { %v5947_v36 = vpop.f32.mrf.mxu1  ;;  %v12681_v58 = vpop.f32.mrf.mxu0 }
 0x481   : > { %v12668_v19 = vadd.f32 %v9214_v51, %v5990_v10  ;;  %v12671_v52 = vadd.f32 %v5947_v36, %v12545_v5 }
 0x482   : > { %v9219_v32 = vpop.f32.mrf.mxu1  ;;  %v12686_v60 = vpop.f32.mrf.mxu0 }
 0x483   : > { %13573 = vst [vmem:[#allocation29_spill] sm:$0xff] %v12671_v52  ;;  %v12676_v50 = vadd.f32 %v9219_v32, %v12550_v45 }
 0x484   : > { %v6770_v34 = vpop.f32.mrf.mxu1  ;;  %v12691_v45 = vpop.f32.mrf.mxu0 }
 0x485   : > { %v12679_v8 = vadd.f32 %v6770_v34, %v12553_v12 }
 0x486   : > { %v9220_v13 = vpop.f32.mrf.mxu1  ;;  %v12698_v10 = vpop.f32.mrf.mxu0 }
 0x487   : > { %v12684_v38 = vadd.f32 %v9220_v13, %v12558_v61 }
 0x488   : > { %v6773_v28 = vpop.f32.mrf.mxu1  ;;  %v7014_v34 = vpop.f32.mrf.mxu0 }
 0x48a   : > { %v9223_v5 = vpop.f32.mrf.mxu1  ;;  %v12710_v31 = vpop.f32.mrf.mxu0 }
 0x48b   : > { %v12689_v51 = vadd.f32 %v9223_v5, %v12566_v18 }
 0x48c   : > { %v6786_v30 = vpop.f32.mrf.mxu1  ;;  %v12717_v43 = vpop.f32.mrf.mxu0 }
 0x48e   : > { %v9224_v40 = vpop.f32.mrf.mxu1 }
 0x48f   : > { %v12694_v12 = vadd.f32 %v9224_v40, %v12574_v2 }
 0x490   : > { %v12696_v17 = vpop.f32.mrf.mxu1 }
 0x492   : > { %v9227_v61 = vpop.f32.mrf.mxu1 }
 0x493   : > { %v12701_v36 = vadd.f32 %v9227_v61, %v12582_v11 }
 0x494   : > { %v12703_v32 = vpop.f32.mrf.mxu1 }
 0x496   : > { %v9228_v18 = vpop.f32.mrf.mxu1 }
 0x497   : > { %v12706_v13 = vadd.f32 %v9228_v18, %v12590_v42  ;;  %v12724_v42 = vpop.f32.mrf.mxu0 }
 0x498   : > { %v12708_v5 = vpop.f32.mrf.mxu1 }
 0x49a   : > { %v9231_v2 = vpop.f32.mrf.mxu1 }
 0x49b   : > { %v12713_v40 = vadd.f32 %v9231_v2, %v12598_v56  ;;  %v12731_v56 = vpop.f32.mrf.mxu0 }
 0x49c   : > { %v12715_v52 = vpop.f32.mrf.mxu1 }
 0x49e   : > { %v9232_v11 = vpop.f32.mrf.mxu1 }
 0x49f   : > { %v12720_v61 = vadd.f32 %v9232_v11, %v12606_v25  ;;  %v12738_v25 = vpop.f32.mrf.mxu0 }
 0x4a0   : > { %v12722_v3 = vpop.f32.mrf.mxu1 }
 0x4a2   : > { %v9235_v18 = vpop.f32.mrf.mxu1 }
 0x4a3   : > { %v12727_v63 = vadd.f32 %v9235_v18, %v12614_v9  ;;  %v12745_v9 = vpop.f32.mrf.mxu0 }
 0x4a4   : > { %v12729_v14 = vpop.f32.mrf.mxu1 }
 0x4a5   : > { %13574 = vst [vmem:[#allocation27_spill] sm:$0xff] %v12727_v63 }
 0x4a6   : > { %v9236_v2 = vpop.f32.mrf.mxu1 }
 0x4a7   : > { %v12734_v23 = vadd.f32 %v9236_v2, %v12622_v22  ;;  %v12752_v22 = vpop.f32.mrf.mxu0 }
 0x4a8   : > { %v12736_v21 = vpop.f32.mrf.mxu1 }
 0x4a9   : > { %13575 = vst [vmem:[#allocation26_spill] sm:$0xff] %v12734_v23  ;;  %13576 = vst [vmem:[#allocation20_spill] sm:$0xff] %v12736_v21 }
 0x4aa   : > { %v9239_v11 = vpop.f32.mrf.mxu1 }
 0x4ab   : > { %v12741_v48 = vadd.f32 %v9239_v11, %v12630_v44  ;;  %v12759_v44 = vpop.f32.mrf.mxu0 }
 0x4ac   : > { %v12743_v41 = vpop.f32.mrf.mxu1 }
 0x4ad   : > { %13577 = vst [vmem:[#allocation41_spill] sm:$0xff] %v12741_v48  ;;  %13578 = vst [vmem:[#allocation46_spill] sm:$0xff] %v12743_v41 }
 0x4ae   : > { %v9240_v18 = vpop.f32.mrf.mxu1 }
 0x4af   : > { %v12748_v63 = vadd.f32 %v9240_v18, %v12638_v62  ;;  %v12766_v62 = vpop.f32.mrf.mxu0 }
 0x4b0   : > { %v12750_v26 = vpop.f32.mrf.mxu1 }
 0x4b1   : > { %13579 = vst [vmem:[#allocation28_spill] sm:$0xff] %v12748_v63  ;;  %13580 = vst [vmem:[#allocation43_spill] sm:$0xff] %v12750_v26 }
 0x4b2   : > { %v9243_v2 = vpop.f32.mrf.mxu1 }
 0x4b3   : > { %v12755_v23 = vadd.f32 %v9243_v2, %v12646_v54  ;;  %v12773_v54 = vpop.f32.mrf.mxu0 }
 0x4b4   : > { %v12757_v7 = vpop.f32.mrf.mxu1 }
 0x4b5   : > { %13581 = vst [vmem:[#allocation17_spill] sm:$0xff] %v12755_v23  ;;  %13582 = vst [vmem:[#allocation48_spill] sm:$0xff] %v12757_v7 }
 0x4b6   : > { %v9244_v11 = vpop.f32.mrf.mxu1 }
 0x4b7   : > { %v12762_v48 = vadd.f32 %v9244_v11, %v12654_v37  ;;  %v6166_v37 = vadd.f32 %v12548_v55, %v12561_v1  ;;  %v12782_v11 = vpop.f32.mrf.mxu0 }
 0x4b8   : > { %v12764_v41 = vpop.f32.mrf.mxu1 }
 0x4b9   : > { %13583 = vst [vmem:[#allocation11_spill] sm:$0xff] %v12762_v48  ;;  %13584 = vst [vmem:[#allocation12_spill] sm:$0xff] %v12764_v41  ;;  %v6898_v41 = vadd.f32 %v6773_v28, %v6166_v37  ;;  %v12788_v21 = vpop.f32.mrf.mxu0  ;;  %v6170_v28 = vadd.f32 %v12564_v35, %v12577_v49 }
 0x4ba   : > { %v9247_v18 = vpop.f32.mrf.mxu1 }
 0x4bb   : > { %v12769_v63 = vadd.f32 %v9247_v18, %v12660_v4  ;;  %v6169_v4 = vadd.f32 %v12556_v29, %v12569_v59  ;;  %v7126_v55 = vadd.f32 %v12691_v45, %v6898_v41  ;;  %v7128_v29 = vadd.f32 %v12686_v60, %v12684_v38 }
 0x4bc   : > { %v12771_v26 = vpop.f32.mrf.mxu1 }
 0x4bd   : > { %13585 = vst [vmem:[#allocation33_spill] sm:$0xff] %v12769_v63  ;;  %13586 = vst [vmem:[#allocation31_spill] sm:$0xff] %v12771_v26  ;;  %v7125_v63 = vadd.f32 %v12681_v58, %v12679_v8  ;;  %v6901_v26 = vadd.f32 %v6786_v30, %v6169_v4  ;;  %v12803_v30 = vpop.f32.mrf.mxu0 }
 0x4be   : > { %v9248_v2 = vpop.f32.mrf.mxu1 }
 0x4bf   : > { %v12776_v23 = vadd.f32 %v9248_v2, %v12668_v19  ;;  %v7127_v2 = vadd.f32 %v12673_v46, %v12676_v50  ;;  %v7129_v58 = vadd.f32 %v7014_v34, %v6901_v26  ;;  %v6902_v46 = vadd.f32 %v12696_v17, %v6170_v28  ;;  %v12818_v38 = vpop.f32.mrf.mxu0 }
 0x4c0   : > { %v12778_v7 = vpop.f32.mrf.mxu1  ;;  %v7131_v17 = vadd.f32 %v12698_v10, %v12689_v51 }
 0x4c1   : > { %13587 = vst [vmem:[#allocation30_spill] sm:$0xff] %v12776_v23  ;;  %v7130_v34 = vadd.f32 %v12717_v43, %v6902_v46  ;;  %v12836_v43 = vpop.f32.mrf.mxu0 }
 0x4c2   : > { %v9287_v48 = vpop.f32.mrf.mxu1 }
 0x4c3   : > { %v12799_v59 = vadd.f32 %v9287_v48, %v7127_v2  ;;  %v6173_v48 = vadd.f32 %v12572_v15, %v12585_v27  ;;  %v6174_v15 = vadd.f32 %v12580_v33, %v12593_v39  ;;  %v7132_v2 = vadd.f32 %v12710_v31, %v12694_v12 }
 0x4c4   : > { %v7226_v18 = vpop.f32.mrf.mxu1 }
 0x4c5   : > { %v12793_v1 = vadd.f32 %v7226_v18, %v7125_v63  ;;  %v7388_v26 = vsel %vm1106_vm8, %v12799_v59, 0.0  ;;  %v6905_v4 = vadd.f32 %v12703_v32, %v6173_v48  ;;  %v6906_v33 = vadd.f32 %v12708_v5, %v6174_v15 }
 0x4c6   : > { %v9288_v19 = vpop.f32.mrf.mxu1  ;;  %v7135_v5 = vadd.f32 %v12724_v42, %v12701_v36  ;;  %v6181_v15 = vadd.f32 %v12604_v0, %v12617_v57  ;;  %v6182_v0 = vadd.f32 %v12612_v6, %v12625_v16 }
 0x4c7   : > { %v7385_v41 = vsel %vm1106_vm8, %v12793_v1, 0.0  ;;  %v12808_v63 = vadd.f32 %v9288_v19, %v7128_v29  ;;  %v7133_v29 = vadd.f32 %v12731_v56, %v6905_v4 }
 0x4c8   : > { %v7229_v23 = vpop.f32.mrf.mxu1 }
 0x4c9   : > { %v12801_v8 = vadd.f32 %v7229_v23, %v7126_v55  ;;  %v7390_v18 = vsel %vm1106_vm8, %v12808_v63, 0.0 }
 0x4ca   : > { %v9291_v37 = vpop.f32.mrf.mxu1 }
 0x4cb   : > { %v7386_v35 = vsel %vm1106_vm8, %v12801_v8, 0.0  ;;  %v12830_v55 = vadd.f32 %v9291_v37, %v7131_v17  ;;  %v6177_v37 = vadd.f32 %v12588_v47, %v12601_v24  ;;  %v6178_v47 = vadd.f32 %v12596_v53, %v12609_v20 }
 0x4cc   : > { %v7387_v49 = vadd.f32 %v7386_v35, %v7385_v41  ;;  %v7242_v50 = vpop.f32.mrf.mxu1  ;;  %v12850_v35 = vpop.f32.mrf.mxu0 }
 0x4cd   : > { %v12816_v23 = vadd.f32 %v7242_v50, %v7129_v58  ;;  %v7396_v46 = vsel %vm1106_vm8, %v12830_v55, 0.0  ;;  %v7134_v50 = vadd.f32 %v12745_v9, %v6906_v33  ;;  %v6909_v48 = vadd.f32 %v12715_v52, %v6177_v37 }
 0x4ce   : > { %v7389_v60 = vadd.f32 %v7388_v26, %v7387_v49  ;;  %v9292_v45 = vpop.f32.mrf.mxu1  ;;  %v12868_v9 = vpop.f32.mrf.mxu0  ;;  %v6910_v53 = vadd.f32 %v12722_v3, %v6178_v47  ;;  %v7139_v3 = vadd.f32 %v12752_v22, %v12713_v40 }
 0x4cf   : > { %v7392_v51 = vsel %vm1106_vm8, %v12816_v23, 0.0  ;;  %v12840_v39 = vadd.f32 %v9292_v45, %v7132_v2  ;;  %v7136_v45 = vadd.f32 %v12738_v25, %v12706_v13  ;;  %v7137_v4 = vadd.f32 %v12759_v44, %v6909_v48 }
 0x4d0   : > { %v7391_v27 = vadd.f32 %v7390_v18, %v7389_v60  ;;  %v7245_v19 = vpop.f32.mrf.mxu1  ;;  %v7081_v2 = vpop.f32.mrf.mxu0 }
 0x4d1   : > { %v12834_v10 = vadd.f32 %v7245_v19, %v7130_v34  ;;  %v7398_v26 = vsel %vm1106_vm8, %v12840_v39, 0.0 }
 0x4d2   : > { %v7393_v32 = vadd.f32 %v7392_v51, %v7391_v27  ;;  %v9295_v28 = vpop.f32.mrf.mxu1 }
 0x4d3   : > { %v7394_v31 = vsel %vm1106_vm8, %v12834_v10, 0.0  ;;  %v12862_v17 = vadd.f32 %v9295_v28, %v7135_v5  ;;  %v6913_v28 = vadd.f32 %v12729_v14, %v6181_v15  ;;  %v13590_v5 = vld [vmem:[#allocation23_spill] sm:$0xff] }
 0x4d4   : > { %v7395_v12 = vadd.f32 %v7394_v31, %v7393_v32  ;;  %v7258_v58 = vpop.f32.mrf.mxu1  ;;  %v7138_v32 = vadd.f32 %v12773_v54, %v6910_v53  ;;  %v7140_v31 = vadd.f32 %v12766_v62, %v12720_v61  ;;  %v12898_v54 = vpop.f32.mrf.mxu0  ;;  %v13593_v53 = vld [vmem:[#allocation42_spill] sm:$0xff] }
 0x4d5   : > { %v12848_v41 = vadd.f32 %v7258_v58, %v7133_v29  ;;  %v7404_v27 = vsel %vm1106_vm8, %v12862_v17, 0.0  ;;  %v7141_v37 = vadd.f32 %v12788_v21, %v6913_v28 }
 0x4d6   : > { %v7397_v56 = vadd.f32 %v7396_v46, %v7395_v12  ;;  %v9296_v49 = vpop.f32.mrf.mxu1  ;;  %v13588_v46 = vld [vmem:[#allocation20_spill] sm:$0xff]  ;;  %v7094_v47 = vpop.f32.mrf.mxu0 }
 0x4d7   : > { %v7400_v36 = vsel %vm1106_vm8, %v12848_v41, 0.0  ;;  %v12872_v20 = vadd.f32 %v9296_v49, %v7136_v45  ;;  %v6914_v6 = vadd.f32 %v13588_v46, %v6182_v0  ;;  %v13589_v49 = vld [vmem:[#allocation18_spill] sm:$0xff]  ;;  %v13596_v0 = vld [vmem:[#allocation43_spill] sm:$0xff] }
 0x4d8   : > { %v7399_v24 = vadd.f32 %v7398_v26, %v7397_v56  ;;  %v7261_v60 = vpop.f32.mrf.mxu1 }
 0x4d9   : > { %v12866_v42 = vadd.f32 %v7261_v60, %v7134_v50  ;;  %v7406_v29 = vsel %vm1106_vm8, %v12872_v20, 0.0  ;;  %v6185_v50 = vadd.f32 %v13590_v5, %v13589_v49  ;;  %v13591_v60 = vld [vmem:[#allocation27_spill] sm:$0xff] }
 0x4da   : > { %v7401_v52 = vadd.f32 %v7400_v36, %v7399_v24  ;;  %v9299_v34 = vpop.f32.mrf.mxu1  ;;  %v7143_v45 = vadd.f32 %v12782_v11, %v13591_v60  ;;  %v7142_v36 = vadd.f32 %v12818_v38, %v6914_v6  ;;  %v9278_v38 = vpop.f32.mrf.mxu0  ;;  %v13602_v60 = vld [vmem:[#allocation24_spill] sm:$0xff] }
 0x4db   : > { %v7402_v13 = vsel %vm1106_vm8, %v12866_v42, 0.0  ;;  %v12892_v12 = vadd.f32 %v9299_v34, %v7139_v3 }
 0x4dc   : > { %v7403_v25 = vadd.f32 %v7402_v13, %v7401_v52  ;;  %v7274_v18 = vpop.f32.mrf.mxu1  ;;  %v13592_v52 = vld [vmem:[#allocation46_spill] sm:$0xff] }
 0x4dd   : > { %v12880_v19 = vadd.f32 %v7274_v18, %v7137_v4  ;;  %v7412_v48 = vsel %vm1106_vm8, %v12892_v12, 0.0  ;;  %v6917_v34 = vadd.f32 %v13592_v52, %v6185_v50  ;;  %v13594_v13 = vld [vmem:[#allocation22_spill] sm:$0xff]  ;;  %v13600_v50 = vld [vmem:[#allocation48_spill] sm:$0xff] }
 0x4de   : > { %v7405_v51 = vadd.f32 %v7404_v27, %v7403_v25  ;;  %v9300_v44 = vpop.f32.mrf.mxu1  ;;  %v6186_v25 = vadd.f32 %v13594_v13, %v13593_v53  ;;  %v13595_v27 = vld [vmem:[#allocation26_spill] sm:$0xff] }
 0x4df   : > { %v7408_v40 = vsel %vm1106_vm8, %v12880_v19, 0.0  ;;  %v12902_v16 = vadd.f32 %v9300_v44, %v7140_v31 }
 0x4e0   : > { %v7407_v57 = vadd.f32 %v7406_v29, %v7405_v51  ;;  %v7277_v33 = vpop.f32.mrf.mxu1  ;;  %v7144_v51 = vadd.f32 %v12803_v30, %v13595_v27  ;;  %v7145_v29 = vadd.f32 %v12850_v35, %v6917_v34  ;;  %v13603_v34 = vld [vmem:[#allocation28_spill] sm:$0xff] }
 0x4e1   : > { %v12896_v22 = vadd.f32 %v7277_v33, %v7138_v32  ;;  %v7414_v4 = vsel %vm1106_vm8, %v12902_v16, 0.0  ;;  %v13604_v27 = vld [vmem:[#allocation12_spill] sm:$0xff] }
 0x4e2   : > { %v7409_v14 = vadd.f32 %v7408_v40, %v7407_v57  ;;  %v9303_v58 = vpop.f32.mrf.mxu1  ;;  %v6918_v57 = vadd.f32 %v13596_v0, %v6186_v25  ;;  %v13606_v0 = vld [vmem:[#allocation14_spill] sm:$0xff] }
 0x4e3   : > { %v7410_v61 = vsel %vm1106_vm8, %v12896_v22, 0.0  ;;  %v12922_v44 = vadd.f32 %v9303_v58, %v7143_v45  ;;  %v13598_v58 = vld [vmem:[#allocation38_spill] sm:$0xff] }
 0x4e4   : > { %v7411_v62 = vadd.f32 %v7410_v61, %v7409_v14  ;;  %v7290_v56 = vpop.f32.mrf.mxu1  ;;  %v13597_v14 = vld [vmem:[#allocation39_spill] sm:$0xff]  ;;  %v7097_v61 = vpop.f32.mrf.mxu0  ;;  %v7146_v5 = vadd.f32 %v7081_v2, %v6918_v57 }
 0x4e5   : > { %v12910_v26 = vadd.f32 %v7290_v56, %v7141_v37  ;;  %v6189_v37 = vadd.f32 %v13598_v58, %v13597_v14  ;;  %v7420_v46 = vsel %vm1106_vm8, %v12922_v44, 0.0  ;;  %v13599_v56 = vld [vmem:[#allocation41_spill] sm:$0xff] }
 0x4e6   : > { %v7413_v24 = vadd.f32 %v7412_v48, %v7411_v62  ;;  %v9304_v21 = vpop.f32.mrf.mxu1  ;;  %v7147_v49 = vadd.f32 %v12836_v43, %v13599_v56  ;;  %v9281_v2 = vpop.f32.mrf.mxu0  ;;  %v13607_v58 = vld [vmem:[#allocation17_spill] sm:$0xff] }
 0x4e7   : > { %v7416_v11 = vsel %vm1106_vm8, %v12910_v26, 0.0  ;;  %v12930_v33 = vadd.f32 %v9304_v21, %v7144_v51  ;;  %v6921_v48 = vadd.f32 %v13600_v50, %v6189_v37  ;;  %v13601_v21 = vld [vmem:[#allocation44_spill] sm:$0xff]  ;;  %v7151_v37 = vadd.f32 %v12898_v54, %v13607_v58  ;;  %v13613_v58 = vld [vmem:[#allocation30_spill] sm:$0xff] }
 0x4e8   : > { %v7415_v18 = vadd.f32 %v7414_v4, %v7413_v24  ;;  %v7293_v15 = vpop.f32.mrf.mxu1  ;;  %v6190_v45 = vadd.f32 %v13602_v60, %v13601_v21  ;;  %v7148_v4 = vadd.f32 %v12868_v9, %v13603_v34  ;;  %v13611_v21 = vld [vmem:[#allocation11_spill] sm:$0xff] }
 0x4e9   : > { %v12926_v3 = vadd.f32 %v7293_v15, %v7142_v36  ;;  %v7422_v24 = vsel %vm1106_vm8, %v12930_v33, 0.0  ;;  %v7149_v15 = vadd.f32 %v7094_v47, %v6921_v48  ;;  %v7152_v60 = vadd.f32 %v9278_v38, %v13611_v21 }
 0x4ea   : > { %v7417_v32 = vadd.f32 %v7416_v11, %v7415_v18  ;;  %v9307_v28 = vpop.f32.mrf.mxu1  ;;  %v6922_v51 = vadd.f32 %v13604_v27, %v6190_v45 }
 0x4eb   : > { %v7418_v31 = vsel %vm1106_vm8, %v12926_v3, 0.0  ;;  %v12949_v53 = vadd.f32 %v9307_v28, %v7147_v49  ;;  %v13605_v28 = vld [vmem:[#allocation9_spill] sm:$0xff] }
 0x4ec   : > { %v7419_v30 = vadd.f32 %v7418_v31, %v7417_v32  ;;  %v7306_v40 = vpop.f32.mrf.mxu1  ;;  %v6193_v57 = vadd.f32 %v13606_v0, %v13605_v28  ;;  %v13609_v49 = vld [vmem:[#allocation29_spill] sm:$0xff] }
 0x4ed   : > { %v12938_v6 = vadd.f32 %v7306_v40, %v7145_v29  ;;  %v7428_v31 = vsel %vm1106_vm8, %v12949_v53, 0.0  ;;  %v7110_v40 = vpop.f32.mrf.mxu0  ;;  %v13612_v28 = vld [vmem:[#allocation33_spill] sm:$0xff] }
 0x4ee   : > { %v7421_v62 = vadd.f32 %v7420_v46, %v7419_v30  ;;  %v9308_v35 = vpop.f32.mrf.mxu1  ;;  %v7150_v46 = vadd.f32 %v7097_v61, %v6922_v51  ;;  %v7155_v0 = vadd.f32 %v9281_v2, %v13612_v28 }
 0x4ef   : > { %v7424_v13 = vsel %vm1106_vm8, %v12938_v6, 0.0  ;;  %v12956_v11 = vadd.f32 %v9308_v35, %v7148_v4  ;;  %v9282_v34 = vpop.f32.mrf.mxu0 }
 0x4f0   : > { %v7423_v36 = vadd.f32 %v7422_v24, %v7421_v62  ;;  %v7309_v52 = vpop.f32.mrf.mxu1  ;;  %v13608_v62 = vld [vmem:[#allocation31_spill] sm:$0xff] }
 0x4f1   : > { %v12953_v43 = vadd.f32 %v7309_v52, %v7146_v5  ;;  %v6925_v35 = vadd.f32 %v13608_v62, %v6193_v57  ;;  %v7430_v56 = vsel %vm1106_vm8, %v12956_v11, 0.0  ;;  %v13610_v5 = vld [vmem:[#allocation10_spill] sm:$0xff]  ;;  %v7113_v38 = vpop.f32.mrf.mxu0 }
 0x4f2   : > { %v7425_v25 = vadd.f32 %v7424_v13, %v7423_v36  ;;  %v9311_v18 = vpop.f32.mrf.mxu1  ;;  %v6194_v50 = vadd.f32 %v13610_v5, %v13609_v49 }
 0x4f3   : > { %v7426_v32 = vsel %vm1106_vm8, %v12953_v43, 0.0  ;;  %v7379_v45 = vadd.f32 %v9311_v18, %v7151_v37  ;;  %v7153_v4 = vadd.f32 %v7110_v40, %v6925_v35 }
 0x4f4   : > { %v7427_v29 = vadd.f32 %v7426_v32, %v7425_v25  ;;  %v7322_v9 = vpop.f32.mrf.mxu1  ;;  %v6926_v13 = vadd.f32 %v12778_v7, %v6194_v50  ;;  %v7156_v7 = vadd.f32 %v9282_v34, %v13613_v58 }
 0x4f5   : > { %v12964_v30 = vadd.f32 %v7322_v9, %v7149_v15  ;;  %v7436_v32 = vsel %vm1106_vm8, %v7379_v45, 0.0 }
 0x4f6   : > { %v7429_v14 = vadd.f32 %v7428_v31, %v7427_v29  ;;  %v9312_v47 = vpop.f32.mrf.mxu1  ;;  %v7154_v57 = vadd.f32 %v7113_v38, %v6926_v13 }
 0x4f7   : > { %v7432_v36 = vsel %vm1106_vm8, %v12964_v30, 0.0  ;;  %v7380_v25 = vadd.f32 %v9312_v47, %v7152_v60 }
 0x4f8   : > { %v7431_v48 = vadd.f32 %v7430_v56, %v7429_v14  ;;  %v7325_v24 = vpop.f32.mrf.mxu1 }
 0x4f9   : > { %v7378_v52 = vadd.f32 %v7325_v24, %v7150_v46  ;;  %v7438_v31 = vsel %vm1106_vm8, %v7380_v25, 0.0 }
 0x4fa   : > { %v7433_v54 = vadd.f32 %v7432_v36, %v7431_v48  ;;  %v9315_v61 = vpop.f32.mrf.mxu1 }
 0x4fb   : > { %v7434_v15 = vsel %vm1106_vm8, %v7378_v52, 0.0  ;;  %v7383_v47 = vadd.f32 %v9315_v61, %v7155_v0 }
 0x4fc   : > { %v7435_v27 = vadd.f32 %v7434_v15, %v7433_v54  ;;  %v7338_v51 = vpop.f32.mrf.mxu1 }
 0x4fd   : > { %v7381_v29 = vadd.f32 %v7338_v51, %v7153_v4  ;;  %v7444_v5 = vsel %vm1106_vm8, %v7383_v47, 0.0 }
 0x4fe   : > { %v7437_v18 = vadd.f32 %v7436_v32, %v7435_v27  ;;  %v9316_v9 = vpop.f32.mrf.mxu1 }
 0x4ff   : > { %v7440_v37 = vsel %vm1106_vm8, %v7381_v29, 0.0  ;;  %v7384_v35 = vadd.f32 %v9316_v9, %v7156_v7 }
 0x500   : > { %v7439_v14 = vadd.f32 %v7438_v31, %v7437_v18  ;;  %v7341_v40 = vpop.f32.mrf.mxu1 }
 0x501   : > { %v7382_v46 = vadd.f32 %v7341_v40, %v7154_v57  ;;  %v7446_v2 = vsel %vm1106_vm8, %v7384_v35, 0.0 }
 0x502   : > { %v7441_v62 = vadd.f32 %v7440_v37, %v7439_v14 }
 0x503   : > { %v7442_v56 = vsel %vm1106_vm8, %v7382_v46, 0.0 }
 0x504   : > { %v7443_v49 = vadd.f32 %v7442_v56, %v7441_v62 }
 0x506   : > { %v7445_v50 = vadd.f32 %v7444_v5, %v7443_v49 }
 0x508   : > { %v7447_v48 = vadd.f32 %v7446_v2, %v7445_v50 }
 0x50a   : > { %v7448_v24 = vrot.slane %v7447_v48, 4 }
 0x50c   : > { %v7449_v21 = vadd.f32 %v7448_v24, %v7447_v48 }
 0x50e   : > { %v7450_v60 = vrot.slane %v7449_v21, 2 }
 0x510   : > { %v7451_v36 = vadd.f32 %v7450_v60, %v7449_v21 }
 0x512   : > { %v7452_v34 = vrot.slane %v7451_v36, 1 }
 0x514   : > { %v7453_v54 = vadd.f32 %v7452_v34, %v7451_v36 }
 0x516   : > { %v7454_v61 = vmul.f32 0.00390625, %v7453_v54 }
 0x518   : > { %v12987_v4 = vsub.f32 %v12866_v42, %v7454_v61  ;;  %v12990_v13 = vsub.f32 %v12880_v19, %v7454_v61  ;;  %v12993_v15 = vsub.f32 %v12896_v22, %v7454_v61  ;;  %v12996_v27 = vsub.f32 %v12892_v12, %v7454_v61 }
 0x519   : > { %v12999_v51 = vsub.f32 %v12902_v16, %v7454_v61  ;;  %v13002_v32 = vsub.f32 %v12910_v26, %v7454_v61  ;;  %v13005_v38 = vsub.f32 %v12926_v3, %v7454_v61  ;;  %v13008_v42 = vsub.f32 %v12922_v44, %v7454_v61 }
 0x51a   : > { %v13011_v19 = vsub.f32 %v12930_v33, %v7454_v61  ;;  %v13014_v22 = vsub.f32 %v12938_v6, %v7454_v61  ;;  %v13017_v12 = vsub.f32 %v12953_v43, %v7454_v61  ;;  %v13020_v16 = vsub.f32 %v12949_v53, %v7454_v61 }
 0x51b   : > { %v13023_v26 = vsub.f32 %v12956_v11, %v7454_v61  ;;  %v13026_v3 = vsub.f32 %v12964_v30, %v7454_v61  ;;  %v13028_v44 = vsub.f32 %v7378_v52, %v7454_v61  ;;  %v13030_v18 = vsub.f32 %v7379_v45, %v7454_v61 }
 0x51c   : > { %v13032_v33 = vsub.f32 %v7380_v25, %v7454_v61  ;;  %v13034_v6 = vsub.f32 %v7381_v29, %v7454_v61  ;;  %v13036_v9 = vsub.f32 %v7382_v46, %v7454_v61  ;;  %v13038_v43 = vsub.f32 %v7383_v47, %v7454_v61 }
 0x51d   : > { %v13040_v53 = vsub.f32 %v7384_v35, %v7454_v61  ;;  %v13043_v11 = vsub.f32 %v12793_v1, %v7454_v61  ;;  %v13046_v30 = vsub.f32 %v12801_v8, %v7454_v61  ;;  %v13049_v52 = vsub.f32 %v12799_v59, %v7454_v61 }
 0x51e   : > { %v13052_v45 = vsub.f32 %v12808_v63, %v7454_v61  ;;  %v13059_v28 = vsub.f32 %v12816_v23, %v7454_v61  ;;  %v13064_v8 = vsub.f32 %v12834_v10, %v7454_v61  ;;  %v13071_v31 = vsub.f32 %v12830_v55, %v7454_v61 }
 0x51f   : > { %v7487_v25 = vmul.f32 %v13043_v11, %v13043_v11  ;;  %v7488_v29 = vmul.f32 %v13046_v30, %v13046_v30  ;;  %v7489_v1 = vmul.f32 %v13049_v52, %v13049_v52  ;;  %v13077_v10 = vsub.f32 %v12840_v39, %v7454_v61 }
 0x520   : > { %v7490_v59 = vmul.f32 %v13052_v45, %v13052_v45  ;;  %v7491_v23 = vmul.f32 %v13059_v28, %v13059_v28  ;;  %v7492_v58 = vmul.f32 %v13064_v8, %v13064_v8  ;;  %v13083_v37 = vsub.f32 %v12848_v41, %v7454_v61 }
 0x521   : > { %v7519_v63 = vsel %vm1106_vm8, %v7487_v25, 0.0  ;;  %v7520_v0 = vsel %vm1106_vm8, %v7488_v29, 0.0  ;;  %v7522_v14 = vsel %vm1106_vm8, %v7489_v1, 0.0  ;;  %v7493_v55 = vmul.f32 %v13071_v31, %v13071_v31 }
 0x522   : > { %v7521_v57 = vadd.f32 %v7520_v0, %v7519_v63  ;;  %v7524_v7 = vsel %vm1106_vm8, %v7490_v59, 0.0  ;;  %v7526_v46 = vsel %vm1106_vm8, %v7491_v23, 0.0  ;;  %v7494_v35 = vmul.f32 %v13077_v10, %v13077_v10 }
 0x523   : > { %v7528_v39 = vsel %vm1106_vm8, %v7492_v58, 0.0  ;;  %v13092_v49 = vsub.f32 %v12862_v17, %v7454_v61  ;;  %v7495_v5 = vmul.f32 %v13083_v37, %v13083_v37  ;;  %v7530_v41 = vsel %vm1106_vm8, %v7493_v55, 0.0 }
 0x524   : > { %v7523_v40 = vadd.f32 %v7522_v14, %v7521_v57  ;;  %v13098_v2 = vsub.f32 %v12872_v20, %v7454_v61  ;;  %v7496_v48 = vmul.f32 %v12987_v4, %v12987_v4  ;;  %v7532_v24 = vsel %vm1106_vm8, %v7494_v35, 0.0 }
 0x525   : > { %v7497_v60 = vmul.f32 %v13092_v49, %v13092_v49  ;;  %v7534_v17 = vsel %vm1106_vm8, %v7495_v5, 0.0  ;;  %v7499_v20 = vmul.f32 %v12990_v13, %v12990_v13  ;;  %v7500_v1 = vmul.f32 %v12993_v15, %v12993_v15 }
 0x526   : > { %v7525_v47 = vadd.f32 %v7524_v7, %v7523_v40  ;;  %v7498_v34 = vmul.f32 %v13098_v2, %v13098_v2  ;;  %v7536_v54 = vsel %vm1106_vm8, %v7496_v48, 0.0  ;;  %v7501_v0 = vmul.f32 %v12996_v27, %v12996_v27 }
 0x527   : > { %v7538_v61 = vsel %vm1106_vm8, %v7497_v60, 0.0  ;;  %v7542_v57 = vsel %vm1106_vm8, %v7499_v20, 0.0  ;;  %v7502_v14 = vmul.f32 %v12999_v51, %v12999_v51  ;;  %v7544_v40 = vsel %vm1106_vm8, %v7500_v1, 0.0 }
 0x528   : > { %v7527_v62 = vadd.f32 %v7526_v46, %v7525_v47  ;;  %v7540_v59 = vsel %vm1106_vm8, %v7498_v34, 0.0  ;;  %v7503_v7 = vmul.f32 %v13002_v32, %v13002_v32  ;;  %v7546_v47 = vsel %vm1106_vm8, %v7501_v0, 0.0 }
 0x529   : > { %v7504_v46 = vmul.f32 %v13005_v38, %v13005_v38 }
 0x52a   : > { %v7529_v56 = vadd.f32 %v7528_v39, %v7527_v62  ;;  %v7548_v62 = vsel %vm1106_vm8, %v7502_v14, 0.0  ;;  %v7505_v39 = vmul.f32 %v13008_v42, %v13008_v42 }
 0x52c   : > { %v7531_v50 = vadd.f32 %v7530_v41, %v7529_v56  ;;  %v7550_v56 = vsel %vm1106_vm8, %v7503_v7, 0.0  ;;  %v7506_v41 = vmul.f32 %v13011_v19, %v13011_v19 }
 0x52e   : > { %v7533_v21 = vadd.f32 %v7532_v24, %v7531_v50  ;;  %v7552_v50 = vsel %vm1106_vm8, %v7504_v46, 0.0  ;;  %v7507_v24 = vmul.f32 %v13014_v22, %v13014_v22 }
 0x530   : > { %v7535_v36 = vadd.f32 %v7534_v17, %v7533_v21  ;;  %v7554_v21 = vsel %vm1106_vm8, %v7505_v39, 0.0  ;;  %v7508_v17 = vmul.f32 %v13017_v12, %v13017_v12 }
 0x532   : > { %v7537_v25 = vadd.f32 %v7536_v54, %v7535_v36  ;;  %v7556_v36 = vsel %vm1106_vm8, %v7506_v41, 0.0  ;;  %v7509_v54 = vmul.f32 %v13020_v16, %v13020_v16 }
 0x534   : > { %v7539_v29 = vadd.f32 %v7538_v61, %v7537_v25  ;;  %v7558_v25 = vsel %vm1106_vm8, %v7507_v24, 0.0  ;;  %v7510_v61 = vmul.f32 %v13023_v26, %v13023_v26 }
 0x536   : > { %v7541_v63 = vadd.f32 %v7540_v59, %v7539_v29  ;;  %v7560_v29 = vsel %vm1106_vm8, %v7508_v17, 0.0  ;;  %v7511_v59 = vmul.f32 %v13026_v3, %v13026_v3 }
 0x538   : > { %v7543_v23 = vadd.f32 %v7542_v57, %v7541_v63  ;;  %v7562_v63 = vsel %vm1106_vm8, %v7509_v54, 0.0  ;;  %v7512_v57 = vmul.f32 %v13028_v44, %v13028_v44 }
 0x53a   : > { %v7545_v58 = vadd.f32 %v7544_v40, %v7543_v23  ;;  %v7564_v23 = vsel %vm1106_vm8, %v7510_v61, 0.0  ;;  %v7513_v40 = vmul.f32 %v13030_v18, %v13030_v18 }
 0x53c   : > { %v7547_v55 = vadd.f32 %v7546_v47, %v7545_v58  ;;  %v7566_v58 = vsel %vm1106_vm8, %v7511_v59, 0.0  ;;  %v7514_v47 = vmul.f32 %v13032_v33, %v13032_v33 }
 0x53e   : > { %v7549_v35 = vadd.f32 %v7548_v62, %v7547_v55  ;;  %v7568_v55 = vsel %vm1106_vm8, %v7512_v57, 0.0  ;;  %v7515_v62 = vmul.f32 %v13034_v6, %v13034_v6 }
 0x540   : > { %v7551_v5 = vadd.f32 %v7550_v56, %v7549_v35  ;;  %v7570_v35 = vsel %vm1106_vm8, %v7513_v40, 0.0  ;;  %v7516_v56 = vmul.f32 %v13036_v9, %v13036_v9 }
 0x542   : > { %v7553_v48 = vadd.f32 %v7552_v50, %v7551_v5  ;;  %v7572_v5 = vsel %vm1106_vm8, %v7514_v47, 0.0  ;;  %v7517_v50 = vmul.f32 %v13038_v43, %v13038_v43 }
 0x544   : > { %v7555_v60 = vadd.f32 %v7554_v21, %v7553_v48  ;;  %v7574_v48 = vsel %vm1106_vm8, %v7515_v62, 0.0  ;;  %v7518_v21 = vmul.f32 %v13040_v53, %v13040_v53 }
 0x546   : > { %v7557_v34 = vadd.f32 %v7556_v36, %v7555_v60  ;;  %v7576_v60 = vsel %vm1106_vm8, %v7516_v56, 0.0  ;;  %v7578_v36 = vsel %vm1106_vm8, %v7517_v50, 0.0  ;;  %v7580_v54 = vsel %vm1106_vm8, %v7518_v21, 0.0  ;;  %v7629_v56 = vld [vmem:[%s9429_s23 + $0x30] sm:$0xff]  ;;  %v7632_v50 = vld [vmem:[%s9429_s23 + $0x48] sm:$0xff]  ;;  %v7635_v21 = vld [vmem:[%s9429_s23 + $0x60] sm:$0xff] }
 0x548   : > { %v7559_v20 = vadd.f32 %v7558_v25, %v7557_v34 }
 0x54a   : > { %v7561_v1 = vadd.f32 %v7560_v29, %v7559_v20 }
 0x54c   : > { %v7563_v0 = vadd.f32 %v7562_v63, %v7561_v1 }
 0x54e   : > { %v7565_v14 = vadd.f32 %v7564_v23, %v7563_v0 }
 0x550   : > { %v7567_v7 = vadd.f32 %v7566_v58, %v7565_v14 }
 0x552   : > { %v7569_v46 = vadd.f32 %v7568_v55, %v7567_v7 }
 0x554   : > { %v7571_v39 = vadd.f32 %v7570_v35, %v7569_v46 }
 0x556   : > { %v7573_v41 = vadd.f32 %v7572_v5, %v7571_v39  ;;  %v7628_v39 = vld [vmem:[%s9429_s23 + $0x28] sm:$0xff]  ;;  %v7630_v5 = vld [vmem:[%s9429_s23 + $0x38] sm:$0xff] }
 0x558   : > { %v7575_v24 = vadd.f32 %v7574_v48, %v7573_v41  ;;  %v7631_v41 = vld [vmem:[%s9429_s23 + $0x40] sm:$0xff]  ;;  %v7633_v48 = vld [vmem:[%s9429_s23 + $0x50] sm:$0xff] }
 0x55a   : > { %v7577_v17 = vadd.f32 %v7576_v60, %v7575_v24  ;;  %v7636_v60 = vld [vmem:[%s9429_s23 + $0x68] sm:$0xff] }
 0x55c   : > { %v7579_v34 = vadd.f32 %v7578_v36, %v7577_v17  ;;  %v7637_v17 = vld [vmem:[%s9429_s23 + $0x70] sm:$0xff]  ;;  %v7638_v36 = vld [vmem:[%s9429_s23 + $0x78] sm:$0xff] }
 0x55e   : > { %v7581_v25 = vadd.f32 %v7580_v54, %v7579_v34  ;;  %v7639_v34 = vld [vmem:[%s9429_s23 + $0x80] sm:$0xff]  ;;  %v7640_v54 = vld [vmem:[%s9429_s23 + $0x88] sm:$0xff] }
 0x560   : > { %v7582_v20 = vrot.slane %v7581_v25, 4 }
 0x562   : > { %v7583_v61 = vadd.f32 %v7582_v20, %v7581_v25  ;;  %v7641_v25 = vld [vmem:[%s9429_s23 + $0x90] sm:$0xff] }
 0x564   : > { %v7584_v29 = vrot.slane %v7583_v61, 2 }
 0x566   : > { %v7585_v1 = vadd.f32 %v7584_v29, %v7583_v61 }
 0x568   : > { %v7586_v59 = vrot.slane %v7585_v1, 1 }
 0x56a   : > { %v7587_v63 = vadd.f32 %v7586_v59, %v7585_v1  ;;  %v7644_v1 = vld [vmem:[%s9429_s23 + $0xa8] sm:$0xff] }
 0x56c   : > { %v7588_v0 = vmul.f32 0.00390625, %v7587_v63 }
 0x56e   : > { %v7589_v57 = vadd.f32 1e-05, %v7588_v0 }
 0x570   : > { %9366 = vrsqrt.f32 %v7589_v57 }
 0x57d   : > { %v9367_v23 = vpop.eup %9366 }
 0x57e   : > { %v7591_v14 = vmul.f32 %v9367_v23, %v13043_v11  ;;  %v7592_v40 = vmul.f32 %v9367_v23, %v13046_v30  ;;  %v7593_v58 = vmul.f32 %v9367_v23, %v13049_v52  ;;  %v7594_v7 = vmul.f32 %v9367_v23, %v13052_v45 }
 0x57f   : > { %v7595_v47 = vmul.f32 %v9367_v23, %v13059_v28  ;;  %v7596_v55 = vmul.f32 %v9367_v23, %v13064_v8  ;;  %v7597_v46 = vmul.f32 %v9367_v23, %v13071_v31  ;;  %v7598_v62 = vmul.f32 %v9367_v23, %v13077_v10 }
 0x580   : > { %v7599_v11 = vmul.f32 %v9367_v23, %v13083_v37  ;;  %v7600_v30 = vmul.f32 %v9367_v23, %v12987_v4  ;;  %v7601_v52 = vmul.f32 %v9367_v23, %v13092_v49  ;;  %v7602_v45 = vmul.f32 %v9367_v23, %v13098_v2  ;;  %v7623_v4 = vld [vmem:[%s9429_s23] sm:$0xff]  ;;  %v7624_v37 = vld [vmem:[%s9429_s23 + $0x8] sm:$0xff]  ;;  %v7625_v49 = vld [vmem:[%s9429_s23 + $0x10] sm:$0xff] }
 0x581   : > { %v13184_v28 = vmul.f32 %v9367_v23, %v12990_v13  ;;  %v13187_v8 = vmul.f32 %v9367_v23, %v12993_v15  ;;  %v13190_v31 = vmul.f32 %v9367_v23, %v12996_v27  ;;  %v13193_v10 = vmul.f32 %v9367_v23, %v12999_v51  ;;  %v7626_v2 = vld [vmem:[%s9429_s23 + $0x18] sm:$0xff]  ;;  %v7627_v51 = vld [vmem:[%s9429_s23 + $0x20] sm:$0xff] }
 0x582   : > { %v13200_v35 = vmul.f32 %v9367_v23, %v13002_v32  ;;  %v13203_v13 = vmul.f32 %v9367_v23, %v13005_v38  ;;  %v13206_v15 = vmul.f32 %v9367_v23, %v13008_v42  ;;  %v13209_v27 = vmul.f32 %v9367_v23, %v13011_v19 }
 0x583   : > { %v13216_v32 = vmul.f32 %v9367_v23, %v13014_v22  ;;  %v13219_v38 = vmul.f32 %v9367_v23, %v13017_v12  ;;  %v13222_v42 = vmul.f32 %v9367_v23, %v13020_v16  ;;  %v13225_v19 = vmul.f32 %v9367_v23, %v13023_v26  ;;  %v7634_v26 = vld [vmem:[%s9429_s23 + $0x58] sm:$0xff] }
 0x584   : > { %v13231_v24 = vmul.f32 %v9367_v23, %v13026_v3  ;;  %v13234_v22 = vmul.f32 %v9367_v23, %v13028_v44  ;;  %v13237_v12 = vmul.f32 %v9367_v23, %v13030_v18  ;;  %v13240_v16 = vmul.f32 %v9367_v23, %v13032_v33 }
 0x585   : > { %v13253_v3 = vmul.f32 %v9367_v23, %v13034_v6  ;;  %v13256_v44 = vmul.f32 %v9367_v23, %v13036_v9  ;;  %v13259_v18 = vmul.f32 %v9367_v23, %v13038_v43  ;;  %v13262_v33 = vmul.f32 %v9367_v23, %v13040_v53  ;;  %v7642_v6 = vld [vmem:[%s9429_s23 + $0x98] sm:$0xff]  ;;  %v7643_v43 = vld [vmem:[%s9429_s23 + $0xa0] sm:$0xff]  ;;  %v7645_v53 = vld [vmem:[%s9429_s23 + $0xb0] sm:$0xff] }
 0x586   : > { %v7655_v20 = vadd.f32 %v7623_v4, %v7591_v14  ;;  %v7656_v61 = vadd.f32 %v7624_v37, %v7592_v40  ;;  %v7657_v29 = vadd.f32 %v7625_v49, %v7593_v58  ;;  %v7658_v9 = vadd.f32 %v7626_v2, %v7594_v7  ;;  %v7646_v23 = vld [vmem:[%s9429_s23 + $0xb8] sm:$0xff]  ;;  %v7648_v14 = vld [vmem:[%s9429_s23 + $0xc8] sm:$0xff] }
 0x587   : > { %13614 = vst [vmem:[#allocation8_spill] sm:$0xff] %v13262_v33  ;;  %v7659_v59 = vadd.f32 %v7627_v51, %v7595_v47  ;;  %v7660_v63 = vadd.f32 %v7628_v39, %v7596_v55  ;;  %v7661_v0 = vadd.f32 %v7629_v56, %v7597_v46  ;;  %v7662_v57 = vadd.f32 %v7630_v5, %v7598_v62  ;;  %v7647_v33 = vld [vmem:[%s9429_s23 + $0xc0] sm:$0xff]  ;;  %v7649_v47 = vld [vmem:[%s9429_s23 + $0xd0] sm:$0xff]  ;;  %v7650_v55 = vld [vmem:[%s9429_s23 + $0xd8] sm:$0xff] }
 0x588   : > { %v7663_v40 = vadd.f32 %v7631_v41, %v7599_v11  ;;  %v7664_v58 = vadd.f32 %v7632_v50, %v7600_v30  ;;  %v7665_v7 = vadd.f32 %v7633_v48, %v7601_v52  ;;  %v7666_v4 = vadd.f32 %v7634_v26, %v7602_v45  ;;  %7687 = vst.msk [vmem:[%s13250_s6] sm:$0xff] %vm1106_vm8, %v7655_v20  ;;  %v7651_v46 = vld [vmem:[%s9429_s23 + $0xe0] sm:$0xff]  ;;  %v7652_v45 = vld [vmem:[%s9429_s23 + $0xe8] sm:$0xff] }
 0x589   : > { %7688 = vst.msk [vmem:[%s13250_s6 + $0x8] sm:$0xff] %vm1106_vm8, %v7656_v61  ;;  %7689 = vst.msk [vmem:[%s13250_s6 + $0x10] sm:$0xff] %vm1106_vm8, %v7657_v29  ;;  %v7667_v62 = vadd.f32 %v7635_v21, %v13184_v28  ;;  %v7668_v11 = vadd.f32 %v7636_v60, %v13187_v8  ;;  %v7669_v30 = vadd.f32 %v7637_v17, %v13190_v31  ;;  %v7653_v28 = vld [vmem:[%s9429_s23 + $0xf0] sm:$0xff]  ;;  %v7654_v8 = vld [vmem:[%s9429_s23 + $0xf8] sm:$0xff] }
 0x58a   : > { %7690 = vst.msk [vmem:[%s13250_s6 + $0x18] sm:$0xff] %vm1106_vm8, %v7658_v9  ;;  %v7670_v52 = vadd.f32 %v7638_v36, %v13193_v10  ;;  %7691 = vst.msk [vmem:[%s13250_s6 + $0x20] sm:$0xff] %vm1106_vm8, %v7659_v59  ;;  %v7671_v31 = vadd.f32 %v7639_v34, %v13200_v35  ;;  %v7672_v37 = vadd.f32 %v7640_v54, %v13203_v13 }
 0x58b   : > { %7692 = vst.msk [vmem:[%s13250_s6 + $0x28] sm:$0xff] %vm1106_vm8, %v7660_v63  ;;  %7693 = vst.msk [vmem:[%s13250_s6 + $0x30] sm:$0xff] %vm1106_vm8, %v7661_v0  ;;  %v7673_v10 = vadd.f32 %v7641_v25, %v13206_v15  ;;  %v7674_v49 = vadd.f32 %v7642_v6, %v13209_v27  ;;  %v7675_v2 = vadd.f32 %v7643_v43, %v13216_v32 }
 0x58c   : > { %7694 = vst.msk [vmem:[%s13250_s6 + $0x38] sm:$0xff] %vm1106_vm8, %v7662_v57  ;;  %7695 = vst.msk [vmem:[%s13250_s6 + $0x40] sm:$0xff] %vm1106_vm8, %v7663_v40  ;;  %v7676_v35 = vadd.f32 %v7644_v1, %v13219_v38  ;;  %v7677_v13 = vadd.f32 %v7645_v53, %v13222_v42  ;;  %v7678_v15 = vadd.f32 %v7646_v23, %v13225_v19 }
 0x58d   : > { %7696 = vst.msk [vmem:[%s13250_s6 + $0x48] sm:$0xff] %vm1106_vm8, %v7664_v58  ;;  %7697 = vst.msk [vmem:[%s13250_s6 + $0x50] sm:$0xff] %vm1106_vm8, %v7665_v7  ;;  %v7679_v27 = vadd.f32 %v7647_v33, %v13231_v24  ;;  %v7680_v51 = vadd.f32 %v7648_v14, %v13234_v22  ;;  %v7681_v39 = vadd.f32 %v7649_v47, %v13237_v12 }
 0x58e   : > { %7698 = vst.msk [vmem:[%s13250_s6 + $0x58] sm:$0xff] %vm1106_vm8, %v7666_v4  ;;  %7699 = vst.msk [vmem:[%s13250_s6 + $0x60] sm:$0xff] %vm1106_vm8, %v7667_v62  ;;  %v7682_v56 = vadd.f32 %v7650_v55, %v13240_v16  ;;  %v7683_v5 = vadd.f32 %v7651_v46, %v13253_v3  ;;  %v7684_v32 = vadd.f32 %v7652_v45, %v13256_v44  ;;  %v13615_v42 = vld [vmem:[#allocation8_spill] sm:$0xff] }
 0x58f   : > { %7700 = vst.msk [vmem:[%s13250_s6 + $0x68] sm:$0xff] %vm1106_vm8, %v7668_v11  ;;  %7701 = vst.msk [vmem:[%s13250_s6 + $0x70] sm:$0xff] %vm1106_vm8, %v7669_v30  ;;  %v7685_v38 = vadd.f32 %v7653_v28, %v13259_v18  ;;  %v7686_v19 = vadd.f32 %v7654_v8, %v13615_v42 }
 0x590   : > { %7702 = vst.msk [vmem:[%s13250_s6 + $0x78] sm:$0xff] %vm1106_vm8, %v7670_v52  ;;  %7703 = vst.msk [vmem:[%s13250_s6 + $0x80] sm:$0xff] %vm1106_vm8, %v7671_v31 }
 0x591   : > { %7704 = vst.msk [vmem:[%s13250_s6 + $0x88] sm:$0xff] %vm1106_vm8, %v7672_v37  ;;  %7705 = vst.msk [vmem:[%s13250_s6 + $0x90] sm:$0xff] %vm1106_vm8, %v7673_v10 }
 0x592   : > { %7706 = vst.msk [vmem:[%s13250_s6 + $0x98] sm:$0xff] %vm1106_vm8, %v7674_v49  ;;  %7707 = vst.msk [vmem:[%s13250_s6 + $0xa0] sm:$0xff] %vm1106_vm8, %v7675_v2 }
 0x593   : > { %7708 = vst.msk [vmem:[%s13250_s6 + $0xa8] sm:$0xff] %vm1106_vm8, %v7676_v35  ;;  %7709 = vst.msk [vmem:[%s13250_s6 + $0xb0] sm:$0xff] %vm1106_vm8, %v7677_v13 }
 0x594   : > { %7710 = vst.msk [vmem:[%s13250_s6 + $0xb8] sm:$0xff] %vm1106_vm8, %v7678_v15  ;;  %7711 = vst.msk [vmem:[%s13250_s6 + $0xc0] sm:$0xff] %vm1106_vm8, %v7679_v27 }
 0x595   : > { %7712 = vst.msk [vmem:[%s13250_s6 + $0xc8] sm:$0xff] %vm1106_vm8, %v7680_v51  ;;  %7713 = vst.msk [vmem:[%s13250_s6 + $0xd0] sm:$0xff] %vm1106_vm8, %v7681_v39 }
 0x596   : > { %7714 = vst.msk [vmem:[%s13250_s6 + $0xd8] sm:$0xff] %vm1106_vm8, %v7682_v56  ;;  %7715 = vst.msk [vmem:[%s13250_s6 + $0xe0] sm:$0xff] %vm1106_vm8, %v7683_v5 }
 0x597   : > { %7716 = vst.msk [vmem:[%s13250_s6 + $0xe8] sm:$0xff] %vm1106_vm8, %v7684_v32  ;;  %7717 = vst.msk [vmem:[%s13250_s6 + $0xf0] sm:$0xff] %vm1106_vm8, %v7685_v38 }
 0x598   : > { %7718 = vst.msk [vmem:[%s13250_s6 + $0xf8] sm:$0xff] %vm1106_vm8, %v7686_v19 }
 0x599 PF: > { %s13_s12 = sadd.s32 1, %s9374_s12  }
 0x59a   : > { %p10_p4 = scmp.ge.s32.totalorder %s13_s12, 4  }
 0x59c   :  { %12 = sbr.rel (!%p10_p4) target bundleno = 1 (0x1), region = 80 }

</bundles_post_ra>
